<compile_context>
chip_gen: v6e
topology: v6e:2x2x1
jax: 0.10.0
libtpu: 0.0.40
codegen_flags: <defaults>
</compile_context>

<pallas_src>
import functools
import math

import numpy as np
import jax
import jax.numpy as jnp
from jax.experimental import pallas as pl
from jax.experimental.pallas import tpu as pltpu

PAD_ID = 0

_LAYER_PARAM_ORDER = ('wqkv', 'bqkv', 'wo', 'bo', 'ln1_g', 'ln1_b',
                      'w1', 'b1', 'w2', 'b2', 'ln2_g', 'ln2_b')

_VMEM_LIMIT = 48 * 1024 * 1024   # > v5e/v6e/v7x scoped defaults, < v7x physical 64 MiB


# ----------------------------------------------------------------------------
# Fused transformer-encoder-layer (post-norm, ReLU FFN, dropout=identity)
# ----------------------------------------------------------------------------
def _layer_norm(x, g, b, eps):
    mu = jnp.mean(x, axis=-1, keepdims=True)
    var = jnp.mean((x - mu) ** 2, axis=-1, keepdims=True)
    return (x - mu) * jax.lax.rsqrt(var + eps) * g + b


def _encoder_layer_body(x_ref, keep_ref,
                        wqkv_ref, bqkv_ref, wo_ref, bo_ref,
                        ln1g_ref, ln1b_ref, w1_ref, b1_ref,
                        w2_ref, b2_ref, ln2g_ref, ln2b_ref,
                        *, nhead, eps):
    """One post-norm encoder layer on a (bn, S, E) VMEM block -> (bn*S, E) fp32."""
    bn, S, E = x_ref.shape
    Dh = E // nhead
    scale = 1.0 / math.sqrt(Dh)

    xf = x_ref[...].reshape(bn * S, E)                 # fp32 activations
    xb = xf.astype(jnp.bfloat16)

    # ---- fused QKV projection: single full-width bf16 GEMM ----
    qkv = jnp.dot(xb, wqkv_ref[...],
                  preferred_element_type=jnp.float32) + bqkv_ref[...]     # (bn*S, 3E)

    # additive key-padding bias: 0 for real keys, -1e9 for PAD keys
    neg_bias = ((keep_ref[...] - 1.0) * 1e9)[:, None, :]                  # (bn, 1, Sk)

    # ---- attention: static loop over heads (nhead small); q/k/v are static lane
    #      slices of the fused QKV output; per-head batched einsums over the batch
    #      dim; head outputs are concatenated and fed to ONE output-projection GEMM.
    head_outs = []
    for h in range(nhead):
        qh = qkv[:, h * Dh:(h + 1) * Dh].reshape(bn, S, Dh).astype(jnp.bfloat16)
        kh = qkv[:, E + h * Dh:E + (h + 1) * Dh].reshape(bn, S, Dh).astype(jnp.bfloat16)
        vh = qkv[:, 2 * E + h * Dh:2 * E + (h + 1) * Dh].reshape(bn, S, Dh).astype(jnp.bfloat16)

        s = jnp.einsum('bqd,bkd->bqk', qh, kh,
                       preferred_element_type=jnp.float32) * scale + neg_bias
        m = jnp.max(s, axis=-1, keepdims=True)
        p = jnp.exp(s - m)
        den = jnp.sum(p, axis=-1, keepdims=True)
        p = p * pl.reciprocal(den, approx=True)        # EUP slot, nearly free
        oh = jnp.einsum('bqk,bkd->bqd', p.astype(jnp.bfloat16), vh,
                        preferred_element_type=jnp.float32)               # (bn, S, Dh)
        head_outs.append(oh.reshape(bn * S, Dh))

    heads = jnp.concatenate(head_outs, axis=-1)                           # (bn*S, E)
    attn = jnp.dot(heads.astype(jnp.bfloat16), wo_ref[...],
                   preferred_element_type=jnp.float32) + bo_ref[...]

    # residual + LayerNorm1 (fp32)
    x1 = _layer_norm(xf + attn, ln1g_ref[...], ln1b_ref[...], eps)

    # FFN: linear -> ReLU -> linear (bf16 GEMMs, fp32 accumulation / elementwise)
    hid = jnp.dot(x1.astype(jnp.bfloat16), w1_ref[...],
                  preferred_element_type=jnp.float32) + b1_ref[...]
    hid = jnp.maximum(hid, 0.0)
    ffn = jnp.dot(hid.astype(jnp.bfloat16), w2_ref[...],
                  preferred_element_type=jnp.float32) + b2_ref[...]

    # residual + LayerNorm2 (fp32)
    return _layer_norm(x1 + ffn, ln2g_ref[...], ln2b_ref[...], eps)        # (bn*S, E)


def _encoder_layer_kernel(x_ref, keep_ref, *args, nhead, eps):
    *w_refs, o_ref = args
    bn, S, E = x_ref.shape
    x2 = _encoder_layer_body(x_ref, keep_ref, *w_refs, nhead=nhead, eps=eps)
    o_ref[...] = x2.reshape(bn, S, E)


def _encoder_layer_pool_kernel(x_ref, keep_ref, *args, nhead, eps):
    """Encoder layer + masked mean over the sequence axis fused: out (bn, E)."""
    *w_refs, o_ref = args
    bn, S, E = x_ref.shape
    x2 = _encoder_layer_body(x_ref, keep_ref, *w_refs, nhead=nhead, eps=eps)
    keep = keep_ref[...]                                                   # (bn, S)
    num = jnp.sum(x2.reshape(bn, S, E) * keep[:, :, None], axis=1)         # (bn, E)
    den = jnp.maximum(jnp.sum(keep, axis=1, keepdims=True), 1.0)           # clamp: no /0
    o_ref[...] = num * pl.reciprocal(den, approx=True)


def _pick_block(n, target):
    """Largest divisor of n that is <= target (keeps grid tiling exact)."""
    b = max(1, min(target, n))
    while n % b:
        b -= 1
    return b


def _layer_cost(n_rows, seq, e, nhid, nhead):
    dh = e // nhead
    gemm_flops = 2 * n_rows * seq * e * (4 * e + 2 * nhid)       # QKV + out-proj + FFN
    attn_flops = 4 * n_rows * nhead * seq * seq * dh             # QK^T + PV
    weight_bytes = 2 * (4 * e * e + 2 * e * nhid) + 4 * (8 * e + nhid)
    act_bytes = 4 * (2 * n_rows * seq * e + n_rows * seq)
    return pl.CostEstimate(flops=int(gemm_flops + attn_flops),
                           transcendentals=int(n_rows * nhead * seq * seq),
                           bytes_accessed=int(weight_bytes + act_bytes))


def fused_encoder_layer(x, keep, p, *, nhead, eps=1e-5, row_block=8, pool=False):
    """One transformer encoder layer as a single pallas_call.

    x:    (N, S, E) fp32 batch-major activations
    keep: (N, S)    fp32 mask (1 = real token, 0 = PAD)
    pool: if True, also masked-mean over S and return (N, E); else return (N, S, E).
    """
    N, S, E = x.shape
    nhid = p['w1'].shape[1]
    bn = _pick_block(N, row_block)
    weights = [p[k] for k in _LAYER_PARAM_ORDER]

    def full_spec(arr):
        nd = arr.ndim
        return pl.BlockSpec(arr.shape, lambda i, _nd=nd: (0,) * _nd)

    if pool:
        kernel = _encoder_layer_pool_kernel
        out_shape = jax.ShapeDtypeStruct((N, E), jnp.float32)
        out_spec = pl.BlockSpec((bn, E), lambda i: (i, 0))
    else:
        kernel = _encoder_layer_kernel
        out_shape = jax.ShapeDtypeStruct((N, S, E), jnp.float32)
        out_spec = pl.BlockSpec((bn, S, E), lambda i: (i, 0, 0))

    return pl.pallas_call(
        functools.partial(kernel, nhead=nhead, eps=eps),
        out_shape=out_shape,
        grid=(N // bn,),
        in_specs=[pl.BlockSpec((bn, S, E), lambda i: (i, 0, 0)),
                  pl.BlockSpec((bn, S), lambda i: (i, 0))]
                 + [full_spec(w) for w in weights],
        out_specs=out_spec,
        compiler_params=pltpu.CompilerParams(
            dimension_semantics=("parallel",),
            vmem_limit_bytes=_VMEM_LIMIT),
        cost_estimate=_layer_cost(N, S, E, nhid, nhead),
    )(x, keep, *weights)


# ----------------------------------------------------------------------------
# Decoder + softmax (tiny, gridded over the batch axis)
# ----------------------------------------------------------------------------
def _classify_kernel(x_ref, wd_ref, bd_ref, o_ref):
    logits = jnp.dot(x_ref[...], wd_ref[...],
                     preferred_element_type=jnp.float32) + bd_ref[...]
    m = jnp.max(logits, axis=-1, keepdims=True)
    e = jnp.exp(logits - m)
    # exact division so output probabilities sum to 1 to tight tolerance
    o_ref[...] = e / jnp.sum(e, axis=-1, keepdims=True)


def pallas_classify(pooled, wd, bd, *, row_block=8):
    B, _ = pooled.shape
    C = wd.shape[1]
    rb = _pick_block(B, row_block)
    return pl.pallas_call(
        _classify_kernel,
        out_shape=jax.ShapeDtypeStruct((B, C), jnp.float32),
        grid=(B // rb,),
        in_specs=[pl.BlockSpec((rb, pooled.shape[1]), lambda i: (i, 0)),
                  pl.BlockSpec(wd.shape, lambda i: (0, 0)),
                  pl.BlockSpec(bd.shape, lambda i: (0, 0))],
        out_specs=pl.BlockSpec((rb, C), lambda i: (i, 0)),
        compiler_params=pltpu.CompilerParams(
            dimension_semantics=("parallel",),
            vmem_limit_bytes=_VMEM_LIMIT),
    )(pooled, wd, bd)


# ----------------------------------------------------------------------------
# Model glue (plain JAX around the Pallas kernels)
# ----------------------------------------------------------------------------
def sinusoid_pe(max_len, d):
    pos = np.arange(max_len)[:, None].astype(np.float64)
    div = np.exp(np.arange(0, d, 2).astype(np.float64) * (-math.log(10000.0) / d))
    pe = np.zeros((max_len, d), dtype=np.float64)
    pe[:, 0::2] = np.sin(pos * div)
    pe[:, 1::2] = np.cos(pos * div)
    return jnp.asarray(pe, jnp.float32)


def hit_forward(code_inp, path_inp, params, pe0, pe1, nhead, emsizes,
                path_row_block=8, main_row_block=8):
    B, S = code_inp.shape
    P = path_inp.shape[-1]
    E0, E1 = emsizes

    code_keep = (code_inp != PAD_ID).astype(jnp.float32)                     # (B, S)
    path_keep = (path_inp != PAD_ID).astype(jnp.float32).reshape(B * S, P)   # (B*S, P)

    # token encoders: embedding * sqrt(E) + sinusoidal PE (plain-JAX gather glue)
    code_enc = params['emb0'][code_inp] * math.sqrt(E0) + pe0[None, :S, :]   # (B, S, E0)
    path_enc = (params['emb1'][path_inp.reshape(B * S, P)] * math.sqrt(E1)
                + pe1[None, :P, :])                                          # (B*S, P, E1)

    # path transformer: scan over all-but-last layers, last layer fused with the
    # masked mean over path tokens (saves an HBM round trip of the activations)
    rest = jax.tree_util.tree_map(lambda a: a[:-1], params['path_layers'])
    last = jax.tree_util.tree_map(lambda a: a[-1], params['path_layers'])

    def path_body(x, lp):
        return fused_encoder_layer(x, path_keep, lp, nhead=nhead,
                                   row_block=path_row_block), None
    path_enc, _ = jax.lax.scan(path_body, path_enc, rest)
    path_pooled = fused_encoder_layer(path_enc, path_keep, last, nhead=nhead,
                                      row_block=path_row_block,
                                      pool=True).reshape(B, S, E1)           # (B, S, E1)

    # fuse code + path encodings, main transformer (same scheme)
    src = jnp.concatenate([code_enc, path_pooled], axis=-1)                  # (B, S, E0+E1)
    rest = jax.tree_util.tree_map(lambda a: a[:-1], params['main_layers'])
    last = jax.tree_util.tree_map(lambda a: a[-1], params['main_layers'])

    def main_body(x, lp):
        return fused_encoder_layer(x, code_keep, lp, nhead=nhead,
                                   row_block=main_row_block), None
    src, _ = jax.lax.scan(main_body, src, rest)
    pooled = fused_encoder_layer(src, code_keep, last, nhead=nhead,
                                 row_block=main_row_block, pool=True)        # (B, E)

    # decoder + softmax
    return pallas_classify(pooled, params['dec_w'], params['dec_b'])


# ----------------------------------------------------------------------------
# Deterministic parameter init.  Matmul weights are stored pre-oriented (in, out),
# QKV stacked as one (E, 3E) matrix (Q|K|V column groups, head h = cols h*Dh:(h+1)*Dh
# within each group), and pre-cast ONCE to bf16 (MXU operands).  Biases / LayerNorm
# parameters stay fp32.
# ----------------------------------------------------------------------------
def init_params(key, ntokens, ncls, emsizes, nhead, nhid, nlayers, path_nlayers):
    emsize = sum(emsizes)
    keys = iter(jax.random.split(key, 256))

    def nrm(shape, scale=0.02, dtype=jnp.float32):
        return (jax.random.normal(next(keys), shape, jnp.float32) * scale).astype(dtype)

    def layer_params(e):
        return dict(
            wqkv=nrm((e, 3 * e), dtype=jnp.bfloat16), bqkv=nrm((1, 3 * e)),
            wo=nrm((e, e), dtype=jnp.bfloat16), bo=nrm((1, e)),
            ln1_g=jnp.ones((1, e), jnp.float32), ln1_b=jnp.zeros((1, e), jnp.float32),
            w1=nrm((e, nhid), dtype=jnp.bfloat16), b1=nrm((1, nhid)),
            w2=nrm((nhid, e), dtype=jnp.bfloat16), b2=nrm((1, e)),
            ln2_g=jnp.ones((1, e), jnp.float32), ln2_b=jnp.zeros((1, e), jnp.float32),
        )

    def stack(layers):
        return jax.tree_util.tree_map(lambda *xs: jnp.stack(xs, axis=0), *layers)

    return dict(
        emb0=nrm((ntokens[0], emsizes[0]), 1.0),
        emb1=nrm((ntokens[1], emsizes[1]), 1.0),
        dec_w=nrm((emsize, ncls)), dec_b=nrm((1, ncls)),
        path_layers=stack([layer_params(emsizes[1]) for _ in range(path_nlayers)]),
        main_layers=stack([layer_params(emsize) for _ in range(nlayers)]),
    )


# ----------------------------------------------------------------------------
if __name__ == "__main__":
    # small, model-consistent config; emsize = sum(emsizes) = 128 keeps the main
    # transformer lane-dense (production configs should also make E1/nhid 128-mult.)
    ntokens = [64, 48]
    ncls = 4
    emsizes = (64, 64)       # emsize = 128
    nhead = 4
    nhid = 128
    nlayers = 2
    path_nlayers = 2
    B, S, P = 2, 8, 8

    key = jax.random.PRNGKey(0)
    k_code, k_path, k_param = jax.random.split(key, 3)

    code_inp = jax.random.randint(k_code, (B, S), 0, ntokens[0], dtype=jnp.int32)
    path_inp = jax.random.randint(k_path, (B, S, P), 0, ntokens[1], dtype=jnp.int32)
    # keep at least one non-PAD token per row (fully-padded rows are also handled,
    # via the clamped masked-mean denominator)
    code_inp = code_inp.at[:, 0].set(jnp.maximum(code_inp[:, 0], 1))
    path_inp = path_inp.at[:, :, 0].set(jnp.maximum(path_inp[:, :, 0], 1))

    params = init_params(k_param, ntokens, ncls, emsizes, nhead, nhid,
                         nlayers, path_nlayers)
    pe0 = sinusoid_pe(64, emsizes[0])
    pe1 = sinusoid_pe(64, emsizes[1])

    fwd = jax.jit(lambda c, p, prm: hit_forward(c, p, prm, pe0, pe1, nhead, emsizes))
    prob = jax.block_until_ready(fwd(code_inp, path_inp, params))

    assert prob.shape == (B, ncls)
    assert np.all(np.isfinite(np.asarray(prob)))
    assert np.allclose(np.asarray(prob).sum(axis=1), 1.0, atol=1e-4)
    print("KERNEL_OK")
</pallas_src>

<mosaic_0001>
module attributes {stable_mosaic.version = 11 : i64} {
  func.func @_encoder_layer_kernel(%arg0: i32, %arg1: memref<8x8x64xf32, #tpu.memory_space<vmem>>, %arg2: memref<8x8xf32, #tpu.memory_space<vmem>>, %arg3: memref<64x192xbf16, #tpu.memory_space<vmem>>, %arg4: memref<1x192xf32, #tpu.memory_space<vmem>>, %arg5: memref<64x64xbf16, #tpu.memory_space<vmem>>, %arg6: memref<1x64xf32, #tpu.memory_space<vmem>>, %arg7: memref<1x64xf32, #tpu.memory_space<vmem>>, %arg8: memref<1x64xf32, #tpu.memory_space<vmem>>, %arg9: memref<64x128xbf16, #tpu.memory_space<vmem>>, %arg10: memref<1x128xf32, #tpu.memory_space<vmem>>, %arg11: memref<128x64xbf16, #tpu.memory_space<vmem>>, %arg12: memref<1x64xf32, #tpu.memory_space<vmem>>, %arg13: memref<1x64xf32, #tpu.memory_space<vmem>>, %arg14: memref<1x64xf32, #tpu.memory_space<vmem>>, %arg15: memref<8x8x64xf32, #tpu.memory_space<vmem>>) attributes {dimension_semantics = [#tpu.dimension_semantics<parallel>], iteration_bounds = array<i64: 2>, scalar_prefetch = 0 : i64, scratch_operands = 0 : i64, tpu.core_type = #tpu.core_type<tc>, window_params = [{transform_indices = @transform_0, window_bounds = array<i64: 8, 8, 64>}, {transform_indices = @transform_1, window_bounds = array<i64: 8, 8>}, {pipeline_mode = #tpu.pipeline_mode<synchronous>, transform_indices = @transform_2, window_bounds = array<i64: 64, 192>}, {pipeline_mode = #tpu.pipeline_mode<synchronous>, transform_indices = @transform_3, window_bounds = array<i64: 1, 192>}, {pipeline_mode = #tpu.pipeline_mode<synchronous>, transform_indices = @transform_4, window_bounds = array<i64: 64, 64>}, {pipeline_mode = #tpu.pipeline_mode<synchronous>, transform_indices = @transform_5, window_bounds = array<i64: 1, 64>}, {pipeline_mode = #tpu.pipeline_mode<synchronous>, transform_indices = @transform_6, window_bounds = array<i64: 1, 64>}, {pipeline_mode = #tpu.pipeline_mode<synchronous>, transform_indices = @transform_7, window_bounds = array<i64: 1, 64>}, {pipeline_mode = #tpu.pipeline_mode<synchronous>, transform_indices = @transform_8, window_bounds = array<i64: 64, 128>}, {pipeline_mode = #tpu.pipeline_mode<synchronous>, transform_indices = @transform_9, window_bounds = array<i64: 1, 128>}, {pipeline_mode = #tpu.pipeline_mode<synchronous>, transform_indices = @transform_10, window_bounds = array<i64: 128, 64>}, {pipeline_mode = #tpu.pipeline_mode<synchronous>, transform_indices = @transform_11, window_bounds = array<i64: 1, 64>}, {pipeline_mode = #tpu.pipeline_mode<synchronous>, transform_indices = @transform_12, window_bounds = array<i64: 1, 64>}, {pipeline_mode = #tpu.pipeline_mode<synchronous>, transform_indices = @transform_13, window_bounds = array<i64: 1, 64>}, {transform_indices = @transform_14, window_bounds = array<i64: 8, 8, 64>}]} {
    %c0 = arith.constant 0 : index
    %c0_0 = arith.constant 0 : index
    %c0_1 = arith.constant 0 : index
    %0 = vector.load %arg1[%c0, %c0_0, %c0_1] : memref<8x8x64xf32, #tpu.memory_space<vmem>>, vector<8x8x64xf32>
    %1 = vector.shape_cast %0 : vector<8x8x64xf32> to vector<64x64xf32>
    %2 = arith.truncf %1 : vector<64x64xf32> to vector<64x64xbf16>
    %c0_2 = arith.constant 0 : index
    %c0_3 = arith.constant 0 : index
    %3 = vector.load %arg3[%c0_2, %c0_3] : memref<64x192xbf16, #tpu.memory_space<vmem>>, vector<64x192xbf16>
    %cst = arith.constant dense<0.000000e+00> : vector<64x192xf32>
    %4 = tpu.matmul %2, %3, %cst {dimension_numbers = #tpu.dot_dimension_numbers<[1], [0], [0], [1], [0, 0, 1, 1], [], []>} : vector<64x64xbf16>, vector<64x192xbf16>, vector<64x192xf32> -> vector<64x192xf32>
    %c0_4 = arith.constant 0 : index
    %c0_5 = arith.constant 0 : index
    %5 = vector.load %arg4[%c0_4, %c0_5] : memref<1x192xf32, #tpu.memory_space<vmem>>, vector<1x192xf32>
    %6 = vector.broadcast %5 : vector<1x192xf32> to vector<64x192xf32>
    %7 = arith.addf %4, %6 : vector<64x192xf32>
    %c0_6 = arith.constant 0 : index
    %c0_7 = arith.constant 0 : index
    %8 = vector.load %arg2[%c0_6, %c0_7] : memref<8x8xf32, #tpu.memory_space<vmem>>, vector<8x8xf32>
    %cst_8 = arith.constant 1.000000e+00 : f32
    %9 = vector.broadcast %cst_8 : f32 to vector<8x8xf32>
    %10 = arith.subf %8, %9 : vector<8x8xf32>
    %cst_9 = arith.constant 1.000000e+09 : f32
    %11 = vector.broadcast %cst_9 : f32 to vector<8x8xf32>
    %12 = arith.mulf %10, %11 : vector<8x8xf32>
    %13 = vector.shape_cast %12 : vector<8x8xf32> to vector<8x1x8xf32>
    %14 = vector.extract_strided_slice %7 {offsets = [0, 0], sizes = [64, 16], strides = [1, 1]} : vector<64x192xf32> to vector<64x16xf32>
    %15 = vector.shape_cast %14 : vector<64x16xf32> to vector<8x8x16xf32>
    %16 = arith.truncf %15 : vector<8x8x16xf32> to vector<8x8x16xbf16>
    %17 = vector.extract_strided_slice %7 {offsets = [0, 64], sizes = [64, 16], strides = [1, 1]} : vector<64x192xf32> to vector<64x16xf32>
    %18 = vector.shape_cast %17 : vector<64x16xf32> to vector<8x8x16xf32>
    %19 = arith.truncf %18 : vector<8x8x16xf32> to vector<8x8x16xbf16>
    %20 = vector.extract_strided_slice %7 {offsets = [0, 128], sizes = [64, 16], strides = [1, 1]} : vector<64x192xf32> to vector<64x16xf32>
    %21 = vector.shape_cast %20 : vector<64x16xf32> to vector<8x8x16xf32>
    %22 = arith.truncf %21 : vector<8x8x16xf32> to vector<8x8x16xbf16>
    "tpu.trace_start"() <{level = 10 : i32, message = "bqd,bkd->bqk"}> : () -> ()
    %cst_10 = arith.constant dense<0.000000e+00> : vector<8x8x8xf32>
    %23 = tpu.matmul %16, %19, %cst_10 {dimension_numbers = #tpu.dot_dimension_numbers<[2], [2], [1], [1], [0, 0, 0, 1, 1, 1], [0], [0]>} : vector<8x8x16xbf16>, vector<8x8x16xbf16>, vector<8x8x8xf32> -> vector<8x8x8xf32>
    "tpu.trace_stop"() : () -> ()
    %cst_11 = arith.constant 2.500000e-01 : f32
    %24 = vector.broadcast %cst_11 : f32 to vector<8x8x8xf32>
    %25 = arith.mulf %23, %24 : vector<8x8x8xf32>
    %26 = vector.broadcast %13 : vector<8x1x8xf32> to vector<8x8x8xf32>
    %27 = arith.addf %25, %26 : vector<8x8x8xf32>
    %cst_12 = arith.constant dense<0xFF800000> : vector<8x8xf32>
    %28 = vector.multi_reduction <maximumf>, %27, %cst_12 [2] : vector<8x8x8xf32> to vector<8x8xf32>
    %29 = vector.shape_cast %28 : vector<8x8xf32> to vector<8x8x1xf32>
    %30 = vector.broadcast %29 : vector<8x8x1xf32> to vector<8x8x8xf32>
    %31 = arith.subf %27, %30 : vector<8x8x8xf32>
    %32 = math.exp %31 : vector<8x8x8xf32>
    %cst_13 = arith.constant dense<0.000000e+00> : vector<8x8xf32>
    %33 = vector.multi_reduction <add>, %32, %cst_13 [2] : vector<8x8x8xf32> to vector<8x8xf32>
    %34 = vector.shape_cast %33 : vector<8x8xf32> to vector<8x8x1xf32>
    %35 = tpu.reciprocal %34 {approx = true} : vector<8x8x1xf32> -> vector<8x8x1xf32>
    %36 = vector.broadcast %35 : vector<8x8x1xf32> to vector<8x8x8xf32>
    %37 = arith.mulf %32, %36 : vector<8x8x8xf32>
    %38 = arith.truncf %37 : vector<8x8x8xf32> to vector<8x8x8xbf16>
    "tpu.trace_start"() <{level = 10 : i32, message = "bqk,bkd->bqd"}> : () -> ()
    %cst_14 = arith.constant dense<0.000000e+00> : vector<8x8x16xf32>
    %39 = tpu.matmul %38, %22, %cst_14 {dimension_numbers = #tpu.dot_dimension_numbers<[2], [1], [1], [2], [0, 0, 0, 1, 1, 2], [0], [0]>} : vector<8x8x8xbf16>, vector<8x8x16xbf16>, vector<8x8x16xf32> -> vector<8x8x16xf32>
    "tpu.trace_stop"() : () -> ()
    %40 = vector.shape_cast %39 : vector<8x8x16xf32> to vector<64x16xf32>
    %41 = vector.extract_strided_slice %7 {offsets = [0, 16], sizes = [64, 16], strides = [1, 1]} : vector<64x192xf32> to vector<64x16xf32>
    %42 = vector.shape_cast %41 : vector<64x16xf32> to vector<8x8x16xf32>
    %43 = arith.truncf %42 : vector<8x8x16xf32> to vector<8x8x16xbf16>
    %44 = vector.extract_strided_slice %7 {offsets = [0, 80], sizes = [64, 16], strides = [1, 1]} : vector<64x192xf32> to vector<64x16xf32>
    %45 = vector.shape_cast %44 : vector<64x16xf32> to vector<8x8x16xf32>
    %46 = arith.truncf %45 : vector<8x8x16xf32> to vector<8x8x16xbf16>
    %47 = vector.extract_strided_slice %7 {offsets = [0, 144], sizes = [64, 16], strides = [1, 1]} : vector<64x192xf32> to vector<64x16xf32>
    %48 = vector.shape_cast %47 : vector<64x16xf32> to vector<8x8x16xf32>
    %49 = arith.truncf %48 : vector<8x8x16xf32> to vector<8x8x16xbf16>
    "tpu.trace_start"() <{level = 10 : i32, message = "bqd,bkd->bqk"}> : () -> ()
    %cst_15 = arith.constant dense<0.000000e+00> : vector<8x8x8xf32>
    %50 = tpu.matmul %43, %46, %cst_15 {dimension_numbers = #tpu.dot_dimension_numbers<[2], [2], [1], [1], [0, 0, 0, 1, 1, 1], [0], [0]>} : vector<8x8x16xbf16>, vector<8x8x16xbf16>, vector<8x8x8xf32> -> vector<8x8x8xf32>
    "tpu.trace_stop"() : () -> ()
    %cst_16 = arith.constant 2.500000e-01 : f32
    %51 = vector.broadcast %cst_16 : f32 to vector<8x8x8xf32>
    %52 = arith.mulf %50, %51 : vector<8x8x8xf32>
    %53 = vector.broadcast %13 : vector<8x1x8xf32> to vector<8x8x8xf32>
    %54 = arith.addf %52, %53 : vector<8x8x8xf32>
    %cst_17 = arith.constant dense<0xFF800000> : vector<8x8xf32>
    %55 = vector.multi_reduction <maximumf>, %54, %cst_17 [2] : vector<8x8x8xf32> to vector<8x8xf32>
    %56 = vector.shape_cast %55 : vector<8x8xf32> to vector<8x8x1xf32>
    %57 = vector.broadcast %56 : vector<8x8x1xf32> to vector<8x8x8xf32>
    %58 = arith.subf %54, %57 : vector<8x8x8xf32>
    %59 = math.exp %58 : vector<8x8x8xf32>
    %cst_18 = arith.constant dense<0.000000e+00> : vector<8x8xf32>
    %60 = vector.multi_reduction <add>, %59, %cst_18 [2] : vector<8x8x8xf32> to vector<8x8xf32>
    %61 = vector.shape_cast %60 : vector<8x8xf32> to vector<8x8x1xf32>
    %62 = tpu.reciprocal %61 {approx = true} : vector<8x8x1xf32> -> vector<8x8x1xf32>
    %63 = vector.broadcast %62 : vector<8x8x1xf32> to vector<8x8x8xf32>
    %64 = arith.mulf %59, %63 : vector<8x8x8xf32>
    %65 = arith.truncf %64 : vector<8x8x8xf32> to vector<8x8x8xbf16>
    "tpu.trace_start"() <{level = 10 : i32, message = "bqk,bkd->bqd"}> : () -> ()
    %cst_19 = arith.constant dense<0.000000e+00> : vector<8x8x16xf32>
    %66 = tpu.matmul %65, %49, %cst_19 {dimension_numbers = #tpu.dot_dimension_numbers<[2], [1], [1], [2], [0, 0, 0, 1, 1, 2], [0], [0]>} : vector<8x8x8xbf16>, vector<8x8x16xbf16>, vector<8x8x16xf32> -> vector<8x8x16xf32>
    "tpu.trace_stop"() : () -> ()
    %67 = vector.shape_cast %66 : vector<8x8x16xf32> to vector<64x16xf32>
    %68 = vector.extract_strided_slice %7 {offsets = [0, 32], sizes = [64, 16], strides = [1, 1]} : vector<64x192xf32> to vector<64x16xf32>
    %69 = vector.shape_cast %68 : vector<64x16xf32> to vector<8x8x16xf32>
    %70 = arith.truncf %69 : vector<8x8x16xf32> to vector<8x8x16xbf16>
    %71 = vector.extract_strided_slice %7 {offsets = [0, 96], sizes = [64, 16], strides = [1, 1]} : vector<64x192xf32> to vector<64x16xf32>
    %72 = vector.shape_cast %71 : vector<64x16xf32> to vector<8x8x16xf32>
    %73 = arith.truncf %72 : vector<8x8x16xf32> to vector<8x8x16xbf16>
    %74 = vector.extract_strided_slice %7 {offsets = [0, 160], sizes = [64, 16], strides = [1, 1]} : vector<64x192xf32> to vector<64x16xf32>
    %75 = vector.shape_cast %74 : vector<64x16xf32> to vector<8x8x16xf32>
    %76 = arith.truncf %75 : vector<8x8x16xf32> to vector<8x8x16xbf16>
    "tpu.trace_start"() <{level = 10 : i32, message = "bqd,bkd->bqk"}> : () -> ()
    %cst_20 = arith.constant dense<0.000000e+00> : vector<8x8x8xf32>
    %77 = tpu.matmul %70, %73, %cst_20 {dimension_numbers = #tpu.dot_dimension_numbers<[2], [2], [1], [1], [0, 0, 0, 1, 1, 1], [0], [0]>} : vector<8x8x16xbf16>, vector<8x8x16xbf16>, vector<8x8x8xf32> -> vector<8x8x8xf32>
    "tpu.trace_stop"() : () -> ()
    %cst_21 = arith.constant 2.500000e-01 : f32
    %78 = vector.broadcast %cst_21 : f32 to vector<8x8x8xf32>
    %79 = arith.mulf %77, %78 : vector<8x8x8xf32>
    %80 = vector.broadcast %13 : vector<8x1x8xf32> to vector<8x8x8xf32>
    %81 = arith.addf %79, %80 : vector<8x8x8xf32>
    %cst_22 = arith.constant dense<0xFF800000> : vector<8x8xf32>
    %82 = vector.multi_reduction <maximumf>, %81, %cst_22 [2] : vector<8x8x8xf32> to vector<8x8xf32>
    %83 = vector.shape_cast %82 : vector<8x8xf32> to vector<8x8x1xf32>
    %84 = vector.broadcast %83 : vector<8x8x1xf32> to vector<8x8x8xf32>
    %85 = arith.subf %81, %84 : vector<8x8x8xf32>
    %86 = math.exp %85 : vector<8x8x8xf32>
    %cst_23 = arith.constant dense<0.000000e+00> : vector<8x8xf32>
    %87 = vector.multi_reduction <add>, %86, %cst_23 [2] : vector<8x8x8xf32> to vector<8x8xf32>
    %88 = vector.shape_cast %87 : vector<8x8xf32> to vector<8x8x1xf32>
    %89 = tpu.reciprocal %88 {approx = true} : vector<8x8x1xf32> -> vector<8x8x1xf32>
    %90 = vector.broadcast %89 : vector<8x8x1xf32> to vector<8x8x8xf32>
    %91 = arith.mulf %86, %90 : vector<8x8x8xf32>
    %92 = arith.truncf %91 : vector<8x8x8xf32> to vector<8x8x8xbf16>
    "tpu.trace_start"() <{level = 10 : i32, message = "bqk,bkd->bqd"}> : () -> ()
    %cst_24 = arith.constant dense<0.000000e+00> : vector<8x8x16xf32>
    %93 = tpu.matmul %92, %76, %cst_24 {dimension_numbers = #tpu.dot_dimension_numbers<[2], [1], [1], [2], [0, 0, 0, 1, 1, 2], [0], [0]>} : vector<8x8x8xbf16>, vector<8x8x16xbf16>, vector<8x8x16xf32> -> vector<8x8x16xf32>
    "tpu.trace_stop"() : () -> ()
    %94 = vector.shape_cast %93 : vector<8x8x16xf32> to vector<64x16xf32>
    %95 = vector.extract_strided_slice %7 {offsets = [0, 48], sizes = [64, 16], strides = [1, 1]} : vector<64x192xf32> to vector<64x16xf32>
    %96 = vector.shape_cast %95 : vector<64x16xf32> to vector<8x8x16xf32>
    %97 = arith.truncf %96 : vector<8x8x16xf32> to vector<8x8x16xbf16>
    %98 = vector.extract_strided_slice %7 {offsets = [0, 112], sizes = [64, 16], strides = [1, 1]} : vector<64x192xf32> to vector<64x16xf32>
    %99 = vector.shape_cast %98 : vector<64x16xf32> to vector<8x8x16xf32>
    %100 = arith.truncf %99 : vector<8x8x16xf32> to vector<8x8x16xbf16>
    %101 = vector.extract_strided_slice %7 {offsets = [0, 176], sizes = [64, 16], strides = [1, 1]} : vector<64x192xf32> to vector<64x16xf32>
    %102 = vector.shape_cast %101 : vector<64x16xf32> to vector<8x8x16xf32>
    %103 = arith.truncf %102 : vector<8x8x16xf32> to vector<8x8x16xbf16>
    "tpu.trace_start"() <{level = 10 : i32, message = "bqd,bkd->bqk"}> : () -> ()
    %cst_25 = arith.constant dense<0.000000e+00> : vector<8x8x8xf32>
    %104 = tpu.matmul %97, %100, %cst_25 {dimension_numbers = #tpu.dot_dimension_numbers<[2], [2], [1], [1], [0, 0, 0, 1, 1, 1], [0], [0]>} : vector<8x8x16xbf16>, vector<8x8x16xbf16>, vector<8x8x8xf32> -> vector<8x8x8xf32>
    "tpu.trace_stop"() : () -> ()
    %cst_26 = arith.constant 2.500000e-01 : f32
    %105 = vector.broadcast %cst_26 : f32 to vector<8x8x8xf32>
    %106 = arith.mulf %104, %105 : vector<8x8x8xf32>
    %107 = vector.broadcast %13 : vector<8x1x8xf32> to vector<8x8x8xf32>
    %108 = arith.addf %106, %107 : vector<8x8x8xf32>
    %cst_27 = arith.constant dense<0xFF800000> : vector<8x8xf32>
    %109 = vector.multi_reduction <maximumf>, %108, %cst_27 [2] : vector<8x8x8xf32> to vector<8x8xf32>
    %110 = vector.shape_cast %109 : vector<8x8xf32> to vector<8x8x1xf32>
    %111 = vector.broadcast %110 : vector<8x8x1xf32> to vector<8x8x8xf32>
    %112 = arith.subf %108, %111 : vector<8x8x8xf32>
    %113 = math.exp %112 : vector<8x8x8xf32>
    %cst_28 = arith.constant dense<0.000000e+00> : vector<8x8xf32>
    %114 = vector.multi_reduction <add>, %113, %cst_28 [2] : vector<8x8x8xf32> to vector<8x8xf32>
    %115 = vector.shape_cast %114 : vector<8x8xf32> to vector<8x8x1xf32>
    %116 = tpu.reciprocal %115 {approx = true} : vector<8x8x1xf32> -> vector<8x8x1xf32>
    %117 = vector.broadcast %116 : vector<8x8x1xf32> to vector<8x8x8xf32>
    %118 = arith.mulf %113, %117 : vector<8x8x8xf32>
    %119 = arith.truncf %118 : vector<8x8x8xf32> to vector<8x8x8xbf16>
    "tpu.trace_start"() <{level = 10 : i32, message = "bqk,bkd->bqd"}> : () -> ()
    %cst_29 = arith.constant dense<0.000000e+00> : vector<8x8x16xf32>
    %120 = tpu.matmul %119, %103, %cst_29 {dimension_numbers = #tpu.dot_dimension_numbers<[2], [1], [1], [2], [0, 0, 0, 1, 1, 2], [0], [0]>} : vector<8x8x8xbf16>, vector<8x8x16xbf16>, vector<8x8x16xf32> -> vector<8x8x16xf32>
    "tpu.trace_stop"() : () -> ()
    %121 = vector.shape_cast %120 : vector<8x8x16xf32> to vector<64x16xf32>
    %122 = tpu.concatenate %40, %67, %94, %121 in 1 : vector<64x16xf32>, vector<64x16xf32>, vector<64x16xf32>, vector<64x16xf32> -> vector<64x64xf32>
    %123 = arith.truncf %122 : vector<64x64xf32> to vector<64x64xbf16>
    %c0_30 = arith.constant 0 : index
    %c0_31 = arith.constant 0 : index
    %124 = vector.load %arg5[%c0_30, %c0_31] : memref<64x64xbf16, #tpu.memory_space<vmem>>, vector<64x64xbf16>
    %cst_32 = arith.constant dense<0.000000e+00> : vector<64x64xf32>
    %125 = tpu.matmul %123, %124, %cst_32 {dimension_numbers = #tpu.dot_dimension_numbers<[1], [0], [0], [1], [0, 0, 1, 1], [], []>} : vector<64x64xbf16>, vector<64x64xbf16>, vector<64x64xf32> -> vector<64x64xf32>
    %c0_33 = arith.constant 0 : index
    %c0_34 = arith.constant 0 : index
    %126 = vector.load %arg6[%c0_33, %c0_34] : memref<1x64xf32, #tpu.memory_space<vmem>>, vector<1x64xf32>
    %127 = vector.broadcast %126 : vector<1x64xf32> to vector<64x64xf32>
    %128 = arith.addf %125, %127 : vector<64x64xf32>
    %129 = arith.addf %1, %128 : vector<64x64xf32>
    %c0_35 = arith.constant 0 : index
    %c0_36 = arith.constant 0 : index
    %130 = vector.load %arg7[%c0_35, %c0_36] : memref<1x64xf32, #tpu.memory_space<vmem>>, vector<1x64xf32>
    %c0_37 = arith.constant 0 : index
    %c0_38 = arith.constant 0 : index
    %131 = vector.load %arg8[%c0_37, %c0_38] : memref<1x64xf32, #tpu.memory_space<vmem>>, vector<1x64xf32>
    %cst_39 = arith.constant dense<0.000000e+00> : vector<64xf32>
    %132 = vector.multi_reduction <add>, %129, %cst_39 [1] : vector<64x64xf32> to vector<64xf32>
    %133 = vector.shape_cast %132 : vector<64xf32> to vector<64x1xf32>
    %cst_40 = arith.constant 6.400000e+01 : f32
    %134 = vector.broadcast %cst_40 : f32 to vector<64x1xf32>
    %135 = arith.divf %133, %134 : vector<64x1xf32>
    %136 = vector.broadcast %135 : vector<64x1xf32> to vector<64x64xf32>
    %137 = arith.subf %129, %136 : vector<64x64xf32>
    %138 = arith.mulf %137, %137 : vector<64x64xf32>
    %cst_41 = arith.constant dense<0.000000e+00> : vector<64xf32>
    %139 = vector.multi_reduction <add>, %138, %cst_41 [1] : vector<64x64xf32> to vector<64xf32>
    %140 = vector.shape_cast %139 : vector<64xf32> to vector<64x1xf32>
    %cst_42 = arith.constant 6.400000e+01 : f32
    %141 = vector.broadcast %cst_42 : f32 to vector<64x1xf32>
    %142 = arith.divf %140, %141 : vector<64x1xf32>
    %143 = vector.broadcast %135 : vector<64x1xf32> to vector<64x64xf32>
    %144 = arith.subf %129, %143 : vector<64x64xf32>
    %cst_43 = arith.constant 9.99999974E-6 : f32
    %145 = vector.broadcast %cst_43 : f32 to vector<64x1xf32>
    %146 = arith.addf %142, %145 : vector<64x1xf32>
    %147 = math.rsqrt %146 : vector<64x1xf32>
    %148 = vector.broadcast %147 : vector<64x1xf32> to vector<64x64xf32>
    %149 = arith.mulf %144, %148 : vector<64x64xf32>
    %150 = vector.broadcast %130 : vector<1x64xf32> to vector<64x64xf32>
    %151 = arith.mulf %149, %150 : vector<64x64xf32>
    %152 = vector.broadcast %131 : vector<1x64xf32> to vector<64x64xf32>
    %153 = arith.addf %151, %152 : vector<64x64xf32>
    %154 = arith.truncf %153 : vector<64x64xf32> to vector<64x64xbf16>
    %c0_44 = arith.constant 0 : index
    %c0_45 = arith.constant 0 : index
    %155 = vector.load %arg9[%c0_44, %c0_45] : memref<64x128xbf16, #tpu.memory_space<vmem>>, vector<64x128xbf16>
    %cst_46 = arith.constant dense<0.000000e+00> : vector<64x128xf32>
    %156 = tpu.matmul %154, %155, %cst_46 {dimension_numbers = #tpu.dot_dimension_numbers<[1], [0], [0], [1], [0, 0, 1, 1], [], []>} : vector<64x64xbf16>, vector<64x128xbf16>, vector<64x128xf32> -> vector<64x128xf32>
    %c0_47 = arith.constant 0 : index
    %c0_48 = arith.constant 0 : index
    %157 = vector.load %arg10[%c0_47, %c0_48] : memref<1x128xf32, #tpu.memory_space<vmem>>, vector<1x128xf32>
    %158 = vector.broadcast %157 : vector<1x128xf32> to vector<64x128xf32>
    %159 = arith.addf %156, %158 : vector<64x128xf32>
    %cst_49 = arith.constant 0.000000e+00 : f32
    %160 = vector.broadcast %cst_49 : f32 to vector<64x128xf32>
    %161 = arith.maximumf %159, %160 : vector<64x128xf32>
    %162 = arith.truncf %161 : vector<64x128xf32> to vector<64x128xbf16>
    %c0_50 = arith.constant 0 : index
    %c0_51 = arith.constant 0 : index
    %163 = vector.load %arg11[%c0_50, %c0_51] : memref<128x64xbf16, #tpu.memory_space<vmem>>, vector<128x64xbf16>
    %cst_52 = arith.constant dense<0.000000e+00> : vector<64x64xf32>
    %164 = tpu.matmul %162, %163, %cst_52 {dimension_numbers = #tpu.dot_dimension_numbers<[1], [0], [0], [1], [0, 0, 1, 1], [], []>} : vector<64x128xbf16>, vector<128x64xbf16>, vector<64x64xf32> -> vector<64x64xf32>
    %c0_53 = arith.constant 0 : index
    %c0_54 = arith.constant 0 : index
    %165 = vector.load %arg12[%c0_53, %c0_54] : memref<1x64xf32, #tpu.memory_space<vmem>>, vector<1x64xf32>
    %166 = vector.broadcast %165 : vector<1x64xf32> to vector<64x64xf32>
    %167 = arith.addf %164, %166 : vector<64x64xf32>
    %168 = arith.addf %153, %167 : vector<64x64xf32>
    %c0_55 = arith.constant 0 : index
    %c0_56 = arith.constant 0 : index
    %169 = vector.load %arg13[%c0_55, %c0_56] : memref<1x64xf32, #tpu.memory_space<vmem>>, vector<1x64xf32>
    %c0_57 = arith.constant 0 : index
    %c0_58 = arith.constant 0 : index
    %170 = vector.load %arg14[%c0_57, %c0_58] : memref<1x64xf32, #tpu.memory_space<vmem>>, vector<1x64xf32>
    %cst_59 = arith.constant dense<0.000000e+00> : vector<64xf32>
    %171 = vector.multi_reduction <add>, %168, %cst_59 [1] : vector<64x64xf32> to vector<64xf32>
    %172 = vector.shape_cast %171 : vector<64xf32> to vector<64x1xf32>
    %cst_60 = arith.constant 6.400000e+01 : f32
    %173 = vector.broadcast %cst_60 : f32 to vector<64x1xf32>
    %174 = arith.divf %172, %173 : vector<64x1xf32>
    %175 = vector.broadcast %174 : vector<64x1xf32> to vector<64x64xf32>
    %176 = arith.subf %168, %175 : vector<64x64xf32>
    %177 = arith.mulf %176, %176 : vector<64x64xf32>
    %cst_61 = arith.constant dense<0.000000e+00> : vector<64xf32>
    %178 = vector.multi_reduction <add>, %177, %cst_61 [1] : vector<64x64xf32> to vector<64xf32>
    %179 = vector.shape_cast %178 : vector<64xf32> to vector<64x1xf32>
    %cst_62 = arith.constant 6.400000e+01 : f32
    %180 = vector.broadcast %cst_62 : f32 to vector<64x1xf32>
    %181 = arith.divf %179, %180 : vector<64x1xf32>
    %182 = vector.broadcast %174 : vector<64x1xf32> to vector<64x64xf32>
    %183 = arith.subf %168, %182 : vector<64x64xf32>
    %cst_63 = arith.constant 9.99999974E-6 : f32
    %184 = vector.broadcast %cst_63 : f32 to vector<64x1xf32>
    %185 = arith.addf %181, %184 : vector<64x1xf32>
    %186 = math.rsqrt %185 : vector<64x1xf32>
    %187 = vector.broadcast %186 : vector<64x1xf32> to vector<64x64xf32>
    %188 = arith.mulf %183, %187 : vector<64x64xf32>
    %189 = vector.broadcast %169 : vector<1x64xf32> to vector<64x64xf32>
    %190 = arith.mulf %188, %189 : vector<64x64xf32>
    %191 = vector.broadcast %170 : vector<1x64xf32> to vector<64x64xf32>
    %192 = arith.addf %190, %191 : vector<64x64xf32>
    %193 = vector.shape_cast %192 : vector<64x64xf32> to vector<8x8x64xf32>
    %c0_64 = arith.constant 0 : index
    %c0_65 = arith.constant 0 : index
    %c0_66 = arith.constant 0 : index
    %194 = vector.load %arg15[%c0_64, %c0_65, %c0_66] : memref<8x8x64xf32, #tpu.memory_space<vmem>>, vector<8x8x64xf32>
    tpu.vector_store %arg15[%c0_64, %c0_65, %c0_66], %193 {strides = array<i32>} : memref<8x8x64xf32, #tpu.memory_space<vmem>>, vector<8x8x64xf32>,
    return
  }
  func.func @transform_0(%arg0: i32) -> (i32, i32, i32) {
    %c0_i32 = arith.constant 0 : i32
    %c0_i32_0 = arith.constant 0 : i32
    %c0_i32_1 = arith.constant 0 : i32
    return %arg0, %c0_i32, %c0_i32_0 : i32, i32, i32
  }
  func.func @transform_1(%arg0: i32) -> (i32, i32) {
    %c0_i32 = arith.constant 0 : i32
    %c0_i32_0 = arith.constant 0 : i32
    return %arg0, %c0_i32 : i32, i32
  }
  func.func @transform_2(%arg0: i32) -> (i32, i32) {
    %c0_i32 = arith.constant 0 : i32
    %c0_i32_0 = arith.constant 0 : i32
    %c0_i32_1 = arith.constant 0 : i32
    return %c0_i32, %c0_i32_0 : i32, i32
  }
  func.func @transform_3(%arg0: i32) -> (i32, i32) {
    %c0_i32 = arith.constant 0 : i32
    %c0_i32_0 = arith.constant 0 : i32
    %c0_i32_1 = arith.constant 0 : i32
    return %c0_i32, %c0_i32_0 : i32, i32
  }
  func.func @transform_4(%arg0: i32) -> (i32, i32) {
    %c0_i32 = arith.constant 0 : i32
    %c0_i32_0 = arith.constant 0 : i32
    %c0_i32_1 = arith.constant 0 : i32
    return %c0_i32, %c0_i32_0 : i32, i32
  }
  func.func @transform_5(%arg0: i32) -> (i32, i32) {
    %c0_i32 = arith.constant 0 : i32
    %c0_i32_0 = arith.constant 0 : i32
    %c0_i32_1 = arith.constant 0 : i32
    return %c0_i32, %c0_i32_0 : i32, i32
  }
  func.func @transform_6(%arg0: i32) -> (i32, i32) {
    %c0_i32 = arith.constant 0 : i32
    %c0_i32_0 = arith.constant 0 : i32
    %c0_i32_1 = arith.constant 0 : i32
    return %c0_i32, %c0_i32_0 : i32, i32
  }
  func.func @transform_7(%arg0: i32) -> (i32, i32) {
    %c0_i32 = arith.constant 0 : i32
    %c0_i32_0 = arith.constant 0 : i32
    %c0_i32_1 = arith.constant 0 : i32
    return %c0_i32, %c0_i32_0 : i32, i32
  }
  func.func @transform_8(%arg0: i32) -> (i32, i32) {
    %c0_i32 = arith.constant 0 : i32
    %c0_i32_0 = arith.constant 0 : i32
    %c0_i32_1 = arith.constant 0 : i32
    return %c0_i32, %c0_i32_0 : i32, i32
  }
  func.func @transform_9(%arg0: i32) -> (i32, i32) {
    %c0_i32 = arith.constant 0 : i32
    %c0_i32_0 = arith.constant 0 : i32
    %c0_i32_1 = arith.constant 0 : i32
    return %c0_i32, %c0_i32_0 : i32, i32
  }
  func.func @transform_10(%arg0: i32) -> (i32, i32) {
    %c0_i32 = arith.constant 0 : i32
    %c0_i32_0 = arith.constant 0 : i32
    %c0_i32_1 = arith.constant 0 : i32
    return %c0_i32, %c0_i32_0 : i32, i32
  }
  func.func @transform_11(%arg0: i32) -> (i32, i32) {
    %c0_i32 = arith.constant 0 : i32
    %c0_i32_0 = arith.constant 0 : i32
    %c0_i32_1 = arith.constant 0 : i32
    return %c0_i32, %c0_i32_0 : i32, i32
  }
  func.func @transform_12(%arg0: i32) -> (i32, i32) {
    %c0_i32 = arith.constant 0 : i32
    %c0_i32_0 = arith.constant 0 : i32
    %c0_i32_1 = arith.constant 0 : i32
    return %c0_i32, %c0_i32_0 : i32, i32
  }
  func.func @transform_13(%arg0: i32) -> (i32, i32) {
    %c0_i32 = arith.constant 0 : i32
    %c0_i32_0 = arith.constant 0 : i32
    %c0_i32_1 = arith.constant 0 : i32
    return %c0_i32, %c0_i32_0 : i32, i32
  }
  func.func @transform_14(%arg0: i32) -> (i32, i32, i32) {
    %c0_i32 = arith.constant 0 : i32
    %c0_i32_0 = arith.constant 0 : i32
    %c0_i32_1 = arith.constant 0 : i32
    return %arg0, %c0_i32, %c0_i32_0 : i32, i32, i32
  }
}

module attributes {stable_mosaic.version = 11 : i64} {
  func.func @_encoder_layer_pool_kernel(%arg0: i32, %arg1: memref<8x8x64xf32, #tpu.memory_space<vmem>>, %arg2: memref<8x8xf32, #tpu.memory_space<vmem>>, %arg3: memref<64x192xbf16, #tpu.memory_space<vmem>>, %arg4: memref<1x192xf32, #tpu.memory_space<vmem>>, %arg5: memref<64x64xbf16, #tpu.memory_space<vmem>>, %arg6: memref<1x64xf32, #tpu.memory_space<vmem>>, %arg7: memref<1x64xf32, #tpu.memory_space<vmem>>, %arg8: memref<1x64xf32, #tpu.memory_space<vmem>>, %arg9: memref<64x128xbf16, #tpu.memory_space<vmem>>, %arg10: memref<1x128xf32, #tpu.memory_space<vmem>>, %arg11: memref<128x64xbf16, #tpu.memory_space<vmem>>, %arg12: memref<1x64xf32, #tpu.memory_space<vmem>>, %arg13: memref<1x64xf32, #tpu.memory_space<vmem>>, %arg14: memref<1x64xf32, #tpu.memory_space<vmem>>, %arg15: memref<8x64xf32, #tpu.memory_space<vmem>>) attributes {dimension_semantics = [#tpu.dimension_semantics<parallel>], iteration_bounds = array<i64: 2>, scalar_prefetch = 0 : i64, scratch_operands = 0 : i64, tpu.core_type = #tpu.core_type<tc>, window_params = [{transform_indices = @transform_0, window_bounds = array<i64: 8, 8, 64>}, {transform_indices = @transform_1, window_bounds = array<i64: 8, 8>}, {pipeline_mode = #tpu.pipeline_mode<synchronous>, transform_indices = @transform_2, window_bounds = array<i64: 64, 192>}, {pipeline_mode = #tpu.pipeline_mode<synchronous>, transform_indices = @transform_3, window_bounds = array<i64: 1, 192>}, {pipeline_mode = #tpu.pipeline_mode<synchronous>, transform_indices = @transform_4, window_bounds = array<i64: 64, 64>}, {pipeline_mode = #tpu.pipeline_mode<synchronous>, transform_indices = @transform_5, window_bounds = array<i64: 1, 64>}, {pipeline_mode = #tpu.pipeline_mode<synchronous>, transform_indices = @transform_6, window_bounds = array<i64: 1, 64>}, {pipeline_mode = #tpu.pipeline_mode<synchronous>, transform_indices = @transform_7, window_bounds = array<i64: 1, 64>}, {pipeline_mode = #tpu.pipeline_mode<synchronous>, transform_indices = @transform_8, window_bounds = array<i64: 64, 128>}, {pipeline_mode = #tpu.pipeline_mode<synchronous>, transform_indices = @transform_9, window_bounds = array<i64: 1, 128>}, {pipeline_mode = #tpu.pipeline_mode<synchronous>, transform_indices = @transform_10, window_bounds = array<i64: 128, 64>}, {pipeline_mode = #tpu.pipeline_mode<synchronous>, transform_indices = @transform_11, window_bounds = array<i64: 1, 64>}, {pipeline_mode = #tpu.pipeline_mode<synchronous>, transform_indices = @transform_12, window_bounds = array<i64: 1, 64>}, {pipeline_mode = #tpu.pipeline_mode<synchronous>, transform_indices = @transform_13, window_bounds = array<i64: 1, 64>}, {transform_indices = @transform_14, window_bounds = array<i64: 8, 64>}]} {
    %c0 = arith.constant 0 : index
    %c0_0 = arith.constant 0 : index
    %c0_1 = arith.constant 0 : index
    %0 = vector.load %arg1[%c0, %c0_0, %c0_1] : memref<8x8x64xf32, #tpu.memory_space<vmem>>, vector<8x8x64xf32>
    %1 = vector.shape_cast %0 : vector<8x8x64xf32> to vector<64x64xf32>
    %2 = arith.truncf %1 : vector<64x64xf32> to vector<64x64xbf16>
    %c0_2 = arith.constant 0 : index
    %c0_3 = arith.constant 0 : index
    %3 = vector.load %arg3[%c0_2, %c0_3] : memref<64x192xbf16, #tpu.memory_space<vmem>>, vector<64x192xbf16>
    %cst = arith.constant dense<0.000000e+00> : vector<64x192xf32>
    %4 = tpu.matmul %2, %3, %cst {dimension_numbers = #tpu.dot_dimension_numbers<[1], [0], [0], [1], [0, 0, 1, 1], [], []>} : vector<64x64xbf16>, vector<64x192xbf16>, vector<64x192xf32> -> vector<64x192xf32>
    %c0_4 = arith.constant 0 : index
    %c0_5 = arith.constant 0 : index
    %5 = vector.load %arg4[%c0_4, %c0_5] : memref<1x192xf32, #tpu.memory_space<vmem>>, vector<1x192xf32>
    %6 = vector.broadcast %5 : vector<1x192xf32> to vector<64x192xf32>
    %7 = arith.addf %4, %6 : vector<64x192xf32>
    %c0_6 = arith.constant 0 : index
    %c0_7 = arith.constant 0 : index
    %8 = vector.load %arg2[%c0_6, %c0_7] : memref<8x8xf32, #tpu.memory_space<vmem>>, vector<8x8xf32>
    %cst_8 = arith.constant 1.000000e+00 : f32
    %9 = vector.broadcast %cst_8 : f32 to vector<8x8xf32>
    %10 = arith.subf %8, %9 : vector<8x8xf32>
    %cst_9 = arith.constant 1.000000e+09 : f32
    %11 = vector.broadcast %cst_9 : f32 to vector<8x8xf32>
    %12 = arith.mulf %10, %11 : vector<8x8xf32>
    %13 = vector.shape_cast %12 : vector<8x8xf32> to vector<8x1x8xf32>
    %14 = vector.extract_strided_slice %7 {offsets = [0, 0], sizes = [64, 16], strides = [1, 1]} : vector<64x192xf32> to vector<64x16xf32>
    %15 = vector.shape_cast %14 : vector<64x16xf32> to vector<8x8x16xf32>
    %16 = arith.truncf %15 : vector<8x8x16xf32> to vector<8x8x16xbf16>
    %17 = vector.extract_strided_slice %7 {offsets = [0, 64], sizes = [64, 16], strides = [1, 1]} : vector<64x192xf32> to vector<64x16xf32>
    %18 = vector.shape_cast %17 : vector<64x16xf32> to vector<8x8x16xf32>
    %19 = arith.truncf %18 : vector<8x8x16xf32> to vector<8x8x16xbf16>
    %20 = vector.extract_strided_slice %7 {offsets = [0, 128], sizes = [64, 16], strides = [1, 1]} : vector<64x192xf32> to vector<64x16xf32>
    %21 = vector.shape_cast %20 : vector<64x16xf32> to vector<8x8x16xf32>
    %22 = arith.truncf %21 : vector<8x8x16xf32> to vector<8x8x16xbf16>
    "tpu.trace_start"() <{level = 10 : i32, message = "bqd,bkd->bqk"}> : () -> ()
    %cst_10 = arith.constant dense<0.000000e+00> : vector<8x8x8xf32>
    %23 = tpu.matmul %16, %19, %cst_10 {dimension_numbers = #tpu.dot_dimension_numbers<[2], [2], [1], [1], [0, 0, 0, 1, 1, 1], [0], [0]>} : vector<8x8x16xbf16>, vector<8x8x16xbf16>, vector<8x8x8xf32> -> vector<8x8x8xf32>
    "tpu.trace_stop"() : () -> ()
    %cst_11 = arith.constant 2.500000e-01 : f32
    %24 = vector.broadcast %cst_11 : f32 to vector<8x8x8xf32>
    %25 = arith.mulf %23, %24 : vector<8x8x8xf32>
    %26 = vector.broadcast %13 : vector<8x1x8xf32> to vector<8x8x8xf32>
    %27 = arith.addf %25, %26 : vector<8x8x8xf32>
    %cst_12 = arith.constant dense<0xFF800000> : vector<8x8xf32>
    %28 = vector.multi_reduction <maximumf>, %27, %cst_12 [2] : vector<8x8x8xf32> to vector<8x8xf32>
    %29 = vector.shape_cast %28 : vector<8x8xf32> to vector<8x8x1xf32>
    %30 = vector.broadcast %29 : vector<8x8x1xf32> to vector<8x8x8xf32>
    %31 = arith.subf %27, %30 : vector<8x8x8xf32>
    %32 = math.exp %31 : vector<8x8x8xf32>
    %cst_13 = arith.constant dense<0.000000e+00> : vector<8x8xf32>
    %33 = vector.multi_reduction <add>, %32, %cst_13 [2] : vector<8x8x8xf32> to vector<8x8xf32>
    %34 = vector.shape_cast %33 : vector<8x8xf32> to vector<8x8x1xf32>
    %35 = tpu.reciprocal %34 {approx = true} : vector<8x8x1xf32> -> vector<8x8x1xf32>
    %36 = vector.broadcast %35 : vector<8x8x1xf32> to vector<8x8x8xf32>
    %37 = arith.mulf %32, %36 : vector<8x8x8xf32>
    %38 = arith.truncf %37 : vector<8x8x8xf32> to vector<8x8x8xbf16>
    "tpu.trace_start"() <{level = 10 : i32, message = "bqk,bkd->bqd"}> : () -> ()
    %cst_14 = arith.constant dense<0.000000e+00> : vector<8x8x16xf32>
    %39 = tpu.matmul %38, %22, %cst_14 {dimension_numbers = #tpu.dot_dimension_numbers<[2], [1], [1], [2], [0, 0, 0, 1, 1, 2], [0], [0]>} : vector<8x8x8xbf16>, vector<8x8x16xbf16>, vector<8x8x16xf32> -> vector<8x8x16xf32>
    "tpu.trace_stop"() : () -> ()
    %40 = vector.shape_cast %39 : vector<8x8x16xf32> to vector<64x16xf32>
    %41 = vector.extract_strided_slice %7 {offsets = [0, 16], sizes = [64, 16], strides = [1, 1]} : vector<64x192xf32> to vector<64x16xf32>
    %42 = vector.shape_cast %41 : vector<64x16xf32> to vector<8x8x16xf32>
    %43 = arith.truncf %42 : vector<8x8x16xf32> to vector<8x8x16xbf16>
    %44 = vector.extract_strided_slice %7 {offsets = [0, 80], sizes = [64, 16], strides = [1, 1]} : vector<64x192xf32> to vector<64x16xf32>
    %45 = vector.shape_cast %44 : vector<64x16xf32> to vector<8x8x16xf32>
    %46 = arith.truncf %45 : vector<8x8x16xf32> to vector<8x8x16xbf16>
    %47 = vector.extract_strided_slice %7 {offsets = [0, 144], sizes = [64, 16], strides = [1, 1]} : vector<64x192xf32> to vector<64x16xf32>
    %48 = vector.shape_cast %47 : vector<64x16xf32> to vector<8x8x16xf32>
    %49 = arith.truncf %48 : vector<8x8x16xf32> to vector<8x8x16xbf16>
    "tpu.trace_start"() <{level = 10 : i32, message = "bqd,bkd->bqk"}> : () -> ()
    %cst_15 = arith.constant dense<0.000000e+00> : vector<8x8x8xf32>
    %50 = tpu.matmul %43, %46, %cst_15 {dimension_numbers = #tpu.dot_dimension_numbers<[2], [2], [1], [1], [0, 0, 0, 1, 1, 1], [0], [0]>} : vector<8x8x16xbf16>, vector<8x8x16xbf16>, vector<8x8x8xf32> -> vector<8x8x8xf32>
    "tpu.trace_stop"() : () -> ()
    %cst_16 = arith.constant 2.500000e-01 : f32
    %51 = vector.broadcast %cst_16 : f32 to vector<8x8x8xf32>
    %52 = arith.mulf %50, %51 : vector<8x8x8xf32>
    %53 = vector.broadcast %13 : vector<8x1x8xf32> to vector<8x8x8xf32>
    %54 = arith.addf %52, %53 : vector<8x8x8xf32>
    %cst_17 = arith.constant dense<0xFF800000> : vector<8x8xf32>
    %55 = vector.multi_reduction <maximumf>, %54, %cst_17 [2] : vector<8x8x8xf32> to vector<8x8xf32>
    %56 = vector.shape_cast %55 : vector<8x8xf32> to vector<8x8x1xf32>
    %57 = vector.broadcast %56 : vector<8x8x1xf32> to vector<8x8x8xf32>
    %58 = arith.subf %54, %57 : vector<8x8x8xf32>
    %59 = math.exp %58 : vector<8x8x8xf32>
    %cst_18 = arith.constant dense<0.000000e+00> : vector<8x8xf32>
    %60 = vector.multi_reduction <add>, %59, %cst_18 [2] : vector<8x8x8xf32> to vector<8x8xf32>
    %61 = vector.shape_cast %60 : vector<8x8xf32> to vector<8x8x1xf32>
    %62 = tpu.reciprocal %61 {approx = true} : vector<8x8x1xf32> -> vector<8x8x1xf32>
    %63 = vector.broadcast %62 : vector<8x8x1xf32> to vector<8x8x8xf32>
    %64 = arith.mulf %59, %63 : vector<8x8x8xf32>
    %65 = arith.truncf %64 : vector<8x8x8xf32> to vector<8x8x8xbf16>
    "tpu.trace_start"() <{level = 10 : i32, message = "bqk,bkd->bqd"}> : () -> ()
    %cst_19 = arith.constant dense<0.000000e+00> : vector<8x8x16xf32>
    %66 = tpu.matmul %65, %49, %cst_19 {dimension_numbers = #tpu.dot_dimension_numbers<[2], [1], [1], [2], [0, 0, 0, 1, 1, 2], [0], [0]>} : vector<8x8x8xbf16>, vector<8x8x16xbf16>, vector<8x8x16xf32> -> vector<8x8x16xf32>
    "tpu.trace_stop"() : () -> ()
    %67 = vector.shape_cast %66 : vector<8x8x16xf32> to vector<64x16xf32>
    %68 = vector.extract_strided_slice %7 {offsets = [0, 32], sizes = [64, 16], strides = [1, 1]} : vector<64x192xf32> to vector<64x16xf32>
    %69 = vector.shape_cast %68 : vector<64x16xf32> to vector<8x8x16xf32>
    %70 = arith.truncf %69 : vector<8x8x16xf32> to vector<8x8x16xbf16>
    %71 = vector.extract_strided_slice %7 {offsets = [0, 96], sizes = [64, 16], strides = [1, 1]} : vector<64x192xf32> to vector<64x16xf32>
    %72 = vector.shape_cast %71 : vector<64x16xf32> to vector<8x8x16xf32>
    %73 = arith.truncf %72 : vector<8x8x16xf32> to vector<8x8x16xbf16>
    %74 = vector.extract_strided_slice %7 {offsets = [0, 160], sizes = [64, 16], strides = [1, 1]} : vector<64x192xf32> to vector<64x16xf32>
    %75 = vector.shape_cast %74 : vector<64x16xf32> to vector<8x8x16xf32>
    %76 = arith.truncf %75 : vector<8x8x16xf32> to vector<8x8x16xbf16>
    "tpu.trace_start"() <{level = 10 : i32, message = "bqd,bkd->bqk"}> : () -> ()
    %cst_20 = arith.constant dense<0.000000e+00> : vector<8x8x8xf32>
    %77 = tpu.matmul %70, %73, %cst_20 {dimension_numbers = #tpu.dot_dimension_numbers<[2], [2], [1], [1], [0, 0, 0, 1, 1, 1], [0], [0]>} : vector<8x8x16xbf16>, vector<8x8x16xbf16>, vector<8x8x8xf32> -> vector<8x8x8xf32>
    "tpu.trace_stop"() : () -> ()
    %cst_21 = arith.constant 2.500000e-01 : f32
    %78 = vector.broadcast %cst_21 : f32 to vector<8x8x8xf32>
    %79 = arith.mulf %77, %78 : vector<8x8x8xf32>
    %80 = vector.broadcast %13 : vector<8x1x8xf32> to vector<8x8x8xf32>
    %81 = arith.addf %79, %80 : vector<8x8x8xf32>
    %cst_22 = arith.constant dense<0xFF800000> : vector<8x8xf32>
    %82 = vector.multi_reduction <maximumf>, %81, %cst_22 [2] : vector<8x8x8xf32> to vector<8x8xf32>
    %83 = vector.shape_cast %82 : vector<8x8xf32> to vector<8x8x1xf32>
    %84 = vector.broadcast %83 : vector<8x8x1xf32> to vector<8x8x8xf32>
    %85 = arith.subf %81, %84 : vector<8x8x8xf32>
    %86 = math.exp %85 : vector<8x8x8xf32>
    %cst_23 = arith.constant dense<0.000000e+00> : vector<8x8xf32>
    %87 = vector.multi_reduction <add>, %86, %cst_23 [2] : vector<8x8x8xf32> to vector<8x8xf32>
    %88 = vector.shape_cast %87 : vector<8x8xf32> to vector<8x8x1xf32>
    %89 = tpu.reciprocal %88 {approx = true} : vector<8x8x1xf32> -> vector<8x8x1xf32>
    %90 = vector.broadcast %89 : vector<8x8x1xf32> to vector<8x8x8xf32>
    %91 = arith.mulf %86, %90 : vector<8x8x8xf32>
    %92 = arith.truncf %91 : vector<8x8x8xf32> to vector<8x8x8xbf16>
    "tpu.trace_start"() <{level = 10 : i32, message = "bqk,bkd->bqd"}> : () -> ()
    %cst_24 = arith.constant dense<0.000000e+00> : vector<8x8x16xf32>
    %93 = tpu.matmul %92, %76, %cst_24 {dimension_numbers = #tpu.dot_dimension_numbers<[2], [1], [1], [2], [0, 0, 0, 1, 1, 2], [0], [0]>} : vector<8x8x8xbf16>, vector<8x8x16xbf16>, vector<8x8x16xf32> -> vector<8x8x16xf32>
    "tpu.trace_stop"() : () -> ()
    %94 = vector.shape_cast %93 : vector<8x8x16xf32> to vector<64x16xf32>
    %95 = vector.extract_strided_slice %7 {offsets = [0, 48], sizes = [64, 16], strides = [1, 1]} : vector<64x192xf32> to vector<64x16xf32>
    %96 = vector.shape_cast %95 : vector<64x16xf32> to vector<8x8x16xf32>
    %97 = arith.truncf %96 : vector<8x8x16xf32> to vector<8x8x16xbf16>
    %98 = vector.extract_strided_slice %7 {offsets = [0, 112], sizes = [64, 16], strides = [1, 1]} : vector<64x192xf32> to vector<64x16xf32>
    %99 = vector.shape_cast %98 : vector<64x16xf32> to vector<8x8x16xf32>
    %100 = arith.truncf %99 : vector<8x8x16xf32> to vector<8x8x16xbf16>
    %101 = vector.extract_strided_slice %7 {offsets = [0, 176], sizes = [64, 16], strides = [1, 1]} : vector<64x192xf32> to vector<64x16xf32>
    %102 = vector.shape_cast %101 : vector<64x16xf32> to vector<8x8x16xf32>
    %103 = arith.truncf %102 : vector<8x8x16xf32> to vector<8x8x16xbf16>
    "tpu.trace_start"() <{level = 10 : i32, message = "bqd,bkd->bqk"}> : () -> ()
    %cst_25 = arith.constant dense<0.000000e+00> : vector<8x8x8xf32>
    %104 = tpu.matmul %97, %100, %cst_25 {dimension_numbers = #tpu.dot_dimension_numbers<[2], [2], [1], [1], [0, 0, 0, 1, 1, 1], [0], [0]>} : vector<8x8x16xbf16>, vector<8x8x16xbf16>, vector<8x8x8xf32> -> vector<8x8x8xf32>
    "tpu.trace_stop"() : () -> ()
    %cst_26 = arith.constant 2.500000e-01 : f32
    %105 = vector.broadcast %cst_26 : f32 to vector<8x8x8xf32>
    %106 = arith.mulf %104, %105 : vector<8x8x8xf32>
    %107 = vector.broadcast %13 : vector<8x1x8xf32> to vector<8x8x8xf32>
    %108 = arith.addf %106, %107 : vector<8x8x8xf32>
    %cst_27 = arith.constant dense<0xFF800000> : vector<8x8xf32>
    %109 = vector.multi_reduction <maximumf>, %108, %cst_27 [2] : vector<8x8x8xf32> to vector<8x8xf32>
    %110 = vector.shape_cast %109 : vector<8x8xf32> to vector<8x8x1xf32>
    %111 = vector.broadcast %110 : vector<8x8x1xf32> to vector<8x8x8xf32>
    %112 = arith.subf %108, %111 : vector<8x8x8xf32>
    %113 = math.exp %112 : vector<8x8x8xf32>
    %cst_28 = arith.constant dense<0.000000e+00> : vector<8x8xf32>
    %114 = vector.multi_reduction <add>, %113, %cst_28 [2] : vector<8x8x8xf32> to vector<8x8xf32>
    %115 = vector.shape_cast %114 : vector<8x8xf32> to vector<8x8x1xf32>
    %116 = tpu.reciprocal %115 {approx = true} : vector<8x8x1xf32> -> vector<8x8x1xf32>
    %117 = vector.broadcast %116 : vector<8x8x1xf32> to vector<8x8x8xf32>
    %118 = arith.mulf %113, %117 : vector<8x8x8xf32>
    %119 = arith.truncf %118 : vector<8x8x8xf32> to vector<8x8x8xbf16>
    "tpu.trace_start"() <{level = 10 : i32, message = "bqk,bkd->bqd"}> : () -> ()
    %cst_29 = arith.constant dense<0.000000e+00> : vector<8x8x16xf32>
    %120 = tpu.matmul %119, %103, %cst_29 {dimension_numbers = #tpu.dot_dimension_numbers<[2], [1], [1], [2], [0, 0, 0, 1, 1, 2], [0], [0]>} : vector<8x8x8xbf16>, vector<8x8x16xbf16>, vector<8x8x16xf32> -> vector<8x8x16xf32>
    "tpu.trace_stop"() : () -> ()
    %121 = vector.shape_cast %120 : vector<8x8x16xf32> to vector<64x16xf32>
    %122 = tpu.concatenate %40, %67, %94, %121 in 1 : vector<64x16xf32>, vector<64x16xf32>, vector<64x16xf32>, vector<64x16xf32> -> vector<64x64xf32>
    %123 = arith.truncf %122 : vector<64x64xf32> to vector<64x64xbf16>
    %c0_30 = arith.constant 0 : index
    %c0_31 = arith.constant 0 : index
    %124 = vector.load %arg5[%c0_30, %c0_31] : memref<64x64xbf16, #tpu.memory_space<vmem>>, vector<64x64xbf16>
    %cst_32 = arith.constant dense<0.000000e+00> : vector<64x64xf32>
    %125 = tpu.matmul %123, %124, %cst_32 {dimension_numbers = #tpu.dot_dimension_numbers<[1], [0], [0], [1], [0, 0, 1, 1], [], []>} : vector<64x64xbf16>, vector<64x64xbf16>, vector<64x64xf32> -> vector<64x64xf32>
    %c0_33 = arith.constant 0 : index
    %c0_34 = arith.constant 0 : index
    %126 = vector.load %arg6[%c0_33, %c0_34] : memref<1x64xf32, #tpu.memory_space<vmem>>, vector<1x64xf32>
    %127 = vector.broadcast %126 : vector<1x64xf32> to vector<64x64xf32>
    %128 = arith.addf %125, %127 : vector<64x64xf32>
    %129 = arith.addf %1, %128 : vector<64x64xf32>
    %c0_35 = arith.constant 0 : index
    %c0_36 = arith.constant 0 : index
    %130 = vector.load %arg7[%c0_35, %c0_36] : memref<1x64xf32, #tpu.memory_space<vmem>>, vector<1x64xf32>
    %c0_37 = arith.constant 0 : index
    %c0_38 = arith.constant 0 : index
    %131 = vector.load %arg8[%c0_37, %c0_38] : memref<1x64xf32, #tpu.memory_space<vmem>>, vector<1x64xf32>
    %cst_39 = arith.constant dense<0.000000e+00> : vector<64xf32>
    %132 = vector.multi_reduction <add>, %129, %cst_39 [1] : vector<64x64xf32> to vector<64xf32>
    %133 = vector.shape_cast %132 : vector<64xf32> to vector<64x1xf32>
    %cst_40 = arith.constant 6.400000e+01 : f32
    %134 = vector.broadcast %cst_40 : f32 to vector<64x1xf32>
    %135 = arith.divf %133, %134 : vector<64x1xf32>
    %136 = vector.broadcast %135 : vector<64x1xf32> to vector<64x64xf32>
    %137 = arith.subf %129, %136 : vector<64x64xf32>
    %138 = arith.mulf %137, %137 : vector<64x64xf32>
    %cst_41 = arith.constant dense<0.000000e+00> : vector<64xf32>
    %139 = vector.multi_reduction <add>, %138, %cst_41 [1] : vector<64x64xf32> to vector<64xf32>
    %140 = vector.shape_cast %139 : vector<64xf32> to vector<64x1xf32>
    %cst_42 = arith.constant 6.400000e+01 : f32
    %141 = vector.broadcast %cst_42 : f32 to vector<64x1xf32>
    %142 = arith.divf %140, %141 : vector<64x1xf32>
    %143 = vector.broadcast %135 : vector<64x1xf32> to vector<64x64xf32>
    %144 = arith.subf %129, %143 : vector<64x64xf32>
    %cst_43 = arith.constant 9.99999974E-6 : f32
    %145 = vector.broadcast %cst_43 : f32 to vector<64x1xf32>
    %146 = arith.addf %142, %145 : vector<64x1xf32>
    %147 = math.rsqrt %146 : vector<64x1xf32>
    %148 = vector.broadcast %147 : vector<64x1xf32> to vector<64x64xf32>
    %149 = arith.mulf %144, %148 : vector<64x64xf32>
    %150 = vector.broadcast %130 : vector<1x64xf32> to vector<64x64xf32>
    %151 = arith.mulf %149, %150 : vector<64x64xf32>
    %152 = vector.broadcast %131 : vector<1x64xf32> to vector<64x64xf32>
    %153 = arith.addf %151, %152 : vector<64x64xf32>
    %154 = arith.truncf %153 : vector<64x64xf32> to vector<64x64xbf16>
    %c0_44 = arith.constant 0 : index
    %c0_45 = arith.constant 0 : index
    %155 = vector.load %arg9[%c0_44, %c0_45] : memref<64x128xbf16, #tpu.memory_space<vmem>>, vector<64x128xbf16>
    %cst_46 = arith.constant dense<0.000000e+00> : vector<64x128xf32>
    %156 = tpu.matmul %154, %155, %cst_46 {dimension_numbers = #tpu.dot_dimension_numbers<[1], [0], [0], [1], [0, 0, 1, 1], [], []>} : vector<64x64xbf16>, vector<64x128xbf16>, vector<64x128xf32> -> vector<64x128xf32>
    %c0_47 = arith.constant 0 : index
    %c0_48 = arith.constant 0 : index
    %157 = vector.load %arg10[%c0_47, %c0_48] : memref<1x128xf32, #tpu.memory_space<vmem>>, vector<1x128xf32>
    %158 = vector.broadcast %157 : vector<1x128xf32> to vector<64x128xf32>
    %159 = arith.addf %156, %158 : vector<64x128xf32>
    %cst_49 = arith.constant 0.000000e+00 : f32
    %160 = vector.broadcast %cst_49 : f32 to vector<64x128xf32>
    %161 = arith.maximumf %159, %160 : vector<64x128xf32>
    %162 = arith.truncf %161 : vector<64x128xf32> to vector<64x128xbf16>
    %c0_50 = arith.constant 0 : index
    %c0_51 = arith.constant 0 : index
    %163 = vector.load %arg11[%c0_50, %c0_51] : memref<128x64xbf16, #tpu.memory_space<vmem>>, vector<128x64xbf16>
    %cst_52 = arith.constant dense<0.000000e+00> : vector<64x64xf32>
    %164 = tpu.matmul %162, %163, %cst_52 {dimension_numbers = #tpu.dot_dimension_numbers<[1], [0], [0], [1], [0, 0, 1, 1], [], []>} : vector<64x128xbf16>, vector<128x64xbf16>, vector<64x64xf32> -> vector<64x64xf32>
    %c0_53 = arith.constant 0 : index
    %c0_54 = arith.constant 0 : index
    %165 = vector.load %arg12[%c0_53, %c0_54] : memref<1x64xf32, #tpu.memory_space<vmem>>, vector<1x64xf32>
    %166 = vector.broadcast %165 : vector<1x64xf32> to vector<64x64xf32>
    %167 = arith.addf %164, %166 : vector<64x64xf32>
    %168 = arith.addf %153, %167 : vector<64x64xf32>
    %c0_55 = arith.constant 0 : index
    %c0_56 = arith.constant 0 : index
    %169 = vector.load %arg13[%c0_55, %c0_56] : memref<1x64xf32, #tpu.memory_space<vmem>>, vector<1x64xf32>
    %c0_57 = arith.constant 0 : index
    %c0_58 = arith.constant 0 : index
    %170 = vector.load %arg14[%c0_57, %c0_58] : memref<1x64xf32, #tpu.memory_space<vmem>>, vector<1x64xf32>
    %cst_59 = arith.constant dense<0.000000e+00> : vector<64xf32>
    %171 = vector.multi_reduction <add>, %168, %cst_59 [1] : vector<64x64xf32> to vector<64xf32>
    %172 = vector.shape_cast %171 : vector<64xf32> to vector<64x1xf32>
    %cst_60 = arith.constant 6.400000e+01 : f32
    %173 = vector.broadcast %cst_60 : f32 to vector<64x1xf32>
    %174 = arith.divf %172, %173 : vector<64x1xf32>
    %175 = vector.broadcast %174 : vector<64x1xf32> to vector<64x64xf32>
    %176 = arith.subf %168, %175 : vector<64x64xf32>
    %177 = arith.mulf %176, %176 : vector<64x64xf32>
    %cst_61 = arith.constant dense<0.000000e+00> : vector<64xf32>
    %178 = vector.multi_reduction <add>, %177, %cst_61 [1] : vector<64x64xf32> to vector<64xf32>
    %179 = vector.shape_cast %178 : vector<64xf32> to vector<64x1xf32>
    %cst_62 = arith.constant 6.400000e+01 : f32
    %180 = vector.broadcast %cst_62 : f32 to vector<64x1xf32>
    %181 = arith.divf %179, %180 : vector<64x1xf32>
    %182 = vector.broadcast %174 : vector<64x1xf32> to vector<64x64xf32>
    %183 = arith.subf %168, %182 : vector<64x64xf32>
    %cst_63 = arith.constant 9.99999974E-6 : f32
    %184 = vector.broadcast %cst_63 : f32 to vector<64x1xf32>
    %185 = arith.addf %181, %184 : vector<64x1xf32>
    %186 = math.rsqrt %185 : vector<64x1xf32>
    %187 = vector.broadcast %186 : vector<64x1xf32> to vector<64x64xf32>
    %188 = arith.mulf %183, %187 : vector<64x64xf32>
    %189 = vector.broadcast %169 : vector<1x64xf32> to vector<64x64xf32>
    %190 = arith.mulf %188, %189 : vector<64x64xf32>
    %191 = vector.broadcast %170 : vector<1x64xf32> to vector<64x64xf32>
    %192 = arith.addf %190, %191 : vector<64x64xf32>
    %c0_64 = arith.constant 0 : index
    %c0_65 = arith.constant 0 : index
    %193 = vector.load %arg2[%c0_64, %c0_65] : memref<8x8xf32, #tpu.memory_space<vmem>>, vector<8x8xf32>
    %194 = vector.shape_cast %192 : vector<64x64xf32> to vector<8x8x64xf32>
    %195 = vector.shape_cast %193 : vector<8x8xf32> to vector<8x8x1xf32>
    %196 = vector.broadcast %195 : vector<8x8x1xf32> to vector<8x8x64xf32>
    %197 = arith.mulf %194, %196 : vector<8x8x64xf32>
    %cst_66 = arith.constant dense<0.000000e+00> : vector<8x64xf32>
    %198 = vector.multi_reduction <add>, %197, %cst_66 [1] : vector<8x8x64xf32> to vector<8x64xf32>
    %cst_67 = arith.constant dense<0.000000e+00> : vector<8xf32>
    %199 = vector.multi_reduction <add>, %193, %cst_67 [1] : vector<8x8xf32> to vector<8xf32>
    %200 = vector.shape_cast %199 : vector<8xf32> to vector<8x1xf32>
    %cst_68 = arith.constant 1.000000e+00 : f32
    %201 = vector.broadcast %cst_68 : f32 to vector<8x1xf32>
    %202 = arith.maximumf %200, %201 : vector<8x1xf32>
    %203 = tpu.reciprocal %202 {approx = true} : vector<8x1xf32> -> vector<8x1xf32>
    %204 = vector.broadcast %203 : vector<8x1xf32> to vector<8x64xf32>
    %205 = arith.mulf %198, %204 : vector<8x64xf32>
    %c0_69 = arith.constant 0 : index
    %c0_70 = arith.constant 0 : index
    %206 = vector.load %arg15[%c0_69, %c0_70] : memref<8x64xf32, #tpu.memory_space<vmem>>, vector<8x64xf32>
    tpu.vector_store %arg15[%c0_69, %c0_70], %205 {strides = array<i32>} : memref<8x64xf32, #tpu.memory_space<vmem>>, vector<8x64xf32>,
    return
  }
  func.func @transform_0(%arg0: i32) -> (i32, i32, i32) {
    %c0_i32 = arith.constant 0 : i32
    %c0_i32_0 = arith.constant 0 : i32
    %c0_i32_1 = arith.constant 0 : i32
    return %arg0, %c0_i32, %c0_i32_0 : i32, i32, i32
  }
  func.func @transform_1(%arg0: i32) -> (i32, i32) {
    %c0_i32 = arith.constant 0 : i32
    %c0_i32_0 = arith.constant 0 : i32
    return %arg0, %c0_i32 : i32, i32
  }
  func.func @transform_2(%arg0: i32) -> (i32, i32) {
    %c0_i32 = arith.constant 0 : i32
    %c0_i32_0 = arith.constant 0 : i32
    %c0_i32_1 = arith.constant 0 : i32
    return %c0_i32, %c0_i32_0 : i32, i32
  }
  func.func @transform_3(%arg0: i32) -> (i32, i32) {
    %c0_i32 = arith.constant 0 : i32
    %c0_i32_0 = arith.constant 0 : i32
    %c0_i32_1 = arith.constant 0 : i32
    return %c0_i32, %c0_i32_0 : i32, i32
  }
  func.func @transform_4(%arg0: i32) -> (i32, i32) {
    %c0_i32 = arith.constant 0 : i32
    %c0_i32_0 = arith.constant 0 : i32
    %c0_i32_1 = arith.constant 0 : i32
    return %c0_i32, %c0_i32_0 : i32, i32
  }
  func.func @transform_5(%arg0: i32) -> (i32, i32) {
    %c0_i32 = arith.constant 0 : i32
    %c0_i32_0 = arith.constant 0 : i32
    %c0_i32_1 = arith.constant 0 : i32
    return %c0_i32, %c0_i32_0 : i32, i32
  }
  func.func @transform_6(%arg0: i32) -> (i32, i32) {
    %c0_i32 = arith.constant 0 : i32
    %c0_i32_0 = arith.constant 0 : i32
    %c0_i32_1 = arith.constant 0 : i32
    return %c0_i32, %c0_i32_0 : i32, i32
  }
  func.func @transform_7(%arg0: i32) -> (i32, i32) {
    %c0_i32 = arith.constant 0 : i32
    %c0_i32_0 = arith.constant 0 : i32
    %c0_i32_1 = arith.constant 0 : i32
    return %c0_i32, %c0_i32_0 : i32, i32
  }
  func.func @transform_8(%arg0: i32) -> (i32, i32) {
    %c0_i32 = arith.constant 0 : i32
    %c0_i32_0 = arith.constant 0 : i32
    %c0_i32_1 = arith.constant 0 : i32
    return %c0_i32, %c0_i32_0 : i32, i32
  }
  func.func @transform_9(%arg0: i32) -> (i32, i32) {
    %c0_i32 = arith.constant 0 : i32
    %c0_i32_0 = arith.constant 0 : i32
    %c0_i32_1 = arith.constant 0 : i32
    return %c0_i32, %c0_i32_0 : i32, i32
  }
  func.func @transform_10(%arg0: i32) -> (i32, i32) {
    %c0_i32 = arith.constant 0 : i32
    %c0_i32_0 = arith.constant 0 : i32
    %c0_i32_1 = arith.constant 0 : i32
    return %c0_i32, %c0_i32_0 : i32, i32
  }
  func.func @transform_11(%arg0: i32) -> (i32, i32) {
    %c0_i32 = arith.constant 0 : i32
    %c0_i32_0 = arith.constant 0 : i32
    %c0_i32_1 = arith.constant 0 : i32
    return %c0_i32, %c0_i32_0 : i32, i32
  }
  func.func @transform_12(%arg0: i32) -> (i32, i32) {
    %c0_i32 = arith.constant 0 : i32
    %c0_i32_0 = arith.constant 0 : i32
    %c0_i32_1 = arith.constant 0 : i32
    return %c0_i32, %c0_i32_0 : i32, i32
  }
  func.func @transform_13(%arg0: i32) -> (i32, i32) {
    %c0_i32 = arith.constant 0 : i32
    %c0_i32_0 = arith.constant 0 : i32
    %c0_i32_1 = arith.constant 0 : i32
    return %c0_i32, %c0_i32_0 : i32, i32
  }
  func.func @transform_14(%arg0: i32) -> (i32, i32) {
    %c0_i32 = arith.constant 0 : i32
    %c0_i32_0 = arith.constant 0 : i32
    return %arg0, %c0_i32 : i32, i32
  }
}

module attributes {stable_mosaic.version = 11 : i64} {
  func.func @_encoder_layer_pool_kernel(%arg0: i32, %arg1: memref<2x8x128xf32, #tpu.memory_space<vmem>>, %arg2: memref<2x8xf32, #tpu.memory_space<vmem>>, %arg3: memref<128x384xbf16, #tpu.memory_space<vmem>>, %arg4: memref<1x384xf32, #tpu.memory_space<vmem>>, %arg5: memref<128x128xbf16, #tpu.memory_space<vmem>>, %arg6: memref<1x128xf32, #tpu.memory_space<vmem>>, %arg7: memref<1x128xf32, #tpu.memory_space<vmem>>, %arg8: memref<1x128xf32, #tpu.memory_space<vmem>>, %arg9: memref<128x128xbf16, #tpu.memory_space<vmem>>, %arg10: memref<1x128xf32, #tpu.memory_space<vmem>>, %arg11: memref<128x128xbf16, #tpu.memory_space<vmem>>, %arg12: memref<1x128xf32, #tpu.memory_space<vmem>>, %arg13: memref<1x128xf32, #tpu.memory_space<vmem>>, %arg14: memref<1x128xf32, #tpu.memory_space<vmem>>, %arg15: memref<2x128xf32, #tpu.memory_space<vmem>>) attributes {dimension_semantics = [#tpu.dimension_semantics<parallel>], iteration_bounds = array<i64: 1>, scalar_prefetch = 0 : i64, scratch_operands = 0 : i64, tpu.core_type = #tpu.core_type<tc>, window_params = [{transform_indices = @transform_0, window_bounds = array<i64: 2, 8, 128>}, {transform_indices = @transform_1, window_bounds = array<i64: 2, 8>}, {pipeline_mode = #tpu.pipeline_mode<synchronous>, transform_indices = @transform_2, window_bounds = array<i64: 128, 384>}, {pipeline_mode = #tpu.pipeline_mode<synchronous>, transform_indices = @transform_3, window_bounds = array<i64: 1, 384>}, {pipeline_mode = #tpu.pipeline_mode<synchronous>, transform_indices = @transform_4, window_bounds = array<i64: 128, 128>}, {pipeline_mode = #tpu.pipeline_mode<synchronous>, transform_indices = @transform_5, window_bounds = array<i64: 1, 128>}, {pipeline_mode = #tpu.pipeline_mode<synchronous>, transform_indices = @transform_6, window_bounds = array<i64: 1, 128>}, {pipeline_mode = #tpu.pipeline_mode<synchronous>, transform_indices = @transform_7, window_bounds = array<i64: 1, 128>}, {pipeline_mode = #tpu.pipeline_mode<synchronous>, transform_indices = @transform_8, window_bounds = array<i64: 128, 128>}, {pipeline_mode = #tpu.pipeline_mode<synchronous>, transform_indices = @transform_9, window_bounds = array<i64: 1, 128>}, {pipeline_mode = #tpu.pipeline_mode<synchronous>, transform_indices = @transform_10, window_bounds = array<i64: 128, 128>}, {pipeline_mode = #tpu.pipeline_mode<synchronous>, transform_indices = @transform_11, window_bounds = array<i64: 1, 128>}, {pipeline_mode = #tpu.pipeline_mode<synchronous>, transform_indices = @transform_12, window_bounds = array<i64: 1, 128>}, {pipeline_mode = #tpu.pipeline_mode<synchronous>, transform_indices = @transform_13, window_bounds = array<i64: 1, 128>}, {transform_indices = @transform_14, window_bounds = array<i64: 2, 128>}]} {
    %c0 = arith.constant 0 : index
    %c0_0 = arith.constant 0 : index
    %c0_1 = arith.constant 0 : index
    %0 = vector.load %arg1[%c0, %c0_0, %c0_1] : memref<2x8x128xf32, #tpu.memory_space<vmem>>, vector<2x8x128xf32>
    %1 = vector.shape_cast %0 : vector<2x8x128xf32> to vector<16x128xf32>
    %2 = arith.truncf %1 : vector<16x128xf32> to vector<16x128xbf16>
    %c0_2 = arith.constant 0 : index
    %c0_3 = arith.constant 0 : index
    %3 = vector.load %arg3[%c0_2, %c0_3] : memref<128x384xbf16, #tpu.memory_space<vmem>>, vector<128x384xbf16>
    %cst = arith.constant dense<0.000000e+00> : vector<16x384xf32>
    %4 = tpu.matmul %2, %3, %cst {dimension_numbers = #tpu.dot_dimension_numbers<[1], [0], [0], [1], [0, 0, 1, 1], [], []>} : vector<16x128xbf16>, vector<128x384xbf16>, vector<16x384xf32> -> vector<16x384xf32>
    %c0_4 = arith.constant 0 : index
    %c0_5 = arith.constant 0 : index
    %5 = vector.load %arg4[%c0_4, %c0_5] : memref<1x384xf32, #tpu.memory_space<vmem>>, vector<1x384xf32>
    %6 = vector.broadcast %5 : vector<1x384xf32> to vector<16x384xf32>
    %7 = arith.addf %4, %6 : vector<16x384xf32>
    %c0_6 = arith.constant 0 : index
    %c0_7 = arith.constant 0 : index
    %8 = vector.load %arg2[%c0_6, %c0_7] : memref<2x8xf32, #tpu.memory_space<vmem>>, vector<2x8xf32>
    %cst_8 = arith.constant 1.000000e+00 : f32
    %9 = vector.broadcast %cst_8 : f32 to vector<2x8xf32>
    %10 = arith.subf %8, %9 : vector<2x8xf32>
    %cst_9 = arith.constant 1.000000e+09 : f32
    %11 = vector.broadcast %cst_9 : f32 to vector<2x8xf32>
    %12 = arith.mulf %10, %11 : vector<2x8xf32>
    %13 = vector.shape_cast %12 : vector<2x8xf32> to vector<2x1x8xf32>
    %14 = vector.extract_strided_slice %7 {offsets = [0, 0], sizes = [16, 32], strides = [1, 1]} : vector<16x384xf32> to vector<16x32xf32>
    %15 = vector.shape_cast %14 : vector<16x32xf32> to vector<2x8x32xf32>
    %16 = arith.truncf %15 : vector<2x8x32xf32> to vector<2x8x32xbf16>
    %17 = vector.extract_strided_slice %7 {offsets = [0, 128], sizes = [16, 32], strides = [1, 1]} : vector<16x384xf32> to vector<16x32xf32>
    %18 = vector.shape_cast %17 : vector<16x32xf32> to vector<2x8x32xf32>
    %19 = arith.truncf %18 : vector<2x8x32xf32> to vector<2x8x32xbf16>
    %20 = vector.extract_strided_slice %7 {offsets = [0, 256], sizes = [16, 32], strides = [1, 1]} : vector<16x384xf32> to vector<16x32xf32>
    %21 = vector.shape_cast %20 : vector<16x32xf32> to vector<2x8x32xf32>
    %22 = arith.truncf %21 : vector<2x8x32xf32> to vector<2x8x32xbf16>
    "tpu.trace_start"() <{level = 10 : i32, message = "bqd,bkd->bqk"}> : () -> ()
    %cst_10 = arith.constant dense<0.000000e+00> : vector<2x8x8xf32>
    %23 = tpu.matmul %16, %19, %cst_10 {dimension_numbers = #tpu.dot_dimension_numbers<[2], [2], [1], [1], [0, 0, 0, 1, 1, 1], [0], [0]>} : vector<2x8x32xbf16>, vector<2x8x32xbf16>, vector<2x8x8xf32> -> vector<2x8x8xf32>
    "tpu.trace_stop"() : () -> ()
    %cst_11 = arith.constant 0.176776692 : f32
    %24 = vector.broadcast %cst_11 : f32 to vector<2x8x8xf32>
    %25 = arith.mulf %23, %24 : vector<2x8x8xf32>
    %26 = vector.broadcast %13 : vector<2x1x8xf32> to vector<2x8x8xf32>
    %27 = arith.addf %25, %26 : vector<2x8x8xf32>
    %cst_12 = arith.constant dense<0xFF800000> : vector<2x8xf32>
    %28 = vector.multi_reduction <maximumf>, %27, %cst_12 [2] : vector<2x8x8xf32> to vector<2x8xf32>
    %29 = vector.shape_cast %28 : vector<2x8xf32> to vector<2x8x1xf32>
    %30 = vector.broadcast %29 : vector<2x8x1xf32> to vector<2x8x8xf32>
    %31 = arith.subf %27, %30 : vector<2x8x8xf32>
    %32 = math.exp %31 : vector<2x8x8xf32>
    %cst_13 = arith.constant dense<0.000000e+00> : vector<2x8xf32>
    %33 = vector.multi_reduction <add>, %32, %cst_13 [2] : vector<2x8x8xf32> to vector<2x8xf32>
    %34 = vector.shape_cast %33 : vector<2x8xf32> to vector<2x8x1xf32>
    %35 = tpu.reciprocal %34 {approx = true} : vector<2x8x1xf32> -> vector<2x8x1xf32>
    %36 = vector.broadcast %35 : vector<2x8x1xf32> to vector<2x8x8xf32>
    %37 = arith.mulf %32, %36 : vector<2x8x8xf32>
    %38 = arith.truncf %37 : vector<2x8x8xf32> to vector<2x8x8xbf16>
    "tpu.trace_start"() <{level = 10 : i32, message = "bqk,bkd->bqd"}> : () -> ()
    %cst_14 = arith.constant dense<0.000000e+00> : vector<2x8x32xf32>
    %39 = tpu.matmul %38, %22, %cst_14 {dimension_numbers = #tpu.dot_dimension_numbers<[2], [1], [1], [2], [0, 0, 0, 1, 1, 2], [0], [0]>} : vector<2x8x8xbf16>, vector<2x8x32xbf16>, vector<2x8x32xf32> -> vector<2x8x32xf32>
    "tpu.trace_stop"() : () -> ()
    %40 = vector.shape_cast %39 : vector<2x8x32xf32> to vector<16x32xf32>
    %41 = vector.extract_strided_slice %7 {offsets = [0, 32], sizes = [16, 32], strides = [1, 1]} : vector<16x384xf32> to vector<16x32xf32>
    %42 = vector.shape_cast %41 : vector<16x32xf32> to vector<2x8x32xf32>
    %43 = arith.truncf %42 : vector<2x8x32xf32> to vector<2x8x32xbf16>
    %44 = vector.extract_strided_slice %7 {offsets = [0, 160], sizes = [16, 32], strides = [1, 1]} : vector<16x384xf32> to vector<16x32xf32>
    %45 = vector.shape_cast %44 : vector<16x32xf32> to vector<2x8x32xf32>
    %46 = arith.truncf %45 : vector<2x8x32xf32> to vector<2x8x32xbf16>
    %47 = vector.extract_strided_slice %7 {offsets = [0, 288], sizes = [16, 32], strides = [1, 1]} : vector<16x384xf32> to vector<16x32xf32>
    %48 = vector.shape_cast %47 : vector<16x32xf32> to vector<2x8x32xf32>
    %49 = arith.truncf %48 : vector<2x8x32xf32> to vector<2x8x32xbf16>
    "tpu.trace_start"() <{level = 10 : i32, message = "bqd,bkd->bqk"}> : () -> ()
    %cst_15 = arith.constant dense<0.000000e+00> : vector<2x8x8xf32>
    %50 = tpu.matmul %43, %46, %cst_15 {dimension_numbers = #tpu.dot_dimension_numbers<[2], [2], [1], [1], [0, 0, 0, 1, 1, 1], [0], [0]>} : vector<2x8x32xbf16>, vector<2x8x32xbf16>, vector<2x8x8xf32> -> vector<2x8x8xf32>
    "tpu.trace_stop"() : () -> ()
    %cst_16 = arith.constant 0.176776692 : f32
    %51 = vector.broadcast %cst_16 : f32 to vector<2x8x8xf32>
    %52 = arith.mulf %50, %51 : vector<2x8x8xf32>
    %53 = vector.broadcast %13 : vector<2x1x8xf32> to vector<2x8x8xf32>
    %54 = arith.addf %52, %53 : vector<2x8x8xf32>
    %cst_17 = arith.constant dense<0xFF800000> : vector<2x8xf32>
    %55 = vector.multi_reduction <maximumf>, %54, %cst_17 [2] : vector<2x8x8xf32> to vector<2x8xf32>
    %56 = vector.shape_cast %55 : vector<2x8xf32> to vector<2x8x1xf32>
    %57 = vector.broadcast %56 : vector<2x8x1xf32> to vector<2x8x8xf32>
    %58 = arith.subf %54, %57 : vector<2x8x8xf32>
    %59 = math.exp %58 : vector<2x8x8xf32>
    %cst_18 = arith.constant dense<0.000000e+00> : vector<2x8xf32>
    %60 = vector.multi_reduction <add>, %59, %cst_18 [2] : vector<2x8x8xf32> to vector<2x8xf32>
    %61 = vector.shape_cast %60 : vector<2x8xf32> to vector<2x8x1xf32>
    %62 = tpu.reciprocal %61 {approx = true} : vector<2x8x1xf32> -> vector<2x8x1xf32>
    %63 = vector.broadcast %62 : vector<2x8x1xf32> to vector<2x8x8xf32>
    %64 = arith.mulf %59, %63 : vector<2x8x8xf32>
    %65 = arith.truncf %64 : vector<2x8x8xf32> to vector<2x8x8xbf16>
    "tpu.trace_start"() <{level = 10 : i32, message = "bqk,bkd->bqd"}> : () -> ()
    %cst_19 = arith.constant dense<0.000000e+00> : vector<2x8x32xf32>
    %66 = tpu.matmul %65, %49, %cst_19 {dimension_numbers = #tpu.dot_dimension_numbers<[2], [1], [1], [2], [0, 0, 0, 1, 1, 2], [0], [0]>} : vector<2x8x8xbf16>, vector<2x8x32xbf16>, vector<2x8x32xf32> -> vector<2x8x32xf32>
    "tpu.trace_stop"() : () -> ()
    %67 = vector.shape_cast %66 : vector<2x8x32xf32> to vector<16x32xf32>
    %68 = vector.extract_strided_slice %7 {offsets = [0, 64], sizes = [16, 32], strides = [1, 1]} : vector<16x384xf32> to vector<16x32xf32>
    %69 = vector.shape_cast %68 : vector<16x32xf32> to vector<2x8x32xf32>
    %70 = arith.truncf %69 : vector<2x8x32xf32> to vector<2x8x32xbf16>
    %71 = vector.extract_strided_slice %7 {offsets = [0, 192], sizes = [16, 32], strides = [1, 1]} : vector<16x384xf32> to vector<16x32xf32>
    %72 = vector.shape_cast %71 : vector<16x32xf32> to vector<2x8x32xf32>
    %73 = arith.truncf %72 : vector<2x8x32xf32> to vector<2x8x32xbf16>
    %74 = vector.extract_strided_slice %7 {offsets = [0, 320], sizes = [16, 32], strides = [1, 1]} : vector<16x384xf32> to vector<16x32xf32>
    %75 = vector.shape_cast %74 : vector<16x32xf32> to vector<2x8x32xf32>
    %76 = arith.truncf %75 : vector<2x8x32xf32> to vector<2x8x32xbf16>
    "tpu.trace_start"() <{level = 10 : i32, message = "bqd,bkd->bqk"}> : () -> ()
    %cst_20 = arith.constant dense<0.000000e+00> : vector<2x8x8xf32>
    %77 = tpu.matmul %70, %73, %cst_20 {dimension_numbers = #tpu.dot_dimension_numbers<[2], [2], [1], [1], [0, 0, 0, 1, 1, 1], [0], [0]>} : vector<2x8x32xbf16>, vector<2x8x32xbf16>, vector<2x8x8xf32> -> vector<2x8x8xf32>
    "tpu.trace_stop"() : () -> ()
    %cst_21 = arith.constant 0.176776692 : f32
    %78 = vector.broadcast %cst_21 : f32 to vector<2x8x8xf32>
    %79 = arith.mulf %77, %78 : vector<2x8x8xf32>
    %80 = vector.broadcast %13 : vector<2x1x8xf32> to vector<2x8x8xf32>
    %81 = arith.addf %79, %80 : vector<2x8x8xf32>
    %cst_22 = arith.constant dense<0xFF800000> : vector<2x8xf32>
    %82 = vector.multi_reduction <maximumf>, %81, %cst_22 [2] : vector<2x8x8xf32> to vector<2x8xf32>
    %83 = vector.shape_cast %82 : vector<2x8xf32> to vector<2x8x1xf32>
    %84 = vector.broadcast %83 : vector<2x8x1xf32> to vector<2x8x8xf32>
    %85 = arith.subf %81, %84 : vector<2x8x8xf32>
    %86 = math.exp %85 : vector<2x8x8xf32>
    %cst_23 = arith.constant dense<0.000000e+00> : vector<2x8xf32>
    %87 = vector.multi_reduction <add>, %86, %cst_23 [2] : vector<2x8x8xf32> to vector<2x8xf32>
    %88 = vector.shape_cast %87 : vector<2x8xf32> to vector<2x8x1xf32>
    %89 = tpu.reciprocal %88 {approx = true} : vector<2x8x1xf32> -> vector<2x8x1xf32>
    %90 = vector.broadcast %89 : vector<2x8x1xf32> to vector<2x8x8xf32>
    %91 = arith.mulf %86, %90 : vector<2x8x8xf32>
    %92 = arith.truncf %91 : vector<2x8x8xf32> to vector<2x8x8xbf16>
    "tpu.trace_start"() <{level = 10 : i32, message = "bqk,bkd->bqd"}> : () -> ()
    %cst_24 = arith.constant dense<0.000000e+00> : vector<2x8x32xf32>
    %93 = tpu.matmul %92, %76, %cst_24 {dimension_numbers = #tpu.dot_dimension_numbers<[2], [1], [1], [2], [0, 0, 0, 1, 1, 2], [0], [0]>} : vector<2x8x8xbf16>, vector<2x8x32xbf16>, vector<2x8x32xf32> -> vector<2x8x32xf32>
    "tpu.trace_stop"() : () -> ()
    %94 = vector.shape_cast %93 : vector<2x8x32xf32> to vector<16x32xf32>
    %95 = vector.extract_strided_slice %7 {offsets = [0, 96], sizes = [16, 32], strides = [1, 1]} : vector<16x384xf32> to vector<16x32xf32>
    %96 = vector.shape_cast %95 : vector<16x32xf32> to vector<2x8x32xf32>
    %97 = arith.truncf %96 : vector<2x8x32xf32> to vector<2x8x32xbf16>
    %98 = vector.extract_strided_slice %7 {offsets = [0, 224], sizes = [16, 32], strides = [1, 1]} : vector<16x384xf32> to vector<16x32xf32>
    %99 = vector.shape_cast %98 : vector<16x32xf32> to vector<2x8x32xf32>
    %100 = arith.truncf %99 : vector<2x8x32xf32> to vector<2x8x32xbf16>
    %101 = vector.extract_strided_slice %7 {offsets = [0, 352], sizes = [16, 32], strides = [1, 1]} : vector<16x384xf32> to vector<16x32xf32>
    %102 = vector.shape_cast %101 : vector<16x32xf32> to vector<2x8x32xf32>
    %103 = arith.truncf %102 : vector<2x8x32xf32> to vector<2x8x32xbf16>
    "tpu.trace_start"() <{level = 10 : i32, message = "bqd,bkd->bqk"}> : () -> ()
    %cst_25 = arith.constant dense<0.000000e+00> : vector<2x8x8xf32>
    %104 = tpu.matmul %97, %100, %cst_25 {dimension_numbers = #tpu.dot_dimension_numbers<[2], [2], [1], [1], [0, 0, 0, 1, 1, 1], [0], [0]>} : vector<2x8x32xbf16>, vector<2x8x32xbf16>, vector<2x8x8xf32> -> vector<2x8x8xf32>
    "tpu.trace_stop"() : () -> ()
    %cst_26 = arith.constant 0.176776692 : f32
    %105 = vector.broadcast %cst_26 : f32 to vector<2x8x8xf32>
    %106 = arith.mulf %104, %105 : vector<2x8x8xf32>
    %107 = vector.broadcast %13 : vector<2x1x8xf32> to vector<2x8x8xf32>
    %108 = arith.addf %106, %107 : vector<2x8x8xf32>
    %cst_27 = arith.constant dense<0xFF800000> : vector<2x8xf32>
    %109 = vector.multi_reduction <maximumf>, %108, %cst_27 [2] : vector<2x8x8xf32> to vector<2x8xf32>
    %110 = vector.shape_cast %109 : vector<2x8xf32> to vector<2x8x1xf32>
    %111 = vector.broadcast %110 : vector<2x8x1xf32> to vector<2x8x8xf32>
    %112 = arith.subf %108, %111 : vector<2x8x8xf32>
    %113 = math.exp %112 : vector<2x8x8xf32>
    %cst_28 = arith.constant dense<0.000000e+00> : vector<2x8xf32>
    %114 = vector.multi_reduction <add>, %113, %cst_28 [2] : vector<2x8x8xf32> to vector<2x8xf32>
    %115 = vector.shape_cast %114 : vector<2x8xf32> to vector<2x8x1xf32>
    %116 = tpu.reciprocal %115 {approx = true} : vector<2x8x1xf32> -> vector<2x8x1xf32>
    %117 = vector.broadcast %116 : vector<2x8x1xf32> to vector<2x8x8xf32>
    %118 = arith.mulf %113, %117 : vector<2x8x8xf32>
    %119 = arith.truncf %118 : vector<2x8x8xf32> to vector<2x8x8xbf16>
    "tpu.trace_start"() <{level = 10 : i32, message = "bqk,bkd->bqd"}> : () -> ()
    %cst_29 = arith.constant dense<0.000000e+00> : vector<2x8x32xf32>
    %120 = tpu.matmul %119, %103, %cst_29 {dimension_numbers = #tpu.dot_dimension_numbers<[2], [1], [1], [2], [0, 0, 0, 1, 1, 2], [0], [0]>} : vector<2x8x8xbf16>, vector<2x8x32xbf16>, vector<2x8x32xf32> -> vector<2x8x32xf32>
    "tpu.trace_stop"() : () -> ()
    %121 = vector.shape_cast %120 : vector<2x8x32xf32> to vector<16x32xf32>
    %122 = tpu.concatenate %40, %67, %94, %121 in 1 : vector<16x32xf32>, vector<16x32xf32>, vector<16x32xf32>, vector<16x32xf32> -> vector<16x128xf32>
    %123 = arith.truncf %122 : vector<16x128xf32> to vector<16x128xbf16>
    %c0_30 = arith.constant 0 : index
    %c0_31 = arith.constant 0 : index
    %124 = vector.load %arg5[%c0_30, %c0_31] : memref<128x128xbf16, #tpu.memory_space<vmem>>, vector<128x128xbf16>
    %cst_32 = arith.constant dense<0.000000e+00> : vector<16x128xf32>
    %125 = tpu.matmul %123, %124, %cst_32 {dimension_numbers = #tpu.dot_dimension_numbers<[1], [0], [0], [1], [0, 0, 1, 1], [], []>} : vector<16x128xbf16>, vector<128x128xbf16>, vector<16x128xf32> -> vector<16x128xf32>
    %c0_33 = arith.constant 0 : index
    %c0_34 = arith.constant 0 : index
    %126 = vector.load %arg6[%c0_33, %c0_34] : memref<1x128xf32, #tpu.memory_space<vmem>>, vector<1x128xf32>
    %127 = vector.broadcast %126 : vector<1x128xf32> to vector<16x128xf32>
    %128 = arith.addf %125, %127 : vector<16x128xf32>
    %129 = arith.addf %1, %128 : vector<16x128xf32>
    %c0_35 = arith.constant 0 : index
    %c0_36 = arith.constant 0 : index
    %130 = vector.load %arg7[%c0_35, %c0_36] : memref<1x128xf32, #tpu.memory_space<vmem>>, vector<1x128xf32>
    %c0_37 = arith.constant 0 : index
    %c0_38 = arith.constant 0 : index
    %131 = vector.load %arg8[%c0_37, %c0_38] : memref<1x128xf32, #tpu.memory_space<vmem>>, vector<1x128xf32>
    %cst_39 = arith.constant dense<0.000000e+00> : vector<16xf32>
    %132 = vector.multi_reduction <add>, %129, %cst_39 [1] : vector<16x128xf32> to vector<16xf32>
    %133 = vector.shape_cast %132 : vector<16xf32> to vector<16x1xf32>
    %cst_40 = arith.constant 1.280000e+02 : f32
    %134 = vector.broadcast %cst_40 : f32 to vector<16x1xf32>
    %135 = arith.divf %133, %134 : vector<16x1xf32>
    %136 = vector.broadcast %135 : vector<16x1xf32> to vector<16x128xf32>
    %137 = arith.subf %129, %136 : vector<16x128xf32>
    %138 = arith.mulf %137, %137 : vector<16x128xf32>
    %cst_41 = arith.constant dense<0.000000e+00> : vector<16xf32>
    %139 = vector.multi_reduction <add>, %138, %cst_41 [1] : vector<16x128xf32> to vector<16xf32>
    %140 = vector.shape_cast %139 : vector<16xf32> to vector<16x1xf32>
    %cst_42 = arith.constant 1.280000e+02 : f32
    %141 = vector.broadcast %cst_42 : f32 to vector<16x1xf32>
    %142 = arith.divf %140, %141 : vector<16x1xf32>
    %143 = vector.broadcast %135 : vector<16x1xf32> to vector<16x128xf32>
    %144 = arith.subf %129, %143 : vector<16x128xf32>
    %cst_43 = arith.constant 9.99999974E-6 : f32
    %145 = vector.broadcast %cst_43 : f32 to vector<16x1xf32>
    %146 = arith.addf %142, %145 : vector<16x1xf32>
    %147 = math.rsqrt %146 : vector<16x1xf32>
    %148 = vector.broadcast %147 : vector<16x1xf32> to vector<16x128xf32>
    %149 = arith.mulf %144, %148 : vector<16x128xf32>
    %150 = vector.broadcast %130 : vector<1x128xf32> to vector<16x128xf32>
    %151 = arith.mulf %149, %150 : vector<16x128xf32>
    %152 = vector.broadcast %131 : vector<1x128xf32> to vector<16x128xf32>
    %153 = arith.addf %151, %152 : vector<16x128xf32>
    %154 = arith.truncf %153 : vector<16x128xf32> to vector<16x128xbf16>
    %c0_44 = arith.constant 0 : index
    %c0_45 = arith.constant 0 : index
    %155 = vector.load %arg9[%c0_44, %c0_45] : memref<128x128xbf16, #tpu.memory_space<vmem>>, vector<128x128xbf16>
    %cst_46 = arith.constant dense<0.000000e+00> : vector<16x128xf32>
    %156 = tpu.matmul %154, %155, %cst_46 {dimension_numbers = #tpu.dot_dimension_numbers<[1], [0], [0], [1], [0, 0, 1, 1], [], []>} : vector<16x128xbf16>, vector<128x128xbf16>, vector<16x128xf32> -> vector<16x128xf32>
    %c0_47 = arith.constant 0 : index
    %c0_48 = arith.constant 0 : index
    %157 = vector.load %arg10[%c0_47, %c0_48] : memref<1x128xf32, #tpu.memory_space<vmem>>, vector<1x128xf32>
    %158 = vector.broadcast %157 : vector<1x128xf32> to vector<16x128xf32>
    %159 = arith.addf %156, %158 : vector<16x128xf32>
    %cst_49 = arith.constant 0.000000e+00 : f32
    %160 = vector.broadcast %cst_49 : f32 to vector<16x128xf32>
    %161 = arith.maximumf %159, %160 : vector<16x128xf32>
    %162 = arith.truncf %161 : vector<16x128xf32> to vector<16x128xbf16>
    %c0_50 = arith.constant 0 : index
    %c0_51 = arith.constant 0 : index
    %163 = vector.load %arg11[%c0_50, %c0_51] : memref<128x128xbf16, #tpu.memory_space<vmem>>, vector<128x128xbf16>
    %cst_52 = arith.constant dense<0.000000e+00> : vector<16x128xf32>
    %164 = tpu.matmul %162, %163, %cst_52 {dimension_numbers = #tpu.dot_dimension_numbers<[1], [0], [0], [1], [0, 0, 1, 1], [], []>} : vector<16x128xbf16>, vector<128x128xbf16>, vector<16x128xf32> -> vector<16x128xf32>
    %c0_53 = arith.constant 0 : index
    %c0_54 = arith.constant 0 : index
    %165 = vector.load %arg12[%c0_53, %c0_54] : memref<1x128xf32, #tpu.memory_space<vmem>>, vector<1x128xf32>
    %166 = vector.broadcast %165 : vector<1x128xf32> to vector<16x128xf32>
    %167 = arith.addf %164, %166 : vector<16x128xf32>
    %168 = arith.addf %153, %167 : vector<16x128xf32>
    %c0_55 = arith.constant 0 : index
    %c0_56 = arith.constant 0 : index
    %169 = vector.load %arg13[%c0_55, %c0_56] : memref<1x128xf32, #tpu.memory_space<vmem>>, vector<1x128xf32>
    %c0_57 = arith.constant 0 : index
    %c0_58 = arith.constant 0 : index
    %170 = vector.load %arg14[%c0_57, %c0_58] : memref<1x128xf32, #tpu.memory_space<vmem>>, vector<1x128xf32>
    %cst_59 = arith.constant dense<0.000000e+00> : vector<16xf32>
    %171 = vector.multi_reduction <add>, %168, %cst_59 [1] : vector<16x128xf32> to vector<16xf32>
    %172 = vector.shape_cast %171 : vector<16xf32> to vector<16x1xf32>
    %cst_60 = arith.constant 1.280000e+02 : f32
    %173 = vector.broadcast %cst_60 : f32 to vector<16x1xf32>
    %174 = arith.divf %172, %173 : vector<16x1xf32>
    %175 = vector.broadcast %174 : vector<16x1xf32> to vector<16x128xf32>
    %176 = arith.subf %168, %175 : vector<16x128xf32>
    %177 = arith.mulf %176, %176 : vector<16x128xf32>
    %cst_61 = arith.constant dense<0.000000e+00> : vector<16xf32>
    %178 = vector.multi_reduction <add>, %177, %cst_61 [1] : vector<16x128xf32> to vector<16xf32>
    %179 = vector.shape_cast %178 : vector<16xf32> to vector<16x1xf32>
    %cst_62 = arith.constant 1.280000e+02 : f32
    %180 = vector.broadcast %cst_62 : f32 to vector<16x1xf32>
    %181 = arith.divf %179, %180 : vector<16x1xf32>
    %182 = vector.broadcast %174 : vector<16x1xf32> to vector<16x128xf32>
    %183 = arith.subf %168, %182 : vector<16x128xf32>
    %cst_63 = arith.constant 9.99999974E-6 : f32
    %184 = vector.broadcast %cst_63 : f32 to vector<16x1xf32>
    %185 = arith.addf %181, %184 : vector<16x1xf32>
    %186 = math.rsqrt %185 : vector<16x1xf32>
    %187 = vector.broadcast %186 : vector<16x1xf32> to vector<16x128xf32>
    %188 = arith.mulf %183, %187 : vector<16x128xf32>
    %189 = vector.broadcast %169 : vector<1x128xf32> to vector<16x128xf32>
    %190 = arith.mulf %188, %189 : vector<16x128xf32>
    %191 = vector.broadcast %170 : vector<1x128xf32> to vector<16x128xf32>
    %192 = arith.addf %190, %191 : vector<16x128xf32>
    %c0_64 = arith.constant 0 : index
    %c0_65 = arith.constant 0 : index
    %193 = vector.load %arg2[%c0_64, %c0_65] : memref<2x8xf32, #tpu.memory_space<vmem>>, vector<2x8xf32>
    %194 = vector.shape_cast %192 : vector<16x128xf32> to vector<2x8x128xf32>
    %195 = vector.shape_cast %193 : vector<2x8xf32> to vector<2x8x1xf32>
    %196 = vector.broadcast %195 : vector<2x8x1xf32> to vector<2x8x128xf32>
    %197 = arith.mulf %194, %196 : vector<2x8x128xf32>
    %cst_66 = arith.constant dense<0.000000e+00> : vector<2x128xf32>
    %198 = vector.multi_reduction <add>, %197, %cst_66 [1] : vector<2x8x128xf32> to vector<2x128xf32>
    %cst_67 = arith.constant dense<0.000000e+00> : vector<2xf32>
    %199 = vector.multi_reduction <add>, %193, %cst_67 [1] : vector<2x8xf32> to vector<2xf32>
    %200 = vector.shape_cast %199 : vector<2xf32> to vector<2x1xf32>
    %cst_68 = arith.constant 1.000000e+00 : f32
    %201 = vector.broadcast %cst_68 : f32 to vector<2x1xf32>
    %202 = arith.maximumf %200, %201 : vector<2x1xf32>
    %203 = tpu.reciprocal %202 {approx = true} : vector<2x1xf32> -> vector<2x1xf32>
    %204 = vector.broadcast %203 : vector<2x1xf32> to vector<2x128xf32>
    %205 = arith.mulf %198, %204 : vector<2x128xf32>
    %c0_69 = arith.constant 0 : index
    %c0_70 = arith.constant 0 : index
    %206 = vector.load %arg15[%c0_69, %c0_70] : memref<2x128xf32, #tpu.memory_space<vmem>>, vector<2x128xf32>
    tpu.vector_store %arg15[%c0_69, %c0_70], %205 {strides = array<i32>} : memref<2x128xf32, #tpu.memory_space<vmem>>, vector<2x128xf32>,
    return
  }
  func.func @transform_0(%arg0: i32) -> (i32, i32, i32) {
    %c0_i32 = arith.constant 0 : i32
    %c0_i32_0 = arith.constant 0 : i32
    %c0_i32_1 = arith.constant 0 : i32
    return %arg0, %c0_i32, %c0_i32_0 : i32, i32, i32
  }
  func.func @transform_1(%arg0: i32) -> (i32, i32) {
    %c0_i32 = arith.constant 0 : i32
    %c0_i32_0 = arith.constant 0 : i32
    return %arg0, %c0_i32 : i32, i32
  }
  func.func @transform_2(%arg0: i32) -> (i32, i32) {
    %c0_i32 = arith.constant 0 : i32
    %c0_i32_0 = arith.constant 0 : i32
    %c0_i32_1 = arith.constant 0 : i32
    return %c0_i32, %c0_i32_0 : i32, i32
  }
  func.func @transform_3(%arg0: i32) -> (i32, i32) {
    %c0_i32 = arith.constant 0 : i32
    %c0_i32_0 = arith.constant 0 : i32
    %c0_i32_1 = arith.constant 0 : i32
    return %c0_i32, %c0_i32_0 : i32, i32
  }
  func.func @transform_4(%arg0: i32) -> (i32, i32) {
    %c0_i32 = arith.constant 0 : i32
    %c0_i32_0 = arith.constant 0 : i32
    %c0_i32_1 = arith.constant 0 : i32
    return %c0_i32, %c0_i32_0 : i32, i32
  }
  func.func @transform_5(%arg0: i32) -> (i32, i32) {
    %c0_i32 = arith.constant 0 : i32
    %c0_i32_0 = arith.constant 0 : i32
    %c0_i32_1 = arith.constant 0 : i32
    return %c0_i32, %c0_i32_0 : i32, i32
  }
  func.func @transform_6(%arg0: i32) -> (i32, i32) {
    %c0_i32 = arith.constant 0 : i32
    %c0_i32_0 = arith.constant 0 : i32
    %c0_i32_1 = arith.constant 0 : i32
    return %c0_i32, %c0_i32_0 : i32, i32
  }
  func.func @transform_7(%arg0: i32) -> (i32, i32) {
    %c0_i32 = arith.constant 0 : i32
    %c0_i32_0 = arith.constant 0 : i32
    %c0_i32_1 = arith.constant 0 : i32
    return %c0_i32, %c0_i32_0 : i32, i32
  }
  func.func @transform_8(%arg0: i32) -> (i32, i32) {
    %c0_i32 = arith.constant 0 : i32
    %c0_i32_0 = arith.constant 0 : i32
    %c0_i32_1 = arith.constant 0 : i32
    return %c0_i32, %c0_i32_0 : i32, i32
  }
  func.func @transform_9(%arg0: i32) -> (i32, i32) {
    %c0_i32 = arith.constant 0 : i32
    %c0_i32_0 = arith.constant 0 : i32
    %c0_i32_1 = arith.constant 0 : i32
    return %c0_i32, %c0_i32_0 : i32, i32
  }
  func.func @transform_10(%arg0: i32) -> (i32, i32) {
    %c0_i32 = arith.constant 0 : i32
    %c0_i32_0 = arith.constant 0 : i32
    %c0_i32_1 = arith.constant 0 : i32
    return %c0_i32, %c0_i32_0 : i32, i32
  }
  func.func @transform_11(%arg0: i32) -> (i32, i32) {
    %c0_i32 = arith.constant 0 : i32
    %c0_i32_0 = arith.constant 0 : i32
    %c0_i32_1 = arith.constant 0 : i32
    return %c0_i32, %c0_i32_0 : i32, i32
  }
  func.func @transform_12(%arg0: i32) -> (i32, i32) {
    %c0_i32 = arith.constant 0 : i32
    %c0_i32_0 = arith.constant 0 : i32
    %c0_i32_1 = arith.constant 0 : i32
    return %c0_i32, %c0_i32_0 : i32, i32
  }
  func.func @transform_13(%arg0: i32) -> (i32, i32) {
    %c0_i32 = arith.constant 0 : i32
    %c0_i32_0 = arith.constant 0 : i32
    %c0_i32_1 = arith.constant 0 : i32
    return %c0_i32, %c0_i32_0 : i32, i32
  }
  func.func @transform_14(%arg0: i32) -> (i32, i32) {
    %c0_i32 = arith.constant 0 : i32
    %c0_i32_0 = arith.constant 0 : i32
    return %arg0, %c0_i32 : i32, i32
  }
}

module attributes {stable_mosaic.version = 11 : i64} {
  func.func @_encoder_layer_kernel(%arg0: i32, %arg1: memref<2x8x128xf32, #tpu.memory_space<vmem>>, %arg2: memref<2x8xf32, #tpu.memory_space<vmem>>, %arg3: memref<128x384xbf16, #tpu.memory_space<vmem>>, %arg4: memref<1x384xf32, #tpu.memory_space<vmem>>, %arg5: memref<128x128xbf16, #tpu.memory_space<vmem>>, %arg6: memref<1x128xf32, #tpu.memory_space<vmem>>, %arg7: memref<1x128xf32, #tpu.memory_space<vmem>>, %arg8: memref<1x128xf32, #tpu.memory_space<vmem>>, %arg9: memref<128x128xbf16, #tpu.memory_space<vmem>>, %arg10: memref<1x128xf32, #tpu.memory_space<vmem>>, %arg11: memref<128x128xbf16, #tpu.memory_space<vmem>>, %arg12: memref<1x128xf32, #tpu.memory_space<vmem>>, %arg13: memref<1x128xf32, #tpu.memory_space<vmem>>, %arg14: memref<1x128xf32, #tpu.memory_space<vmem>>, %arg15: memref<2x8x128xf32, #tpu.memory_space<vmem>>) attributes {dimension_semantics = [#tpu.dimension_semantics<parallel>], iteration_bounds = array<i64: 1>, scalar_prefetch = 0 : i64, scratch_operands = 0 : i64, tpu.core_type = #tpu.core_type<tc>, window_params = [{transform_indices = @transform_0, window_bounds = array<i64: 2, 8, 128>}, {transform_indices = @transform_1, window_bounds = array<i64: 2, 8>}, {pipeline_mode = #tpu.pipeline_mode<synchronous>, transform_indices = @transform_2, window_bounds = array<i64: 128, 384>}, {pipeline_mode = #tpu.pipeline_mode<synchronous>, transform_indices = @transform_3, window_bounds = array<i64: 1, 384>}, {pipeline_mode = #tpu.pipeline_mode<synchronous>, transform_indices = @transform_4, window_bounds = array<i64: 128, 128>}, {pipeline_mode = #tpu.pipeline_mode<synchronous>, transform_indices = @transform_5, window_bounds = array<i64: 1, 128>}, {pipeline_mode = #tpu.pipeline_mode<synchronous>, transform_indices = @transform_6, window_bounds = array<i64: 1, 128>}, {pipeline_mode = #tpu.pipeline_mode<synchronous>, transform_indices = @transform_7, window_bounds = array<i64: 1, 128>}, {pipeline_mode = #tpu.pipeline_mode<synchronous>, transform_indices = @transform_8, window_bounds = array<i64: 128, 128>}, {pipeline_mode = #tpu.pipeline_mode<synchronous>, transform_indices = @transform_9, window_bounds = array<i64: 1, 128>}, {pipeline_mode = #tpu.pipeline_mode<synchronous>, transform_indices = @transform_10, window_bounds = array<i64: 128, 128>}, {pipeline_mode = #tpu.pipeline_mode<synchronous>, transform_indices = @transform_11, window_bounds = array<i64: 1, 128>}, {pipeline_mode = #tpu.pipeline_mode<synchronous>, transform_indices = @transform_12, window_bounds = array<i64: 1, 128>}, {pipeline_mode = #tpu.pipeline_mode<synchronous>, transform_indices = @transform_13, window_bounds = array<i64: 1, 128>}, {transform_indices = @transform_14, window_bounds = array<i64: 2, 8, 128>}]} {
    %c0 = arith.constant 0 : index
    %c0_0 = arith.constant 0 : index
    %c0_1 = arith.constant 0 : index
    %0 = vector.load %arg1[%c0, %c0_0, %c0_1] : memref<2x8x128xf32, #tpu.memory_space<vmem>>, vector<2x8x128xf32>
    %1 = vector.shape_cast %0 : vector<2x8x128xf32> to vector<16x128xf32>
    %2 = arith.truncf %1 : vector<16x128xf32> to vector<16x128xbf16>
    %c0_2 = arith.constant 0 : index
    %c0_3 = arith.constant 0 : index
    %3 = vector.load %arg3[%c0_2, %c0_3] : memref<128x384xbf16, #tpu.memory_space<vmem>>, vector<128x384xbf16>
    %cst = arith.constant dense<0.000000e+00> : vector<16x384xf32>
    %4 = tpu.matmul %2, %3, %cst {dimension_numbers = #tpu.dot_dimension_numbers<[1], [0], [0], [1], [0, 0, 1, 1], [], []>} : vector<16x128xbf16>, vector<128x384xbf16>, vector<16x384xf32> -> vector<16x384xf32>
    %c0_4 = arith.constant 0 : index
    %c0_5 = arith.constant 0 : index
    %5 = vector.load %arg4[%c0_4, %c0_5] : memref<1x384xf32, #tpu.memory_space<vmem>>, vector<1x384xf32>
    %6 = vector.broadcast %5 : vector<1x384xf32> to vector<16x384xf32>
    %7 = arith.addf %4, %6 : vector<16x384xf32>
    %c0_6 = arith.constant 0 : index
    %c0_7 = arith.constant 0 : index
    %8 = vector.load %arg2[%c0_6, %c0_7] : memref<2x8xf32, #tpu.memory_space<vmem>>, vector<2x8xf32>
    %cst_8 = arith.constant 1.000000e+00 : f32
    %9 = vector.broadcast %cst_8 : f32 to vector<2x8xf32>
    %10 = arith.subf %8, %9 : vector<2x8xf32>
    %cst_9 = arith.constant 1.000000e+09 : f32
    %11 = vector.broadcast %cst_9 : f32 to vector<2x8xf32>
    %12 = arith.mulf %10, %11 : vector<2x8xf32>
    %13 = vector.shape_cast %12 : vector<2x8xf32> to vector<2x1x8xf32>
    %14 = vector.extract_strided_slice %7 {offsets = [0, 0], sizes = [16, 32], strides = [1, 1]} : vector<16x384xf32> to vector<16x32xf32>
    %15 = vector.shape_cast %14 : vector<16x32xf32> to vector<2x8x32xf32>
    %16 = arith.truncf %15 : vector<2x8x32xf32> to vector<2x8x32xbf16>
    %17 = vector.extract_strided_slice %7 {offsets = [0, 128], sizes = [16, 32], strides = [1, 1]} : vector<16x384xf32> to vector<16x32xf32>
    %18 = vector.shape_cast %17 : vector<16x32xf32> to vector<2x8x32xf32>
    %19 = arith.truncf %18 : vector<2x8x32xf32> to vector<2x8x32xbf16>
    %20 = vector.extract_strided_slice %7 {offsets = [0, 256], sizes = [16, 32], strides = [1, 1]} : vector<16x384xf32> to vector<16x32xf32>
    %21 = vector.shape_cast %20 : vector<16x32xf32> to vector<2x8x32xf32>
    %22 = arith.truncf %21 : vector<2x8x32xf32> to vector<2x8x32xbf16>
    "tpu.trace_start"() <{level = 10 : i32, message = "bqd,bkd->bqk"}> : () -> ()
    %cst_10 = arith.constant dense<0.000000e+00> : vector<2x8x8xf32>
    %23 = tpu.matmul %16, %19, %cst_10 {dimension_numbers = #tpu.dot_dimension_numbers<[2], [2], [1], [1], [0, 0, 0, 1, 1, 1], [0], [0]>} : vector<2x8x32xbf16>, vector<2x8x32xbf16>, vector<2x8x8xf32> -> vector<2x8x8xf32>
    "tpu.trace_stop"() : () -> ()
    %cst_11 = arith.constant 0.176776692 : f32
    %24 = vector.broadcast %cst_11 : f32 to vector<2x8x8xf32>
    %25 = arith.mulf %23, %24 : vector<2x8x8xf32>
    %26 = vector.broadcast %13 : vector<2x1x8xf32> to vector<2x8x8xf32>
    %27 = arith.addf %25, %26 : vector<2x8x8xf32>
    %cst_12 = arith.constant dense<0xFF800000> : vector<2x8xf32>
    %28 = vector.multi_reduction <maximumf>, %27, %cst_12 [2] : vector<2x8x8xf32> to vector<2x8xf32>
    %29 = vector.shape_cast %28 : vector<2x8xf32> to vector<2x8x1xf32>
    %30 = vector.broadcast %29 : vector<2x8x1xf32> to vector<2x8x8xf32>
    %31 = arith.subf %27, %30 : vector<2x8x8xf32>
    %32 = math.exp %31 : vector<2x8x8xf32>
    %cst_13 = arith.constant dense<0.000000e+00> : vector<2x8xf32>
    %33 = vector.multi_reduction <add>, %32, %cst_13 [2] : vector<2x8x8xf32> to vector<2x8xf32>
    %34 = vector.shape_cast %33 : vector<2x8xf32> to vector<2x8x1xf32>
    %35 = tpu.reciprocal %34 {approx = true} : vector<2x8x1xf32> -> vector<2x8x1xf32>
    %36 = vector.broadcast %35 : vector<2x8x1xf32> to vector<2x8x8xf32>
    %37 = arith.mulf %32, %36 : vector<2x8x8xf32>
    %38 = arith.truncf %37 : vector<2x8x8xf32> to vector<2x8x8xbf16>
    "tpu.trace_start"() <{level = 10 : i32, message = "bqk,bkd->bqd"}> : () -> ()
    %cst_14 = arith.constant dense<0.000000e+00> : vector<2x8x32xf32>
    %39 = tpu.matmul %38, %22, %cst_14 {dimension_numbers = #tpu.dot_dimension_numbers<[2], [1], [1], [2], [0, 0, 0, 1, 1, 2], [0], [0]>} : vector<2x8x8xbf16>, vector<2x8x32xbf16>, vector<2x8x32xf32> -> vector<2x8x32xf32>
    "tpu.trace_stop"() : () -> ()
    %40 = vector.shape_cast %39 : vector<2x8x32xf32> to vector<16x32xf32>
    %41 = vector.extract_strided_slice %7 {offsets = [0, 32], sizes = [16, 32], strides = [1, 1]} : vector<16x384xf32> to vector<16x32xf32>
    %42 = vector.shape_cast %41 : vector<16x32xf32> to vector<2x8x32xf32>
    %43 = arith.truncf %42 : vector<2x8x32xf32> to vector<2x8x32xbf16>
    %44 = vector.extract_strided_slice %7 {offsets = [0, 160], sizes = [16, 32], strides = [1, 1]} : vector<16x384xf32> to vector<16x32xf32>
    %45 = vector.shape_cast %44 : vector<16x32xf32> to vector<2x8x32xf32>
    %46 = arith.truncf %45 : vector<2x8x32xf32> to vector<2x8x32xbf16>
    %47 = vector.extract_strided_slice %7 {offsets = [0, 288], sizes = [16, 32], strides = [1, 1]} : vector<16x384xf32> to vector<16x32xf32>
    %48 = vector.shape_cast %47 : vector<16x32xf32> to vector<2x8x32xf32>
    %49 = arith.truncf %48 : vector<2x8x32xf32> to vector<2x8x32xbf16>
    "tpu.trace_start"() <{level = 10 : i32, message = "bqd,bkd->bqk"}> : () -> ()
    %cst_15 = arith.constant dense<0.000000e+00> : vector<2x8x8xf32>
    %50 = tpu.matmul %43, %46, %cst_15 {dimension_numbers = #tpu.dot_dimension_numbers<[2], [2], [1], [1], [0, 0, 0, 1, 1, 1], [0], [0]>} : vector<2x8x32xbf16>, vector<2x8x32xbf16>, vector<2x8x8xf32> -> vector<2x8x8xf32>
    "tpu.trace_stop"() : () -> ()
    %cst_16 = arith.constant 0.176776692 : f32
    %51 = vector.broadcast %cst_16 : f32 to vector<2x8x8xf32>
    %52 = arith.mulf %50, %51 : vector<2x8x8xf32>
    %53 = vector.broadcast %13 : vector<2x1x8xf32> to vector<2x8x8xf32>
    %54 = arith.addf %52, %53 : vector<2x8x8xf32>
    %cst_17 = arith.constant dense<0xFF800000> : vector<2x8xf32>
    %55 = vector.multi_reduction <maximumf>, %54, %cst_17 [2] : vector<2x8x8xf32> to vector<2x8xf32>
    %56 = vector.shape_cast %55 : vector<2x8xf32> to vector<2x8x1xf32>
    %57 = vector.broadcast %56 : vector<2x8x1xf32> to vector<2x8x8xf32>
    %58 = arith.subf %54, %57 : vector<2x8x8xf32>
    %59 = math.exp %58 : vector<2x8x8xf32>
    %cst_18 = arith.constant dense<0.000000e+00> : vector<2x8xf32>
    %60 = vector.multi_reduction <add>, %59, %cst_18 [2] : vector<2x8x8xf32> to vector<2x8xf32>
    %61 = vector.shape_cast %60 : vector<2x8xf32> to vector<2x8x1xf32>
    %62 = tpu.reciprocal %61 {approx = true} : vector<2x8x1xf32> -> vector<2x8x1xf32>
    %63 = vector.broadcast %62 : vector<2x8x1xf32> to vector<2x8x8xf32>
    %64 = arith.mulf %59, %63 : vector<2x8x8xf32>
    %65 = arith.truncf %64 : vector<2x8x8xf32> to vector<2x8x8xbf16>
    "tpu.trace_start"() <{level = 10 : i32, message = "bqk,bkd->bqd"}> : () -> ()
    %cst_19 = arith.constant dense<0.000000e+00> : vector<2x8x32xf32>
    %66 = tpu.matmul %65, %49, %cst_19 {dimension_numbers = #tpu.dot_dimension_numbers<[2], [1], [1], [2], [0, 0, 0, 1, 1, 2], [0], [0]>} : vector<2x8x8xbf16>, vector<2x8x32xbf16>, vector<2x8x32xf32> -> vector<2x8x32xf32>
    "tpu.trace_stop"() : () -> ()
    %67 = vector.shape_cast %66 : vector<2x8x32xf32> to vector<16x32xf32>
    %68 = vector.extract_strided_slice %7 {offsets = [0, 64], sizes = [16, 32], strides = [1, 1]} : vector<16x384xf32> to vector<16x32xf32>
    %69 = vector.shape_cast %68 : vector<16x32xf32> to vector<2x8x32xf32>
    %70 = arith.truncf %69 : vector<2x8x32xf32> to vector<2x8x32xbf16>
    %71 = vector.extract_strided_slice %7 {offsets = [0, 192], sizes = [16, 32], strides = [1, 1]} : vector<16x384xf32> to vector<16x32xf32>
    %72 = vector.shape_cast %71 : vector<16x32xf32> to vector<2x8x32xf32>
    %73 = arith.truncf %72 : vector<2x8x32xf32> to vector<2x8x32xbf16>
    %74 = vector.extract_strided_slice %7 {offsets = [0, 320], sizes = [16, 32], strides = [1, 1]} : vector<16x384xf32> to vector<16x32xf32>
    %75 = vector.shape_cast %74 : vector<16x32xf32> to vector<2x8x32xf32>
    %76 = arith.truncf %75 : vector<2x8x32xf32> to vector<2x8x32xbf16>
    "tpu.trace_start"() <{level = 10 : i32, message = "bqd,bkd->bqk"}> : () -> ()
    %cst_20 = arith.constant dense<0.000000e+00> : vector<2x8x8xf32>
    %77 = tpu.matmul %70, %73, %cst_20 {dimension_numbers = #tpu.dot_dimension_numbers<[2], [2], [1], [1], [0, 0, 0, 1, 1, 1], [0], [0]>} : vector<2x8x32xbf16>, vector<2x8x32xbf16>, vector<2x8x8xf32> -> vector<2x8x8xf32>
    "tpu.trace_stop"() : () -> ()
    %cst_21 = arith.constant 0.176776692 : f32
    %78 = vector.broadcast %cst_21 : f32 to vector<2x8x8xf32>
    %79 = arith.mulf %77, %78 : vector<2x8x8xf32>
    %80 = vector.broadcast %13 : vector<2x1x8xf32> to vector<2x8x8xf32>
    %81 = arith.addf %79, %80 : vector<2x8x8xf32>
    %cst_22 = arith.constant dense<0xFF800000> : vector<2x8xf32>
    %82 = vector.multi_reduction <maximumf>, %81, %cst_22 [2] : vector<2x8x8xf32> to vector<2x8xf32>
    %83 = vector.shape_cast %82 : vector<2x8xf32> to vector<2x8x1xf32>
    %84 = vector.broadcast %83 : vector<2x8x1xf32> to vector<2x8x8xf32>
    %85 = arith.subf %81, %84 : vector<2x8x8xf32>
    %86 = math.exp %85 : vector<2x8x8xf32>
    %cst_23 = arith.constant dense<0.000000e+00> : vector<2x8xf32>
    %87 = vector.multi_reduction <add>, %86, %cst_23 [2] : vector<2x8x8xf32> to vector<2x8xf32>
    %88 = vector.shape_cast %87 : vector<2x8xf32> to vector<2x8x1xf32>
    %89 = tpu.reciprocal %88 {approx = true} : vector<2x8x1xf32> -> vector<2x8x1xf32>
    %90 = vector.broadcast %89 : vector<2x8x1xf32> to vector<2x8x8xf32>
    %91 = arith.mulf %86, %90 : vector<2x8x8xf32>
    %92 = arith.truncf %91 : vector<2x8x8xf32> to vector<2x8x8xbf16>
    "tpu.trace_start"() <{level = 10 : i32, message = "bqk,bkd->bqd"}> : () -> ()
    %cst_24 = arith.constant dense<0.000000e+00> : vector<2x8x32xf32>
    %93 = tpu.matmul %92, %76, %cst_24 {dimension_numbers = #tpu.dot_dimension_numbers<[2], [1], [1], [2], [0, 0, 0, 1, 1, 2], [0], [0]>} : vector<2x8x8xbf16>, vector<2x8x32xbf16>, vector<2x8x32xf32> -> vector<2x8x32xf32>
    "tpu.trace_stop"() : () -> ()
    %94 = vector.shape_cast %93 : vector<2x8x32xf32> to vector<16x32xf32>
    %95 = vector.extract_strided_slice %7 {offsets = [0, 96], sizes = [16, 32], strides = [1, 1]} : vector<16x384xf32> to vector<16x32xf32>
    %96 = vector.shape_cast %95 : vector<16x32xf32> to vector<2x8x32xf32>
    %97 = arith.truncf %96 : vector<2x8x32xf32> to vector<2x8x32xbf16>
    %98 = vector.extract_strided_slice %7 {offsets = [0, 224], sizes = [16, 32], strides = [1, 1]} : vector<16x384xf32> to vector<16x32xf32>
    %99 = vector.shape_cast %98 : vector<16x32xf32> to vector<2x8x32xf32>
    %100 = arith.truncf %99 : vector<2x8x32xf32> to vector<2x8x32xbf16>
    %101 = vector.extract_strided_slice %7 {offsets = [0, 352], sizes = [16, 32], strides = [1, 1]} : vector<16x384xf32> to vector<16x32xf32>
    %102 = vector.shape_cast %101 : vector<16x32xf32> to vector<2x8x32xf32>
    %103 = arith.truncf %102 : vector<2x8x32xf32> to vector<2x8x32xbf16>
    "tpu.trace_start"() <{level = 10 : i32, message = "bqd,bkd->bqk"}> : () -> ()
    %cst_25 = arith.constant dense<0.000000e+00> : vector<2x8x8xf32>
    %104 = tpu.matmul %97, %100, %cst_25 {dimension_numbers = #tpu.dot_dimension_numbers<[2], [2], [1], [1], [0, 0, 0, 1, 1, 1], [0], [0]>} : vector<2x8x32xbf16>, vector<2x8x32xbf16>, vector<2x8x8xf32> -> vector<2x8x8xf32>
    "tpu.trace_stop"() : () -> ()
    %cst_26 = arith.constant 0.176776692 : f32
    %105 = vector.broadcast %cst_26 : f32 to vector<2x8x8xf32>
    %106 = arith.mulf %104, %105 : vector<2x8x8xf32>
    %107 = vector.broadcast %13 : vector<2x1x8xf32> to vector<2x8x8xf32>
    %108 = arith.addf %106, %107 : vector<2x8x8xf32>
    %cst_27 = arith.constant dense<0xFF800000> : vector<2x8xf32>
    %109 = vector.multi_reduction <maximumf>, %108, %cst_27 [2] : vector<2x8x8xf32> to vector<2x8xf32>
    %110 = vector.shape_cast %109 : vector<2x8xf32> to vector<2x8x1xf32>
    %111 = vector.broadcast %110 : vector<2x8x1xf32> to vector<2x8x8xf32>
    %112 = arith.subf %108, %111 : vector<2x8x8xf32>
    %113 = math.exp %112 : vector<2x8x8xf32>
    %cst_28 = arith.constant dense<0.000000e+00> : vector<2x8xf32>
    %114 = vector.multi_reduction <add>, %113, %cst_28 [2] : vector<2x8x8xf32> to vector<2x8xf32>
    %115 = vector.shape_cast %114 : vector<2x8xf32> to vector<2x8x1xf32>
    %116 = tpu.reciprocal %115 {approx = true} : vector<2x8x1xf32> -> vector<2x8x1xf32>
    %117 = vector.broadcast %116 : vector<2x8x1xf32> to vector<2x8x8xf32>
    %118 = arith.mulf %113, %117 : vector<2x8x8xf32>
    %119 = arith.truncf %118 : vector<2x8x8xf32> to vector<2x8x8xbf16>
    "tpu.trace_start"() <{level = 10 : i32, message = "bqk,bkd->bqd"}> : () -> ()
    %cst_29 = arith.constant dense<0.000000e+00> : vector<2x8x32xf32>
    %120 = tpu.matmul %119, %103, %cst_29 {dimension_numbers = #tpu.dot_dimension_numbers<[2], [1], [1], [2], [0, 0, 0, 1, 1, 2], [0], [0]>} : vector<2x8x8xbf16>, vector<2x8x32xbf16>, vector<2x8x32xf32> -> vector<2x8x32xf32>
    "tpu.trace_stop"() : () -> ()
    %121 = vector.shape_cast %120 : vector<2x8x32xf32> to vector<16x32xf32>
    %122 = tpu.concatenate %40, %67, %94, %121 in 1 : vector<16x32xf32>, vector<16x32xf32>, vector<16x32xf32>, vector<16x32xf32> -> vector<16x128xf32>
    %123 = arith.truncf %122 : vector<16x128xf32> to vector<16x128xbf16>
    %c0_30 = arith.constant 0 : index
    %c0_31 = arith.constant 0 : index
    %124 = vector.load %arg5[%c0_30, %c0_31] : memref<128x128xbf16, #tpu.memory_space<vmem>>, vector<128x128xbf16>
    %cst_32 = arith.constant dense<0.000000e+00> : vector<16x128xf32>
    %125 = tpu.matmul %123, %124, %cst_32 {dimension_numbers = #tpu.dot_dimension_numbers<[1], [0], [0], [1], [0, 0, 1, 1], [], []>} : vector<16x128xbf16>, vector<128x128xbf16>, vector<16x128xf32> -> vector<16x128xf32>
    %c0_33 = arith.constant 0 : index
    %c0_34 = arith.constant 0 : index
    %126 = vector.load %arg6[%c0_33, %c0_34] : memref<1x128xf32, #tpu.memory_space<vmem>>, vector<1x128xf32>
    %127 = vector.broadcast %126 : vector<1x128xf32> to vector<16x128xf32>
    %128 = arith.addf %125, %127 : vector<16x128xf32>
    %129 = arith.addf %1, %128 : vector<16x128xf32>
    %c0_35 = arith.constant 0 : index
    %c0_36 = arith.constant 0 : index
    %130 = vector.load %arg7[%c0_35, %c0_36] : memref<1x128xf32, #tpu.memory_space<vmem>>, vector<1x128xf32>
    %c0_37 = arith.constant 0 : index
    %c0_38 = arith.constant 0 : index
    %131 = vector.load %arg8[%c0_37, %c0_38] : memref<1x128xf32, #tpu.memory_space<vmem>>, vector<1x128xf32>
    %cst_39 = arith.constant dense<0.000000e+00> : vector<16xf32>
    %132 = vector.multi_reduction <add>, %129, %cst_39 [1] : vector<16x128xf32> to vector<16xf32>
    %133 = vector.shape_cast %132 : vector<16xf32> to vector<16x1xf32>
    %cst_40 = arith.constant 1.280000e+02 : f32
    %134 = vector.broadcast %cst_40 : f32 to vector<16x1xf32>
    %135 = arith.divf %133, %134 : vector<16x1xf32>
    %136 = vector.broadcast %135 : vector<16x1xf32> to vector<16x128xf32>
    %137 = arith.subf %129, %136 : vector<16x128xf32>
    %138 = arith.mulf %137, %137 : vector<16x128xf32>
    %cst_41 = arith.constant dense<0.000000e+00> : vector<16xf32>
    %139 = vector.multi_reduction <add>, %138, %cst_41 [1] : vector<16x128xf32> to vector<16xf32>
    %140 = vector.shape_cast %139 : vector<16xf32> to vector<16x1xf32>
    %cst_42 = arith.constant 1.280000e+02 : f32
    %141 = vector.broadcast %cst_42 : f32 to vector<16x1xf32>
    %142 = arith.divf %140, %141 : vector<16x1xf32>
    %143 = vector.broadcast %135 : vector<16x1xf32> to vector<16x128xf32>
    %144 = arith.subf %129, %143 : vector<16x128xf32>
    %cst_43 = arith.constant 9.99999974E-6 : f32
    %145 = vector.broadcast %cst_43 : f32 to vector<16x1xf32>
    %146 = arith.addf %142, %145 : vector<16x1xf32>
    %147 = math.rsqrt %146 : vector<16x1xf32>
    %148 = vector.broadcast %147 : vector<16x1xf32> to vector<16x128xf32>
    %149 = arith.mulf %144, %148 : vector<16x128xf32>
    %150 = vector.broadcast %130 : vector<1x128xf32> to vector<16x128xf32>
    %151 = arith.mulf %149, %150 : vector<16x128xf32>
    %152 = vector.broadcast %131 : vector<1x128xf32> to vector<16x128xf32>
    %153 = arith.addf %151, %152 : vector<16x128xf32>
    %154 = arith.truncf %153 : vector<16x128xf32> to vector<16x128xbf16>
    %c0_44 = arith.constant 0 : index
    %c0_45 = arith.constant 0 : index
    %155 = vector.load %arg9[%c0_44, %c0_45] : memref<128x128xbf16, #tpu.memory_space<vmem>>, vector<128x128xbf16>
    %cst_46 = arith.constant dense<0.000000e+00> : vector<16x128xf32>
    %156 = tpu.matmul %154, %155, %cst_46 {dimension_numbers = #tpu.dot_dimension_numbers<[1], [0], [0], [1], [0, 0, 1, 1], [], []>} : vector<16x128xbf16>, vector<128x128xbf16>, vector<16x128xf32> -> vector<16x128xf32>
    %c0_47 = arith.constant 0 : index
    %c0_48 = arith.constant 0 : index
    %157 = vector.load %arg10[%c0_47, %c0_48] : memref<1x128xf32, #tpu.memory_space<vmem>>, vector<1x128xf32>
    %158 = vector.broadcast %157 : vector<1x128xf32> to vector<16x128xf32>
    %159 = arith.addf %156, %158 : vector<16x128xf32>
    %cst_49 = arith.constant 0.000000e+00 : f32
    %160 = vector.broadcast %cst_49 : f32 to vector<16x128xf32>
    %161 = arith.maximumf %159, %160 : vector<16x128xf32>
    %162 = arith.truncf %161 : vector<16x128xf32> to vector<16x128xbf16>
    %c0_50 = arith.constant 0 : index
    %c0_51 = arith.constant 0 : index
    %163 = vector.load %arg11[%c0_50, %c0_51] : memref<128x128xbf16, #tpu.memory_space<vmem>>, vector<128x128xbf16>
    %cst_52 = arith.constant dense<0.000000e+00> : vector<16x128xf32>
    %164 = tpu.matmul %162, %163, %cst_52 {dimension_numbers = #tpu.dot_dimension_numbers<[1], [0], [0], [1], [0, 0, 1, 1], [], []>} : vector<16x128xbf16>, vector<128x128xbf16>, vector<16x128xf32> -> vector<16x128xf32>
    %c0_53 = arith.constant 0 : index
    %c0_54 = arith.constant 0 : index
    %165 = vector.load %arg12[%c0_53, %c0_54] : memref<1x128xf32, #tpu.memory_space<vmem>>, vector<1x128xf32>
    %166 = vector.broadcast %165 : vector<1x128xf32> to vector<16x128xf32>
    %167 = arith.addf %164, %166 : vector<16x128xf32>
    %168 = arith.addf %153, %167 : vector<16x128xf32>
    %c0_55 = arith.constant 0 : index
    %c0_56 = arith.constant 0 : index
    %169 = vector.load %arg13[%c0_55, %c0_56] : memref<1x128xf32, #tpu.memory_space<vmem>>, vector<1x128xf32>
    %c0_57 = arith.constant 0 : index
    %c0_58 = arith.constant 0 : index
    %170 = vector.load %arg14[%c0_57, %c0_58] : memref<1x128xf32, #tpu.memory_space<vmem>>, vector<1x128xf32>
    %cst_59 = arith.constant dense<0.000000e+00> : vector<16xf32>
    %171 = vector.multi_reduction <add>, %168, %cst_59 [1] : vector<16x128xf32> to vector<16xf32>
    %172 = vector.shape_cast %171 : vector<16xf32> to vector<16x1xf32>
    %cst_60 = arith.constant 1.280000e+02 : f32
    %173 = vector.broadcast %cst_60 : f32 to vector<16x1xf32>
    %174 = arith.divf %172, %173 : vector<16x1xf32>
    %175 = vector.broadcast %174 : vector<16x1xf32> to vector<16x128xf32>
    %176 = arith.subf %168, %175 : vector<16x128xf32>
    %177 = arith.mulf %176, %176 : vector<16x128xf32>
    %cst_61 = arith.constant dense<0.000000e+00> : vector<16xf32>
    %178 = vector.multi_reduction <add>, %177, %cst_61 [1] : vector<16x128xf32> to vector<16xf32>
    %179 = vector.shape_cast %178 : vector<16xf32> to vector<16x1xf32>
    %cst_62 = arith.constant 1.280000e+02 : f32
    %180 = vector.broadcast %cst_62 : f32 to vector<16x1xf32>
    %181 = arith.divf %179, %180 : vector<16x1xf32>
    %182 = vector.broadcast %174 : vector<16x1xf32> to vector<16x128xf32>
    %183 = arith.subf %168, %182 : vector<16x128xf32>
    %cst_63 = arith.constant 9.99999974E-6 : f32
    %184 = vector.broadcast %cst_63 : f32 to vector<16x1xf32>
    %185 = arith.addf %181, %184 : vector<16x1xf32>
    %186 = math.rsqrt %185 : vector<16x1xf32>
    %187 = vector.broadcast %186 : vector<16x1xf32> to vector<16x128xf32>
    %188 = arith.mulf %183, %187 : vector<16x128xf32>
    %189 = vector.broadcast %169 : vector<1x128xf32> to vector<16x128xf32>
    %190 = arith.mulf %188, %189 : vector<16x128xf32>
    %191 = vector.broadcast %170 : vector<1x128xf32> to vector<16x128xf32>
    %192 = arith.addf %190, %191 : vector<16x128xf32>
    %193 = vector.shape_cast %192 : vector<16x128xf32> to vector<2x8x128xf32>
    %c0_64 = arith.constant 0 : index
    %c0_65 = arith.constant 0 : index
    %c0_66 = arith.constant 0 : index
    %194 = vector.load %arg15[%c0_64, %c0_65, %c0_66] : memref<2x8x128xf32, #tpu.memory_space<vmem>>, vector<2x8x128xf32>
    tpu.vector_store %arg15[%c0_64, %c0_65, %c0_66], %193 {strides = array<i32>} : memref<2x8x128xf32, #tpu.memory_space<vmem>>, vector<2x8x128xf32>,
    return
  }
  func.func @transform_0(%arg0: i32) -> (i32, i32, i32) {
    %c0_i32 = arith.constant 0 : i32
    %c0_i32_0 = arith.constant 0 : i32
    %c0_i32_1 = arith.constant 0 : i32
    return %arg0, %c0_i32, %c0_i32_0 : i32, i32, i32
  }
  func.func @transform_1(%arg0: i32) -> (i32, i32) {
    %c0_i32 = arith.constant 0 : i32
    %c0_i32_0 = arith.constant 0 : i32
    return %arg0, %c0_i32 : i32, i32
  }
  func.func @transform_2(%arg0: i32) -> (i32, i32) {
    %c0_i32 = arith.constant 0 : i32
    %c0_i32_0 = arith.constant 0 : i32
    %c0_i32_1 = arith.constant 0 : i32
    return %c0_i32, %c0_i32_0 : i32, i32
  }
  func.func @transform_3(%arg0: i32) -> (i32, i32) {
    %c0_i32 = arith.constant 0 : i32
    %c0_i32_0 = arith.constant 0 : i32
    %c0_i32_1 = arith.constant 0 : i32
    return %c0_i32, %c0_i32_0 : i32, i32
  }
  func.func @transform_4(%arg0: i32) -> (i32, i32) {
    %c0_i32 = arith.constant 0 : i32
    %c0_i32_0 = arith.constant 0 : i32
    %c0_i32_1 = arith.constant 0 : i32
    return %c0_i32, %c0_i32_0 : i32, i32
  }
  func.func @transform_5(%arg0: i32) -> (i32, i32) {
    %c0_i32 = arith.constant 0 : i32
    %c0_i32_0 = arith.constant 0 : i32
    %c0_i32_1 = arith.constant 0 : i32
    return %c0_i32, %c0_i32_0 : i32, i32
  }
  func.func @transform_6(%arg0: i32) -> (i32, i32) {
    %c0_i32 = arith.constant 0 : i32
    %c0_i32_0 = arith.constant 0 : i32
    %c0_i32_1 = arith.constant 0 : i32
    return %c0_i32, %c0_i32_0 : i32, i32
  }
  func.func @transform_7(%arg0: i32) -> (i32, i32) {
    %c0_i32 = arith.constant 0 : i32
    %c0_i32_0 = arith.constant 0 : i32
    %c0_i32_1 = arith.constant 0 : i32
    return %c0_i32, %c0_i32_0 : i32, i32
  }
  func.func @transform_8(%arg0: i32) -> (i32, i32) {
    %c0_i32 = arith.constant 0 : i32
    %c0_i32_0 = arith.constant 0 : i32
    %c0_i32_1 = arith.constant 0 : i32
    return %c0_i32, %c0_i32_0 : i32, i32
  }
  func.func @transform_9(%arg0: i32) -> (i32, i32) {
    %c0_i32 = arith.constant 0 : i32
    %c0_i32_0 = arith.constant 0 : i32
    %c0_i32_1 = arith.constant 0 : i32
    return %c0_i32, %c0_i32_0 : i32, i32
  }
  func.func @transform_10(%arg0: i32) -> (i32, i32) {
    %c0_i32 = arith.constant 0 : i32
    %c0_i32_0 = arith.constant 0 : i32
    %c0_i32_1 = arith.constant 0 : i32
    return %c0_i32, %c0_i32_0 : i32, i32
  }
  func.func @transform_11(%arg0: i32) -> (i32, i32) {
    %c0_i32 = arith.constant 0 : i32
    %c0_i32_0 = arith.constant 0 : i32
    %c0_i32_1 = arith.constant 0 : i32
    return %c0_i32, %c0_i32_0 : i32, i32
  }
  func.func @transform_12(%arg0: i32) -> (i32, i32) {
    %c0_i32 = arith.constant 0 : i32
    %c0_i32_0 = arith.constant 0 : i32
    %c0_i32_1 = arith.constant 0 : i32
    return %c0_i32, %c0_i32_0 : i32, i32
  }
  func.func @transform_13(%arg0: i32) -> (i32, i32) {
    %c0_i32 = arith.constant 0 : i32
    %c0_i32_0 = arith.constant 0 : i32
    %c0_i32_1 = arith.constant 0 : i32
    return %c0_i32, %c0_i32_0 : i32, i32
  }
  func.func @transform_14(%arg0: i32) -> (i32, i32, i32) {
    %c0_i32 = arith.constant 0 : i32
    %c0_i32_0 = arith.constant 0 : i32
    %c0_i32_1 = arith.constant 0 : i32
    return %arg0, %c0_i32, %c0_i32_0 : i32, i32, i32
  }
}

module attributes {stable_mosaic.version = 11 : i64} {
  func.func @_classify_kernel(%arg0: i32, %arg1: memref<2x128xf32, #tpu.memory_space<vmem>>, %arg2: memref<128x4xf32, #tpu.memory_space<vmem>>, %arg3: memref<1x4xf32, #tpu.memory_space<vmem>>, %arg4: memref<2x4xf32, #tpu.memory_space<vmem>>) attributes {dimension_semantics = [#tpu.dimension_semantics<parallel>], iteration_bounds = array<i64: 1>, scalar_prefetch = 0 : i64, scratch_operands = 0 : i64, tpu.core_type = #tpu.core_type<tc>, window_params = [{transform_indices = @transform_0, window_bounds = array<i64: 2, 128>}, {pipeline_mode = #tpu.pipeline_mode<synchronous>, transform_indices = @transform_1, window_bounds = array<i64: 128, 4>}, {pipeline_mode = #tpu.pipeline_mode<synchronous>, transform_indices = @transform_2, window_bounds = array<i64: 1, 4>}, {transform_indices = @transform_3, window_bounds = array<i64: 2, 4>}]} {
    %c0 = arith.constant 0 : index
    %c0_0 = arith.constant 0 : index
    %0 = vector.load %arg1[%c0, %c0_0] : memref<2x128xf32, #tpu.memory_space<vmem>>, vector<2x128xf32>
    %c0_1 = arith.constant 0 : index
    %c0_2 = arith.constant 0 : index
    %1 = vector.load %arg2[%c0_1, %c0_2] : memref<128x4xf32, #tpu.memory_space<vmem>>, vector<128x4xf32>
    %cst = arith.constant dense<0.000000e+00> : vector<2x4xf32>
    %2 = tpu.matmul %0, %1, %cst {dimension_numbers = #tpu.dot_dimension_numbers<[1], [0], [0], [1], [0, 0, 1, 1], [], []>} : vector<2x128xf32>, vector<128x4xf32>, vector<2x4xf32> -> vector<2x4xf32>
    %c0_3 = arith.constant 0 : index
    %c0_4 = arith.constant 0 : index
    %3 = vector.load %arg3[%c0_3, %c0_4] : memref<1x4xf32, #tpu.memory_space<vmem>>, vector<1x4xf32>
    %4 = vector.broadcast %3 : vector<1x4xf32> to vector<2x4xf32>
    %5 = arith.addf %2, %4 : vector<2x4xf32>
    %cst_5 = arith.constant dense<0xFF800000> : vector<2xf32>
    %6 = vector.multi_reduction <maximumf>, %5, %cst_5 [1] : vector<2x4xf32> to vector<2xf32>
    %7 = vector.shape_cast %6 : vector<2xf32> to vector<2x1xf32>
    %8 = vector.broadcast %7 : vector<2x1xf32> to vector<2x4xf32>
    %9 = arith.subf %5, %8 : vector<2x4xf32>
    %10 = math.exp %9 : vector<2x4xf32>
    %cst_6 = arith.constant dense<0.000000e+00> : vector<2xf32>
    %11 = vector.multi_reduction <add>, %10, %cst_6 [1] : vector<2x4xf32> to vector<2xf32>
    %12 = vector.shape_cast %11 : vector<2xf32> to vector<2x1xf32>
    %13 = vector.broadcast %12 : vector<2x1xf32> to vector<2x4xf32>
    %14 = arith.divf %10, %13 : vector<2x4xf32>
    %c0_7 = arith.constant 0 : index
    %c0_8 = arith.constant 0 : index
    %15 = vector.load %arg4[%c0_7, %c0_8] : memref<2x4xf32, #tpu.memory_space<vmem>>, vector<2x4xf32>
    tpu.vector_store %arg4[%c0_7, %c0_8], %14 {strides = array<i32>} : memref<2x4xf32, #tpu.memory_space<vmem>>, vector<2x4xf32>,
    return
  }
  func.func @transform_0(%arg0: i32) -> (i32, i32) {
    %c0_i32 = arith.constant 0 : i32
    %c0_i32_0 = arith.constant 0 : i32
    return %arg0, %c0_i32 : i32, i32
  }
  func.func @transform_1(%arg0: i32) -> (i32, i32) {
    %c0_i32 = arith.constant 0 : i32
    %c0_i32_0 = arith.constant 0 : i32
    %c0_i32_1 = arith.constant 0 : i32
    return %c0_i32, %c0_i32_0 : i32, i32
  }
  func.func @transform_2(%arg0: i32) -> (i32, i32) {
    %c0_i32 = arith.constant 0 : i32
    %c0_i32_0 = arith.constant 0 : i32
    %c0_i32_1 = arith.constant 0 : i32
    return %c0_i32, %c0_i32_0 : i32, i32
  }
  func.func @transform_3(%arg0: i32) -> (i32, i32) {
    %c0_i32 = arith.constant 0 : i32
    %c0_i32_0 = arith.constant 0 : i32
    return %arg0, %c0_i32 : i32, i32
  }
}

</mosaic_0001>

<bundles_post_ra>
// kernel: closed_call.7
= control target key start
LH: loop header
LB: loop body
LE: loop exit
PB: predicated region body
PF: predicated region fallthrough
CT: control target
= control target key end

     0   :  { %v2145_v1 = vmov 0   ;;  %v2146_v2 = vmov 0.0   ;;  %vm2147_vm0 = vmmov 0   ;;  %v85_v29 = vlaneseq  ;;  %s2150_s18 = smov 64   ;;  %s2151_s19 = smov 32   ;;  %s2640_s2 = inlined_call_operand.vmem [shape: bf16[128,384], index: 2, kind: input, shape index: {}]   ;;  %s2641_s0 = inlined_call_operand.vmem [shape: f32[2,8,128], index: 0, kind: input, shape index: {}]   ;;  %s2642_s3 = inlined_call_operand.vmem [shape: f32[1,384], index: 3, kind: input, shape index: {}]   ;;  %s2643_s1 = inlined_call_operand.vmem [shape: f32[2,8], index: 1, kind: input, shape index: {}]   ;;  %s2644_s4 = inlined_call_operand.vmem [shape: bf16[128,128], index: 4, kind: input, shape index: {}]   ;;  %s2645_s5 = inlined_call_operand.vmem [shape: f32[1,128], index: 5, kind: input, shape index: {}]   ;;  %s2646_s8 = inlined_call_operand.vmem [shape: bf16[128,128], index: 8, kind: input, shape index: {}]   ;;  %s2647_s10 = inlined_call_operand.vmem [shape: bf16[128,128], index: 10, kind: input, shape index: {}]   ;;  %s2648_s6 = inlined_call_operand.vmem [shape: f32[1,128], index: 6, kind: input, shape index: {}]   ;;  %s2649_s7 = inlined_call_operand.vmem [shape: f32[1,128], index: 7, kind: input, shape index: {}]   ;;  %s2650_s9 = inlined_call_operand.vmem [shape: f32[1,128], index: 9, kind: input, shape index: {}]   ;;  %s2651_s11 = inlined_call_operand.vmem [shape: f32[1,128], index: 11, kind: input, shape index: {}]   ;;  %s2652_s12 = inlined_call_operand.vmem [shape: f32[1,128], index: 12, kind: input, shape index: {}]   ;;  %s2653_s13 = inlined_call_operand.vmem [shape: f32[1,128], index: 13, kind: input, shape index: {}]   ;;  %s2654_s14 = inlined_call_operand.vmem [shape: f32[2,8,128], index: 14, kind: output, shape index: {}]  }
   0x1   :  { %v2049_v0 = vld [vmem:[%s2640_s2 + $0xac] ss:$12 sps:$4 sm:$0xff]   ;;  %260 = vmatprep.mubr.bf16.mxu0 %v2145_v1  ;;  %1851 = vmatprep.subr.bf16.mxu1 %v2146_v2  ;;  %v2051_v3 = vld [vmem:[%s2640_s2 + $0xa8] ss:$12 sps:$4 sm:$0xff]   ;;  %v2054_v5 = vld [vmem:[%s2640_s2 + $0x90] ss:$12 sps:$4 sm:$0xff]  }
   0x2   :  { %228 = vmatprep.subr.bf16.mxu0 %v2049_v0  ;;  %v2052_v4 = vld [vmem:[%s2640_s2 + $0x94] ss:$12 sps:$4 sm:$0xff]   ;;  %v2055_v6 = vld [vmem:[%s2640_s2 + $0x7c] ss:$12 sps:$4 sm:$0xff]   ;;  %v2057_v7 = vld [vmem:[%s2640_s2 + $0x78] ss:$12 sps:$4 sm:$0xff]   ;;  %1867 = vmatprep.mubr.msk.bf16.mxu1 %vm2147_vm0, %v2146_v2 }
   0x3   :  { %229 = vmatpush1.bf16.msra.mxu0 %v2051_v3  ;;  %v2058_v8 = vld [vmem:[%s2640_s2 + $0x64] ss:$12 sps:$4 sm:$0xff]   ;;  %v2060_v9 = vld [vmem:[%s2640_s2 + $0x60] ss:$12 sps:$4 sm:$0xff]   ;;  %v2063_v13 = vld [vmem:[%s2640_s2 + $0x48] ss:$12 sps:$4 sm:$0xff]  }
   0x4   :  { %230 = vmatprep.subr.bf16.mxu0 %v2052_v4  ;;  %v2061_v10 = vld [vmem:[%s2640_s2 + $0x4c] ss:$12 sps:$4 sm:$0xff]   ;;  %v2073_v11 = vld [vmem:[%s2640_s2 + $0xb0] ss:$12 sps:$4 sm:$0xff]   ;;  %v2064_v14 = vld [vmem:[%s2640_s2 + $0x34] ss:$12 sps:$4 sm:$0xff]  }
   0x5   :  { %1852 = vmatpush3.bf16.msra.mxu1 %v2073_v11  ;;  %v2074_v12 = vld [vmem:[%s2640_s2 + $0x98] ss:$12 sps:$4 sm:$0xff]   ;;  %v2075_v15 = vld [vmem:[%s2640_s2 + $0x80] ss:$12 sps:$4 sm:$0xff]   ;;  %v2066_v16 = vld [vmem:[%s2640_s2 + $0x30] ss:$12 sps:$4 sm:$0xff]  }
   0x6   :  { %1853 = vmatprep.subr.bf16.mxu1 %v2146_v2  ;;  %v2067_v17 = vld [vmem:[%s2640_s2 + $0x1c] ss:$12 sps:$4 sm:$0xff]   ;;  %v2069_v19 = vld [vmem:[%s2640_s2 + $0x18] ss:$12 sps:$4 sm:$0xff]   ;;  %v2072_v22 = vld [vmem:[%s2640_s2] ss:$12 sps:$4 sm:$0xff]  }
   0x7   :  { %231 = vmatpush1.bf16.msra.mxu0 %v2054_v5  ;;  %v2076_v18 = vld [vmem:[%s2640_s2 + $0x68] ss:$12 sps:$4 sm:$0xff]   ;;  %v2070_v20 = vld [vmem:[%s2640_s2 + $0x4] ss:$12 sps:$4 sm:$0xff]   ;;  %v2079_v27 = vld [vmem:[%s2640_s2 + $0x20] ss:$12 sps:$4 sm:$0xff]  }
   0x8   :  { %232 = vmatprep.subr.bf16.mxu0 %v2055_v6  ;;  %v2077_v21 = vld [vmem:[%s2640_s2 + $0x50] ss:$12 sps:$4 sm:$0xff]   ;;  %v2297_v23 = vld [vmem:[%s2641_s0] sm:$0xff]  ;;  %v2302_v24 = vld [vmem:[%s2641_s0 + $0x8] sm:$0xff]  ;;  %v86_v30 = vshrl.u32 %v85_v29, 7  ;;  %vm344_vm1 = vcmask 261120  }
   0x9   :  { %1854 = vmatpush3.bf16.msra.mxu1 %v2074_v12  ;;  %v50_v25 = vpack.c.bf16 %v2302_v24, %v2297_v23  ;;  %v2078_v26 = vld [vmem:[%s2640_s2 + $0x38] ss:$12 sps:$4 sm:$0xff]   ;;  %v2080_v28 = vld [vmem:[%s2640_s2 + $0x8] ss:$12 sps:$4 sm:$0xff]   ;;  %v83_v32 = vld [vmem:[%s2642_s3] sm:$0x7] }
   0xa   :  { %1855 = vmatprep.subr.bf16.mxu1 %v2146_v2  ;;  %v91_v31 = vsub.s32 1, %v86_v30  ;;  %v87_v35 = vsub.s32 0, %v86_v30  ;;  %v95_v50 = vsub.s32 2, %v86_v30  ;;  %vm479_vm2 = vcmask 1043456   ;;  %v312_v62 = vld [vmem:[%s2643_s1] sm:$0x3] }
   0xb   :  { %233 = vmatpush1.bf16.msra.mxu0 %v2057_v7  ;;  %v2148_v60 = vmov 1966171168   ;;  %v1735_v63 = vadd.f32 -1.0, %v312_v62  ;;  %vm451_vm3 = vcmask 64512   ;;  %s2149_s1 = smov 96   ;;  %vm1273_vm4 = vcmask 523264  }
   0xc   :  { %234 = vmatprep.subr.bf16.mxu0 %v2058_v8  ;;  %v92_v33 = vrot.slane %v83_v32, %v91_v31  ;;  %v88_v39 = vrot.slane %v83_v32, %v87_v35  ;;  %v96_v51 = vrot.slane %v83_v32, %v95_v50  ;;  %v317_v61 = vunpack.c.l.s4 %v2148_v60 }
   0xd   :  { %1856 = vmatpush3.bf16.msra.mxu1 %v2075_v15  ;;  %v314_v1 = vmul.f32 1e+09, %v1735_v63  ;;  %vm1276_vm5 = vcmask 785408  }
   0xe   :  { %1857 = vmatprep.subr.bf16.mxu1 %v2146_v2  ;;  %v318_v0 = vunpack.c.0.s8 %v317_v61 }
   0xf   :  { %235 = vmatpush1.bf16.msra.mxu0 %v2060_v9 }
  0x10   :  { %236 = vmatprep.subr.bf16.mxu0 %v2061_v10  ;;  %v321_v3 = vsub.s32 %v318_v0, %v86_v30 }
  0x11   :  { %1858 = vmatpush3.bf16.msra.mxu1 %v2076_v18 }
  0x12   :  { %1859 = vmatprep.subr.bf16.mxu1 %v2146_v2  ;;  %v322_v4 = vrot.slane %v314_v1, %v321_v3 }
  0x13   :  { %237 = vmatpush1.bf16.msra.mxu0 %v2063_v13 }
  0x14   :  { %238 = vmatprep.subr.bf16.mxu0 %v2064_v14  ;;  %v330_v5 = vrot.slane %v322_v4, %v321_v3  ;;  %v323_v7 = vcombine.high %v322_v4, %v322_v4 }
  0x15   :  { %1860 = vmatpush3.bf16.msra.mxu1 %v2077_v21 }
  0x16   :  { %1861 = vmatprep.subr.bf16.mxu1 %v2146_v2  ;;  %v2360_v6 = vrot.slane %v330_v5, %v87_v35  ;;  %v337_v12 = vrot.slane %v323_v7, %v321_v3 }
  0x17   :  { %239 = vmatpush1.bf16.msra.mxu0 %v2066_v16 }
  0x18   :  { %240 = vmatprep.subr.bf16.mxu0 %v2067_v17  ;;  %v2364_v16 = vrot.slane %v337_v12, %v87_v35 }
  0x19   :  { %1862 = vmatpush3.bf16.msra.mxu1 %v2078_v26 }
  0x1a   :  { %1863 = vmatprep.subr.bf16.mxu1 %v2146_v2 }
  0x1b   :  { %241 = vmatpush1.bf16.msra.mxu0 %v2069_v19 }
  0x1c   :  { %242 = vmatprep.subr.bf16.mxu0 %v2070_v20 }
  0x1d   :  { %1864 = vmatpush3.bf16.msra.mxu1 %v2079_v27 }
  0x1e   :  { %1865 = vmatprep.subr.bf16.mxu1 %v2146_v2 }
  0x1f   :  { %243 = vmatpush1.bf16.msra.mxu0 %v2072_v22 }
  0x20   :  { %1895 = vmatprep.subr.bf16.mxu0 %v2146_v2 }
  0x21   :  { %1866 = vmatpush3.bf16.msra.mxu1 %v2080_v28 }
  0x22   :  { %261 = vmatmul.mubr.bf16.vlgmr.msra.gmra.mxu0 %v50_v25  ;;  %1871 = vmatprep.subr.bf16.mxu1 %v2146_v2 }
  0x23   :  { %1897 = vmatprep.mubr.msk.bf16.mxu0 %vm2147_vm0, %v2146_v2 }
  0x24   :  { %1868 = vmatmul.mubr.bf16.vlgmr.msra.gmra.mxu1 %v50_v25 }
  0x25   :  { %1873 = vmatprep.mubr.msk.bf16.mxu1 %vm2147_vm0, %v2146_v2 }
  0xe2   :  { %v262_v34 = vpop.f32.mrf.mxu0 }
  0xe3   :  { %v263_v44 = vadd.f32 %v262_v34, %v88_v39 }
  0xe4   :  { %v264_v36 = vpop.f32.mrf.mxu0  ;;  %v305_v52 = vpop.f32.mrf.mxu1 }
  0xe5   :  { %v265_v37 = vadd.f32 %v264_v36, %v92_v33  ;;  %v2337_v46 = vpack.c.bf16 %v263_v44, %v263_v44  ;;  %v306_v53 = vadd.f32 %v305_v52, %v96_v51 }
  0xe6   :  { %v266_v38 = vpop.f32.mrf.mxu0  ;;  %v1869_v54 = vpop.f32.mrf.mxu1 }
  0xe7   :  { %v2330_v40 = vpack.c.bf16 %v265_v37, %v265_v37  ;;  %v267_v48 = vadd.f32 %v266_v38, %v88_v39  ;;  %v2352_v55 = vpack.c.bf16 %v306_v53, %v306_v53 }
  0xe8   :  { %v268_v41 = vpop.f32.mrf.mxu0  ;;  %v308_v56 = vpop.f32.mrf.mxu1 }
  0xe9   :  { %v269_v42 = vadd.f32 %v268_v41, %v92_v33  ;;  %v349_v43 = vsel %vm344_vm1, %v2330_v40, 0  ;;  %v2346_v49 = vpack.c.bf16 %v267_v48, %v267_v48  ;;  %v309_v57 = vadd.f32 %v308_v56, %v96_v51 }
  0xea   :  { %1872 = vmatpush3.bf16.xpose.msra.mxu1 %v349_v43  ;;  %v481_v58 = vsel %vm479_vm2, %v2352_v55, 0  ;;  %v1870_v59 = vpop.f32.mrf.mxu1 }
  0xeb   :  { %1877 = vmatprep.subr.bf16.mxu1 %v2146_v2  ;;  %v2335_v45 = vpack.c.bf16 %v269_v42, %v269_v42  ;;  %v2380_v41 = vpack.c.bf16 %v309_v57, %v309_v57 }
  0xed   :  { %v395_v47 = vsel %vm344_vm1, %v2335_v45, 0  ;;  %v527_v44 = vsel %vm479_vm2, %v2380_v41, 0 }
  0xf1   :  { %1874 = vmatmul.mubr.msk.bf16.vlgmr.msra.gmra.mxu1 %vm344_vm1, %v2337_v46 }
  0xf2   :  { %1878 = vmatpush3.bf16.xpose.msra.mxu1 %v395_v47  ;;  %1879 = vmatprep.mubr.msk.bf16.mxu1 %vm2147_vm0, %v2146_v2 }
  0xf3   :  { %1883 = vmatprep.subr.bf16.mxu1 %v2146_v2 }
  0xf9   :  { %1880 = vmatmul.mubr.msk.bf16.vlgmr.msra.gmra.mxu1 %vm344_vm1, %v2346_v49 }
  0xfa   :  { %1885 = vmatprep.mubr.msk.bf16.mxu1 %vm2147_vm0, %v2146_v2  ;;  %1884 = vmatpush3.bf16.msra.mxu1 %v481_v58 }
  0xfb   :  { %1889 = vmatprep.subr.bf16.mxu1 %v2146_v2 }
 0x1b1   :  { %v385_v8 = vpop.f32.mrf.mxu1 }
 0x1b2   :  { %v437_v9 = vmul.f32 0.17677669, %v385_v8 }
 0x1b3   :  { %v1875_v10 = vpop.f32.mrf.mxu1 }
 0x1b4   :  { %v449_v11 = vadd.f32 %v2360_v6, %v437_v9 }
 0x1b5   :  { %v388_v13 = vpop.f32.mrf.mxu1 }
 0x1b6   :  { %v452_v14 = vsel %vm451_vm3, %v449_v11, -inf }
 0x1b7   :  { %453 = vmax.xlane.f32.xlu0 %v452_v14  ;;  %v1876_v15 = vpop.f32.mrf.mxu1 }
 0x1b9   :  { %v431_v17 = vpop.f32.mrf.mxu1 }
 0x1ba   :  { %v438_v18 = vmul.f32 0.17677669, %v431_v17 }
 0x1bb   :  { %v1881_v19 = vpop.f32.mrf.mxu1 }
 0x1bc   :  { %v450_v20 = vadd.f32 %v2364_v16, %v438_v18 }
 0x1bd   :  { %v434_v21 = vpop.f32.mrf.mxu1 }
 0x1be   :  { %v455_v22 = vsel %vm451_vm3, %v450_v20, -inf }
 0x1bf   :  { %456 = vmax.xlane.f32.xlu0 %v455_v22  ;;  %v1882_v25 = vpop.f32.mrf.mxu1 }
 0x1d5   :  { %573 = vrot.lane.b32.xlu0 %v2330_v40, %s2149_s1 }
 0x240   :  { %v454_v26 = vpop.xlane.xlu0 %453 }
 0x241   :  { %v458_v27 = vsub.f32 %v449_v11, %v454_v26 }
 0x243   :  { %v460_v28 = vmul.f32 1.442695, %v458_v27 }
 0x245   :  { %2105 = vpow2.f32 %v460_v28 }
 0x248   :  { %v457_v29 = vpop.xlane.xlu0 %456 }
 0x249   :  { %v459_v34 = vsub.f32 %v450_v20, %v457_v29 }
 0x24b   :  { %v462_v35 = vmul.f32 1.442695, %v459_v34 }
 0x24c   :  { %v574_v30 = vpop.permute.xlu0 %573 }
 0x24d   :  { %v579_v31 = vsel %vm344_vm1, %v574_v30, 0  ;;  %2107 = vpow2.f32 %v462_v35 }
 0x24e   :  { %1896 = vmatpush3.bf16.xpose.msra.mxu0 %v579_v31 }
 0x24f   :  { %1907 = vmatprep.subr.bf16.mxu0 %v2146_v2 }
 0x252   :  { %v2106_v32 = vpop.eup %2105 }
 0x253   :  { %v464_v33 = vsel %vm451_vm3, %v2106_v32, 0.0 }
 0x254   :  { %465 = vadd.xlane.f32.xlu1 %v464_v33 }
 0x25a   :  { %v2108_v36 = vpop.eup %2107 }
 0x25b   :  { %v467_v37 = vsel %vm451_vm3, %v2108_v36, 0.0 }
 0x265   :  { %625 = vrot.lane.b32.xlu1 %v2335_v45, %s2149_s1 }
 0x289   :  { %468 = vadd.xlane.f32.xlu1 %v467_v37 }
 0x29a   :  { %570 = vrot.lane.b32.xlu1 %v2337_v46, %s2149_s1 }
 0x29e   :  { %622 = vrot.lane.b32.xlu1 %v2346_v49, %s2149_s1 }
 0x2dd   :  { %v466_v38 = vpop.xlane.xlu1 %465 }
 0x2de   :  { %2109 = vrcp.f32 %v466_v38 }
 0x2e1   :  { %v626_v47 = vpop.permute.xlu1 %625 }
 0x2e2   :  { %v631_v54 = vsel %vm344_vm1, %v626_v47, 0 }
 0x2eb   :  { %v2110_v39 = vpop.eup %2109 }
 0x2ec   :  { %v472_v42 = vmul.f32 %v2110_v39, %v2106_v32 }
 0x2ee   :  { %v474_v43 = vpack.c.bf16 %v472_v42, %v472_v42 }
 0x2f0   :  { %1886 = vmatmul.mubr.msk.bf16.vlgmr.msra.gmra.mxu1 %vm451_vm3, %v474_v43 }
 0x2f1   :  { %1890 = vmatpush3.bf16.msra.mxu1 %v527_v44  ;;  %1891 = vmatprep.mubr.msk.bf16.mxu1 %vm2147_vm0, %v2146_v2 }
 0x2f2   :  { %1901 = vmatprep.subr.bf16.mxu1 %v2146_v2 }
 0x312   :  { %v469_v48 = vpop.xlane.xlu1 %468 }
 0x313   :  { %2111 = vrcp.f32 %v469_v48 }
 0x316   :  { %v571_v50 = vpop.permute.xlu1 %570 }
 0x317   :  { %1898 = vmatmul.mubr.msk.bf16.vlgmr.msra.gmra.mxu0 %vm344_vm1, %v571_v50 }
 0x318   :  { %1909 = vmatprep.mubr.msk.bf16.mxu0 %vm2147_vm0, %v2146_v2 }
 0x31a   :  { %v623_v56 = vpop.permute.xlu1 %622 }
 0x320   :  { %v2112_v51 = vpop.eup %2111 }
 0x321   :  { %v473_v52 = vmul.f32 %v2112_v51, %v2108_v36 }
 0x323   :  { %v475_v53 = vpack.c.bf16 %v473_v52, %v473_v52 }
 0x325   :  { %1892 = vmatmul.mubr.msk.bf16.vlgmr.msra.gmra.mxu1 %vm451_vm3, %v475_v53 }
 0x326   :  { %1902 = vmatpush3.bf16.xpose.msra.mxu1 %v631_v54  ;;  %1903 = vmatprep.mubr.msk.bf16.mxu1 %vm2147_vm0, %v2146_v2 }
 0x327   :  { %1913 = vmatprep.subr.bf16.mxu1 %v2146_v2 }
 0x32d   :  { %1904 = vmatmul.mubr.msk.bf16.vlgmr.msra.gmra.mxu1 %vm344_vm1, %v623_v56 }
 0x32e   :  { %1915 = vmatprep.mubr.msk.bf16.mxu1 %vm2147_vm0, %v2146_v2 }
 0x3b0   :  { %v2399_v57 = vpop.f32.mrf.mxu1 }
 0x3b2   :  { %v1887_v58 = vpop.f32.mrf.mxu1 }
 0x3b4   :  { %v520_v59 = vpop.f32.mrf.mxu1 }
 0x3b6   :  { %v1888_v60 = vpop.f32.mrf.mxu1 }
 0x3d7   :  { %v615_v61 = vpop.f32.mrf.mxu0 }
 0x3d8   :  { %v673_v62 = vmul.f32 0.17677669, %v615_v61 }
 0x3d9   :  { %v1899_v63 = vpop.f32.mrf.mxu0 }
 0x3da   :  { %v675_v0 = vadd.f32 %v673_v62, %v2360_v6 }
 0x3db   :  { %v618_v1 = vpop.f32.mrf.mxu0 }
 0x3dc   :  { %v677_v3 = vsel %vm451_vm3, %v675_v0, -inf }
 0x3dd   :  { %678 = vmax.xlane.f32.xlu0 %v677_v3  ;;  %v1900_v4 = vpop.f32.mrf.mxu0 }
 0x3e5   :  { %v2403_v5 = vpop.f32.mrf.mxu1 }
 0x3e7   :  { %v1893_v7 = vpop.f32.mrf.mxu1 }
 0x3e9   :  { %v566_v8 = vpop.f32.mrf.mxu1 }
 0x3eb   :  { %v1894_v9 = vpop.f32.mrf.mxu1 }
 0x3ed   :  { %v667_v10 = vpop.f32.mrf.mxu1 }
 0x3ee   :  { %v674_v11 = vmul.f32 0.17677669, %v667_v10 }
 0x3ef   :  { %v1905_v12 = vpop.f32.mrf.mxu1 }
 0x3f0   :  { %v676_v13 = vadd.f32 %v674_v11, %v2364_v16 }
 0x3f1   :  { %v670_v14 = vpop.f32.mrf.mxu1 }
 0x3f2   :  { %v680_v15 = vsel %vm451_vm3, %v676_v13, -inf }
 0x3f3   :  { %681 = vmax.xlane.f32.xlu1 %v680_v15  ;;  %v1906_v17 = vpop.f32.mrf.mxu1 }
 0x404   :  { %751 = vrot.lane.b32.xlu1 %v2380_v41, %s2149_s1 }
 0x408   :  { %801 = vrot.lane.b32.xlu1 %v2330_v40, %s2150_s18 }
 0x40c   :  { %851 = vrot.lane.b32.xlu1 %v2335_v45, %s2150_s18 }
 0x410   :  { %849 = vrot.lane.b32.xlu1 %v2346_v49, %s2150_s18 }
 0x466   :  { %v679_v18 = vpop.xlane.xlu0 %678 }
 0x467   :  { %v683_v19 = vsub.f32 %v675_v0, %v679_v18 }
 0x469   :  { %v685_v20 = vmul.f32 1.442695, %v683_v19 }
 0x46b   :  { %2113 = vpow2.f32 %v685_v20 }
 0x478   :  { %v2114_v21 = vpop.eup %2113 }
 0x479   :  { %v689_v22 = vsel %vm451_vm3, %v2114_v21, 0.0 }
 0x47a   :  { %690 = vadd.xlane.f32.xlu0 %v689_v22 }
 0x47c   :  { %v682_v25 = vpop.xlane.xlu1 %681 }
 0x47d   :  { %v684_v26 = vsub.f32 %v676_v13, %v682_v25 }
 0x47f   :  { %v687_v27 = vmul.f32 1.442695, %v684_v26 }
 0x480   :  { %v752_v28 = vpop.permute.xlu1 %751 }
 0x481   :  { %2115 = vpow2.f32 %v687_v27  ;;  %v757_v29 = vsel %vm479_vm2, %v752_v28, 0 }
 0x482   :  { %1914 = vmatpush3.bf16.msra.mxu1 %v757_v29 }
 0x483   :  { %1925 = vmatprep.subr.bf16.mxu1 %v2146_v2 }
 0x484   :  { %v802_v38 = vpop.permute.xlu1 %801 }
 0x485   :  { %v807_v42 = vsel %vm344_vm1, %v802_v38, 0 }
 0x488   :  { %v852_v47 = vpop.permute.xlu1 %851 }
 0x489   :  { %v857_v51 = vsel %vm344_vm1, %v852_v47, 0 }
 0x48c   :  { %v850_v52 = vpop.permute.xlu1 %849 }
 0x48e   :  { %v2116_v30 = vpop.eup %2115 }
 0x48f   :  { %v692_v31 = vsel %vm451_vm3, %v2116_v30, 0.0 }
 0x490   :  { %693 = vadd.xlane.f32.xlu0 %v692_v31 }
 0x4a6   :  { %702 = vrot.lane.b32.xlu0 %v2352_v55, %s2149_s1 }
 0x4aa   :  { %799 = vrot.lane.b32.xlu0 %v2337_v46, %s2150_s18 }
 0x503   :  { %v691_v32 = vpop.xlane.xlu0 %690 }
 0x504   :  { %2117 = vrcp.f32 %v691_v32 }
 0x511   :  { %v2118_v33 = vpop.eup %2117 }
 0x512   :  { %v697_v35 = vmul.f32 %v2118_v33, %v2114_v21 }
 0x514   :  { %v699_v39 = vpack.c.bf16 %v697_v35, %v697_v35 }
 0x519   :  { %v694_v34 = vpop.xlane.xlu0 %693 }
 0x51a   :  { %2119 = vrcp.f32 %v694_v34 }
 0x51d   :  { %v703_v36 = vpop.permute.xlu0 %702 }
 0x51e   :  { %v708_v37 = vsel %vm479_vm2, %v703_v36, 0 }
 0x51f   :  { %1908 = vmatpush3.bf16.msra.mxu0 %v708_v37 }
 0x520   :  { %1919 = vmatprep.subr.bf16.mxu0 %v2146_v2 }
 0x521   :  { %v800_v48 = vpop.permute.xlu0 %799 }
 0x522   :  { %1910 = vmatmul.mubr.msk.bf16.vlgmr.msra.gmra.mxu0 %vm451_vm3, %v699_v39 }
 0x523   :  { %1920 = vmatpush3.bf16.xpose.msra.mxu0 %v807_v42  ;;  %1921 = vmatprep.mubr.msk.bf16.mxu0 %vm2147_vm0, %v2146_v2 }
 0x524   :  { %1931 = vmatprep.subr.bf16.mxu0 %v2146_v2 }
 0x527   :  { %v2120_v43 = vpop.eup %2119 }
 0x528   :  { %v698_v44 = vmul.f32 %v2120_v43, %v2116_v30 }
 0x52a   :  { %1922 = vmatmul.mubr.msk.bf16.vlgmr.msra.gmra.mxu0 %vm344_vm1, %v800_v48  ;;  %v700_v50 = vpack.c.bf16 %v698_v44, %v698_v44 }
 0x52b   :  { %1933 = vmatprep.mubr.msk.bf16.mxu0 %vm2147_vm0, %v2146_v2 }
 0x52c   :  { %1916 = vmatmul.mubr.msk.bf16.vlgmr.msra.gmra.mxu1 %vm451_vm3, %v700_v50 }
 0x52d   :  { %1926 = vmatpush3.bf16.xpose.msra.mxu1 %v857_v51  ;;  %1927 = vmatprep.mubr.msk.bf16.mxu1 %vm2147_vm0, %v2146_v2 }
 0x52e   :  { %1937 = vmatprep.subr.bf16.mxu1 %v2146_v2 }
 0x534   :  { %1928 = vmatmul.mubr.msk.bf16.vlgmr.msra.gmra.mxu1 %vm344_vm1, %v850_v52 }
 0x535   :  { %1939 = vmatprep.mubr.msk.bf16.mxu1 %vm2147_vm0, %v2146_v2 }
 0x5e2   :  { %v2441_v53 = vpop.f32.mrf.mxu0 }
 0x5e4   :  { %v1911_v54 = vpop.f32.mrf.mxu0 }
 0x5e6   :  { %v747_v56 = vpop.f32.mrf.mxu0 }
 0x5e8   :  { %v1912_v58 = vpop.f32.mrf.mxu0 }
 0x5ea   :  { %v843_v59 = vpop.f32.mrf.mxu0 }
 0x5eb   :  { %v899_v60 = vmul.f32 0.17677669, %v843_v59 }
 0x5ec   :  { %v2443_v61 = vpop.f32.mrf.mxu1  ;;  %v1923_v62 = vpop.f32.mrf.mxu0 }
 0x5ed   :  { %v2034_v63 = vpack.i.bf16 %v2443_v61, %v2441_v53  ;;  %v901_v0 = vadd.f32 %v899_v60, %v2360_v6 }
 0x5ee   :  { %v1917_v1 = vpop.f32.mrf.mxu1  ;;  %v846_v3 = vpop.f32.mrf.mxu0 }
 0x5ef   :  { %v903_v4 = vsel %vm451_vm3, %v901_v0, -inf }
 0x5f0   :  { %904 = vmax.xlane.f32.xlu0 %v903_v4  ;;  %v796_v7 = vpop.f32.mrf.mxu1  ;;  %v1924_v8 = vpop.f32.mrf.mxu0 }
 0x5f2   :  { %v1918_v9 = vpop.f32.mrf.mxu1 }
 0x5f4   :  { %v893_v10 = vpop.f32.mrf.mxu1 }
 0x5f5   :  { %v900_v11 = vmul.f32 0.17677669, %v893_v10 }
 0x5f6   :  { %v1929_v12 = vpop.f32.mrf.mxu1 }
 0x5f7   :  { %v902_v13 = vadd.f32 %v900_v11, %v2364_v16 }
 0x5f8   :  { %v896_v14 = vpop.f32.mrf.mxu1 }
 0x5f9   :  { %v906_v15 = vsel %vm451_vm3, %v902_v13, -inf }
 0x5fa   :  { %907 = vmax.xlane.f32.xlu1 %v906_v15  ;;  %v1930_v17 = vpop.f32.mrf.mxu1 }
 0x60b   :  { %975 = vrot.lane.b32.xlu1 %v2380_v41, %s2150_s18 }
 0x60f   :  { %1025 = vrot.lane.b32.xlu1 %v2330_v40, %s2151_s19 }
 0x613   :  { %1075 = vrot.lane.b32.xlu1 %v2335_v45, %s2151_s19 }
 0x617   :  { %1073 = vrot.lane.b32.xlu1 %v2346_v49, %s2151_s19 }
 0x679   :  { %v905_v18 = vpop.xlane.xlu0 %904 }
 0x67a   :  { %v909_v19 = vsub.f32 %v901_v0, %v905_v18 }
 0x67c   :  { %v911_v20 = vmul.f32 1.442695, %v909_v19 }
 0x67e   :  { %2121 = vpow2.f32 %v911_v20 }
 0x683   :  { %v908_v21 = vpop.xlane.xlu1 %907 }
 0x684   :  { %v910_v22 = vsub.f32 %v902_v13, %v908_v21 }
 0x686   :  { %v913_v25 = vmul.f32 1.442695, %v910_v22 }
 0x687   :  { %v976_v26 = vpop.permute.xlu1 %975 }
 0x688   :  { %2123 = vpow2.f32 %v913_v25  ;;  %v981_v27 = vsel %vm479_vm2, %v976_v26, 0 }
 0x689   :  { %1938 = vmatpush3.bf16.msra.mxu1 %v981_v27 }
 0x68a   :  { %1949 = vmatprep.subr.bf16.mxu1 %v2146_v2 }
 0x68b   :  { %v2122_v40 = vpop.eup %2121  ;;  %v1026_v35 = vpop.permute.xlu1 %1025 }
 0x68c   :  { %v915_v45 = vsel %vm451_vm3, %v2122_v40, 0.0  ;;  %v1031_v37 = vsel %vm344_vm1, %v1026_v35, 0  ;;  %v2085_v35 = vld [vmem:[%s2644_s4 + $0x18] sm:$0xff]  }
 0x68d   :  { %916 = vadd.xlane.f32.xlu0 %v915_v45 }
 0x68f   :  { %v1076_v39 = vpop.permute.xlu1 %1075 }
 0x690   :  { %v1081_v44 = vsel %vm344_vm1, %v1076_v39, 0 }
 0x693   :  { %v1074_v47 = vpop.permute.xlu1 %1073 }
 0x695   :  { %v2124_v28 = vpop.eup %2123 }
 0x696   :  { %v918_v49 = vsel %vm451_vm3, %v2124_v28, 0.0 }
 0x697   :  { %919 = vadd.xlane.f32.xlu0 %v918_v49 }
 0x6ad   :  { %927 = vrot.lane.b32.xlu0 %v2352_v55, %s2150_s18 }
 0x6b1   :  { %1023 = vrot.lane.b32.xlu0 %v2337_v46, %s2151_s19 }
 0x716   :  { %v917_v29 = vpop.xlane.xlu0 %916 }
 0x717   :  { %2125 = vrcp.f32 %v917_v29 }
 0x720   :  { %v920_v30 = vpop.xlane.xlu0 %919 }
 0x721   :  { %2127 = vrcp.f32 %v920_v30 }
 0x724   :  { %v2126_v31 = vpop.eup %2125  ;;  %v928_v32 = vpop.permute.xlu0 %927 }
 0x725   :  { %v933_v33 = vsel %vm479_vm2, %v928_v32, 0  ;;  %v923_v34 = vmul.f32 %v2126_v31, %v2122_v40  ;;  %v2081_v31 = vld [vmem:[%s2644_s4 + $0x38] sm:$0xff]   ;;  %v2082_v32 = vld [vmem:[%s2644_s4 + $0x30] sm:$0xff]  }
 0x726   :  { %1932 = vmatpush3.bf16.msra.mxu0 %v933_v33  ;;  %v2083_v33 = vld [vmem:[%s2644_s4 + $0x28] sm:$0xff]  }
 0x727   :  { %v925_v36 = vpack.c.bf16 %v923_v34, %v923_v34  ;;  %1943 = vmatprep.subr.bf16.mxu0 %v2146_v2  ;;  %v2084_v34 = vld [vmem:[%s2644_s4 + $0x20] sm:$0xff]  }
 0x728   :  { %v1024_v42 = vpop.permute.xlu0 %1023 }
 0x729   :  { %1934 = vmatmul.mubr.msk.bf16.vlgmr.msra.gmra.mxu0 %vm451_vm3, %v925_v36  ;;  %v2086_v36 = vld [vmem:[%s2644_s4 + $0x10] sm:$0xff]  }
 0x72a   :  { %1944 = vmatpush3.bf16.xpose.msra.mxu0 %v1031_v37  ;;  %1945 = vmatprep.mubr.msk.bf16.mxu0 %vm2147_vm0, %v2146_v2  ;;  %v2087_v37 = vld [vmem:[%s2644_s4 + $0x8] sm:$0xff]  }
 0x72b   :  { %1955 = vmatprep.subr.bf16.mxu0 %v2146_v2 }
 0x72e   :  { %v2128_v46 = vpop.eup %2127 }
 0x72f   :  { %v924_v38 = vmul.f32 %v2128_v46, %v2124_v28 }
 0x731   :  { %1946 = vmatmul.mubr.msk.bf16.vlgmr.msra.gmra.mxu0 %vm344_vm1, %v1024_v42  ;;  %v926_v43 = vpack.c.bf16 %v924_v38, %v924_v38  ;;  %v2088_v38 = vld [vmem:[%s2644_s4] sm:$0xff]  }
 0x732   :  { %1957 = vmatprep.mubr.msk.bf16.mxu0 %vm2147_vm0, %v2146_v2 }
 0x733   :  { %1940 = vmatmul.mubr.msk.bf16.vlgmr.msra.gmra.mxu1 %vm451_vm3, %v926_v43 }
 0x734   :  { %1950 = vmatpush3.bf16.xpose.msra.mxu1 %v1081_v44  ;;  %1951 = vmatprep.mubr.msk.bf16.mxu1 %vm2147_vm0, %v2146_v2 }
 0x735   :  { %1961 = vmatprep.subr.bf16.mxu1 %v2146_v2 }
 0x73b   :  { %1952 = vmatmul.mubr.msk.bf16.vlgmr.msra.gmra.mxu1 %vm344_vm1, %v1074_v47 }
 0x73c   :  { %1963 = vmatprep.mubr.msk.bf16.mxu1 %vm2147_vm0, %v2146_v2 }
 0x7e9   :  { %v969_v48 = vpop.f32.mrf.mxu0 }
 0x7eb   :  { %v1935_v50 = vpop.f32.mrf.mxu0 }
 0x7ed   :  { %v972_v51 = vpop.f32.mrf.mxu0 }
 0x7ef   :  { %v1936_v52 = vpop.f32.mrf.mxu0 }
 0x7f1   :  { %v1067_v54 = vpop.f32.mrf.mxu0 }
 0x7f2   :  { %v1123_v56 = vmul.f32 0.17677669, %v1067_v54 }
 0x7f3   :  { %v1017_v58 = vpop.f32.mrf.mxu1  ;;  %v1947_v59 = vpop.f32.mrf.mxu0 }
 0x7f4   :  { %v1125_v60 = vadd.f32 %v1123_v56, %v2360_v6  ;;  %v2039_v6 = vpack.i.bf16 %v1017_v58, %v969_v48 }
 0x7f5   :  { %v1941_v62 = vpop.f32.mrf.mxu1  ;;  %v1070_v0 = vpop.f32.mrf.mxu0 }
 0x7f6   :  { %v1127_v1 = vsel %vm451_vm3, %v1125_v60, -inf }
 0x7f7   :  { %1128 = vmax.xlane.f32.xlu0 %v1127_v1  ;;  %v1020_v3 = vpop.f32.mrf.mxu1  ;;  %v1948_v4 = vpop.f32.mrf.mxu0 }
 0x7f9   :  { %v1942_v7 = vpop.f32.mrf.mxu1 }
 0x7fb   :  { %v1117_v8 = vpop.f32.mrf.mxu1 }
 0x7fc   :  { %v1124_v9 = vmul.f32 0.17677669, %v1117_v8 }
 0x7fd   :  { %v1953_v10 = vpop.f32.mrf.mxu1 }
 0x7fe   :  { %v1126_v11 = vadd.f32 %v1124_v9, %v2364_v16 }
 0x7ff   :  { %v1120_v12 = vpop.f32.mrf.mxu1 }
 0x800   :  { %v1130_v13 = vsel %vm451_vm3, %v1126_v11, -inf  ;;  %v1752_v12 = vld [vmem:[%s2645_s5] ss:$0 sm:$0xff] }
 0x801   :  { %1131 = vmax.xlane.f32.xlu1 %v1130_v13  ;;  %v1954_v14 = vpop.f32.mrf.mxu1 }
 0x812   :  { %1199 = vrot.lane.b32.xlu1 %v2380_v41, %s2151_s19 }
 0x816   :  { %2035 = vrot.lane.b32.xlu1 %v2034_v63, %s2151_s19 }
 0x81a   :  { %2040 = vrot.lane.b32.xlu1 %v2039_v6, %s2150_s18 }
 0x880   :  { %v1129_v15 = vpop.xlane.xlu0 %1128 }
 0x881   :  { %v1133_v17 = vsub.f32 %v1125_v60, %v1129_v15 }
 0x883   :  { %v1135_v18 = vmul.f32 1.442695, %v1133_v17 }
 0x885   :  { %2129 = vpow2.f32 %v1135_v18 }
 0x88a   :  { %v1132_v16 = vpop.xlane.xlu1 %1131 }
 0x88b   :  { %v1134_v19 = vsub.f32 %v1126_v11, %v1132_v16  ;;  %v2089_v16 = vld [vmem:[%s2646_s8 + $0x38] sm:$0xff]  }
 0x88d   :  { %v1137_v20 = vmul.f32 1.442695, %v1134_v19 }
 0x88e   :  { %v1200_v21 = vpop.permute.xlu1 %1199 }
 0x88f   :  { %2131 = vpow2.f32 %v1137_v20  ;;  %v1205_v22 = vsel %vm479_vm2, %v1200_v21, 0 }
 0x890   :  { %1962 = vmatpush3.bf16.msra.mxu1 %v1205_v22 }
 0x891   :  { %1987 = vmatprep.subr.bf16.mxu1 %v2146_v2 }
 0x892   :  { %v2130_v41 = vpop.eup %2129  ;;  %v2036_v52 = vpop.permute.xlu1 %2035 }
 0x893   :  { %v1139_v53 = vsel %vm451_vm3, %v2130_v41, 0.0  ;;  %v2038_v56 = vunpack.i.h.bf16 %v2036_v52  ;;  %v2037_v58 = vunpack.i.l.bf16 %v2036_v52  ;;  %v2102_v52 = vld [vmem:[%s2647_s10 + $0x10] sm:$0xff]  }
 0x894   :  { %1140 = vadd.xlane.f32.xlu0 %v1139_v53 }
 0x895   :  { %v1272_v0 = vsel %vm344_vm1, %v2403_v5, %v2038_v56  ;;  %v1271_v1 = vsel %vm344_vm1, %v2399_v57, %v2037_v58  ;;  %v2104_v56 = vld [vmem:[%s2647_s10] sm:$0xff]  }
 0x896   :  { %v2041_v54 = vpop.permute.xlu1 %2040  ;;  %v1763_v58 = vld [vmem:[%s2650_s9] ss:$0 sm:$0xff] }
 0x897   :  { %v2043_v59 = vunpack.i.h.bf16 %v2041_v54  ;;  %v2042_v60 = vunpack.i.l.bf16 %v2041_v54  ;;  %v2103_v54 = vld [vmem:[%s2647_s10 + $0x8] sm:$0xff]  }
 0x899   :  { %v1274_v7 = vsel %vm1273_vm4, %v1271_v1, %v2042_v60  ;;  %v1275_v8 = vsel %vm1273_vm4, %v1272_v0, %v2043_v59 }
 0x89c   :  { %v2132_v61 = vpop.eup %2131 }
 0x89d   :  { %v1142_v63 = vsel %vm451_vm3, %v2132_v61, 0.0 }
 0x89e   :  { %1143 = vadd.xlane.f32.xlu0 %v1142_v63  ;;  %v2091_v63 = vld [vmem:[%s2646_s8 + $0x28] sm:$0xff]  }
 0x8b4   :  { %1151 = vrot.lane.b32.xlu0 %v2352_v55, %s2151_s19 }
 0x91d   :  { %v1141_v25 = vpop.xlane.xlu0 %1140 }
 0x91e   :  { %2133 = vrcp.f32 %v1141_v25  ;;  %v2092_v25 = vld [vmem:[%s2646_s8 + $0x20] sm:$0xff]  }
 0x927   :  { %v1144_v26 = vpop.xlane.xlu0 %1143 }
 0x928   :  { %2135 = vrcp.f32 %v1144_v26  ;;  %v2093_v26 = vld [vmem:[%s2646_s8 + $0x18] sm:$0xff]  }
 0x92b   :  { %v2134_v27 = vpop.eup %2133  ;;  %v1152_v40 = vpop.permute.xlu0 %1151 }
 0x92c   :  { %v1157_v45 = vsel %vm479_vm2, %v1152_v40, 0  ;;  %v1147_v28 = vmul.f32 %v2134_v27, %v2130_v41  ;;  %v2094_v27 = vld [vmem:[%s2646_s8 + $0x10] sm:$0xff]   ;;  %v2095_v40 = vld [vmem:[%s2646_s8 + $0x8] sm:$0xff]  }
 0x92d   :  { %1956 = vmatpush3.bf16.msra.mxu0 %v1157_v45  ;;  %v2096_v45 = vld [vmem:[%s2646_s8] sm:$0xff]  }
 0x92e   :  { %v1149_v49 = vpack.c.bf16 %v1147_v28, %v1147_v28  ;;  %1967 = vmatprep.subr.bf16.mxu0 %v2146_v2  ;;  %v2097_v28 = vld [vmem:[%s2647_s10 + $0x38] sm:$0xff]  }
 0x930   :  { %1958 = vmatmul.mubr.msk.bf16.vlgmr.msra.gmra.mxu0 %vm451_vm3, %v1149_v49  ;;  %v2098_v49 = vld [vmem:[%s2647_s10 + $0x30] sm:$0xff]  }
 0x931   :  { %1983 = vmatprep.mubr.msk.bf16.mxu0 %vm2147_vm0, %v2146_v2  ;;  %1968 = vmatpush3.bf16.msra.mxu0 %v2081_v31 }
 0x932   :  { %1969 = vmatprep.subr.bf16.mxu0 %v2146_v2 }
 0x935   :  { %v2136_v29 = vpop.eup %2135  ;;  %1970 = vmatpush3.bf16.msra.mxu0 %v2082_v32 }
 0x936   :  { %v1148_v55 = vmul.f32 %v2136_v29, %v2132_v61  ;;  %1971 = vmatprep.subr.bf16.mxu0 %v2146_v2  ;;  %v2099_v29 = vld [vmem:[%s2647_s10 + $0x28] sm:$0xff]  }
 0x938   :  { %v1150_v30 = vpack.c.bf16 %v1148_v55, %v1148_v55  ;;  %v2100_v55 = vld [vmem:[%s2647_s10 + $0x20] sm:$0xff]  }
 0x939   :  { %1972 = vmatpush3.bf16.msra.mxu0 %v2083_v33 }
 0x93a   :  { %1964 = vmatmul.mubr.msk.bf16.vlgmr.msra.gmra.mxu1 %vm451_vm3, %v1150_v30  ;;  %1973 = vmatprep.subr.bf16.mxu0 %v2146_v2  ;;  %v2101_v30 = vld [vmem:[%s2647_s10 + $0x18] sm:$0xff]  }
 0x93b   :  { %2003 = vmatprep.mubr.msk.bf16.mxu1 %vm2147_vm0, %v2146_v2  ;;  %1988 = vmatpush3.bf16.msra.mxu1 %v2089_v16 }
 0x93c   :  { %1989 = vmatprep.subr.bf16.mxu1 %v2146_v2 }
 0x93d   :  { %1974 = vmatpush3.bf16.msra.mxu0 %v2084_v34 }
 0x93e   :  { %1975 = vmatprep.subr.bf16.mxu0 %v2146_v2 }
 0x941   :  { %1976 = vmatpush3.bf16.msra.mxu0 %v2085_v35 }
 0x942   :  { %1977 = vmatprep.subr.bf16.mxu0 %v2146_v2 }
 0x945   :  { %1978 = vmatpush3.bf16.msra.mxu0 %v2086_v36 }
 0x946   :  { %1979 = vmatprep.subr.bf16.mxu0 %v2146_v2 }
 0x949   :  { %1980 = vmatpush3.bf16.msra.mxu0 %v2087_v37 }
 0x94a   :  { %1981 = vmatprep.subr.bf16.mxu0 %v2146_v2 }
 0x94d   :  { %1982 = vmatpush3.bf16.msra.mxu0 %v2088_v38  ;;  %v1761_v38 = vld [vmem:[%s2648_s6] ss:$0 sm:$0xff] }
 0x94e   :  { %2007 = vmatprep.subr.bf16.mxu0 %v2146_v2 }
 0x9f0   :  { %v1193_v46 = vpop.f32.mrf.mxu0 }
 0x9f2   :  { %v1959_v39 = vpop.f32.mrf.mxu0 }
 0x9f4   :  { %v1196_v42 = vpop.f32.mrf.mxu0 }
 0x9f6   :  { %v1960_v43 = vpop.f32.mrf.mxu0 }
 0x9fa   :  { %v1241_v44 = vpop.f32.mrf.mxu1 }
 0x9fb   :  { %v2044_v47 = vpack.i.bf16 %v1241_v44, %v1193_v46  ;;  %v1762_v44 = vld [vmem:[%s2649_s7] ss:$0 sm:$0xff] }
 0x9fc   :  { %v1965_v48 = vpop.f32.mrf.mxu1 }
 0x9fd   :  { %2045 = vrot.lane.b32.xlu0 %v2044_v47, %s2149_s1 }
 0x9fe   :  { %v1244_v50 = vpop.f32.mrf.mxu1 }
 0xa00   :  { %v1966_v51 = vpop.f32.mrf.mxu1 }
 0xa6f   :  { %v2046_v62 = vpop.permute.xlu0 %2045 }
 0xa70   :  { %v2048_v3 = vunpack.i.h.bf16 %v2046_v62  ;;  %v2047_v4 = vunpack.i.l.bf16 %v2046_v62 }
 0xa72   :  { %v1278_v9 = vsel %vm1276_vm5, %v1275_v8, %v2048_v3  ;;  %v1277_v10 = vsel %vm1276_vm5, %v1274_v7, %v2047_v4 }
 0xa73   :  { %v1279_v11 = vpack.c.bf16 %v1278_v9, %v1277_v10 }
 0xa75   :  { %1984 = vmatmul.mubr.bf16.vlgmr.msra.gmra.mxu0 %v1279_v11 }
 0xa76   :  { %2023 = vmatprep.mubr.msk.bf16.mxu0 %vm2147_vm0, %v2146_v2  ;;  %2008 = vmatpush3.bf16.msra.mxu0 %v2097_v28 }
 0xa77   :  { %2009 = vmatprep.subr.bf16.mxu0 %v2146_v2 }
 0xa7a   :  { %2010 = vmatpush3.bf16.msra.mxu0 %v2098_v49 }
 0xa7b   :  { %2011 = vmatprep.subr.bf16.mxu0 %v2146_v2 }
 0xa7e   :  { %2012 = vmatpush3.bf16.msra.mxu0 %v2099_v29 }
 0xa7f   :  { %2013 = vmatprep.subr.bf16.mxu0 %v2146_v2 }
 0xa82   :  { %2014 = vmatpush3.bf16.msra.mxu0 %v2100_v55 }
 0xa83   :  { %2015 = vmatprep.subr.bf16.mxu0 %v2146_v2 }
 0xa86   :  { %2016 = vmatpush3.bf16.msra.mxu0 %v2101_v30 }
 0xa87   :  { %2017 = vmatprep.subr.bf16.mxu0 %v2146_v2 }
 0xa8a   :  { %2018 = vmatpush3.bf16.msra.mxu0 %v2102_v52 }
 0xa8b   :  { %2019 = vmatprep.subr.bf16.mxu0 %v2146_v2 }
 0xa8e   :  { %2020 = vmatpush3.bf16.msra.mxu0 %v2103_v54 }
 0xa8f   :  { %2021 = vmatprep.subr.bf16.mxu0 %v2146_v2 }
 0xa92   :  { %2022 = vmatpush3.bf16.msra.mxu0 %v2104_v56 }
 0xb35   :  { %v1385_v13 = vpop.f32.mrf.mxu0 }
 0xb36   :  { %v1386_v5 = vadd.f32 %v1752_v12, %v1385_v13 }
 0xb37   :  { %v1985_v14 = vpop.f32.mrf.mxu0 }
 0xb38   :  { %v1392_v57 = vadd.f32 %v1386_v5, %v2297_v23 }
 0xb39   :  { %v1388_v6 = vpop.f32.mrf.mxu0 }
 0xb3a   :  { %v1389_v15 = vadd.f32 %v1752_v12, %v1388_v6  ;;  %1396 = vadd.xlane.f32.xlu1 %v1392_v57 }
 0xb3b   :  { %v1986_v17 = vpop.f32.mrf.mxu0 }
 0xb3c   :  { %v1393_v18 = vadd.f32 %v1389_v15, %v2302_v24  ;;  %v2090_v24 = vld [vmem:[%s2646_s8 + $0x30] sm:$0xff]  }
 0xb3d   :  { %1990 = vmatpush3.bf16.msra.mxu1 %v2090_v24 }
 0xb3e   :  { %1398 = vadd.xlane.f32.xlu0 %v1393_v18  ;;  %1991 = vmatprep.subr.bf16.mxu1 %v2146_v2 }
 0xb41   :  { %1992 = vmatpush3.bf16.msra.mxu1 %v2091_v63 }
 0xb42   :  { %1993 = vmatprep.subr.bf16.mxu1 %v2146_v2 }
 0xb45   :  { %1994 = vmatpush3.bf16.msra.mxu1 %v2092_v25  ;;  %v1781_v25 = vld [vmem:[%s2652_s12] ss:$0 sm:$0xff] }
 0xb46   :  { %1995 = vmatprep.subr.bf16.mxu1 %v2146_v2 }
 0xb49   :  { %1996 = vmatpush3.bf16.msra.mxu1 %v2093_v26 }
 0xb4a   :  { %1997 = vmatprep.subr.bf16.mxu1 %v2146_v2 }
 0xb4d   :  { %1998 = vmatpush3.bf16.msra.mxu1 %v2094_v27  ;;  %v1782_v27 = vld [vmem:[%s2653_s13] ss:$0 sm:$0xff] }
 0xb4e   :  { %1999 = vmatprep.subr.bf16.mxu1 %v2146_v2 }
 0xb51   :  { %2000 = vmatpush3.bf16.msra.mxu1 %v2095_v40 }
 0xb52   :  { %2001 = vmatprep.subr.bf16.mxu1 %v2146_v2  ;;  %v1772_v2 = vld [vmem:[%s2651_s11] ss:$0 sm:$0xff] }
 0xb55   :  { %2002 = vmatpush3.bf16.msra.mxu1 %v2096_v45 }
 0xbc3   :  { %v1397_v19 = vpop.xlane.xlu1 %1396 }
 0xbc4   :  { %v1401_v20 = vmul.f32 0.0078125, %v1397_v19 }
 0xbc6   :  { %v1403_v21 = vsub.f32 %v1392_v57, %v1401_v20 }
 0xbc7   :  { %v1399_v22 = vpop.xlane.xlu0 %1398 }
 0xbc8   :  { %v1402_v41 = vmul.f32 0.0078125, %v1399_v22  ;;  %v1405_v23 = vmul.f32 %v1403_v21, %v1403_v21 }
 0xbca   :  { %v1404_v53 = vsub.f32 %v1393_v18, %v1402_v41  ;;  %1407 = vadd.xlane.f32.xlu0 %v1405_v23 }
 0xbcc   :  { %v1406_v61 = vmul.f32 %v1404_v53, %v1404_v53 }
 0xbce   :  { %1409 = vadd.xlane.f32.xlu0 %v1406_v61 }
 0xc53   :  { %v1408_v31 = vpop.xlane.xlu0 %1407 }
 0xc54   :  { %v1411_v32 = vmul.f32 0.0078125, %v1408_v31 }
 0xc56   :  { %v1413_v33 = vadd.f32 1e-05, %v1411_v32 }
 0xc57   :  { %v1410_v34 = vpop.xlane.xlu0 %1409 }
 0xc58   :  { %2137 = vrsqrt.f32 %v1413_v33  ;;  %v1412_v35 = vmul.f32 0.0078125, %v1410_v34 }
 0xc5a   :  { %v1414_v36 = vadd.f32 1e-05, %v1412_v35 }
 0xc5c   :  { %2139 = vrsqrt.f32 %v1414_v36 }
 0xc65   :  { %v2138_v37 = vpop.eup %2137 }
 0xc66   :  { %v1417_v46 = vmul.f32 %v2138_v37, %v1403_v21 }
 0xc68   :  { %v1425_v43 = vmul.f32 %v1761_v38, %v1417_v46 }
 0xc69   :  { %v2140_v39 = vpop.eup %2139 }
 0xc6a   :  { %v1418_v42 = vmul.f32 %v2140_v39, %v1404_v53  ;;  %v1433_v48 = vadd.f32 %v1762_v44, %v1425_v43 }
 0xc6c   :  { %v1426_v47 = vmul.f32 %v1761_v38, %v1418_v42 }
 0xc6e   :  { %v1434_v50 = vadd.f32 %v1762_v44, %v1426_v47 }
 0xc70   :  { %v1435_v51 = vpack.c.bf16 %v1434_v50, %v1433_v48 }
 0xc72   :  { %2004 = vmatmul.mubr.bf16.vlgmr.msra.gmra.mxu1 %v1435_v51 }
 0xd32   :  { %v1541_v59 = vpop.f32.mrf.mxu1 }
 0xd33   :  { %v1542_v62 = vadd.f32 %v1763_v58, %v1541_v59 }
 0xd34   :  { %v2005_v60 = vpop.f32.mrf.mxu1 }
 0xd35   :  { %v1548_v4 = vmax.f32 %v1542_v62, 0.0 }
 0xd36   :  { %v1544_v0 = vpop.f32.mrf.mxu1 }
 0xd37   :  { %v1545_v1 = vadd.f32 %v1763_v58, %v1544_v0 }
 0xd38   :  { %v2006_v3 = vpop.f32.mrf.mxu1 }
 0xd39   :  { %v1549_v7 = vmax.f32 %v1545_v1, 0.0 }
 0xd3b   :  { %v1550_v8 = vpack.c.bf16 %v1549_v7, %v1548_v4 }
 0xd3d   :  { %2024 = vmatmul.mubr.bf16.vlgmr.msra.gmra.mxu0 %v1550_v8 }
 0xdfd   :  { %v1656_v9 = vpop.f32.mrf.mxu0 }
 0xdfe   :  { %v1657_v10 = vadd.f32 %v1772_v2, %v1656_v9 }
 0xdff   :  { %v2025_v11 = vpop.f32.mrf.mxu0 }
 0xe00   :  { %v1663_v12 = vadd.f32 %v1657_v10, %v1433_v48 }
 0xe01   :  { %v1659_v13 = vpop.f32.mrf.mxu0 }
 0xe02   :  { %v1660_v5 = vadd.f32 %v1772_v2, %v1659_v13  ;;  %1667 = vadd.xlane.f32.xlu1 %v1663_v12 }
 0xe03   :  { %v2026_v14 = vpop.f32.mrf.mxu0 }
 0xe04   :  { %v1664_v57 = vadd.f32 %v1660_v5, %v1434_v50 }
 0xe06   :  { %1669 = vadd.xlane.f32.xlu0 %v1664_v57 }
 0xe8b   :  { %v1668_v6 = vpop.xlane.xlu1 %1667 }
 0xe8c   :  { %v1671_v15 = vmul.f32 0.0078125, %v1668_v6 }
 0xe8e   :  { %v1673_v17 = vsub.f32 %v1663_v12, %v1671_v15 }
 0xe8f   :  { %v1670_v18 = vpop.xlane.xlu0 %1669 }
 0xe90   :  { %v1672_v16 = vmul.f32 0.0078125, %v1670_v18  ;;  %v1675_v19 = vmul.f32 %v1673_v17, %v1673_v17 }
 0xe92   :  { %v1674_v20 = vsub.f32 %v1664_v57, %v1672_v16  ;;  %1677 = vadd.xlane.f32.xlu1 %v1675_v19 }
 0xe94   :  { %v1676_v21 = vmul.f32 %v1674_v20, %v1674_v20 }
 0xe96   :  { %1679 = vadd.xlane.f32.xlu0 %v1676_v21 }
 0xf1b   :  { %v1678_v22 = vpop.xlane.xlu1 %1677 }
 0xf1c   :  { %v1681_v41 = vmul.f32 0.0078125, %v1678_v22 }
 0xf1e   :  { %v1683_v23 = vadd.f32 1e-05, %v1681_v41 }
 0xf1f   :  { %v1680_v53 = vpop.xlane.xlu0 %1679 }
 0xf20   :  { %2141 = vrsqrt.f32 %v1683_v23  ;;  %v1682_v61 = vmul.f32 0.0078125, %v1680_v53 }
 0xf22   :  { %v1684_v24 = vadd.f32 1e-05, %v1682_v61 }
 0xf24   :  { %2143 = vrsqrt.f32 %v1684_v24 }
 0xf2d   :  { %v2142_v63 = vpop.eup %2141 }
 0xf2e   :  { %v1687_v26 = vmul.f32 %v2142_v63, %v1673_v17 }
 0xf30   :  { %v1695_v40 = vmul.f32 %v1781_v25, %v1687_v26 }
 0xf31   :  { %v2144_v45 = vpop.eup %2143 }
 0xf32   :  { %v1703_v28 = vadd.f32 %v1782_v27, %v1695_v40  ;;  %v1688_v49 = vmul.f32 %v2144_v45, %v1674_v20 }
 0xf34   :  { %1705 = vst [vmem:[%s2654_s14] sm:$0xff] %v1703_v28  ;;  %v1696_v29 = vmul.f32 %v1781_v25, %v1688_v49 }
 0xf36   :  { %v1704_v55 = vadd.f32 %v1782_v27, %v1696_v29 }
 0xf38   :  { %1706 = vst [vmem:[%s2654_s14 + $0x8] sm:$0xff] %v1704_v55 }

// kernel: _lambda_.4
= control target key start
LH: loop header
LB: loop body
LE: loop exit
PB: predicated region body
PF: predicated region fallthrough
CT: control target
= control target key end

     0   :  { %v2193_v1 = vmov 0   ;;  %v2194_v2 = vmov 0.0   ;;  %vm2195_vm0 = vmmov 0   ;;  %v85_v29 = vlaneseq  ;;  %s2197_s18 = smov 96   ;;  %s2198_s19 = smov 64   ;;  %s2704_s2 = inlined_call_operand.vmem [shape: bf16[128,384], index: 2, kind: input, shape index: {}]   ;;  %s2705_s0 = inlined_call_operand.vmem [shape: f32[2,8,128], index: 0, kind: input, shape index: {}]   ;;  %s2706_s3 = inlined_call_operand.vmem [shape: f32[1,384], index: 3, kind: input, shape index: {}]   ;;  %s2707_s1 = inlined_call_operand.vmem [shape: f32[2,8], index: 1, kind: input, shape index: {}]   ;;  %s2708_s4 = inlined_call_operand.vmem [shape: bf16[128,128], index: 4, kind: input, shape index: {}]   ;;  %s2709_s5 = inlined_call_operand.vmem [shape: f32[1,128], index: 5, kind: input, shape index: {}]   ;;  %s2710_s8 = inlined_call_operand.vmem [shape: bf16[128,128], index: 8, kind: input, shape index: {}]   ;;  %s2711_s10 = inlined_call_operand.vmem [shape: bf16[128,128], index: 10, kind: input, shape index: {}]   ;;  %s2712_s6 = inlined_call_operand.vmem [shape: f32[1,128], index: 6, kind: input, shape index: {}]   ;;  %s2713_s7 = inlined_call_operand.vmem [shape: f32[1,128], index: 7, kind: input, shape index: {}]   ;;  %s2714_s9 = inlined_call_operand.vmem [shape: f32[1,128], index: 9, kind: input, shape index: {}]   ;;  %s2715_s11 = inlined_call_operand.vmem [shape: f32[1,128], index: 11, kind: input, shape index: {}]   ;;  %s2716_s12 = inlined_call_operand.vmem [shape: f32[1,128], index: 12, kind: input, shape index: {}]   ;;  %s2717_s13 = inlined_call_operand.vmem [shape: f32[1,128], index: 13, kind: input, shape index: {}]   ;;  %s2718_s14 = inlined_call_operand.vmem [shape: f32[2,128], index: 14, kind: output, shape index: {}]  }
   0x1   :  { %v2095_v0 = vld [vmem:[%s2704_s2 + $0xac] ss:$12 sps:$4 sm:$0xff]   ;;  %260 = vmatprep.mubr.bf16.mxu0 %v2193_v1  ;;  %1897 = vmatprep.subr.bf16.mxu1 %v2194_v2  ;;  %v2097_v3 = vld [vmem:[%s2704_s2 + $0xa8] ss:$12 sps:$4 sm:$0xff]   ;;  %v2100_v5 = vld [vmem:[%s2704_s2 + $0x90] ss:$12 sps:$4 sm:$0xff]  }
   0x2   :  { %228 = vmatprep.subr.bf16.mxu0 %v2095_v0  ;;  %v2098_v4 = vld [vmem:[%s2704_s2 + $0x94] ss:$12 sps:$4 sm:$0xff]   ;;  %v2101_v6 = vld [vmem:[%s2704_s2 + $0x7c] ss:$12 sps:$4 sm:$0xff]   ;;  %v2103_v7 = vld [vmem:[%s2704_s2 + $0x78] ss:$12 sps:$4 sm:$0xff]   ;;  %1913 = vmatprep.mubr.msk.bf16.mxu1 %vm2195_vm0, %v2194_v2 }
   0x3   :  { %229 = vmatpush1.bf16.msra.mxu0 %v2097_v3  ;;  %v2104_v8 = vld [vmem:[%s2704_s2 + $0x64] ss:$12 sps:$4 sm:$0xff]   ;;  %v2106_v9 = vld [vmem:[%s2704_s2 + $0x60] ss:$12 sps:$4 sm:$0xff]   ;;  %v2109_v13 = vld [vmem:[%s2704_s2 + $0x48] ss:$12 sps:$4 sm:$0xff]  }
   0x4   :  { %230 = vmatprep.subr.bf16.mxu0 %v2098_v4  ;;  %v2107_v10 = vld [vmem:[%s2704_s2 + $0x4c] ss:$12 sps:$4 sm:$0xff]   ;;  %v2119_v11 = vld [vmem:[%s2704_s2 + $0xb0] ss:$12 sps:$4 sm:$0xff]   ;;  %v2110_v14 = vld [vmem:[%s2704_s2 + $0x34] ss:$12 sps:$4 sm:$0xff]  }
   0x5   :  { %1898 = vmatpush3.bf16.msra.mxu1 %v2119_v11  ;;  %v2120_v12 = vld [vmem:[%s2704_s2 + $0x98] ss:$12 sps:$4 sm:$0xff]   ;;  %v2121_v15 = vld [vmem:[%s2704_s2 + $0x80] ss:$12 sps:$4 sm:$0xff]   ;;  %v2112_v16 = vld [vmem:[%s2704_s2 + $0x30] ss:$12 sps:$4 sm:$0xff]  }
   0x6   :  { %1899 = vmatprep.subr.bf16.mxu1 %v2194_v2  ;;  %v2113_v17 = vld [vmem:[%s2704_s2 + $0x1c] ss:$12 sps:$4 sm:$0xff]   ;;  %v2115_v19 = vld [vmem:[%s2704_s2 + $0x18] ss:$12 sps:$4 sm:$0xff]   ;;  %v2118_v22 = vld [vmem:[%s2704_s2] ss:$12 sps:$4 sm:$0xff]  }
   0x7   :  { %231 = vmatpush1.bf16.msra.mxu0 %v2100_v5  ;;  %v2122_v18 = vld [vmem:[%s2704_s2 + $0x68] ss:$12 sps:$4 sm:$0xff]   ;;  %v2116_v20 = vld [vmem:[%s2704_s2 + $0x4] ss:$12 sps:$4 sm:$0xff]   ;;  %v2125_v27 = vld [vmem:[%s2704_s2 + $0x20] ss:$12 sps:$4 sm:$0xff]  }
   0x8   :  { %232 = vmatprep.subr.bf16.mxu0 %v2101_v6  ;;  %v2123_v21 = vld [vmem:[%s2704_s2 + $0x50] ss:$12 sps:$4 sm:$0xff]   ;;  %v2345_v23 = vld [vmem:[%s2705_s0] sm:$0xff]  ;;  %v2350_v24 = vld [vmem:[%s2705_s0 + $0x8] sm:$0xff]  ;;  %v2375_v30 = vshrl.u32 %v85_v29, 7  ;;  %vm344_vm1 = vcmask 261120  }
   0x9   :  { %1900 = vmatpush3.bf16.msra.mxu1 %v2120_v12  ;;  %v50_v25 = vpack.c.bf16 %v2350_v24, %v2345_v23  ;;  %v2124_v26 = vld [vmem:[%s2704_s2 + $0x38] ss:$12 sps:$4 sm:$0xff]   ;;  %v2126_v28 = vld [vmem:[%s2704_s2 + $0x8] ss:$12 sps:$4 sm:$0xff]   ;;  %v83_v32 = vld [vmem:[%s2706_s3] sm:$0x7] }
   0xa   :  { %1901 = vmatprep.subr.bf16.mxu1 %v2194_v2  ;;  %v91_v31 = vsub.s32 1, %v2375_v30  ;;  %v2384_v35 = vsub.s32 0, %v2375_v30  ;;  %v95_v50 = vsub.s32 2, %v2375_v30  ;;  %vm479_vm2 = vcmask 1043456   ;;  %v312_v62 = vld [vmem:[%s2707_s1] sm:$0x3] }
   0xb   :  { %233 = vmatpush1.bf16.msra.mxu0 %v2103_v7  ;;  %v2196_v60 = vmov 1966171168   ;;  %v1781_v63 = vadd.f32 -1.0, %v312_v62  ;;  %vm451_vm3 = vcmask 64512   ;;  %s2199_s20 = smov 32   ;;  %vm1273_vm4 = vcmask 523264  }
   0xc   :  { %234 = vmatprep.subr.bf16.mxu0 %v2104_v8  ;;  %v92_v33 = vrot.slane %v83_v32, %v91_v31  ;;  %v88_v39 = vrot.slane %v83_v32, %v2384_v35  ;;  %v96_v51 = vrot.slane %v83_v32, %v95_v50  ;;  %v317_v61 = vunpack.c.l.s4 %v2196_v60 }
   0xd   :  { %1902 = vmatpush3.bf16.msra.mxu1 %v2121_v15  ;;  %v314_v1 = vmul.f32 1e+09, %v1781_v63  ;;  %vm1276_vm5 = vcmask 785408   ;;  %vm1734_vm6 = vcmask 58368   ;;  %vm1749_vm7 = vcmask 1041409  }
   0xe   :  { %1903 = vmatprep.subr.bf16.mxu1 %v2194_v2  ;;  %v318_v0 = vunpack.c.0.s8 %v317_v61 }
   0xf   :  { %235 = vmatpush1.bf16.msra.mxu0 %v2106_v9 }
  0x10   :  { %236 = vmatprep.subr.bf16.mxu0 %v2107_v10  ;;  %v321_v3 = vsub.s32 %v318_v0, %v2375_v30 }
  0x11   :  { %1904 = vmatpush3.bf16.msra.mxu1 %v2122_v18 }
  0x12   :  { %1905 = vmatprep.subr.bf16.mxu1 %v2194_v2  ;;  %v322_v4 = vrot.slane %v314_v1, %v321_v3 }
  0x13   :  { %237 = vmatpush1.bf16.msra.mxu0 %v2109_v13 }
  0x14   :  { %238 = vmatprep.subr.bf16.mxu0 %v2110_v14  ;;  %v330_v5 = vrot.slane %v322_v4, %v321_v3  ;;  %v323_v7 = vcombine.high %v322_v4, %v322_v4 }
  0x15   :  { %1906 = vmatpush3.bf16.msra.mxu1 %v2123_v21 }
  0x16   :  { %1907 = vmatprep.subr.bf16.mxu1 %v2194_v2  ;;  %v2420_v6 = vrot.slane %v330_v5, %v2384_v35  ;;  %v337_v12 = vrot.slane %v323_v7, %v321_v3 }
  0x17   :  { %239 = vmatpush1.bf16.msra.mxu0 %v2112_v16 }
  0x18   :  { %240 = vmatprep.subr.bf16.mxu0 %v2113_v17  ;;  %v2425_v16 = vrot.slane %v337_v12, %v2384_v35 }
  0x19   :  { %1908 = vmatpush3.bf16.msra.mxu1 %v2124_v26 }
  0x1a   :  { %1909 = vmatprep.subr.bf16.mxu1 %v2194_v2 }
  0x1b   :  { %241 = vmatpush1.bf16.msra.mxu0 %v2115_v19 }
  0x1c   :  { %242 = vmatprep.subr.bf16.mxu0 %v2116_v20 }
  0x1d   :  { %1910 = vmatpush3.bf16.msra.mxu1 %v2125_v27 }
  0x1e   :  { %1911 = vmatprep.subr.bf16.mxu1 %v2194_v2 }
  0x1f   :  { %243 = vmatpush1.bf16.msra.mxu0 %v2118_v22 }
  0x20   :  { %1941 = vmatprep.subr.bf16.mxu0 %v2194_v2 }
  0x21   :  { %1912 = vmatpush3.bf16.msra.mxu1 %v2126_v28 }
  0x22   :  { %261 = vmatmul.mubr.bf16.vlgmr.msra.gmra.mxu0 %v50_v25  ;;  %1917 = vmatprep.subr.bf16.mxu1 %v2194_v2 }
  0x23   :  { %1943 = vmatprep.mubr.msk.bf16.mxu0 %vm2195_vm0, %v2194_v2 }
  0x24   :  { %1914 = vmatmul.mubr.bf16.vlgmr.msra.gmra.mxu1 %v50_v25 }
  0x25   :  { %1919 = vmatprep.mubr.msk.bf16.mxu1 %vm2195_vm0, %v2194_v2 }
  0xe2   :  { %v262_v34 = vpop.f32.mrf.mxu0 }
  0xe3   :  { %v263_v44 = vadd.f32 %v262_v34, %v88_v39 }
  0xe4   :  { %v264_v36 = vpop.f32.mrf.mxu0  ;;  %v305_v52 = vpop.f32.mrf.mxu1 }
  0xe5   :  { %v265_v37 = vadd.f32 %v264_v36, %v92_v33  ;;  %v2394_v46 = vpack.c.bf16 %v263_v44, %v263_v44  ;;  %v306_v53 = vadd.f32 %v305_v52, %v96_v51 }
  0xe6   :  { %v266_v38 = vpop.f32.mrf.mxu0  ;;  %v1915_v54 = vpop.f32.mrf.mxu1 }
  0xe7   :  { %v2387_v40 = vpack.c.bf16 %v265_v37, %v265_v37  ;;  %v267_v48 = vadd.f32 %v266_v38, %v88_v39  ;;  %v2410_v55 = vpack.c.bf16 %v306_v53, %v306_v53 }
  0xe8   :  { %v268_v41 = vpop.f32.mrf.mxu0  ;;  %v308_v56 = vpop.f32.mrf.mxu1 }
  0xe9   :  { %v269_v42 = vadd.f32 %v268_v41, %v92_v33  ;;  %v349_v43 = vsel %vm344_vm1, %v2387_v40, 0  ;;  %v2403_v49 = vpack.c.bf16 %v267_v48, %v267_v48  ;;  %v309_v57 = vadd.f32 %v308_v56, %v96_v51 }
  0xea   :  { %1918 = vmatpush3.bf16.xpose.msra.mxu1 %v349_v43  ;;  %v481_v58 = vsel %vm479_vm2, %v2410_v55, 0  ;;  %v1916_v59 = vpop.f32.mrf.mxu1 }
  0xeb   :  { %1923 = vmatprep.subr.bf16.mxu1 %v2194_v2  ;;  %v2392_v45 = vpack.c.bf16 %v269_v42, %v269_v42  ;;  %v2441_v44 = vpack.c.bf16 %v309_v57, %v309_v57 }
  0xed   :  { %v395_v47 = vsel %vm344_vm1, %v2392_v45, 0  ;;  %v527_v50 = vsel %vm479_vm2, %v2441_v44, 0 }
  0xf1   :  { %1920 = vmatmul.mubr.msk.bf16.vlgmr.msra.gmra.mxu1 %vm344_vm1, %v2394_v46 }
  0xf2   :  { %1924 = vmatpush3.bf16.xpose.msra.mxu1 %v395_v47  ;;  %1925 = vmatprep.mubr.msk.bf16.mxu1 %vm2195_vm0, %v2194_v2 }
  0xf3   :  { %1929 = vmatprep.subr.bf16.mxu1 %v2194_v2 }
  0xf9   :  { %1926 = vmatmul.mubr.msk.bf16.vlgmr.msra.gmra.mxu1 %vm344_vm1, %v2403_v49 }
  0xfa   :  { %1931 = vmatprep.mubr.msk.bf16.mxu1 %vm2195_vm0, %v2194_v2  ;;  %1930 = vmatpush3.bf16.msra.mxu1 %v481_v58 }
  0xfb   :  { %1935 = vmatprep.subr.bf16.mxu1 %v2194_v2 }
 0x1b1   :  { %v385_v8 = vpop.f32.mrf.mxu1 }
 0x1b2   :  { %v437_v9 = vmul.f32 0.17677669, %v385_v8 }
 0x1b3   :  { %v1921_v10 = vpop.f32.mrf.mxu1 }
 0x1b4   :  { %v449_v11 = vadd.f32 %v2420_v6, %v437_v9 }
 0x1b5   :  { %v388_v13 = vpop.f32.mrf.mxu1 }
 0x1b6   :  { %v452_v14 = vsel %vm451_vm3, %v449_v11, -inf }
 0x1b7   :  { %453 = vmax.xlane.f32.xlu0 %v452_v14  ;;  %v1922_v15 = vpop.f32.mrf.mxu1 }
 0x1b9   :  { %v431_v17 = vpop.f32.mrf.mxu1 }
 0x1ba   :  { %v438_v18 = vmul.f32 0.17677669, %v431_v17 }
 0x1bb   :  { %v1927_v19 = vpop.f32.mrf.mxu1 }
 0x1bc   :  { %v450_v20 = vadd.f32 %v2425_v16, %v438_v18 }
 0x1bd   :  { %v434_v21 = vpop.f32.mrf.mxu1 }
 0x1be   :  { %v455_v22 = vsel %vm451_vm3, %v450_v20, -inf }
 0x1bf   :  { %456 = vmax.xlane.f32.xlu0 %v455_v22  ;;  %v1928_v25 = vpop.f32.mrf.mxu1 }
 0x1d5   :  { %573 = vrot.lane.b32.xlu0 %v2387_v40, %s2197_s18 }
 0x240   :  { %v454_v26 = vpop.xlane.xlu0 %453 }
 0x241   :  { %v458_v27 = vsub.f32 %v449_v11, %v454_v26 }
 0x243   :  { %v460_v28 = vmul.f32 1.442695, %v458_v27 }
 0x245   :  { %2151 = vpow2.f32 %v460_v28 }
 0x248   :  { %v457_v29 = vpop.xlane.xlu0 %456 }
 0x249   :  { %v459_v37 = vsub.f32 %v450_v20, %v457_v29 }
 0x24b   :  { %v462_v38 = vmul.f32 1.442695, %v459_v37 }
 0x24c   :  { %v574_v32 = vpop.permute.xlu0 %573 }
 0x24d   :  { %v579_v33 = vsel %vm344_vm1, %v574_v32, 0  ;;  %2153 = vpow2.f32 %v462_v38 }
 0x24e   :  { %1942 = vmatpush3.bf16.xpose.msra.mxu0 %v579_v33 }
 0x24f   :  { %1953 = vmatprep.subr.bf16.mxu0 %v2194_v2 }
 0x252   :  { %v2152_v34 = vpop.eup %2151 }
 0x253   :  { %v464_v36 = vsel %vm451_vm3, %v2152_v34, 0.0 }
 0x254   :  { %465 = vadd.xlane.f32.xlu1 %v464_v36 }
 0x25a   :  { %v2154_v39 = vpop.eup %2153 }
 0x25b   :  { %v467_v41 = vsel %vm451_vm3, %v2154_v39, 0.0 }
 0x265   :  { %625 = vrot.lane.b32.xlu1 %v2392_v45, %s2197_s18 }
 0x289   :  { %468 = vadd.xlane.f32.xlu1 %v467_v41 }
 0x29a   :  { %570 = vrot.lane.b32.xlu1 %v2394_v46, %s2197_s18 }
 0x29e   :  { %622 = vrot.lane.b32.xlu1 %v2403_v49, %s2197_s18 }
 0x2dd   :  { %v466_v42 = vpop.xlane.xlu1 %465 }
 0x2de   :  { %2155 = vrcp.f32 %v466_v42 }
 0x2e1   :  { %v626_v51 = vpop.permute.xlu1 %625 }
 0x2e2   :  { %v631_v58 = vsel %vm344_vm1, %v626_v51, 0 }
 0x2eb   :  { %v2156_v43 = vpop.eup %2155 }
 0x2ec   :  { %v472_v47 = vmul.f32 %v2156_v43, %v2152_v34 }
 0x2ee   :  { %v474_v48 = vpack.c.bf16 %v472_v47, %v472_v47 }
 0x2f0   :  { %1932 = vmatmul.mubr.msk.bf16.vlgmr.msra.gmra.mxu1 %vm451_vm3, %v474_v48 }
 0x2f1   :  { %1936 = vmatpush3.bf16.msra.mxu1 %v527_v50  ;;  %1937 = vmatprep.mubr.msk.bf16.mxu1 %vm2195_vm0, %v2194_v2 }
 0x2f2   :  { %1947 = vmatprep.subr.bf16.mxu1 %v2194_v2 }
 0x312   :  { %v469_v52 = vpop.xlane.xlu1 %468 }
 0x313   :  { %2157 = vrcp.f32 %v469_v52 }
 0x316   :  { %v571_v53 = vpop.permute.xlu1 %570 }
 0x317   :  { %1944 = vmatmul.mubr.msk.bf16.vlgmr.msra.gmra.mxu0 %vm344_vm1, %v571_v53 }
 0x318   :  { %1955 = vmatprep.mubr.msk.bf16.mxu0 %vm2195_vm0, %v2194_v2 }
 0x31a   :  { %v623_v59 = vpop.permute.xlu1 %622 }
 0x320   :  { %v2158_v54 = vpop.eup %2157 }
 0x321   :  { %v473_v56 = vmul.f32 %v2158_v54, %v2154_v39 }
 0x323   :  { %v475_v57 = vpack.c.bf16 %v473_v56, %v473_v56 }
 0x325   :  { %1938 = vmatmul.mubr.msk.bf16.vlgmr.msra.gmra.mxu1 %vm451_vm3, %v475_v57 }
 0x326   :  { %1948 = vmatpush3.bf16.xpose.msra.mxu1 %v631_v58  ;;  %1949 = vmatprep.mubr.msk.bf16.mxu1 %vm2195_vm0, %v2194_v2 }
 0x327   :  { %1959 = vmatprep.subr.bf16.mxu1 %v2194_v2 }
 0x32d   :  { %1950 = vmatmul.mubr.msk.bf16.vlgmr.msra.gmra.mxu1 %vm344_vm1, %v623_v59 }
 0x32e   :  { %1961 = vmatprep.mubr.msk.bf16.mxu1 %vm2195_vm0, %v2194_v2 }
 0x3b0   :  { %v2460_v60 = vpop.f32.mrf.mxu1 }
 0x3b2   :  { %v1933_v61 = vpop.f32.mrf.mxu1 }
 0x3b4   :  { %v520_v62 = vpop.f32.mrf.mxu1 }
 0x3b6   :  { %v1934_v63 = vpop.f32.mrf.mxu1 }
 0x3d7   :  { %v615_v0 = vpop.f32.mrf.mxu0 }
 0x3d8   :  { %v673_v1 = vmul.f32 0.17677669, %v615_v0 }
 0x3d9   :  { %v1945_v3 = vpop.f32.mrf.mxu0 }
 0x3da   :  { %v675_v4 = vadd.f32 %v673_v1, %v2420_v6 }
 0x3db   :  { %v618_v5 = vpop.f32.mrf.mxu0 }
 0x3dc   :  { %v677_v7 = vsel %vm451_vm3, %v675_v4, -inf }
 0x3dd   :  { %678 = vmax.xlane.f32.xlu0 %v677_v7  ;;  %v1946_v8 = vpop.f32.mrf.mxu0 }
 0x3e5   :  { %v2464_v9 = vpop.f32.mrf.mxu1 }
 0x3e7   :  { %v1939_v10 = vpop.f32.mrf.mxu1 }
 0x3e9   :  { %v566_v11 = vpop.f32.mrf.mxu1 }
 0x3eb   :  { %v1940_v12 = vpop.f32.mrf.mxu1 }
 0x3ed   :  { %v667_v13 = vpop.f32.mrf.mxu1 }
 0x3ee   :  { %v674_v14 = vmul.f32 0.17677669, %v667_v13 }
 0x3ef   :  { %v1951_v15 = vpop.f32.mrf.mxu1 }
 0x3f0   :  { %v676_v17 = vadd.f32 %v674_v14, %v2425_v16 }
 0x3f1   :  { %v670_v18 = vpop.f32.mrf.mxu1 }
 0x3f2   :  { %v680_v19 = vsel %vm451_vm3, %v676_v17, -inf }
 0x3f3   :  { %681 = vmax.xlane.f32.xlu1 %v680_v19  ;;  %v1952_v20 = vpop.f32.mrf.mxu1 }
 0x404   :  { %751 = vrot.lane.b32.xlu1 %v2441_v44, %s2197_s18 }
 0x408   :  { %801 = vrot.lane.b32.xlu1 %v2387_v40, %s2198_s19 }
 0x40c   :  { %851 = vrot.lane.b32.xlu1 %v2392_v45, %s2198_s19 }
 0x410   :  { %849 = vrot.lane.b32.xlu1 %v2403_v49, %s2198_s19 }
 0x466   :  { %v679_v21 = vpop.xlane.xlu0 %678 }
 0x467   :  { %v683_v22 = vsub.f32 %v675_v4, %v679_v21 }
 0x469   :  { %v685_v25 = vmul.f32 1.442695, %v683_v22 }
 0x46b   :  { %2159 = vpow2.f32 %v685_v25 }
 0x478   :  { %v2160_v26 = vpop.eup %2159 }
 0x479   :  { %v689_v27 = vsel %vm451_vm3, %v2160_v26, 0.0 }
 0x47a   :  { %690 = vadd.xlane.f32.xlu0 %v689_v27 }
 0x47c   :  { %v682_v28 = vpop.xlane.xlu1 %681 }
 0x47d   :  { %v684_v29 = vsub.f32 %v676_v17, %v682_v28 }
 0x47f   :  { %v687_v32 = vmul.f32 1.442695, %v684_v29 }
 0x480   :  { %v752_v33 = vpop.permute.xlu1 %751 }
 0x481   :  { %2161 = vpow2.f32 %v687_v32  ;;  %v757_v34 = vsel %vm479_vm2, %v752_v33, 0 }
 0x482   :  { %1960 = vmatpush3.bf16.msra.mxu1 %v757_v34 }
 0x483   :  { %1971 = vmatprep.subr.bf16.mxu1 %v2194_v2 }
 0x484   :  { %v802_v48 = vpop.permute.xlu1 %801 }
 0x485   :  { %v807_v51 = vsel %vm344_vm1, %v802_v48, 0 }
 0x488   :  { %v852_v54 = vpop.permute.xlu1 %851 }
 0x489   :  { %v857_v58 = vsel %vm344_vm1, %v852_v54, 0 }
 0x48c   :  { %v850_v59 = vpop.permute.xlu1 %849 }
 0x48e   :  { %v2162_v36 = vpop.eup %2161 }
 0x48f   :  { %v692_v37 = vsel %vm451_vm3, %v2162_v36, 0.0 }
 0x490   :  { %693 = vadd.xlane.f32.xlu0 %v692_v37 }
 0x4a6   :  { %702 = vrot.lane.b32.xlu0 %v2410_v55, %s2197_s18 }
 0x4aa   :  { %799 = vrot.lane.b32.xlu0 %v2394_v46, %s2198_s19 }
 0x503   :  { %v691_v38 = vpop.xlane.xlu0 %690 }
 0x504   :  { %2163 = vrcp.f32 %v691_v38 }
 0x511   :  { %v2164_v39 = vpop.eup %2163 }
 0x512   :  { %v697_v42 = vmul.f32 %v2164_v39, %v2160_v26 }
 0x514   :  { %v699_v50 = vpack.c.bf16 %v697_v42, %v697_v42 }
 0x519   :  { %v694_v41 = vpop.xlane.xlu0 %693 }
 0x51a   :  { %2165 = vrcp.f32 %v694_v41 }
 0x51d   :  { %v703_v43 = vpop.permute.xlu0 %702 }
 0x51e   :  { %v708_v47 = vsel %vm479_vm2, %v703_v43, 0 }
 0x51f   :  { %1954 = vmatpush3.bf16.msra.mxu0 %v708_v47 }
 0x520   :  { %1965 = vmatprep.subr.bf16.mxu0 %v2194_v2 }
 0x521   :  { %v800_v56 = vpop.permute.xlu0 %799 }
 0x522   :  { %1956 = vmatmul.mubr.msk.bf16.vlgmr.msra.gmra.mxu0 %vm451_vm3, %v699_v50 }
 0x523   :  { %1966 = vmatpush3.bf16.xpose.msra.mxu0 %v807_v51  ;;  %1967 = vmatprep.mubr.msk.bf16.mxu0 %vm2195_vm0, %v2194_v2 }
 0x524   :  { %1977 = vmatprep.subr.bf16.mxu0 %v2194_v2 }
 0x527   :  { %v2166_v52 = vpop.eup %2165 }
 0x528   :  { %v698_v53 = vmul.f32 %v2166_v52, %v2162_v36 }
 0x52a   :  { %1968 = vmatmul.mubr.msk.bf16.vlgmr.msra.gmra.mxu0 %vm344_vm1, %v800_v56  ;;  %v700_v57 = vpack.c.bf16 %v698_v53, %v698_v53 }
 0x52b   :  { %1979 = vmatprep.mubr.msk.bf16.mxu0 %vm2195_vm0, %v2194_v2 }
 0x52c   :  { %1962 = vmatmul.mubr.msk.bf16.vlgmr.msra.gmra.mxu1 %vm451_vm3, %v700_v57 }
 0x52d   :  { %1972 = vmatpush3.bf16.xpose.msra.mxu1 %v857_v58  ;;  %1973 = vmatprep.mubr.msk.bf16.mxu1 %vm2195_vm0, %v2194_v2 }
 0x52e   :  { %1983 = vmatprep.subr.bf16.mxu1 %v2194_v2 }
 0x534   :  { %1974 = vmatmul.mubr.msk.bf16.vlgmr.msra.gmra.mxu1 %vm344_vm1, %v850_v59 }
 0x535   :  { %1985 = vmatprep.mubr.msk.bf16.mxu1 %vm2195_vm0, %v2194_v2 }
 0x5e2   :  { %v2502_v61 = vpop.f32.mrf.mxu0 }
 0x5e4   :  { %v1957_v62 = vpop.f32.mrf.mxu0 }
 0x5e6   :  { %v747_v63 = vpop.f32.mrf.mxu0 }
 0x5e8   :  { %v1958_v0 = vpop.f32.mrf.mxu0 }
 0x5ea   :  { %v843_v1 = vpop.f32.mrf.mxu0 }
 0x5eb   :  { %v899_v3 = vmul.f32 0.17677669, %v843_v1 }
 0x5ec   :  { %v2504_v4 = vpop.f32.mrf.mxu1  ;;  %v1969_v5 = vpop.f32.mrf.mxu0 }
 0x5ed   :  { %v2080_v7 = vpack.i.bf16 %v2504_v4, %v2502_v61  ;;  %v901_v8 = vadd.f32 %v899_v3, %v2420_v6 }
 0x5ee   :  { %v1963_v10 = vpop.f32.mrf.mxu1  ;;  %v846_v11 = vpop.f32.mrf.mxu0 }
 0x5ef   :  { %v903_v12 = vsel %vm451_vm3, %v901_v8, -inf }
 0x5f0   :  { %904 = vmax.xlane.f32.xlu0 %v903_v12  ;;  %v796_v13 = vpop.f32.mrf.mxu1  ;;  %v1970_v14 = vpop.f32.mrf.mxu0 }
 0x5f2   :  { %v1964_v15 = vpop.f32.mrf.mxu1 }
 0x5f4   :  { %v893_v17 = vpop.f32.mrf.mxu1 }
 0x5f5   :  { %v900_v18 = vmul.f32 0.17677669, %v893_v17 }
 0x5f6   :  { %v1975_v19 = vpop.f32.mrf.mxu1 }
 0x5f7   :  { %v902_v20 = vadd.f32 %v900_v18, %v2425_v16 }
 0x5f8   :  { %v896_v21 = vpop.f32.mrf.mxu1 }
 0x5f9   :  { %v906_v22 = vsel %vm451_vm3, %v902_v20, -inf }
 0x5fa   :  { %907 = vmax.xlane.f32.xlu1 %v906_v22  ;;  %v1976_v25 = vpop.f32.mrf.mxu1 }
 0x60b   :  { %975 = vrot.lane.b32.xlu1 %v2441_v44, %s2198_s19 }
 0x60f   :  { %1025 = vrot.lane.b32.xlu1 %v2387_v40, %s2199_s20 }
 0x613   :  { %1075 = vrot.lane.b32.xlu1 %v2392_v45, %s2199_s20 }
 0x617   :  { %1073 = vrot.lane.b32.xlu1 %v2403_v49, %s2199_s20 }
 0x679   :  { %v905_v26 = vpop.xlane.xlu0 %904 }
 0x67a   :  { %v909_v27 = vsub.f32 %v901_v8, %v905_v26 }
 0x67c   :  { %v911_v28 = vmul.f32 1.442695, %v909_v27 }
 0x67e   :  { %2167 = vpow2.f32 %v911_v28 }
 0x683   :  { %v908_v29 = vpop.xlane.xlu1 %907 }
 0x684   :  { %v910_v32 = vsub.f32 %v902_v20, %v908_v29 }
 0x686   :  { %v913_v33 = vmul.f32 1.442695, %v910_v32 }
 0x687   :  { %v976_v34 = vpop.permute.xlu1 %975 }
 0x688   :  { %2169 = vpow2.f32 %v913_v33  ;;  %v981_v36 = vsel %vm479_vm2, %v976_v34, 0 }
 0x689   :  { %1984 = vmatpush3.bf16.msra.mxu1 %v981_v36 }
 0x68a   :  { %1995 = vmatprep.subr.bf16.mxu1 %v2194_v2 }
 0x68b   :  { %v2168_v40 = vpop.eup %2167  ;;  %v1026_v48 = vpop.permute.xlu1 %1025 }
 0x68c   :  { %v915_v45 = vsel %vm451_vm3, %v2168_v40, 0.0  ;;  %v1031_v51 = vsel %vm344_vm1, %v1026_v48, 0  ;;  %v2128_v48 = vld [vmem:[%s2708_s4 + $0x30] sm:$0xff]  }
 0x68d   :  { %916 = vadd.xlane.f32.xlu0 %v915_v45 }
 0x68f   :  { %v1076_v53 = vpop.permute.xlu1 %1075 }
 0x690   :  { %v1081_v57 = vsel %vm344_vm1, %v1076_v53, 0  ;;  %v2133_v53 = vld [vmem:[%s2708_s4 + $0x8] sm:$0xff]  }
 0x693   :  { %v1074_v58 = vpop.permute.xlu1 %1073 }
 0x695   :  { %v2170_v37 = vpop.eup %2169 }
 0x696   :  { %v918_v49 = vsel %vm451_vm3, %v2170_v37, 0.0 }
 0x697   :  { %919 = vadd.xlane.f32.xlu0 %v918_v49 }
 0x6ad   :  { %927 = vrot.lane.b32.xlu0 %v2410_v55, %s2198_s19 }
 0x6b1   :  { %1023 = vrot.lane.b32.xlu0 %v2394_v46, %s2199_s20 }
 0x716   :  { %v917_v38 = vpop.xlane.xlu0 %916 }
 0x717   :  { %2171 = vrcp.f32 %v917_v38 }
 0x720   :  { %v920_v39 = vpop.xlane.xlu0 %919 }
 0x721   :  { %2173 = vrcp.f32 %v920_v39 }
 0x724   :  { %v2172_v41 = vpop.eup %2171  ;;  %v928_v42 = vpop.permute.xlu0 %927 }
 0x725   :  { %v933_v43 = vsel %vm479_vm2, %v928_v42, 0  ;;  %v923_v47 = vmul.f32 %v2172_v41, %v2168_v40 }
 0x726   :  { %1978 = vmatpush3.bf16.msra.mxu0 %v933_v43 }
 0x727   :  { %v925_v50 = vpack.c.bf16 %v923_v47, %v923_v47  ;;  %1989 = vmatprep.subr.bf16.mxu0 %v2194_v2  ;;  %v2127_v47 = vld [vmem:[%s2708_s4 + $0x38] sm:$0xff]  }
 0x728   :  { %v1024_v54 = vpop.permute.xlu0 %1023 }
 0x729   :  { %1980 = vmatmul.mubr.msk.bf16.vlgmr.msra.gmra.mxu0 %vm451_vm3, %v925_v50  ;;  %v2129_v50 = vld [vmem:[%s2708_s4 + $0x28] sm:$0xff]  }
 0x72a   :  { %1990 = vmatpush3.bf16.xpose.msra.mxu0 %v1031_v51  ;;  %1991 = vmatprep.mubr.msk.bf16.mxu0 %vm2195_vm0, %v2194_v2  ;;  %v2130_v51 = vld [vmem:[%s2708_s4 + $0x20] sm:$0xff]  }
 0x72b   :  { %2001 = vmatprep.subr.bf16.mxu0 %v2194_v2 }
 0x72e   :  { %v2174_v46 = vpop.eup %2173 }
 0x72f   :  { %v924_v52 = vmul.f32 %v2174_v46, %v2170_v37  ;;  %v2131_v46 = vld [vmem:[%s2708_s4 + $0x18] sm:$0xff]  }
 0x731   :  { %1992 = vmatmul.mubr.msk.bf16.vlgmr.msra.gmra.mxu0 %vm344_vm1, %v1024_v54  ;;  %v926_v56 = vpack.c.bf16 %v924_v52, %v924_v52  ;;  %v2132_v52 = vld [vmem:[%s2708_s4 + $0x10] sm:$0xff]  }
 0x732   :  { %2003 = vmatprep.mubr.msk.bf16.mxu0 %vm2195_vm0, %v2194_v2 }
 0x733   :  { %1986 = vmatmul.mubr.msk.bf16.vlgmr.msra.gmra.mxu1 %vm451_vm3, %v926_v56  ;;  %v2134_v56 = vld [vmem:[%s2708_s4] sm:$0xff]  }
 0x734   :  { %1996 = vmatpush3.bf16.xpose.msra.mxu1 %v1081_v57  ;;  %1997 = vmatprep.mubr.msk.bf16.mxu1 %vm2195_vm0, %v2194_v2 }
 0x735   :  { %2007 = vmatprep.subr.bf16.mxu1 %v2194_v2 }
 0x73b   :  { %1998 = vmatmul.mubr.msk.bf16.vlgmr.msra.gmra.mxu1 %vm344_vm1, %v1074_v58 }
 0x73c   :  { %2009 = vmatprep.mubr.msk.bf16.mxu1 %vm2195_vm0, %v2194_v2 }
 0x7e9   :  { %v969_v59 = vpop.f32.mrf.mxu0 }
 0x7eb   :  { %v1981_v62 = vpop.f32.mrf.mxu0 }
 0x7ed   :  { %v972_v63 = vpop.f32.mrf.mxu0 }
 0x7ef   :  { %v1982_v0 = vpop.f32.mrf.mxu0 }
 0x7f1   :  { %v1067_v1 = vpop.f32.mrf.mxu0 }
 0x7f2   :  { %v1123_v3 = vmul.f32 0.17677669, %v1067_v1 }
 0x7f3   :  { %v1017_v5 = vpop.f32.mrf.mxu1  ;;  %v1993_v8 = vpop.f32.mrf.mxu0 }
 0x7f4   :  { %v1125_v10 = vadd.f32 %v1123_v3, %v2420_v6  ;;  %v2085_v6 = vpack.i.bf16 %v1017_v5, %v969_v59 }
 0x7f5   :  { %v1987_v11 = vpop.f32.mrf.mxu1  ;;  %v1070_v12 = vpop.f32.mrf.mxu0 }
 0x7f6   :  { %v1127_v13 = vsel %vm451_vm3, %v1125_v10, -inf }
 0x7f7   :  { %1128 = vmax.xlane.f32.xlu0 %v1127_v13  ;;  %v1020_v14 = vpop.f32.mrf.mxu1  ;;  %v1994_v15 = vpop.f32.mrf.mxu0 }
 0x7f9   :  { %v1988_v17 = vpop.f32.mrf.mxu1 }
 0x7fb   :  { %v1117_v18 = vpop.f32.mrf.mxu1 }
 0x7fc   :  { %v1124_v19 = vmul.f32 0.17677669, %v1117_v18 }
 0x7fd   :  { %v1999_v20 = vpop.f32.mrf.mxu1 }
 0x7fe   :  { %v1126_v21 = vadd.f32 %v1124_v19, %v2425_v16 }
 0x7ff   :  { %v1120_v22 = vpop.f32.mrf.mxu1 }
 0x800   :  { %v1130_v25 = vsel %vm451_vm3, %v1126_v21, -inf }
 0x801   :  { %1131 = vmax.xlane.f32.xlu1 %v1130_v25  ;;  %v2000_v26 = vpop.f32.mrf.mxu1 }
 0x812   :  { %1199 = vrot.lane.b32.xlu1 %v2441_v44, %s2199_s20 }
 0x816   :  { %2081 = vrot.lane.b32.xlu1 %v2080_v7, %s2199_s20 }
 0x81a   :  { %2086 = vrot.lane.b32.xlu1 %v2085_v6, %s2198_s19  ;;  %v1798_v6 = vld [vmem:[%s2709_s5] ss:$0 sm:$0xff] }
 0x880   :  { %v1129_v27 = vpop.xlane.xlu0 %1128 }
 0x881   :  { %v1133_v28 = vsub.f32 %v1125_v10, %v1129_v27 }
 0x883   :  { %v1135_v29 = vmul.f32 1.442695, %v1133_v28 }
 0x885   :  { %2175 = vpow2.f32 %v1135_v29 }
 0x88a   :  { %v1132_v16 = vpop.xlane.xlu1 %1131 }
 0x88b   :  { %v1134_v32 = vsub.f32 %v1126_v21, %v1132_v16 }
 0x88d   :  { %v1137_v33 = vmul.f32 1.442695, %v1134_v32 }
 0x88e   :  { %v1200_v34 = vpop.permute.xlu1 %1199 }
 0x88f   :  { %2177 = vpow2.f32 %v1137_v33  ;;  %v1205_v36 = vsel %vm479_vm2, %v1200_v34, 0  ;;  %v2135_v34 = vld [vmem:[%s2710_s8 + $0x38] sm:$0xff]  }
 0x890   :  { %2008 = vmatpush3.bf16.msra.mxu1 %v1205_v36 }
 0x891   :  { %2033 = vmatprep.subr.bf16.mxu1 %v2194_v2 }
 0x892   :  { %v2176_v44 = vpop.eup %2175  ;;  %v2082_v5 = vpop.permute.xlu1 %2081 }
 0x893   :  { %v1139_v61 = vsel %vm451_vm3, %v2176_v44, 0.0  ;;  %v2084_v10 = vunpack.i.h.bf16 %v2082_v5  ;;  %v2083_v11 = vunpack.i.l.bf16 %v2082_v5 }
 0x894   :  { %1140 = vadd.xlane.f32.xlu0 %v1139_v61 }
 0x895   :  { %v1272_v15 = vsel %vm344_vm1, %v2464_v9, %v2084_v10  ;;  %v1271_v17 = vsel %vm344_vm1, %v2460_v60, %v2083_v11  ;;  %v2148_v11 = vld [vmem:[%s2711_s10 + $0x10] sm:$0xff]  }
 0x896   :  { %v2087_v8 = vpop.permute.xlu1 %2086 }
 0x897   :  { %v2089_v12 = vunpack.i.h.bf16 %v2087_v8  ;;  %v2088_v13 = vunpack.i.l.bf16 %v2087_v8 }
 0x899   :  { %v1274_v20 = vsel %vm1273_vm4, %v1271_v17, %v2088_v13  ;;  %v1275_v21 = vsel %vm1273_vm4, %v1272_v15, %v2089_v12  ;;  %v2149_v12 = vld [vmem:[%s2711_s10 + $0x8] sm:$0xff]   ;;  %v2150_v13 = vld [vmem:[%s2711_s10] sm:$0xff]  }
 0x89c   :  { %v2178_v4 = vpop.eup %2177 }
 0x89d   :  { %v1142_v7 = vsel %vm451_vm3, %v2178_v4, 0.0 }
 0x89e   :  { %1143 = vadd.xlane.f32.xlu0 %v1142_v7 }
 0x8b4   :  { %1151 = vrot.lane.b32.xlu0 %v2410_v55, %s2199_s20 }
 0x91d   :  { %v1141_v40 = vpop.xlane.xlu0 %1140 }
 0x91e   :  { %2179 = vrcp.f32 %v1141_v40 }
 0x927   :  { %v1144_v45 = vpop.xlane.xlu0 %1143 }
 0x928   :  { %2181 = vrcp.f32 %v1144_v45 }
 0x92b   :  { %v2180_v37 = vpop.eup %2179  ;;  %v1152_v49 = vpop.permute.xlu0 %1151 }
 0x92c   :  { %v1157_v38 = vsel %vm479_vm2, %v1152_v49, 0  ;;  %v1147_v39 = vmul.f32 %v2180_v37, %v2176_v44  ;;  %v2137_v37 = vld [vmem:[%s2710_s8 + $0x28] sm:$0xff]   ;;  %v2138_v49 = vld [vmem:[%s2710_s8 + $0x20] sm:$0xff]  }
 0x92d   :  { %2002 = vmatpush3.bf16.msra.mxu0 %v1157_v38  ;;  %v2139_v38 = vld [vmem:[%s2710_s8 + $0x18] sm:$0xff]  }
 0x92e   :  { %v1149_v41 = vpack.c.bf16 %v1147_v39, %v1147_v39  ;;  %2013 = vmatprep.subr.bf16.mxu0 %v2194_v2  ;;  %v2140_v39 = vld [vmem:[%s2710_s8 + $0x10] sm:$0xff]  }
 0x930   :  { %2004 = vmatmul.mubr.msk.bf16.vlgmr.msra.gmra.mxu0 %vm451_vm3, %v1149_v41  ;;  %v2141_v41 = vld [vmem:[%s2710_s8 + $0x8] sm:$0xff]  }
 0x931   :  { %2029 = vmatprep.mubr.msk.bf16.mxu0 %vm2195_vm0, %v2194_v2  ;;  %2014 = vmatpush3.bf16.msra.mxu0 %v2127_v47  ;;  %v2145_v47 = vld [vmem:[%s2711_s10 + $0x28] sm:$0xff]  }
 0x932   :  { %2015 = vmatprep.subr.bf16.mxu0 %v2194_v2 }
 0x935   :  { %v2182_v42 = vpop.eup %2181  ;;  %2016 = vmatpush3.bf16.msra.mxu0 %v2128_v48  ;;  %v2146_v48 = vld [vmem:[%s2711_s10 + $0x20] sm:$0xff]  }
 0x936   :  { %v1148_v55 = vmul.f32 %v2182_v42, %v2178_v4  ;;  %2017 = vmatprep.subr.bf16.mxu0 %v2194_v2  ;;  %v2142_v42 = vld [vmem:[%s2710_s8] sm:$0xff]  }
 0x938   :  { %v1150_v43 = vpack.c.bf16 %v1148_v55, %v1148_v55  ;;  %v2143_v55 = vld [vmem:[%s2711_s10 + $0x38] sm:$0xff]  }
 0x939   :  { %2018 = vmatpush3.bf16.msra.mxu0 %v2129_v50  ;;  %v2147_v50 = vld [vmem:[%s2711_s10 + $0x18] sm:$0xff]  }
 0x93a   :  { %2010 = vmatmul.mubr.msk.bf16.vlgmr.msra.gmra.mxu1 %vm451_vm3, %v1150_v43  ;;  %2019 = vmatprep.subr.bf16.mxu0 %v2194_v2  ;;  %v2144_v43 = vld [vmem:[%s2711_s10 + $0x30] sm:$0xff]  }
 0x93b   :  { %2049 = vmatprep.mubr.msk.bf16.mxu1 %vm2195_vm0, %v2194_v2  ;;  %2034 = vmatpush3.bf16.msra.mxu1 %v2135_v34 }
 0x93c   :  { %2035 = vmatprep.subr.bf16.mxu1 %v2194_v2 }
 0x93d   :  { %2020 = vmatpush3.bf16.msra.mxu0 %v2130_v51 }
 0x93e   :  { %2021 = vmatprep.subr.bf16.mxu0 %v2194_v2 }
 0x941   :  { %2022 = vmatpush3.bf16.msra.mxu0 %v2131_v46 }
 0x942   :  { %2023 = vmatprep.subr.bf16.mxu0 %v2194_v2 }
 0x945   :  { %2024 = vmatpush3.bf16.msra.mxu0 %v2132_v52 }
 0x946   :  { %2025 = vmatprep.subr.bf16.mxu0 %v2194_v2 }
 0x949   :  { %2026 = vmatpush3.bf16.msra.mxu0 %v2133_v53 }
 0x94a   :  { %2027 = vmatprep.subr.bf16.mxu0 %v2194_v2 }
 0x94d   :  { %2028 = vmatpush3.bf16.msra.mxu0 %v2134_v56 }
 0x94e   :  { %2053 = vmatprep.subr.bf16.mxu0 %v2194_v2 }
 0x9f0   :  { %v1193_v54 = vpop.f32.mrf.mxu0 }
 0x9f2   :  { %v2005_v57 = vpop.f32.mrf.mxu0 }
 0x9f4   :  { %v1196_v58 = vpop.f32.mrf.mxu0 }
 0x9f6   :  { %v2006_v59 = vpop.f32.mrf.mxu0 }
 0x9f7   :  { %v1807_v59 = vld [vmem:[%s2712_s6] ss:$0 sm:$0xff] }
 0x9fa   :  { %v1241_v62 = vpop.f32.mrf.mxu1 }
 0x9fb   :  { %v2090_v63 = vpack.i.bf16 %v1241_v62, %v1193_v54 }
 0x9fc   :  { %v2011_v0 = vpop.f32.mrf.mxu1 }
 0x9fd   :  { %2091 = vrot.lane.b32.xlu0 %v2090_v63, %s2197_s18 }
 0x9fe   :  { %v1244_v1 = vpop.f32.mrf.mxu1 }
 0x9ff   :  { %v1808_v1 = vld [vmem:[%s2713_s7] ss:$0 sm:$0xff] }
 0xa00   :  { %v2012_v3 = vpop.f32.mrf.mxu1 }
 0xa6f   :  { %v2092_v14 = vpop.permute.xlu0 %2091 }
 0xa70   :  { %v2094_v18 = vunpack.i.h.bf16 %v2092_v14  ;;  %v2093_v19 = vunpack.i.l.bf16 %v2092_v14  ;;  %v1809_v14 = vld [vmem:[%s2714_s9] ss:$0 sm:$0xff] }
 0xa72   :  { %v1278_v22 = vsel %vm1276_vm5, %v1275_v21, %v2094_v18  ;;  %v1277_v25 = vsel %vm1276_vm5, %v1274_v20, %v2093_v19 }
 0xa73   :  { %v1279_v26 = vpack.c.bf16 %v1278_v22, %v1277_v25 }
 0xa75   :  { %2030 = vmatmul.mubr.bf16.vlgmr.msra.gmra.mxu0 %v1279_v26 }
 0xa76   :  { %2069 = vmatprep.mubr.msk.bf16.mxu0 %vm2195_vm0, %v2194_v2  ;;  %2054 = vmatpush3.bf16.msra.mxu0 %v2143_v55 }
 0xa77   :  { %2055 = vmatprep.subr.bf16.mxu0 %v2194_v2 }
 0xa7a   :  { %2056 = vmatpush3.bf16.msra.mxu0 %v2144_v43 }
 0xa7b   :  { %2057 = vmatprep.subr.bf16.mxu0 %v2194_v2 }
 0xa7e   :  { %2058 = vmatpush3.bf16.msra.mxu0 %v2145_v47 }
 0xa7f   :  { %2059 = vmatprep.subr.bf16.mxu0 %v2194_v2 }
 0xa82   :  { %2060 = vmatpush3.bf16.msra.mxu0 %v2146_v48  ;;  %v1827_v48 = vld [vmem:[%s2716_s12] ss:$0 sm:$0xff] }
 0xa83   :  { %2061 = vmatprep.subr.bf16.mxu0 %v2194_v2 }
 0xa86   :  { %2062 = vmatpush3.bf16.msra.mxu0 %v2147_v50 }
 0xa87   :  { %2063 = vmatprep.subr.bf16.mxu0 %v2194_v2 }
 0xa8a   :  { %2064 = vmatpush3.bf16.msra.mxu0 %v2148_v11 }
 0xa8b   :  { %2065 = vmatprep.subr.bf16.mxu0 %v2194_v2 }
 0xa8e   :  { %2066 = vmatpush3.bf16.msra.mxu0 %v2149_v12 }
 0xa8f   :  { %2067 = vmatprep.subr.bf16.mxu0 %v2194_v2 }
 0xa92   :  { %2068 = vmatpush3.bf16.msra.mxu0 %v2150_v13 }
 0xb35   :  { %v1385_v27 = vpop.f32.mrf.mxu0 }
 0xb36   :  { %v1386_v9 = vadd.f32 %v1798_v6, %v1385_v27 }
 0xb37   :  { %v2031_v28 = vpop.f32.mrf.mxu0 }
 0xb38   :  { %v1392_v60 = vadd.f32 %v1386_v9, %v2345_v23 }
 0xb39   :  { %v1388_v29 = vpop.f32.mrf.mxu0 }
 0xb3a   :  { %v1389_v16 = vadd.f32 %v1798_v6, %v1388_v29  ;;  %1396 = vadd.xlane.f32.xlu1 %v1392_v60 }
 0xb3b   :  { %v2032_v32 = vpop.f32.mrf.mxu0 }
 0xb3c   :  { %v1393_v33 = vadd.f32 %v1389_v16, %v2350_v24  ;;  %v2136_v24 = vld [vmem:[%s2710_s8 + $0x30] sm:$0xff]  }
 0xb3d   :  { %2036 = vmatpush3.bf16.msra.mxu1 %v2136_v24 }
 0xb3e   :  { %1398 = vadd.xlane.f32.xlu0 %v1393_v33  ;;  %2037 = vmatprep.subr.bf16.mxu1 %v2194_v2 }
 0xb41   :  { %2038 = vmatpush3.bf16.msra.mxu1 %v2137_v37 }
 0xb42   :  { %2039 = vmatprep.subr.bf16.mxu1 %v2194_v2 }
 0xb45   :  { %2040 = vmatpush3.bf16.msra.mxu1 %v2138_v49 }
 0xb46   :  { %2041 = vmatprep.subr.bf16.mxu1 %v2194_v2 }
 0xb49   :  { %2042 = vmatpush3.bf16.msra.mxu1 %v2139_v38 }
 0xb4a   :  { %2043 = vmatprep.subr.bf16.mxu1 %v2194_v2 }
 0xb4d   :  { %2044 = vmatpush3.bf16.msra.mxu1 %v2140_v39 }
 0xb4e   :  { %2045 = vmatprep.subr.bf16.mxu1 %v2194_v2 }
 0xb51   :  { %2046 = vmatpush3.bf16.msra.mxu1 %v2141_v41 }
 0xb52   :  { %2047 = vmatprep.subr.bf16.mxu1 %v2194_v2  ;;  %v1818_v2 = vld [vmem:[%s2715_s11] ss:$0 sm:$0xff] }
 0xb55   :  { %2048 = vmatpush3.bf16.msra.mxu1 %v2142_v42 }
 0xbc3   :  { %v1397_v36 = vpop.xlane.xlu1 %1396 }
 0xbc4   :  { %v1401_v44 = vmul.f32 0.0078125, %v1397_v36 }
 0xbc6   :  { %v1403_v61 = vsub.f32 %v1392_v60, %v1401_v44 }
 0xbc7   :  { %v1399_v4 = vpop.xlane.xlu0 %1398 }
 0xbc8   :  { %v1402_v7 = vmul.f32 0.0078125, %v1399_v4  ;;  %v1405_v23 = vmul.f32 %v1403_v61, %v1403_v61 }
 0xbca   :  { %v1404_v40 = vsub.f32 %v1393_v33, %v1402_v7  ;;  %1407 = vadd.xlane.f32.xlu0 %v1405_v23 }
 0xbcc   :  { %v1406_v45 = vmul.f32 %v1404_v40, %v1404_v40 }
 0xbce   :  { %1409 = vadd.xlane.f32.xlu0 %v1406_v45 }
 0xc53   :  { %v1408_v51 = vpop.xlane.xlu0 %1407 }
 0xc54   :  { %v1411_v46 = vmul.f32 0.0078125, %v1408_v51 }
 0xc56   :  { %v1413_v52 = vadd.f32 1e-05, %v1411_v46 }
 0xc57   :  { %v1410_v53 = vpop.xlane.xlu0 %1409 }
 0xc58   :  { %2183 = vrsqrt.f32 %v1413_v52  ;;  %v1412_v54 = vmul.f32 0.0078125, %v1410_v53 }
 0xc5a   :  { %v1414_v56 = vadd.f32 1e-05, %v1412_v54 }
 0xc5c   :  { %2185 = vrsqrt.f32 %v1414_v56 }
 0xc65   :  { %v2184_v57 = vpop.eup %2183 }
 0xc66   :  { %v1417_v58 = vmul.f32 %v2184_v57, %v1403_v61 }
 0xc68   :  { %v1425_v0 = vmul.f32 %v1807_v59, %v1417_v58 }
 0xc69   :  { %v2186_v62 = vpop.eup %2185 }
 0xc6a   :  { %v1418_v63 = vmul.f32 %v2186_v62, %v1404_v40  ;;  %v1433_v5 = vadd.f32 %v1808_v1, %v1425_v0  ;;  %v1705_v40 = vld [vmem:[%s2707_s1] sm:$0x3] }
 0xc6b   :  { %v1735_v45 = vsel %vm1734_vm6, %v1705_v40, 0.0  ;;  %v1716_v24 = vrot.slane %v1705_v40, %v91_v31  ;;  %v1709_v37 = vrot.slane %v1705_v40, %v2384_v35  ;;  %v1828_v31 = vld [vmem:[%s2717_s13] ss:$0 sm:$0xff] }
 0xc6c   :  { %v1426_v3 = vmul.f32 %v1807_v59, %v1418_v63 }
 0xc6e   :  { %v1434_v8 = vadd.f32 %v1808_v1, %v1426_v3 }
 0xc70   :  { %v1435_v10 = vpack.c.bf16 %v1434_v8, %v1433_v5 }
 0xc72   :  { %2050 = vmatmul.mubr.bf16.vlgmr.msra.gmra.mxu1 %v1435_v10 }
 0xd32   :  { %v1541_v15 = vpop.f32.mrf.mxu1 }
 0xd33   :  { %v1542_v18 = vadd.f32 %v1809_v14, %v1541_v15 }
 0xd34   :  { %v2051_v17 = vpop.f32.mrf.mxu1 }
 0xd35   :  { %v1548_v22 = vmax.f32 %v1542_v18, 0.0 }
 0xd36   :  { %v1544_v19 = vpop.f32.mrf.mxu1 }
 0xd37   :  { %v1545_v20 = vadd.f32 %v1809_v14, %v1544_v19 }
 0xd38   :  { %v2052_v21 = vpop.f32.mrf.mxu1 }
 0xd39   :  { %v1549_v25 = vmax.f32 %v1545_v20, 0.0 }
 0xd3b   :  { %v1550_v26 = vpack.c.bf16 %v1549_v25, %v1548_v22 }
 0xd3d   :  { %2070 = vmatmul.mubr.bf16.vlgmr.msra.gmra.mxu0 %v1550_v26 }
 0xdfd   :  { %v1656_v6 = vpop.f32.mrf.mxu0 }
 0xdfe   :  { %v1657_v27 = vadd.f32 %v1818_v2, %v1656_v6 }
 0xdff   :  { %v2071_v9 = vpop.f32.mrf.mxu0 }
 0xe00   :  { %v1663_v28 = vadd.f32 %v1657_v27, %v1433_v5 }
 0xe01   :  { %v1659_v60 = vpop.f32.mrf.mxu0 }
 0xe02   :  { %v1660_v29 = vadd.f32 %v1818_v2, %v1659_v60  ;;  %1667 = vadd.xlane.f32.xlu0 %v1663_v28 }
 0xe03   :  { %v2072_v16 = vpop.f32.mrf.mxu0 }
 0xe04   :  { %v1664_v32 = vadd.f32 %v1660_v29, %v1434_v8 }
 0xe06   :  { %1669 = vadd.xlane.f32.xlu1 %v1664_v32 }
 0xe8b   :  { %v1668_v33 = vpop.xlane.xlu0 %1667 }
 0xe8c   :  { %v1671_v34 = vmul.f32 0.0078125, %v1668_v33 }
 0xe8e   :  { %v1673_v36 = vsub.f32 %v1663_v28, %v1671_v34 }
 0xe8f   :  { %v1670_v44 = vpop.xlane.xlu1 %1669 }
 0xe90   :  { %v1672_v61 = vmul.f32 0.0078125, %v1670_v44  ;;  %v1675_v4 = vmul.f32 %v1673_v36, %v1673_v36 }
 0xe92   :  { %v1674_v7 = vsub.f32 %v1664_v32, %v1672_v61  ;;  %1677 = vadd.xlane.f32.xlu0 %v1675_v4 }
 0xe94   :  { %v1676_v23 = vmul.f32 %v1674_v7, %v1674_v7 }
 0xe96   :  { %1679 = vadd.xlane.f32.xlu1 %v1676_v23 }
 0xe9a   :  { %1736 = vadd.xlane.f32.xlu1 %v1735_v45 }
 0xea8   :  { %1718 = vbcast.lane.b32.xlu0 %v1716_v24, 256 }
 0xeab   :  { %1711 = vbcast.lane.b32.xlu1 %v1709_v37, 256 }
 0xf1b   :  { %v1678_v49 = vpop.xlane.xlu0 %1677 }
 0xf1c   :  { %v1681_v38 = vmul.f32 0.0078125, %v1678_v49 }
 0xf1e   :  { %v1683_v39 = vadd.f32 1e-05, %v1681_v38 }
 0xf1f   :  { %v1680_v41 = vpop.xlane.xlu1 %1679  ;;  %v1719_v57 = vpop.permute.xlu0 %1718 }
 0xf20   :  { %2187 = vrsqrt.f32 %v1683_v39  ;;  %v1682_v42 = vmul.f32 0.0078125, %v1680_v41 }
 0xf22   :  { %v1684_v55 = vadd.f32 1e-05, %v1682_v42 }
 0xf23   :  { %v1737_v43 = vpop.xlane.xlu1 %1736 }
 0xf24   :  { %2189 = vrsqrt.f32 %v1684_v55  ;;  %v1738_v35 = vmax.f32 %v1737_v43, 1.0 }
 0xf26   :  { %2191 = vrcp.f32 %v1738_v35 }
 0xf27   :  { %v1712_v46 = vpop.permute.xlu1 %1711 }
 0xf2d   :  { %v2188_v47 = vpop.eup %2187 }
 0xf2e   :  { %v1687_v30 = vmul.f32 %v2188_v47, %v1673_v36 }
 0xf30   :  { %v1695_v50 = vmul.f32 %v1827_v48, %v1687_v30 }
 0xf31   :  { %v2190_v51 = vpop.eup %2189 }
 0xf32   :  { %v1703_v52 = vadd.f32 %v1828_v31, %v1695_v50  ;;  %v1688_v53 = vmul.f32 %v2190_v51, %v1674_v7 }
 0xf33   :  { %v2192_v12 = vpop.eup %2191 }
 0xf34   :  { %v1720_v54 = vmul.f32 %v1712_v46, %v1703_v52  ;;  %v1696_v56 = vmul.f32 %v1827_v48, %v1688_v53  ;;  %v1741_v14 = vrot.slane %v2192_v12, 1 }
 0xf36   :  { %v1722_v58 = vrot.slane %v1720_v54, 4  ;;  %v1704_v59 = vadd.f32 %v1828_v31, %v1696_v56 }
 0xf38   :  { %v1723_v62 = vadd.f32 %v1722_v58, %v1720_v54  ;;  %v1721_v63 = vmul.f32 %v1719_v57, %v1704_v59 }
 0xf3a   :  { %v1724_v0 = vrot.slane %v1723_v62, 2  ;;  %v1728_v1 = vrot.slane %v1721_v63, 4 }
 0xf3c   :  { %v1725_v3 = vadd.f32 %v1724_v0, %v1723_v62  ;;  %v1729_v5 = vadd.f32 %v1728_v1, %v1721_v63 }
 0xf3e   :  { %v1730_v8 = vrot.slane %v1729_v5, 2  ;;  %v1726_v10 = vrot.slane %v1725_v3, 1 }
 0xf40   :  { %v1731_v11 = vadd.f32 %v1730_v8, %v1729_v5  ;;  %v1727_v15 = vadd.f32 %v1726_v10, %v1725_v3 }
 0xf42   :  { %v1732_v13 = vrot.slane %v1731_v11, 1  ;;  %v1744_v19 = vmul.f32 %v2192_v12, %v1727_v15 }
 0xf44   :  { %v1733_v17 = vadd.f32 %v1732_v13, %v1731_v11 }
 0xf46   :  { %v1745_v18 = vmul.f32 %v1741_v14, %v1733_v17 }
 0xf48   :  { %v1748_v20 = vrot.slane %v1745_v18, 7 }
 0xf4a   :  { %v1750_v21 = vsel %vm1749_vm7, %v1748_v20, %v1744_v19 }
 0xf4b   :  { %1752 = vst [vmem:[%s2718_s14] sm:$0x3] %v1750_v21 }

// kernel: _lambda_.3
= control target key start
LH: loop header
LB: loop body
LE: loop exit
PB: predicated region body
PF: predicated region fallthrough
CT: control target
= control target key end

     0   :  { %s6452_s29 = smov 0   ;;  %s7830_s0 = inlined_call_operand.vmem [shape: f32[16,8,64], index: 0, kind: input, shape index: {}]   ;;  %s7831_s1 = inlined_call_operand.vmem [shape: f32[16,8], index: 1, kind: input, shape index: {}]   ;;  %s7832_s2 = inlined_call_operand.vmem [shape: bf16[64,192], index: 2, kind: input, shape index: {}]   ;;  %s7833_s3 = inlined_call_operand.vmem [shape: f32[1,192], index: 3, kind: input, shape index: {}]   ;;  %s7834_s4 = inlined_call_operand.vmem [shape: bf16[64,64], index: 4, kind: input, shape index: {}]   ;;  %s7835_s5 = inlined_call_operand.vmem [shape: f32[1,64], index: 5, kind: input, shape index: {}]   ;;  %s7836_s6 = inlined_call_operand.vmem [shape: f32[1,64], index: 6, kind: input, shape index: {}]   ;;  %s7837_s7 = inlined_call_operand.vmem [shape: f32[1,64], index: 7, kind: input, shape index: {}]   ;;  %s7838_s8 = inlined_call_operand.vmem [shape: bf16[64,128], index: 8, kind: input, shape index: {}]   ;;  %s7839_s9 = inlined_call_operand.vmem [shape: f32[1,128], index: 9, kind: input, shape index: {}]   ;;  %s7840_s10 = inlined_call_operand.vmem [shape: bf16[128,64], index: 10, kind: input, shape index: {}]   ;;  %s7841_s11 = inlined_call_operand.vmem [shape: f32[1,64], index: 11, kind: input, shape index: {}]   ;;  %s7842_s12 = inlined_call_operand.vmem [shape: f32[1,64], index: 12, kind: input, shape index: {}]   ;;  %s7843_s13 = inlined_call_operand.vmem [shape: f32[1,64], index: 13, kind: input, shape index: {}]   ;;  %s7844_s14 = inlined_call_operand.vmem [shape: f32[16,64], index: 14, kind: output, shape index: {}]  }
   0x1 LB: > { %s6458_s30 = sadd.s32 4294967295, %s6364_s29   ;;  %p5369_p0 = scmp.ge.s32.totalorder %s6364_s29, 1  ;;  %s6364_s29 = sphi %s6452_s29, %s24_s29  }
   0x2   : > { %p422_p1 = scmp.lt.s32.totalorder %s6364_s29, 3 }
   0x4   : > { %p423_p2 = pnand %p5369_p0, %p422_p1 }
   0x6   : > { %426 = sbr.rel (%p423_p2) target bundleno = 4326 (0x10e6), region = 76 }
   0xb   : > { %v6159_v0 = vld [vmem:[%s7832_s2 + $0x34] ss:$8 sps:$4 sm:$0xff]   ;;  %s5370_s17 = sshll.u32 %s6458_s30, 3  ;;  %v6161_v1 = vld [vmem:[%s7832_s2 + $0x30] ss:$8 sps:$4 sm:$0xff]   ;;  %v6366_v2 = vmov 0   ;;  %v508_v21 = vlaneseq }
   0xc   : > { %603 = vmatprep.mubr.bf16.mxu0 %v6366_v2  ;;  %p472_p3 = scmp.lt.s32.totalorder %s5370_s17, 15  ;;  %579 = vmatprep.subr.bf16.mxu0 %v6159_v0  ;;  %v6162_v3 = vld [vmem:[%s7832_s2 + $0x24] ss:$8 sps:$4 sm:$0xff]   ;;  %v6164_v4 = vld [vmem:[%s7832_s2 + $0x20] ss:$8 sps:$4 sm:$0xff]   ;;  %vm558_vm0 = vcmask 523264  }
   0xd   : > { %580 = vmatpush1.bf16.msra.mxu0 %v6161_v1  ;;  %v6165_v5 = vld [vmem:[%s7832_s2 + $0x14] ss:$8 sps:$4 sm:$0xff]   ;;  %v6167_v6 = vld [vmem:[%s7832_s2 + $0x10] ss:$8 sps:$4 sm:$0xff]   ;;  %v6168_v7 = vld [vmem:[%s7832_s2 + $0x4] ss:$8 sps:$4 sm:$0xff]  }
   0xe   : > { %s7866_s17 = smov (!%p472_p3, %s5370_s17), 15  ;;  %581 = vmatprep.subr.bf16.mxu0 %v6162_v3  ;;  %v6170_v8 = vld [vmem:[%s7832_s2] ss:$8 sps:$4 sm:$0xff]   ;;  %v6504_v22 = vshrl.u32 %v508_v21, 7  ;;  %v7846_v23 = vmov 0.0   ;;  %vm6368_vm1 = vmmov 0  }
   0xf   : > { %s5371_s26 = sshll.u32 %s7866_s17, 3  ;;  %5646 = vmatprep.subr.bf16.mxu1 %v7846_v23  ;;  %v506_v25 = vld [vmem:[%s7833_s3] sm:$0x3]  ;;  %5648 = vmatprep.mubr.msk.bf16.mxu1 %vm6368_vm1, %v7846_v23  ;;  %s6369_s24 = smov 64   ;;  %vm716_vm2 = vcmask 130048   ;;  %vm1262_vm3 = vcmask 1043456  }
  0x10   : > { %s6481_s15 = scalar_lea.vmem %s7830_s0, %s5371_s26  ;;  %7851 = vst [vmem:[#allocation2_spill] sm:$0xff] %v6504_v22  ;;  %v6509_v24 = vsub.s32 0, %v6504_v22  ;;  %v7845_v30 = vsub.s32 1, %v6504_v22  ;;  %p477_p4 = scmp.lt.s32.totalorder %s6458_s30, 1  ;;  %v6370_v21 = vmov 1966171168  }
  0x11   : > { %582 = vmatpush1.bf16.msra.mxu0 %v6164_v4  ;;  %v486_v9 = vld [vmem:[%s6481_s15] sm:$0xff]  ;;  %v487_v10 = vld [vmem:[%s6481_s15 + $0x8] sm:$0xff]  ;;  %v488_v12 = vld [vmem:[%s6481_s15 + $0x10] sm:$0xff]  ;;  %vm1162_vm4 = vcmask 64512   ;;  %s6371_s16 = smov 48   ;;  %s6372_s18 = smov 112  }
  0x12   : > { %583 = vmatprep.subr.bf16.mxu0 %v6165_v5  ;;  %v494_v11 = vpack.c.bf16 %v487_v10, %v486_v9  ;;  %v489_v13 = vld [vmem:[%s6481_s15 + $0x18] sm:$0xff]  ;;  %v490_v15 = vld [vmem:[%s6481_s15 + $0x20] sm:$0xff]  ;;  %v491_v16 = vld [vmem:[%s6481_s15 + $0x28] sm:$0xff]  ;;  %7852 = vst [vmem:[#allocation3_spill] sm:$0xff] %v6509_v24  ;;  %v511_v28 = vrot.slane %v506_v25, %v6509_v24  ;;  %v6528_v36 = vrot.slane %v506_v25, %v7845_v30  ;;  %s7868_s30 = smov (!%p477_p4, %s6458_s30), 1  ;;  %v650_v25 = vunpack.c.l.s4 %v6370_v21  ;;  %s6373_s19 = smov 32  }
  0x13   : > { %v495_v14 = vpack.c.bf16 %v489_v13, %v488_v12  ;;  %v496_v17 = vpack.c.bf16 %v491_v16, %v490_v15  ;;  %v492_v18 = vld [vmem:[%s6481_s15 + $0x30] sm:$0xff]  ;;  %v493_v19 = vld [vmem:[%s6481_s15 + $0x38] sm:$0xff]  ;;  %s5372_s25 = sshll.u32 %s7868_s30, 3  ;;  %s6374_s20 = smov 96   ;;  %vm4428_vm5 = vcmask 261120   ;;  %vm4437_vm6 = vcmask 392192  }
  0x14   : > { %v497_v20 = vpack.c.bf16 %v493_v19, %v492_v18  ;;  %s6645_s28 = scalar_lea.vmem %s7831_s1, %s5372_s25  ;;  %s6375_s17 = smov 16   ;;  %vm5278_vm7 = vcmask 1041409   ;;  %vm5281_vm8 = vcmask 1042434   ;;  %vm5284_vm9 = vcmask 1043459  }
  0x15   : > { %584 = vmatpush1.bf16.msra.mxu0 %v6167_v6  ;;  %s6376_s21 = smov 80   ;;  %vm5287_vm10 = vcmask 1044484   ;;  %vm5290_vm11 = vcmask 1045509   ;;  %vm5293_vm12 = vcmask 1046534   ;;  %vm5296_vm13 = vcmask 1047559  }
  0x16   : > { %585 = vmatprep.subr.bf16.mxu0 %v6168_v7 }
  0x19   : > { %586 = vmatpush1.bf16.msra.mxu0 %v6170_v8 }
  0x1a   : > { %5640 = vmatprep.subr.bf16.mxu0 %v7846_v23 }
  0x1c   : > { %5382 = vmatmul.mubr.msk.bf16.vlgmr.msra.gmra.mxu0 %vm558_vm0, %v494_v11 }
  0x1d   : > { %613 = vmatprep.mubr.bf16.mxu0 %v6366_v2 }
  0x24   : > { %5383 = vmatmul.mubr.msk.bf16.gmra.mxu0 %vm558_vm0, %v495_v14 }
  0x25   : > { %623 = vmatprep.mubr.bf16.mxu0 %v6366_v2 }
  0x2c   : > { %5384 = vmatmul.mubr.msk.bf16.gmra.mxu0 %vm558_vm0, %v496_v17 }
  0x2d   : > { %633 = vmatprep.mubr.bf16.mxu0 %v6366_v2 }
  0x34   : > { %5385 = vmatmul.mubr.msk.bf16.gmra.mxu0 %vm558_vm0, %v497_v20 }
  0x35   : > { %5642 = vmatprep.mubr.msk.bf16.mxu0 %vm6368_vm1, %v7846_v23 }
  0xdc   : > { %v605_v26 = vpop.f32.mrf.mxu0 }
  0xdd   : > { %v606_v33 = vadd.f32 %v605_v26, %v511_v28  ;;  %v644_v26 = vld [vmem:[%s6645_s28] sm:$0xff] }
  0xde   : > { %v6514_v27 = vpop.f32.mrf.mxu0 }
  0xdf   : > { %v6532_v39 = vpack.c.bf16 %v606_v33, %v606_v33  ;;  %v608_v17 = vadd.f32 %v6514_v27, %v6528_v36  ;;  %v5386_v27 = vadd.f32 -1.0, %v644_v26 }
  0xe0   : > { %v609_v29 = vpop.f32.mrf.mxu0 }
  0xe1   : > { %v610_v31 = vadd.f32 %v609_v29, %v511_v28  ;;  %v6626_v19 = vpack.c.bf16 %v608_v17, %v608_v17  ;;  %v646_v29 = vmul.f32 1e+09, %v5386_v27 }
  0xe2   : > { %v6522_v32 = vpop.f32.mrf.mxu0 }
  0xe3   : > { %v6524_v34 = vpack.c.bf16 %v610_v31, %v610_v31  ;;  %v612_v12 = vadd.f32 %v6522_v32, %v6528_v36  ;;  %v1264_v20 = vsel %vm1262_vm3, %v6626_v19, 0 }
  0xe4   : > { %v615_v35 = vpop.f32.mrf.mxu0 }
  0xe5   : > { %v616_v37 = vadd.f32 %v615_v35, %v511_v28  ;;  %764 = vrot.lane.b32.xlu0 %v6524_v34, %s6369_s24  ;;  %v6609_v15 = vpack.c.bf16 %v612_v12, %v612_v12 }
  0xe6   : > { %v617_v38 = vpop.f32.mrf.mxu0 }
  0xe7   : > { %v6534_v40 = vpack.c.bf16 %v616_v37, %v616_v37  ;;  %v6537_v41 = vadd.f32 %v617_v38, %v6528_v36  ;;  %v1310_v18 = vsel %vm1262_vm3, %v6609_v15, 0 }
  0xe8   : > { %v619_v42 = vpop.f32.mrf.mxu0 }
  0xe9   : > { %v620_v43 = vadd.f32 %v619_v42, %v511_v28  ;;  %714 = vrot.lane.b32.xlu0 %v6532_v39, %s6369_s24  ;;  %813 = vrot.lane.b32.xlu1 %v6534_v40, %s6369_s24 }
  0xea   : > { %v6543_v44 = vpop.f32.mrf.mxu0 }
  0xeb   : > { %v6545_v45 = vpack.c.bf16 %v620_v43, %v620_v43 }
  0xec   : > { %v625_v46 = vpop.f32.mrf.mxu0 }
  0xed   : > { %v626_v47 = vadd.f32 %v625_v46, %v511_v28  ;;  %862 = vrot.lane.b32.xlu1 %v6545_v45, %s6369_s24  ;;  %v648_v46 = vcombine.high %v646_v29, %v646_v29 }
  0xee   : > { %v627_v48 = vpop.f32.mrf.mxu0 }
  0xef   : > { %v6549_v49 = vpack.c.bf16 %v626_v47, %v626_v47  ;;  %v6552_v50 = vadd.f32 %v627_v48, %v6528_v36 }
  0xf0   : > { %v629_v51 = vpop.f32.mrf.mxu0 }
  0xf1   : > { %v630_v52 = vadd.f32 %v629_v51, %v511_v28  ;;  %911 = vrot.lane.b32.xlu0 %v6549_v49, %s6369_s24 }
  0xf2   : > { %v6556_v53 = vpop.f32.mrf.mxu0 }
  0xf3   : > { %v6558_v54 = vpack.c.bf16 %v630_v52, %v630_v52 }
  0xf4   : > { %v635_v55 = vpop.f32.mrf.mxu0 }
  0xf5   : > { %v636_v56 = vadd.f32 %v635_v55, %v511_v28  ;;  %960 = vrot.lane.b32.xlu1 %v6558_v54, %s6369_s24 }
  0xf6   : > { %v637_v57 = vpop.f32.mrf.mxu0 }
  0xf7   : > { %v6562_v58 = vpack.c.bf16 %v636_v56, %v636_v56  ;;  %v6565_v59 = vadd.f32 %v637_v57, %v6528_v36 }
  0xf8   : > { %v639_v60 = vpop.f32.mrf.mxu0 }
  0xf9   : > { %v640_v61 = vadd.f32 %v639_v60, %v511_v28  ;;  %1009 = vrot.lane.b32.xlu0 %v6562_v58, %s6369_s24  ;;  %v651_v28 = vunpack.c.0.s8 %v650_v25 }
  0xfa   : > { %v6652_v47 = vpop.f32.mrf.mxu0 }
  0xfb   : > { %v6569_v62 = vpack.c.bf16 %v640_v61, %v640_v61  ;;  %v654_v31 = vsub.s32 %v651_v28, %v6504_v22 }
  0xfd   : > { %1058 = vrot.lane.b32.xlu1 %v6569_v62, %s6369_s24  ;;  %v655_v32 = vrot.slane %v646_v29, %v654_v31 }
  0xff   : > { %v663_v33 = vcombine.high %v655_v32, %v655_v32  ;;  %v671_v38 = vrot.slane %v655_v32, %v654_v31 }
 0x101   : > { %v685_v35 = vrot.slane %v663_v33, %v654_v31  ;;  %v6658_v52 = vrot.slane %v671_v38, %v6509_v24  ;;  %v693_v55 = vcombine.high %v671_v38, %v671_v38 }
 0x103   : > { %v6650_v37 = vrot.slane %v685_v35, %v6509_v24  ;;  %v695_v12 = vcombine.high %v685_v35, %v685_v35 }
 0x157   : > { %v765_v63 = vpop.permute.xlu0 %764 }
 0x158   : > { %v770_v0 = vsel %vm716_vm2, %v765_v63, 0  ;;  %v662_v63 = vrot.slane %v648_v46, %v654_v31 }
 0x159   : > { %5647 = vmatpush3.bf16.xpose.msra.mxu1 %v770_v0 }
 0x15a   : > { %5652 = vmatprep.subr.bf16.mxu1 %v7846_v23  ;;  %v678_v35 = vrot.slane %v662_v63, %v654_v31 }
 0x15b   : > { %v715_v1 = vpop.permute.xlu0 %714  ;;  %v814_v3 = vpop.permute.xlu1 %813 }
 0x15c   : > { %v721_v2 = vsel %vm716_vm2, %v715_v1, 0  ;;  %v819_v4 = vsel %vm716_vm2, %v814_v3, 0  ;;  %v6666_v3 = vrot.slane %v693_v55, %v6509_v24 }
 0x15d   : > { %5641 = vmatpush3.bf16.xpose.msra.mxu0 %v721_v2 }
 0x15e   : > { %5670 = vmatprep.subr.bf16.mxu0 %v7846_v23 }
 0x15f   : > { %v863_v5 = vpop.permute.xlu1 %862 }
 0x160   : > { %5649 = vmatmul.mubr.msk.bf16.vlgmr.msra.gmra.mxu1 %vm716_vm2, %v6524_v34  ;;  %v868_v7 = vsel %vm716_vm2, %v863_v5, 0 }
 0x161   : > { %5653 = vmatpush3.bf16.xpose.msra.mxu1 %v819_v4  ;;  %5654 = vmatprep.mubr.msk.bf16.mxu1 %vm6368_vm1, %v7846_v23 }
 0x162   : > { %5658 = vmatprep.subr.bf16.mxu1 %v7846_v23 }
 0x163   : > { %v912_v9 = vpop.permute.xlu0 %911 }
 0x164   : > { %5643 = vmatmul.mubr.msk.bf16.vlgmr.msra.gmra.mxu0 %vm716_vm2, %v6532_v39  ;;  %v917_v10 = vsel %vm716_vm2, %v912_v9, 0 }
 0x165   : > { %5672 = vmatprep.mubr.msk.bf16.mxu0 %vm6368_vm1, %v7846_v23 }
 0x167   : > { %v961_v6 = vpop.permute.xlu1 %960 }
 0x168   : > { %v966_v8 = vsel %vm716_vm2, %v961_v6, 0  ;;  %5655 = vmatmul.mubr.msk.bf16.vlgmr.msra.gmra.mxu1 %vm716_vm2, %v6534_v40 }
 0x169   : > { %5659 = vmatpush3.bf16.xpose.msra.mxu1 %v868_v7  ;;  %5671 = vmatpush3.bf16.xpose.msra.mxu0 %v966_v8  ;;  %v664_v8 = vcombine.high %v662_v63, %v662_v63 }
 0x16a   : > { %5660 = vmatprep.mubr.msk.bf16.mxu1 %vm6368_vm1, %v7846_v23  ;;  %5664 = vmatprep.subr.bf16.mxu1 %v7846_v23 }
 0x16b   : > { %5682 = vmatprep.subr.bf16.mxu0 %v7846_v23  ;;  %v1010_v14 = vpop.permute.xlu0 %1009 }
 0x16c   : > { %v1015_v16 = vsel %vm716_vm2, %v1010_v14, 0 }
 0x16f   : > { %v1059_v11 = vpop.permute.xlu1 %1058 }
 0x170   : > { %v1064_v13 = vsel %vm716_vm2, %v1059_v11, 0  ;;  %5661 = vmatmul.mubr.msk.bf16.vlgmr.msra.gmra.mxu1 %vm716_vm2, %v6545_v45  ;;  %5673 = vmatmul.mubr.msk.bf16.vlgmr.msra.gmra.mxu0 %vm716_vm2, %v6558_v54 }
 0x171   : > { %5665 = vmatpush3.bf16.xpose.msra.mxu1 %v917_v10  ;;  %5683 = vmatpush3.bf16.xpose.msra.mxu0 %v1064_v13 }
 0x172   : > { %5666 = vmatprep.mubr.msk.bf16.mxu1 %vm6368_vm1, %v7846_v23  ;;  %5684 = vmatprep.mubr.msk.bf16.mxu0 %vm6368_vm1, %v7846_v23 }
 0x173   : > { %5676 = vmatprep.subr.bf16.mxu1 %v7846_v23  ;;  %5694 = vmatprep.subr.bf16.mxu0 %v7846_v23 }
 0x178   : > { %5667 = vmatmul.mubr.msk.bf16.vlgmr.msra.gmra.mxu1 %vm716_vm2, %v6549_v49  ;;  %5685 = vmatmul.mubr.msk.bf16.vlgmr.msra.gmra.mxu0 %vm716_vm2, %v6569_v62 }
 0x179   : > { %5677 = vmatpush3.bf16.xpose.msra.mxu1 %v1015_v16  ;;  %5695 = vmatpush3.bf16.msra.mxu0 %v1310_v18  ;;  %v692_v16 = vrot.slane %v664_v8, %v654_v31  ;;  %v6676_v18 = vrot.slane %v695_v12, %v6509_v24 }
 0x17a   : > { %5678 = vmatprep.mubr.msk.bf16.mxu1 %vm6368_vm1, %v7846_v23  ;;  %5688 = vmatprep.subr.bf16.mxu1 %v7846_v23 }
 0x17b   : > { %5696 = vmatprep.mubr.msk.bf16.mxu0 %vm6368_vm1, %v7846_v23  ;;  %5706 = vmatprep.subr.bf16.mxu0 %v7846_v23  ;;  %v6679_v27 = vrot.slane %v692_v16, %v6509_v24  ;;  %v696_v33 = vcombine.high %v692_v16, %v692_v16 }
 0x180   : > { %5679 = vmatmul.mubr.msk.bf16.vlgmr.msra.gmra.mxu1 %vm716_vm2, %v6562_v58 }
 0x181   : > { %5689 = vmatpush3.bf16.msra.mxu1 %v1264_v20  ;;  %5690 = vmatprep.mubr.msk.bf16.mxu1 %vm6368_vm1, %v7846_v23 }
 0x182   : > { %5700 = vmatprep.subr.bf16.mxu1 %v7846_v23 }
 0x220   : > { %v806_v42 = vpop.f32.mrf.mxu1 }
 0x221   : > { %v1107_v43 = vmul.f32 0.25, %v806_v42 }
 0x222   : > { %v5650_v48 = vpop.f32.mrf.mxu1 }
 0x223   : > { %v6655_v51 = vadd.f32 %v6650_v37, %v1107_v43 }
 0x224   : > { %v757_v56 = vpop.f32.mrf.mxu0  ;;  %v809_v57 = vpop.f32.mrf.mxu1 }
 0x225   : > { %v1106_v60 = vmul.f32 0.25, %v757_v56  ;;  %v1166_v61 = vsel %vm1162_vm4, %v6655_v51, -inf  ;;  %v6685_v56 = vrot.slane %v696_v33, %v6509_v24  ;;  %v6688_v57 = vrot.slane %v678_v35, %v6509_v24 }
 0x226   : > { %1167 = vmax.xlane.f32.xlu1 %v1166_v61  ;;  %v5644_v0 = vpop.f32.mrf.mxu0  ;;  %v5651_v1 = vpop.f32.mrf.mxu1 }
 0x227   : > { %v6663_v2 = vadd.f32 %v6658_v52, %v1106_v60 }
 0x228   : > { %v760_v4 = vpop.f32.mrf.mxu0  ;;  %v855_v5 = vpop.f32.mrf.mxu1 }
 0x229   : > { %v1108_v6 = vmul.f32 0.25, %v855_v5  ;;  %v1163_v7 = vsel %vm1162_vm4, %v6663_v2, -inf }
 0x22a   : > { %v5656_v9 = vpop.f32.mrf.mxu1  ;;  %1164 = vmax.xlane.f32.xlu0 %v1163_v7  ;;  %v5645_v10 = vpop.f32.mrf.mxu0  ;;  %v694_v7 = vcombine.high %v678_v35, %v678_v35 }
 0x22b   : > { %v6671_v11 = vadd.f32 %v6666_v3, %v1108_v6 }
 0x22c   : > { %v858_v13 = vpop.f32.mrf.mxu1  ;;  %v6699_v16 = vrot.slane %v694_v7, %v6509_v24 }
 0x22d   : > { %v1169_v14 = vsel %vm1162_vm4, %v6671_v11, -inf }
 0x22e   : > { %v5657_v17 = vpop.f32.mrf.mxu1  ;;  %1170 = vmax.xlane.f32.xlu0 %v1169_v14 }
 0x230   : > { %v904_v20 = vpop.f32.mrf.mxu1  ;;  %v1002_v21 = vpop.f32.mrf.mxu0 }
 0x231   : > { %v1109_v25 = vmul.f32 0.25, %v904_v20  ;;  %v1111_v26 = vmul.f32 0.25, %v1002_v21 }
 0x232   : > { %v5662_v28 = vpop.f32.mrf.mxu1  ;;  %v5674_v29 = vpop.f32.mrf.mxu0 }
 0x233   : > { %v1157_v32 = vadd.f32 %v6676_v18, %v1109_v25  ;;  %v1159_v46 = vadd.f32 %v6679_v27, %v1111_v26 }
 0x234   : > { %v907_v38 = vpop.f32.mrf.mxu1  ;;  %v1005_v42 = vpop.f32.mrf.mxu0 }
 0x235   : > { %v1172_v43 = vsel %vm1162_vm4, %v1157_v32, -inf  ;;  %v1178_v31 = vsel %vm1162_vm4, %v1159_v46, -inf }
 0x236   : > { %v5663_v48 = vpop.f32.mrf.mxu1  ;;  %1173 = vmax.xlane.f32.xlu0 %v1172_v43  ;;  %v5675_v55 = vpop.f32.mrf.mxu0 }
 0x238   : > { %v953_v60 = vpop.f32.mrf.mxu1  ;;  %v1100_v61 = vpop.f32.mrf.mxu0 }
 0x239   : > { %v1110_v0 = vmul.f32 0.25, %v953_v60  ;;  %v1113_v1 = vmul.f32 0.25, %v1100_v61 }
 0x23a   : > { %1179 = vmax.xlane.f32.xlu0 %v1178_v31  ;;  %v5668_v63 = vpop.f32.mrf.mxu1  ;;  %v5686_v4 = vpop.f32.mrf.mxu0 }
 0x23b   : > { %v1161_v5 = vadd.f32 %v6685_v56, %v1113_v1  ;;  %v6693_v6 = vadd.f32 %v6688_v57, %v1110_v0 }
 0x23c   : > { %v956_v8 = vpop.f32.mrf.mxu1  ;;  %v1103_v9 = vpop.f32.mrf.mxu0 }
 0x23d   : > { %v1184_v10 = vsel %vm1162_vm4, %v1161_v5, -inf  ;;  %v1175_v12 = vsel %vm1162_vm4, %v6693_v6, -inf }
 0x23e   : > { %1185 = vmax.xlane.f32.xlu0 %v1184_v10  ;;  %v5687_v13 = vpop.f32.mrf.mxu0  ;;  %1176 = vmax.xlane.f32.xlu1 %v1175_v12  ;;  %v5669_v14 = vpop.f32.mrf.mxu1 }
 0x240   : > { %v1051_v17 = vpop.f32.mrf.mxu1 }
 0x241   : > { %v1112_v20 = vmul.f32 0.25, %v1051_v17 }
 0x242   : > { %v5680_v21 = vpop.f32.mrf.mxu1 }
 0x243   : > { %v6702_v25 = vadd.f32 %v6699_v16, %v1112_v20 }
 0x244   : > { %v1054_v26 = vpop.f32.mrf.mxu1 }
 0x245   : > { %v1181_v28 = vsel %vm1162_vm4, %v6702_v25, -inf }
 0x246   : > { %1182 = vmax.xlane.f32.xlu1 %v1181_v28  ;;  %v5681_v29 = vpop.f32.mrf.mxu1 }
 0x2af   : > { %v1168_v33 = vpop.xlane.xlu1 %1167 }
 0x2b0   : > { %v1188_v35 = vsub.f32 %v6655_v51, %v1168_v33 }
 0x2b2   : > { %v1197_v38 = vmul.f32 1.442695, %v1188_v35 }
 0x2b3   : > { %v1165_v42 = vpop.xlane.xlu0 %1164 }
 0x2b4   : > { %6187 = vpow2.f32 %v1197_v38  ;;  %v1187_v43 = vsub.f32 %v6663_v2, %v1165_v42 }
 0x2b6   : > { %v1195_v48 = vmul.f32 1.442695, %v1187_v43 }
 0x2b7   : > { %v1171_v55 = vpop.xlane.xlu0 %1170 }
 0x2b8   : > { %6189 = vpow2.f32 %v1195_v48  ;;  %v1189_v60 = vsub.f32 %v6671_v11, %v1171_v55 }
 0x2ba   : > { %v1199_v61 = vmul.f32 1.442695, %v1189_v60 }
 0x2bc   : > { %6191 = vpow2.f32 %v1199_v61  ;;  %v622_v61 = vadd.f32 %v6543_v44, %v6528_v36 }
 0x2bf   : > { %v1174_v0 = vpop.xlane.xlu0 %1173 }
 0x2c0   : > { %v1190_v1 = vsub.f32 %v1157_v32, %v1174_v0 }
 0x2c1   : > { %v6709_v31 = vpop.eup %6187 }
 0x2c2   : > { %v1201_v63 = vmul.f32 1.442695, %v1190_v1  ;;  %v1214_v51 = vsel %vm1162_vm4, %v6709_v31, 0.0  ;;  %v6777_v1 = vpack.c.bf16 %v622_v61, %v622_v61 }
 0x2c3   : > { %1215 = vadd.xlane.f32.xlu0 %v1214_v51  ;;  %v1180_v4 = vpop.xlane.xlu0 %1179 }
 0x2c4   : > { %6193 = vpow2.f32 %v1201_v63  ;;  %v1192_v7 = vsub.f32 %v1159_v46, %v1180_v4  ;;  %v1402_v44 = vsel %vm1262_vm3, %v6777_v1, 0 }
 0x2c5   : > { %v6713_v2 = vpop.eup %6189 }
 0x2c6   : > { %v1205_v8 = vmul.f32 1.442695, %v1192_v7  ;;  %v1211_v11 = vsel %vm1162_vm4, %v6713_v2, 0.0 }
 0x2c7   : > { %1212 = vadd.xlane.f32.xlu1 %v1211_v11  ;;  %v1186_v9 = vpop.xlane.xlu0 %1185  ;;  %v1177_v26 = vpop.xlane.xlu1 %1176 }
 0x2c8   : > { %6195 = vpow2.f32 %v1205_v8  ;;  %v1194_v32 = vsub.f32 %v1161_v5, %v1186_v9  ;;  %v1191_v28 = vsub.f32 %v6693_v6, %v1177_v26  ;;  %v6784_v8 = vpack.c.bf16 %v6537_v41, %v6537_v41 }
 0x2c9   : > { %v6717_v10 = vpop.eup %6191 }
 0x2ca   : > { %v1209_v12 = vmul.f32 1.442695, %v1194_v32  ;;  %v1217_v13 = vsel %vm1162_vm4, %v6717_v10, 0.0  ;;  %v1203_v29 = vmul.f32 1.442695, %v1191_v28  ;;  %v1356_v41 = vsel %vm1262_vm3, %v6784_v8, 0 }
 0x2cb   : > { %1218 = vadd.xlane.f32.xlu1 %v1217_v13  ;;  %v6806_v13 = vpack.c.bf16 %v6552_v50, %v6552_v50 }
 0x2cc   : > { %6197 = vpow2.f32 %v1209_v12 }
 0x2cd   : > { %6199 = vpow2.f32 %v1203_v29  ;;  %v642_v29 = vadd.f32 %v6652_v47, %v6528_v36 }
 0x2cf   : > { %v1183_v35 = vpop.xlane.xlu1 %1182 }
 0x2d0   : > { %v1193_v38 = vsub.f32 %v6702_v25, %v1183_v35  ;;  %v6830_v35 = vpack.c.bf16 %v642_v29, %v642_v29 }
 0x2d1   : > { %v6721_v14 = vpop.eup %6193 }
 0x2d2   : > { %v1220_v46 = vsel %vm1162_vm4, %v6721_v14, 0.0  ;;  %v1207_v42 = vmul.f32 1.442695, %v1193_v38 }
 0x2d3   : > { %1221 = vadd.xlane.f32.xlu0 %v1220_v46  ;;  %v632_v46 = vadd.f32 %v6556_v53, %v6528_v36  ;;  %v1586_v36 = vsel %vm1262_vm3, %v6830_v35, 0 }
 0x2d4   : > { %6201 = vpow2.f32 %v1207_v42 }
 0x2d5   : > { %v6725_v17 = vpop.eup %6195  ;;  %v6812_v26 = vpack.c.bf16 %v632_v46, %v632_v46 }
 0x2d6   : > { %v1226_v20 = vsel %vm1162_vm4, %v6725_v17, 0.0 }
 0x2d7   : > { %1227 = vadd.xlane.f32.xlu0 %v1226_v20 }
 0x2d9   : > { %v6729_v5 = vpop.eup %6197 }
 0x2da   : > { %v1232_v21 = vsel %vm1162_vm4, %v6729_v5, 0.0  ;;  %v6742_v33 = vpop.eup %6199 }
 0x2db   : > { %1233 = vadd.xlane.f32.xlu0 %v1232_v21  ;;  %v1223_v6 = vsel %vm1162_vm4, %v6742_v33, 0.0 }
 0x2dc   : > { %1630 = vrot.lane.b32.xlu1 %v6532_v39, %s6371_s16 }
 0x2e1   : > { %v6759_v43 = vpop.eup %6201 }
 0x2e2   : > { %v1229_v48 = vsel %vm1162_vm4, %v6759_v43, 0.0 }
 0x2f1   : > { %1680 = vrot.lane.b32.xlu0 %v6524_v34, %s6371_s16 }
 0x2f5   : > { %1730 = vrot.lane.b32.xlu0 %v6534_v40, %s6371_s16 }
 0x2f9   : > { %1728 = vrot.lane.b32.xlu0 %v6534_v40, %s6372_s18 }
 0x2fd   : > { %1830 = vrot.lane.b32.xlu0 %v6549_v49, %s6371_s16 }
 0x300   : > { %1224 = vadd.xlane.f32.xlu1 %v1223_v6  ;;  %v1494_v6 = vsel %vm1262_vm3, %v6812_v26, 0 }
 0x301   : > { %1828 = vrot.lane.b32.xlu0 %v6549_v49, %s6372_s18 }
 0x305   : > { %1930 = vrot.lane.b32.xlu0 %v6562_v58, %s6371_s16 }
 0x309   : > { %1928 = vrot.lane.b32.xlu0 %v6562_v58, %s6372_s18 }
 0x30d   : > { %2190 = vrot.lane.b32.xlu0 %v6609_v15, %s6372_s18 }
 0x311   : > { %1628 = vrot.lane.b32.xlu1 %v6532_v39, %s6372_s18 }
 0x335   : > { %1230 = vadd.xlane.f32.xlu1 %v1229_v48 }
 0x346   : > { %1678 = vrot.lane.b32.xlu1 %v6524_v34, %s6372_s18 }
 0x34a   : > { %1780 = vrot.lane.b32.xlu1 %v6545_v45, %s6371_s16 }
 0x34c   : > { %v1216_v55 = vpop.xlane.xlu0 %1215 }
 0x34d   : > { %6203 = vrcp.f32 %v1216_v55 }
 0x34e   : > { %1778 = vrot.lane.b32.xlu1 %v6545_v45, %s6372_s18 }
 0x350   : > { %v1213_v25 = vpop.xlane.xlu1 %1212 }
 0x351   : > { %6205 = vrcp.f32 %v1213_v25 }
 0x352   : > { %1880 = vrot.lane.b32.xlu1 %v6558_v54, %s6371_s16 }
 0x354   : > { %v1219_v60 = vpop.xlane.xlu1 %1218 }
 0x355   : > { %6207 = vrcp.f32 %v1219_v60 }
 0x356   : > { %1878 = vrot.lane.b32.xlu1 %v6558_v54, %s6372_s18 }
 0x358   : > { %v1631_v25 = vpop.permute.xlu1 %1630 }
 0x35a   : > { %v6204_v0 = vpop.eup %6203  ;;  %1980 = vrot.lane.b32.xlu1 %v6569_v62, %s6371_s16 }
 0x35b   : > { %v1244_v63 = vmul.f32 %v6204_v0, %v6709_v31  ;;  %v6846_v0 = vpack.c.bf16 %v6565_v59, %v6565_v59 }
 0x35c   : > { %v1222_v51 = vpop.xlane.xlu0 %1221 }
 0x35d   : > { %6209 = vrcp.f32 %v1222_v51  ;;  %v1252_v4 = vpack.c.bf16 %v1244_v63, %v1244_v63  ;;  %v1540_v51 = vsel %vm1262_vm3, %v6846_v0, 0 }
 0x35e   : > { %v6206_v7 = vpop.eup %6205  ;;  %1978 = vrot.lane.b32.xlu1 %v6569_v62, %s6372_s18 }
 0x35f   : > { %5697 = vmatmul.mubr.msk.bf16.vlgmr.msra.gmra.mxu0 %vm1162_vm4, %v1252_v4  ;;  %v1243_v11 = vmul.f32 %v6206_v7, %v6713_v2 }
 0x360   : > { %5707 = vmatpush3.bf16.msra.mxu0 %v1402_v44  ;;  %v1228_v31 = vpop.xlane.xlu0 %1227  ;;  %5708 = vmatprep.mubr.msk.bf16.mxu0 %vm6368_vm1, %v7846_v23 }
 0x361   : > { %6211 = vrcp.f32 %v1228_v31  ;;  %v1251_v9 = vpack.c.bf16 %v1243_v11, %v1243_v11  ;;  %5718 = vmatprep.subr.bf16.mxu0 %v7846_v23 }
 0x362   : > { %v6208_v32 = vpop.eup %6207  ;;  %2141 = vrot.lane.b32.xlu1 %v6626_v19, %s6372_s18 }
 0x363   : > { %5691 = vmatmul.mubr.msk.bf16.vlgmr.msra.gmra.mxu1 %vm1162_vm4, %v1251_v9  ;;  %v1245_v2 = vmul.f32 %v6208_v32, %v6717_v10  ;;  %v1448_v10 = vsel %vm1262_vm3, %v6806_v13, 0 }
 0x364   : > { %5701 = vmatpush3.bf16.msra.mxu1 %v1356_v41  ;;  %5702 = vmatprep.mubr.msk.bf16.mxu1 %vm6368_vm1, %v7846_v23  ;;  %v1234_v12 = vpop.xlane.xlu0 %1233 }
 0x365   : > { %5712 = vmatprep.subr.bf16.mxu1 %v7846_v23  ;;  %6213 = vrcp.f32 %v1234_v12  ;;  %v1253_v20 = vpack.c.bf16 %v1245_v2, %v1245_v2 }
 0x366   : > { %2239 = vrot.lane.b32.xlu1 %v6784_v8, %s6372_s18 }
 0x368   : > { %v1681_v48 = vpop.permute.xlu0 %1680 }
 0x36a   : > { %v6210_v21 = vpop.eup %6209  ;;  %2288 = vrot.lane.b32.xlu1 %v6777_v1, %s6372_s18 }
 0x36b   : > { %5703 = vmatmul.mubr.msk.bf16.vlgmr.msra.gmra.mxu1 %vm1162_vm4, %v1253_v20  ;;  %v1246_v28 = vmul.f32 %v6210_v21, %v6721_v14 }
 0x36c   : > { %5713 = vmatpush3.bf16.msra.mxu1 %v1448_v10  ;;  %5714 = vmatprep.mubr.msk.bf16.mxu1 %vm6368_vm1, %v7846_v23  ;;  %v1731_v4 = vpop.permute.xlu0 %1730 }
 0x36d   : > { %v1254_v50 = vpack.c.bf16 %v1246_v28, %v1246_v28  ;;  %5724 = vmatprep.subr.bf16.mxu1 %v7846_v23  ;;  %v1636_v28 = vsel %vm716_vm2, %v1631_v25, 0 }
 0x36e   : > { %v6212_v53 = vpop.eup %6211 }
 0x36f   : > { %5709 = vmatmul.mubr.msk.bf16.vlgmr.msra.gmra.mxu0 %vm1162_vm4, %v1254_v50  ;;  %v1248_v14 = vmul.f32 %v6212_v53, %v6725_v17  ;;  %v1686_v17 = vsel %vm716_vm2, %v1681_v48, 0 }
 0x370   : > { %5719 = vmatpush3.bf16.msra.mxu0 %v1494_v6  ;;  %5720 = vmatprep.mubr.msk.bf16.mxu0 %vm6368_vm1, %v7846_v23  ;;  %v1729_v44 = vpop.permute.xlu0 %1728  ;;  %v1736_v6 = vsel %vm716_vm2, %v1731_v4, 0 }
 0x371   : > { %5730 = vmatprep.subr.bf16.mxu0 %v7846_v23  ;;  %v1256_v38 = vpack.c.bf16 %v1248_v14, %v1248_v14 }
 0x372   : > { %v6214_v42 = vpop.eup %6213 }
 0x373   : > { %v1250_v47 = vmul.f32 %v6214_v42, %v6729_v5 }
 0x375   : > { %v1258_v55 = vpack.c.bf16 %v1250_v47, %v1250_v47 }
 0x377   : > { %5721 = vmatmul.mubr.msk.bf16.vlgmr.msra.gmra.mxu0 %vm1162_vm4, %v1256_v38 }
 0x378   : > { %5731 = vmatpush3.bf16.msra.mxu0 %v1586_v36  ;;  %5732 = vmatprep.mubr.msk.bf16.mxu0 %vm6368_vm1, %v7846_v23 }
 0x379   : > { %5742 = vmatprep.subr.bf16.mxu0 %v7846_v23 }
 0x37f   : > { %5733 = vmatmul.mubr.msk.bf16.vlgmr.msra.gmra.mxu0 %vm1162_vm4, %v1258_v55 }
 0x380   : > { %5743 = vmatpush3.bf16.xpose.msra.mxu0 %v1686_v17  ;;  %5744 = vmatprep.mubr.msk.bf16.mxu0 %vm6368_vm1, %v7846_v23 }
 0x381   : > { %5754 = vmatprep.subr.bf16.mxu0 %v7846_v23 }
 0x389   : > { %v1225_v60 = vpop.xlane.xlu1 %1224 }
 0x38a   : > { %6215 = vrcp.f32 %v1225_v60 }
 0x38d   : > { %v1629_v7 = vpop.permute.xlu1 %1628 }
 0x397   : > { %v6216_v61 = vpop.eup %6215 }
 0x398   : > { %v1247_v5 = vmul.f32 %v6216_v61, %v6742_v33  ;;  %v1831_v33 = vpop.permute.xlu0 %1830 }
 0x399   : > { %v1836_v36 = vsel %vm716_vm2, %v1831_v33, 0 }
 0x39a   : > { %v1255_v63 = vpack.c.bf16 %v1247_v5, %v1247_v5 }
 0x39c   : > { %5715 = vmatmul.mubr.msk.bf16.vlgmr.msra.gmra.mxu1 %vm1162_vm4, %v1255_v63  ;;  %v1829_v32 = vpop.permute.xlu0 %1828 }
 0x39d   : > { %5725 = vmatpush3.bf16.msra.mxu1 %v1540_v51  ;;  %5726 = vmatprep.mubr.msk.bf16.mxu1 %vm6368_vm1, %v7846_v23 }
 0x39e   : > { %5736 = vmatprep.subr.bf16.mxu1 %v7846_v23 }
 0x3a0   : > { %v1931_v10 = vpop.permute.xlu0 %1930 }
 0x3a1   : > { %v1936_v47 = vsel %vm716_vm2, %v1931_v10, 0 }
 0x3be   : > { %v1231_v11 = vpop.xlane.xlu1 %1230 }
 0x3bf   : > { %6217 = vrcp.f32 %v1231_v11 }
 0x3c2   : > { %v1679_v59 = vpop.permute.xlu1 %1678 }
 0x3c3   : > { %5745 = vmatmul.mubr.msk.bf16.vlgmr.msra.gmra.mxu0 %vm716_vm2, %v1679_v59 }
 0x3c4   : > { %5756 = vmatprep.mubr.msk.bf16.mxu0 %vm6368_vm1, %v7846_v23 }
 0x3c6   : > { %v1781_v31 = vpop.permute.xlu1 %1780 }
 0x3c7   : > { %v1786_v9 = vsel %vm716_vm2, %v1781_v31, 0 }
 0x3c8   : > { %5755 = vmatpush3.bf16.xpose.msra.mxu0 %v1786_v9 }
 0x3c9   : > { %5766 = vmatprep.subr.bf16.mxu0 %v7846_v23 }
 0x3ca   : > { %v1779_v41 = vpop.permute.xlu1 %1778 }
 0x3cc   : > { %v6218_v2 = vpop.eup %6217 }
 0x3cd   : > { %v1249_v12 = vmul.f32 %v6218_v2, %v6759_v43  ;;  %v1929_v43 = vpop.permute.xlu0 %1928 }
 0x3ce   : > { %v1881_v46 = vpop.permute.xlu1 %1880 }
 0x3cf   : > { %v1886_v20 = vsel %vm716_vm2, %v1881_v46, 0  ;;  %5757 = vmatmul.mubr.msk.bf16.vlgmr.msra.gmra.mxu0 %vm716_vm2, %v1779_v41  ;;  %v1257_v21 = vpack.c.bf16 %v1249_v12, %v1249_v12 }
 0x3d0   : > { %5767 = vmatpush3.bf16.xpose.msra.mxu0 %v1886_v20  ;;  %5768 = vmatprep.mubr.msk.bf16.mxu0 %vm6368_vm1, %v7846_v23 }
 0x3d1   : > { %5727 = vmatmul.mubr.msk.bf16.vlgmr.msra.gmra.mxu1 %vm1162_vm4, %v1257_v21  ;;  %5778 = vmatprep.subr.bf16.mxu0 %v7846_v23  ;;  %v2191_v14 = vpop.permute.xlu0 %2190 }
 0x3d2   : > { %5737 = vmatpush3.bf16.xpose.msra.mxu1 %v1636_v28  ;;  %v1879_v50 = vpop.permute.xlu1 %1878  ;;  %5738 = vmatprep.mubr.msk.bf16.mxu1 %vm6368_vm1, %v7846_v23  ;;  %v2196_v42 = vsel %vm1262_vm3, %v2191_v14, 0 }
 0x3d3   : > { %5748 = vmatprep.subr.bf16.mxu1 %v7846_v23 }
 0x3d6   : > { %v1981_v53 = vpop.permute.xlu1 %1980 }
 0x3d7   : > { %v1986_v29 = vsel %vm716_vm2, %v1981_v53, 0  ;;  %5769 = vmatmul.mubr.msk.bf16.vlgmr.msra.gmra.mxu0 %vm716_vm2, %v1879_v50 }
 0x3d8   : > { %5779 = vmatpush3.bf16.xpose.msra.mxu0 %v1986_v29  ;;  %5780 = vmatprep.mubr.msk.bf16.mxu0 %vm6368_vm1, %v7846_v23 }
 0x3d9   : > { %5739 = vmatmul.mubr.msk.bf16.vlgmr.msra.gmra.mxu1 %vm716_vm2, %v1629_v7  ;;  %5790 = vmatprep.subr.bf16.mxu0 %v7846_v23 }
 0x3da   : > { %5749 = vmatpush3.bf16.xpose.msra.mxu1 %v1736_v6  ;;  %5750 = vmatprep.mubr.msk.bf16.mxu1 %vm6368_vm1, %v7846_v23  ;;  %v1979_v38 = vpop.permute.xlu1 %1978 }
 0x3db   : > { %5760 = vmatprep.subr.bf16.mxu1 %v7846_v23 }
 0x3de   : > { %v2142_v48 = vpop.permute.xlu1 %2141 }
 0x3df   : > { %5781 = vmatmul.mubr.msk.bf16.vlgmr.msra.gmra.mxu0 %vm716_vm2, %v1979_v38  ;;  %v2147_v55 = vsel %vm1262_vm3, %v2142_v48, 0 }
 0x3e0   : > { %5791 = vmatpush3.bf16.msra.mxu0 %v2196_v42  ;;  %5792 = vmatprep.mubr.msk.bf16.mxu0 %vm6368_vm1, %v7846_v23 }
 0x3e1   : > { %5751 = vmatmul.mubr.msk.bf16.vlgmr.msra.gmra.mxu1 %vm716_vm2, %v1729_v44  ;;  %5802 = vmatprep.subr.bf16.mxu0 %v7846_v23 }
 0x3e2   : > { %5761 = vmatpush3.bf16.xpose.msra.mxu1 %v1836_v36  ;;  %5762 = vmatprep.mubr.msk.bf16.mxu1 %vm6368_vm1, %v7846_v23 }
 0x3e3   : > { %5772 = vmatprep.subr.bf16.mxu1 %v7846_v23 }
 0x3e9   : > { %5763 = vmatmul.mubr.msk.bf16.vlgmr.msra.gmra.mxu1 %vm716_vm2, %v1829_v32 }
 0x3ea   : > { %5773 = vmatpush3.bf16.xpose.msra.mxu1 %v1936_v47  ;;  %5774 = vmatprep.mubr.msk.bf16.mxu1 %vm6368_vm1, %v7846_v23 }
 0x3eb   : > { %5784 = vmatprep.subr.bf16.mxu1 %v7846_v23 }
 0x3f1   : > { %5775 = vmatmul.mubr.msk.bf16.vlgmr.msra.gmra.mxu1 %vm716_vm2, %v1929_v43 }
 0x3f2   : > { %5785 = vmatpush3.bf16.msra.mxu1 %v2147_v55  ;;  %5786 = vmatprep.mubr.msk.bf16.mxu1 %vm6368_vm1, %v7846_v23 }
 0x3f3   : > { %5796 = vmatprep.subr.bf16.mxu1 %v7846_v23 }
 0x41f   : > { %v6901_v17 = vpop.f32.mrf.mxu0 }
 0x421   : > { %v5698_v25 = vpop.f32.mrf.mxu0 }
 0x423   : > { %v6903_v60 = vpop.f32.mrf.mxu1  ;;  %v1349_v61 = vpop.f32.mrf.mxu0 }
 0x425   : > { %v5692_v5 = vpop.f32.mrf.mxu1  ;;  %v5699_v63 = vpop.f32.mrf.mxu0 }
 0x427   : > { %v1303_v51 = vpop.f32.mrf.mxu1 }
 0x429   : > { %v5693_v4 = vpop.f32.mrf.mxu1 }
 0x42b   : > { %v6905_v7 = vpop.f32.mrf.mxu1 }
 0x42d   : > { %v5704_v44 = vpop.f32.mrf.mxu1 }
 0x42f   : > { %v1395_v11 = vpop.f32.mrf.mxu1  ;;  %v6907_v59 = vpop.f32.mrf.mxu0 }
 0x431   : > { %v5705_v33 = vpop.f32.mrf.mxu1  ;;  %v5710_v31 = vpop.f32.mrf.mxu0 }
 0x433   : > { %v1441_v9 = vpop.f32.mrf.mxu0 }
 0x435   : > { %v5711_v32 = vpop.f32.mrf.mxu0 }
 0x437   : > { %v6909_v41 = vpop.f32.mrf.mxu0 }
 0x439   : > { %v5722_v2 = vpop.f32.mrf.mxu0 }
 0x43b   : > { %v1533_v12 = vpop.f32.mrf.mxu0 }
 0x43d   : > { %v5723_v46 = vpop.f32.mrf.mxu0 }
 0x43f   : > { %v6911_v20 = vpop.f32.mrf.mxu0 }
 0x440   : > { %7853 = vst [vmem:[#allocation4_spill] sm:$0xff] %v6911_v20 }
 0x441   : > { %v5734_v21 = vpop.f32.mrf.mxu0 }
 0x443   : > { %v1625_v10 = vpop.f32.mrf.mxu0 }
 0x445   : > { %v5735_v28 = vpop.f32.mrf.mxu0 }
 0x45c   : > { %v6913_v50 = vpop.f32.mrf.mxu1 }
 0x45e   : > { %v5716_v43 = vpop.f32.mrf.mxu1 }
 0x460   : > { %v1487_v53 = vpop.f32.mrf.mxu1 }
 0x462   : > { %v5717_v29 = vpop.f32.mrf.mxu1 }
 0x483   : > { %v1722_v6 = vpop.f32.mrf.mxu0 }
 0x484   : > { %v2029_v14 = vmul.f32 0.25, %v1722_v6 }
 0x485   : > { %v5746_v38 = vpop.f32.mrf.mxu0 }
 0x486   : > { %v6916_v42 = vadd.f32 %v2029_v14, %v6650_v37 }
 0x487   : > { %v1725_v36 = vpop.f32.mrf.mxu0 }
 0x488   : > { %v2047_v47 = vsel %vm1162_vm4, %v6916_v42, -inf }
 0x489   : > { %2048 = vmax.xlane.f32.xlu1 %v2047_v47  ;;  %v5747_v48 = vpop.f32.mrf.mxu0 }
 0x48f   : > { %v1822_v55 = vpop.f32.mrf.mxu0 }
 0x490   : > { %v2031_v6 = vmul.f32 0.25, %v1822_v55 }
 0x491   : > { %v6920_v25 = vpop.f32.mrf.mxu1  ;;  %v5758_v61 = vpop.f32.mrf.mxu0 }
 0x492   : > { %7854 = vst [vmem:[#allocation5_spill] sm:$0xff] %v6920_v25 }
 0x493   : > { %v5728_v5 = vpop.f32.mrf.mxu1  ;;  %v1825_v63 = vpop.f32.mrf.mxu0 }
 0x495   : > { %v1579_v51 = vpop.f32.mrf.mxu1  ;;  %v5759_v4 = vpop.f32.mrf.mxu0 }
 0x496   : > { %v2039_v51 = vadd.f32 %v2031_v6, %v6676_v18 }
 0x497   : > { %v5729_v44 = vpop.f32.mrf.mxu1  ;;  %v1922_v11 = vpop.f32.mrf.mxu0 }
 0x498   : > { %v2033_v5 = vmul.f32 0.25, %v1922_v11 }
 0x499   : > { %v1672_v33 = vpop.f32.mrf.mxu1  ;;  %v5770_v31 = vpop.f32.mrf.mxu0 }
 0x49a   : > { %v2028_v9 = vmul.f32 0.25, %v1672_v33  ;;  %v2041_v55 = vadd.f32 %v2033_v5, %v6679_v27 }
 0x49b   : > { %v5740_v32 = vpop.f32.mrf.mxu1  ;;  %v1925_v2 = vpop.f32.mrf.mxu0 }
 0x49c   : > { %v2036_v12 = vadd.f32 %v2028_v9, %v6658_v52  ;;  %v2053_v9 = vsel %vm1162_vm4, %v2039_v51, -inf  ;;  %v2059_v11 = vsel %vm1162_vm4, %v2041_v55, -inf }
 0x49d   : > { %v1675_v46 = vpop.f32.mrf.mxu1  ;;  %v5771_v21 = vpop.f32.mrf.mxu0 }
 0x49e   : > { %v2044_v10 = vsel %vm1162_vm4, %v2036_v12, -inf }
 0x49f   : > { %v5741_v28 = vpop.f32.mrf.mxu1  ;;  %2045 = vmax.xlane.f32.xlu0 %v2044_v10  ;;  %v2022_v43 = vpop.f32.mrf.mxu0 }
 0x4a0   : > { %v2035_v33 = vmul.f32 0.25, %v2022_v43 }
 0x4a1   : > { %v1772_v53 = vpop.f32.mrf.mxu1  ;;  %v5782_v29 = vpop.f32.mrf.mxu0 }
 0x4a2   : > { %v2030_v14 = vmul.f32 0.25, %v1772_v53  ;;  %v6933_v10 = vadd.f32 %v2035_v33, %v6685_v56 }
 0x4a3   : > { %v5752_v38 = vpop.f32.mrf.mxu1  ;;  %v2025_v36 = vpop.f32.mrf.mxu0 }
 0x4a4   : > { %v2038_v47 = vadd.f32 %v2030_v14, %v6666_v3  ;;  %v2065_v29 = vsel %vm1162_vm4, %v6933_v10, -inf }
 0x4a5   : > { %v1775_v48 = vpop.f32.mrf.mxu1  ;;  %v5783_v61 = vpop.f32.mrf.mxu0 }
 0x4a6   : > { %v2050_v63 = vsel %vm1162_vm4, %v2038_v47, -inf  ;;  %v6943_v61 = vpop.permute.xlu1 %2239 }
 0x4a7   : > { %2051 = vmax.xlane.f32.xlu0 %v2050_v63  ;;  %v5753_v4 = vpop.f32.mrf.mxu1 }
 0x4a9   : > { %v1872_v44 = vpop.f32.mrf.mxu1 }
 0x4aa   : > { %v2032_v31 = vmul.f32 0.25, %v1872_v44  ;;  %v6945_v5 = vpop.permute.xlu1 %2288 }
 0x4ab   : > { %2054 = vmax.xlane.f32.xlu0 %v2053_v9  ;;  %v5764_v32 = vpop.f32.mrf.mxu1 }
 0x4ac   : > { %v2040_v2 = vadd.f32 %v2032_v31, %v6688_v57 }
 0x4ad   : > { %v1875_v46 = vpop.f32.mrf.mxu1 }
 0x4ae   : > { %v2056_v21 = vsel %vm1162_vm4, %v2040_v2, -inf }
 0x4af   : > { %2060 = vmax.xlane.f32.xlu0 %v2059_v11  ;;  %2057 = vmax.xlane.f32.xlu1 %v2056_v21  ;;  %v5765_v28 = vpop.f32.mrf.mxu1 }
 0x4b1   : > { %v1972_v43 = vpop.f32.mrf.mxu1 }
 0x4b2   : > { %v2034_v53 = vmul.f32 0.25, %v1972_v43 }
 0x4b3   : > { %2066 = vmax.xlane.f32.xlu0 %v2065_v29  ;;  %v5776_v6 = vpop.f32.mrf.mxu1 }
 0x4b4   : > { %v2042_v14 = vadd.f32 %v2034_v53, %v6699_v16 }
 0x4b5   : > { %v1975_v38 = vpop.f32.mrf.mxu1 }
 0x4b6   : > { %v2062_v36 = vsel %vm1162_vm4, %v2042_v14, -inf }
 0x4b7   : > { %2063 = vmax.xlane.f32.xlu1 %v2062_v36  ;;  %v5777_v48 = vpop.f32.mrf.mxu1 }
 0x4c8   : > { %2386 = vrot.lane.b32.xlu1 %v6812_v26, %s6372_s18 }
 0x4c9   : > { %2337 = vrot.lane.b32.xlu0 %v6806_v13, %s6372_s18 }
 0x512   : > { %v2049_v63 = vpop.xlane.xlu1 %2048 }
 0x513   : > { %v2069_v4 = vsub.f32 %v6916_v42, %v2049_v63 }
 0x515   : > { %v2078_v44 = vmul.f32 1.442695, %v2069_v4 }
 0x517   : > { %6219 = vpow2.f32 %v2078_v44 }
 0x524   : > { %v6948_v33 = vpop.eup %6219 }
 0x525   : > { %v2095_v31 = vsel %vm1162_vm4, %v6948_v33, 0.0 }
 0x526   : > { %2096 = vadd.xlane.f32.xlu0 %v2095_v31 }
 0x528   : > { %v2046_v9 = vpop.xlane.xlu0 %2045 }
 0x529   : > { %v2068_v32 = vsub.f32 %v2036_v12, %v2046_v9 }
 0x52b   : > { %v2076_v46 = vmul.f32 1.442695, %v2068_v32 }
 0x52d   : > { %6221 = vpow2.f32 %v2076_v46 }
 0x530   : > { %v2052_v11 = vpop.xlane.xlu0 %2051 }
 0x531   : > { %v2070_v21 = vsub.f32 %v2038_v47, %v2052_v11 }
 0x533   : > { %v2080_v28 = vmul.f32 1.442695, %v2070_v21 }
 0x534   : > { %v2055_v43 = vpop.xlane.xlu0 %2054 }
 0x535   : > { %6223 = vpow2.f32 %v2080_v28  ;;  %v2071_v53 = vsub.f32 %v2039_v51, %v2055_v43 }
 0x537   : > { %v2082_v29 = vmul.f32 1.442695, %v2071_v53 }
 0x538   : > { %v2058_v42 = vpop.xlane.xlu1 %2057  ;;  %v2061_v6 = vpop.xlane.xlu0 %2060 }
 0x539   : > { %6225 = vpow2.f32 %v2082_v29  ;;  %v2072_v38 = vsub.f32 %v2040_v2, %v2058_v42  ;;  %v2073_v36 = vsub.f32 %v2041_v55, %v2061_v6 }
 0x53a   : > { %v6952_v48 = vpop.eup %6221 }
 0x53b   : > { %v2084_v63 = vmul.f32 1.442695, %v2072_v38  ;;  %v2086_v4 = vmul.f32 1.442695, %v2073_v36  ;;  %v2092_v12 = vsel %vm1162_vm4, %v6952_v48, 0.0 }
 0x53c   : > { %2093 = vadd.xlane.f32.xlu1 %v2092_v12  ;;  %v2067_v11 = vpop.xlane.xlu0 %2066 }
 0x53d   : > { %6227 = vpow2.f32 %v2084_v63  ;;  %v2075_v28 = vsub.f32 %v6933_v10, %v2067_v11 }
 0x53e   : > { %6229 = vpow2.f32 %v2086_v4 }
 0x53f   : > { %v2090_v53 = vmul.f32 1.442695, %v2075_v28  ;;  %v2245_v28 = vsel %vm1262_vm3, %v6943_v61, 0 }
 0x540   : > { %v2064_v46 = vpop.xlane.xlu1 %2063  ;;  %v2338_v10 = vpop.permute.xlu0 %2337 }
 0x541   : > { %v2074_v21 = vsub.f32 %v2042_v14, %v2064_v46 }
 0x542   : > { %v6956_v47 = vpop.eup %6223 }
 0x543   : > { %v2098_v51 = vsel %vm1162_vm4, %v6956_v47, 0.0  ;;  %v2088_v43 = vmul.f32 1.442695, %v2074_v21 }
 0x544   : > { %2099 = vadd.xlane.f32.xlu1 %v2098_v51  ;;  %v2387_v12 = vpop.permute.xlu1 %2386  ;;  %v2294_v51 = vsel %vm1262_vm3, %v6945_v5, 0 }
 0x545   : > { %6231 = vpow2.f32 %v2088_v43 }
 0x546   : > { %v6960_v44 = vpop.eup %6225  ;;  %6233 = vpow2.f32 %v2090_v53 }
 0x547   : > { %v2101_v55 = vsel %vm1162_vm4, %v6960_v44, 0.0 }
 0x548   : > { %2102 = vadd.xlane.f32.xlu0 %v2101_v55 }
 0x54a   : > { %v6964_v2 = vpop.eup %6227 }
 0x54b   : > { %v6966_v31 = vpop.eup %6229  ;;  %v2104_v9 = vsel %vm1162_vm4, %v6964_v2, 0.0 }
 0x54c   : > { %2105 = vadd.xlane.f32.xlu1 %v2104_v9  ;;  %v2107_v32 = vsel %vm1162_vm4, %v6966_v31, 0.0 }
 0x54d   : > { %2108 = vadd.xlane.f32.xlu0 %v2107_v32 }
 0x552   : > { %v6977_v29 = vpop.eup %6231 }
 0x553   : > { %v6979_v42 = vpop.eup %6233  ;;  %v2110_v6 = vsel %vm1162_vm4, %v6977_v29, 0.0 }
 0x554   : > { %v2113_v38 = vsel %vm1162_vm4, %v6979_v42, 0.0 }
 0x55d   : > { %2484 = vrot.lane.b32.xlu1 %v6830_v35, %s6372_s18 }
 0x563   : > { %2435 = vrot.lane.b32.xlu0 %v6846_v0, %s6372_s18 }
 0x581   : > { %2111 = vadd.xlane.f32.xlu1 %v2110_v6 }
 0x582   : > { %2114 = vadd.xlane.f32.xlu0 %v2113_v38  ;;  %v2343_v38 = vsel %vm1262_vm3, %v2338_v10, 0 }
 0x592   : > { %2584 = vrot.lane.b32.xlu1 %v6524_v34, %s6373_s19 }
 0x596   : > { %2582 = vrot.lane.b32.xlu1 %v6524_v34, %s6374_s20 }
 0x598   : > { %2534 = vrot.lane.b32.xlu0 %v6532_v39, %s6373_s19 }
 0x59a   : > { %2684 = vrot.lane.b32.xlu1 %v6545_v45, %s6373_s19 }
 0x59c   : > { %2532 = vrot.lane.b32.xlu0 %v6532_v39, %s6374_s20 }
 0x59e   : > { %2682 = vrot.lane.b32.xlu1 %v6545_v45, %s6374_s20 }
 0x5a0   : > { %2634 = vrot.lane.b32.xlu0 %v6534_v40, %s6373_s19 }
 0x5a2   : > { %2784 = vrot.lane.b32.xlu1 %v6558_v54, %s6373_s19 }
 0x5a4   : > { %2632 = vrot.lane.b32.xlu0 %v6534_v40, %s6374_s20 }
 0x5a6   : > { %2782 = vrot.lane.b32.xlu1 %v6558_v54, %s6374_s20 }
 0x5a8   : > { %2734 = vrot.lane.b32.xlu0 %v6549_v49, %s6373_s19 }
 0x5aa   : > { %2884 = vrot.lane.b32.xlu1 %v6569_v62, %s6373_s19 }
 0x5ac   : > { %2732 = vrot.lane.b32.xlu0 %v6549_v49, %s6374_s20 }
 0x5ae   : > { %2882 = vrot.lane.b32.xlu1 %v6569_v62, %s6374_s20 }
 0x5af   : > { %v2097_v14 = vpop.xlane.xlu0 %2096 }
 0x5b0   : > { %2834 = vrot.lane.b32.xlu0 %v6562_v58, %s6373_s19  ;;  %6235 = vrcp.f32 %v2097_v14 }
 0x5b2   : > { %3044 = vrot.lane.b32.xlu1 %v6626_v19, %s6374_s20 }
 0x5b4   : > { %2832 = vrot.lane.b32.xlu0 %v6562_v58, %s6374_s20 }
 0x5b6   : > { %3140 = vrot.lane.b32.xlu1 %v6784_v8, %s6374_s20 }
 0x5b8   : > { %3092 = vrot.lane.b32.xlu0 %v6609_v15, %s6374_s20 }
 0x5ba   : > { %3188 = vrot.lane.b32.xlu1 %v6777_v1, %s6374_s20 }
 0x5bd   : > { %v6236_v36 = vpop.eup %6235 }
 0x5be   : > { %v2125_v63 = vmul.f32 %v6236_v36, %v6948_v33 }
 0x5c0   : > { %v2133_v4 = vpack.c.bf16 %v2125_v63, %v2125_v63 }
 0x5c2   : > { %5793 = vmatmul.mubr.msk.bf16.vlgmr.msra.gmra.mxu0 %vm1162_vm4, %v2133_v4  ;;  %v2392_v4 = vsel %vm1262_vm3, %v2387_v12, 0 }
 0x5c3   : > { %5803 = vmatpush3.bf16.msra.mxu0 %v2294_v51  ;;  %5804 = vmatprep.mubr.msk.bf16.mxu0 %vm6368_vm1, %v7846_v23 }
 0x5c4   : > { %5814 = vmatprep.subr.bf16.mxu0 %v7846_v23 }
 0x5c5   : > { %v2094_v55 = vpop.xlane.xlu1 %2093 }
 0x5c6   : > { %6237 = vrcp.f32 %v2094_v55 }
 0x5cd   : > { %v2100_v9 = vpop.xlane.xlu1 %2099 }
 0x5ce   : > { %6239 = vrcp.f32 %v2100_v9 }
 0x5d1   : > { %v2103_v32 = vpop.xlane.xlu0 %2102 }
 0x5d2   : > { %6241 = vrcp.f32 %v2103_v32 }
 0x5d3   : > { %v6238_v33 = vpop.eup %6237 }
 0x5d4   : > { %v2124_v46 = vmul.f32 %v6238_v33, %v6952_v48 }
 0x5d5   : > { %v2106_v11 = vpop.xlane.xlu1 %2105 }
 0x5d6   : > { %6243 = vrcp.f32 %v2106_v11  ;;  %v2109_v5 = vpop.xlane.xlu0 %2108  ;;  %v2132_v21 = vpack.c.bf16 %v2124_v46, %v2124_v46 }
 0x5d7   : > { %6245 = vrcp.f32 %v2109_v5 }
 0x5d8   : > { %5787 = vmatmul.mubr.msk.bf16.vlgmr.msra.gmra.mxu1 %vm1162_vm4, %v2132_v21 }
 0x5d9   : > { %5797 = vmatpush3.bf16.msra.mxu1 %v2245_v28  ;;  %5798 = vmatprep.mubr.msk.bf16.mxu1 %vm6368_vm1, %v7846_v23  ;;  %v2485_v9 = vpop.permute.xlu1 %2484 }
 0x5da   : > { %5808 = vmatprep.subr.bf16.mxu1 %v7846_v23  ;;  %v2436_v10 = vpop.permute.xlu0 %2435  ;;  %v2490_v12 = vsel %vm1262_vm3, %v2485_v9, 0 }
 0x5db   : > { %v6240_v43 = vpop.eup %6239  ;;  %v2441_v55 = vsel %vm1262_vm3, %v2436_v10, 0 }
 0x5dc   : > { %v2126_v53 = vmul.f32 %v6240_v43, %v6956_v47 }
 0x5de   : > { %v2134_v48 = vpack.c.bf16 %v2126_v53, %v2126_v53 }
 0x5df   : > { %v6242_v6 = vpop.eup %6241 }
 0x5e0   : > { %5799 = vmatmul.mubr.msk.bf16.vlgmr.msra.gmra.mxu1 %vm1162_vm4, %v2134_v48  ;;  %v2127_v14 = vmul.f32 %v6242_v6, %v6960_v44 }
 0x5e1   : > { %5809 = vmatpush3.bf16.msra.mxu1 %v2343_v38  ;;  %5810 = vmatprep.mubr.msk.bf16.mxu1 %vm6368_vm1, %v7846_v23 }
 0x5e2   : > { %v2135_v61 = vpack.c.bf16 %v2127_v14, %v2127_v14  ;;  %5820 = vmatprep.subr.bf16.mxu1 %v7846_v23 }
 0x5e3   : > { %v6244_v36 = vpop.eup %6243 }
 0x5e4   : > { %v6246_v63 = vpop.eup %6245  ;;  %5805 = vmatmul.mubr.msk.bf16.vlgmr.msra.gmra.mxu0 %vm1162_vm4, %v2135_v61  ;;  %v2128_v47 = vmul.f32 %v6244_v36, %v6964_v2 }
 0x5e5   : > { %5815 = vmatpush3.bf16.msra.mxu0 %v2392_v4  ;;  %5816 = vmatprep.mubr.msk.bf16.mxu0 %vm6368_vm1, %v7846_v23  ;;  %v2129_v51 = vmul.f32 %v6246_v63, %v6966_v31 }
 0x5e6   : > { %v2136_v44 = vpack.c.bf16 %v2128_v47, %v2128_v47  ;;  %5826 = vmatprep.subr.bf16.mxu0 %v7846_v23 }
 0x5e7   : > { %v2137_v2 = vpack.c.bf16 %v2129_v51, %v2129_v51 }
 0x5e8   : > { %5811 = vmatmul.mubr.msk.bf16.vlgmr.msra.gmra.mxu1 %vm1162_vm4, %v2136_v44 }
 0x5e9   : > { %5821 = vmatpush3.bf16.msra.mxu1 %v2441_v55  ;;  %5822 = vmatprep.mubr.msk.bf16.mxu1 %vm6368_vm1, %v7846_v23 }
 0x5ea   : > { %5832 = vmatprep.subr.bf16.mxu1 %v7846_v23 }
 0x5ec   : > { %5817 = vmatmul.mubr.msk.bf16.vlgmr.msra.gmra.mxu0 %vm1162_vm4, %v2137_v2 }
 0x5ed   : > { %5827 = vmatpush3.bf16.msra.mxu0 %v2490_v12  ;;  %5828 = vmatprep.mubr.msk.bf16.mxu0 %vm6368_vm1, %v7846_v23 }
 0x5ee   : > { %5838 = vmatprep.subr.bf16.mxu0 %v7846_v23 }
 0x60a   : > { %v2112_v31 = vpop.xlane.xlu1 %2111 }
 0x60b   : > { %6247 = vrcp.f32 %v2112_v31  ;;  %v2115_v32 = vpop.xlane.xlu0 %2114 }
 0x60c   : > { %6249 = vrcp.f32 %v2115_v32 }
 0x60e   : > { %v2585_v33 = vpop.permute.xlu1 %2584 }
 0x60f   : > { %v2535_v46 = vpop.permute.xlu0 %2534  ;;  %v2590_v4 = vsel %vm716_vm2, %v2585_v33, 0 }
 0x610   : > { %v2540_v36 = vsel %vm716_vm2, %v2535_v46, 0 }
 0x612   : > { %v2583_v11 = vpop.permute.xlu1 %2582 }
 0x613   : > { %v2533_v5 = vpop.permute.xlu0 %2532 }
 0x616   : > { %v2685_v21 = vpop.permute.xlu1 %2684 }
 0x617   : > { %v2635_v28 = vpop.permute.xlu0 %2634  ;;  %v2690_v10 = vsel %vm716_vm2, %v2685_v21, 0 }
 0x618   : > { %v6248_v43 = vpop.eup %6247  ;;  %v2640_v47 = vsel %vm716_vm2, %v2635_v28, 0 }
 0x619   : > { %v6250_v53 = vpop.eup %6249  ;;  %v2130_v48 = vmul.f32 %v6248_v43, %v6977_v29 }
 0x61a   : > { %v2131_v6 = vmul.f32 %v6250_v53, %v6979_v42  ;;  %v2683_v14 = vpop.permute.xlu1 %2682 }
 0x61b   : > { %v2138_v38 = vpack.c.bf16 %v2130_v48, %v2130_v48  ;;  %v2633_v63 = vpop.permute.xlu0 %2632 }
 0x61c   : > { %v2139_v61 = vpack.c.bf16 %v2131_v6, %v2131_v6 }
 0x61d   : > { %5823 = vmatmul.mubr.msk.bf16.vlgmr.msra.gmra.mxu1 %vm1162_vm4, %v2138_v38 }
 0x61e   : > { %5829 = vmatmul.mubr.msk.bf16.vlgmr.msra.gmra.mxu0 %vm1162_vm4, %v2139_v61  ;;  %5833 = vmatpush3.bf16.xpose.msra.mxu1 %v2540_v36  ;;  %v2785_v29 = vpop.permute.xlu1 %2784 }
 0x61f   : > { %5839 = vmatpush3.bf16.xpose.msra.mxu0 %v2590_v4  ;;  %5834 = vmatprep.mubr.msk.bf16.mxu1 %vm6368_vm1, %v7846_v23  ;;  %v2735_v42 = vpop.permute.xlu0 %2734  ;;  %v2790_v9 = vsel %vm716_vm2, %v2785_v29, 0 }
 0x620   : > { %5840 = vmatprep.mubr.msk.bf16.mxu0 %vm6368_vm1, %v7846_v23  ;;  %5844 = vmatprep.subr.bf16.mxu1 %v7846_v23  ;;  %v2740_v55 = vsel %vm716_vm2, %v2735_v42, 0 }
 0x621   : > { %5850 = vmatprep.subr.bf16.mxu0 %v7846_v23 }
 0x622   : > { %v2783_v44 = vpop.permute.xlu1 %2782 }
 0x623   : > { %v2733_v51 = vpop.permute.xlu0 %2732 }
 0x625   : > { %5835 = vmatmul.mubr.msk.bf16.vlgmr.msra.gmra.mxu1 %vm716_vm2, %v2533_v5 }
 0x626   : > { %5841 = vmatmul.mubr.msk.bf16.vlgmr.msra.gmra.mxu0 %vm716_vm2, %v2583_v11  ;;  %5845 = vmatpush3.bf16.xpose.msra.mxu1 %v2640_v47  ;;  %v2885_v2 = vpop.permute.xlu1 %2884 }
 0x627   : > { %5851 = vmatpush3.bf16.xpose.msra.mxu0 %v2690_v10  ;;  %5846 = vmatprep.mubr.msk.bf16.mxu1 %vm6368_vm1, %v7846_v23  ;;  %v2835_v12 = vpop.permute.xlu0 %2834  ;;  %v2890_v46 = vsel %vm716_vm2, %v2885_v2, 0 }
 0x628   : > { %5852 = vmatprep.mubr.msk.bf16.mxu0 %vm6368_vm1, %v7846_v23  ;;  %5856 = vmatprep.subr.bf16.mxu1 %v7846_v23  ;;  %v2840_v32 = vsel %vm716_vm2, %v2835_v12, 0 }
 0x629   : > { %5862 = vmatprep.subr.bf16.mxu0 %v7846_v23 }
 0x62a   : > { %v2883_v31 = vpop.permute.xlu1 %2882 }
 0x62b   : > { %v2833_v33 = vpop.permute.xlu0 %2832 }
 0x62d   : > { %5847 = vmatmul.mubr.msk.bf16.vlgmr.msra.gmra.mxu1 %vm716_vm2, %v2633_v63 }
 0x62e   : > { %5853 = vmatmul.mubr.msk.bf16.vlgmr.msra.gmra.mxu0 %vm716_vm2, %v2683_v14  ;;  %5857 = vmatpush3.bf16.xpose.msra.mxu1 %v2740_v55  ;;  %v3045_v11 = vpop.permute.xlu1 %3044 }
 0x62f   : > { %5863 = vmatpush3.bf16.xpose.msra.mxu0 %v2790_v9  ;;  %5858 = vmatprep.mubr.msk.bf16.mxu1 %vm6368_vm1, %v7846_v23  ;;  %v3093_v5 = vpop.permute.xlu0 %3092  ;;  %v3050_v21 = vsel %vm1262_vm3, %v3045_v11, 0 }
 0x630   : > { %5864 = vmatprep.mubr.msk.bf16.mxu0 %vm6368_vm1, %v7846_v23  ;;  %5868 = vmatprep.subr.bf16.mxu1 %v7846_v23  ;;  %v3098_v28 = vsel %vm1262_vm3, %v3093_v5, 0 }
 0x631   : > { %5874 = vmatprep.subr.bf16.mxu0 %v7846_v23 }
 0x635   : > { %5859 = vmatmul.mubr.msk.bf16.vlgmr.msra.gmra.mxu1 %vm716_vm2, %v2733_v51 }
 0x636   : > { %5865 = vmatmul.mubr.msk.bf16.vlgmr.msra.gmra.mxu0 %vm716_vm2, %v2783_v44  ;;  %5869 = vmatpush3.bf16.xpose.msra.mxu1 %v2840_v32 }
 0x637   : > { %5875 = vmatpush3.bf16.xpose.msra.mxu0 %v2890_v46  ;;  %5870 = vmatprep.mubr.msk.bf16.mxu1 %vm6368_vm1, %v7846_v23 }
 0x638   : > { %5876 = vmatprep.mubr.msk.bf16.mxu0 %vm6368_vm1, %v7846_v23  ;;  %5880 = vmatprep.subr.bf16.mxu1 %v7846_v23 }
 0x639   : > { %5886 = vmatprep.subr.bf16.mxu0 %v7846_v23 }
 0x63d   : > { %5871 = vmatmul.mubr.msk.bf16.vlgmr.msra.gmra.mxu1 %vm716_vm2, %v2833_v33 }
 0x63e   : > { %5877 = vmatmul.mubr.msk.bf16.vlgmr.msra.gmra.mxu0 %vm716_vm2, %v2883_v31  ;;  %5881 = vmatpush3.bf16.msra.mxu1 %v3050_v21 }
 0x63f   : > { %5887 = vmatpush3.bf16.msra.mxu0 %v3098_v28  ;;  %5882 = vmatprep.mubr.msk.bf16.mxu1 %vm6368_vm1, %v7846_v23 }
 0x640   : > { %5888 = vmatprep.mubr.msk.bf16.mxu0 %vm6368_vm1, %v7846_v23  ;;  %5892 = vmatprep.subr.bf16.mxu1 %v7846_v23 }
 0x641   : > { %5898 = vmatprep.subr.bf16.mxu0 %v7846_v23 }
 0x682   : > { %v7115_v43 = vpop.f32.mrf.mxu0 }
 0x684   : > { %v5794_v53 = vpop.f32.mrf.mxu0 }
 0x686   : > { %v2235_v48 = vpop.f32.mrf.mxu0 }
 0x688   : > { %v5795_v6 = vpop.f32.mrf.mxu0 }
 0x698   : > { %v7117_v38 = vpop.f32.mrf.mxu1 }
 0x69a   : > { %v5788_v61 = vpop.f32.mrf.mxu1 }
 0x69c   : > { %v2186_v36 = vpop.f32.mrf.mxu1 }
 0x69e   : > { %v5789_v63 = vpop.f32.mrf.mxu1 }
 0x6a0   : > { %v7121_v4 = vpop.f32.mrf.mxu1 }
 0x6a2   : > { %v5800_v29 = vpop.f32.mrf.mxu1 }
 0x6a4   : > { %v2284_v42 = vpop.f32.mrf.mxu1  ;;  %v7123_v47 = vpop.f32.mrf.mxu0 }
 0x6a6   : > { %v5801_v44 = vpop.f32.mrf.mxu1  ;;  %v5806_v51 = vpop.f32.mrf.mxu0 }
 0x6a8   : > { %v2333_v55 = vpop.f32.mrf.mxu0  ;;  %v7127_v9 = vpop.f32.mrf.mxu1 }
 0x6aa   : > { %v5807_v2 = vpop.f32.mrf.mxu0  ;;  %v5812_v12 = vpop.f32.mrf.mxu1 }
 0x6ac   : > { %v2382_v31 = vpop.f32.mrf.mxu1  ;;  %v7129_v32 = vpop.f32.mrf.mxu0 }
 0x6ae   : > { %v5813_v46 = vpop.f32.mrf.mxu1  ;;  %v5818_v11 = vpop.f32.mrf.mxu0 }
 0x6b0   : > { %v2431_v5 = vpop.f32.mrf.mxu0 }
 0x6b2   : > { %v5819_v21 = vpop.f32.mrf.mxu0 }
 0x6dd   : > { %v7133_v28 = vpop.f32.mrf.mxu1 }
 0x6de   : > { %v7135_v53 = vpop.f32.mrf.mxu0 }
 0x6df   : > { %v5824_v6 = vpop.f32.mrf.mxu1 }
 0x6e0   : > { %v5830_v61 = vpop.f32.mrf.mxu0 }
 0x6e1   : > { %v2480_v36 = vpop.f32.mrf.mxu1 }
 0x6e2   : > { %v2529_v63 = vpop.f32.mrf.mxu0 }
 0x6e3   : > { %v5825_v29 = vpop.f32.mrf.mxu1 }
 0x6e4   : > { %v5831_v42 = vpop.f32.mrf.mxu0 }
 0x6e5   : > { %v2576_v44 = vpop.f32.mrf.mxu1 }
 0x6e6   : > { %v2932_v51 = vmul.f32 0.25, %v2576_v44  ;;  %v2626_v55 = vpop.f32.mrf.mxu0 }
 0x6e7   : > { %v2933_v2 = vmul.f32 0.25, %v2626_v55  ;;  %v5836_v12 = vpop.f32.mrf.mxu1 }
 0x6e8   : > { %v5842_v31 = vpop.f32.mrf.mxu0  ;;  %v7140_v46 = vadd.f32 %v2932_v51, %v6658_v52 }
 0x6e9   : > { %v2579_v11 = vpop.f32.mrf.mxu1  ;;  %v7143_v5 = vadd.f32 %v2933_v2, %v6650_v37 }
 0x6ea   : > { %v2629_v21 = vpop.f32.mrf.mxu0  ;;  %v2948_v6 = vsel %vm1162_vm4, %v7140_v46, -inf }
 0x6eb   : > { %v2951_v61 = vsel %vm1162_vm4, %v7143_v5, -inf  ;;  %2949 = vmax.xlane.f32.xlu0 %v2948_v6  ;;  %v5837_v36 = vpop.f32.mrf.mxu1 }
 0x6ec   : > { %2952 = vmax.xlane.f32.xlu1 %v2951_v61  ;;  %v5843_v63 = vpop.f32.mrf.mxu0 }
 0x6ed   : > { %v2676_v29 = vpop.f32.mrf.mxu1 }
 0x6ee   : > { %v2934_v42 = vmul.f32 0.25, %v2676_v29  ;;  %v2726_v44 = vpop.f32.mrf.mxu0 }
 0x6ef   : > { %v2935_v51 = vmul.f32 0.25, %v2726_v44  ;;  %v5848_v55 = vpop.f32.mrf.mxu1 }
 0x6f0   : > { %v5854_v12 = vpop.f32.mrf.mxu0  ;;  %v2942_v2 = vadd.f32 %v2934_v42, %v6666_v3 }
 0x6f1   : > { %v2679_v31 = vpop.f32.mrf.mxu1  ;;  %v2943_v30 = vadd.f32 %v2935_v51, %v6676_v18 }
 0x6f2   : > { %v2729_v11 = vpop.f32.mrf.mxu0  ;;  %v2954_v21 = vsel %vm1162_vm4, %v2942_v2, -inf }
 0x6f3   : > { %2955 = vmax.xlane.f32.xlu0 %v2954_v21  ;;  %v5849_v33 = vpop.f32.mrf.mxu1  ;;  %v2957_v29 = vsel %vm1162_vm4, %v2943_v30, -inf }
 0x6f4   : > { %v5855_v6 = vpop.f32.mrf.mxu0 }
 0x6f5   : > { %v2776_v36 = vpop.f32.mrf.mxu1 }
 0x6f6   : > { %v2936_v61 = vmul.f32 0.25, %v2776_v36  ;;  %v2826_v63 = vpop.f32.mrf.mxu0 }
 0x6f7   : > { %v2937_v14 = vmul.f32 0.25, %v2826_v63  ;;  %2958 = vmax.xlane.f32.xlu0 %v2957_v29  ;;  %v5860_v44 = vpop.f32.mrf.mxu1 }
 0x6f8   : > { %v5866_v55 = vpop.f32.mrf.mxu0  ;;  %v2944_v42 = vadd.f32 %v2936_v61, %v6688_v57 }
 0x6f9   : > { %v2779_v12 = vpop.f32.mrf.mxu1  ;;  %v2945_v31 = vadd.f32 %v2937_v14, %v6679_v27 }
 0x6fa   : > { %v2829_v11 = vpop.f32.mrf.mxu0  ;;  %v2960_v51 = vsel %vm1162_vm4, %v2944_v42, -inf }
 0x6fb   : > { %v2963_v33 = vsel %vm1162_vm4, %v2945_v31, -inf  ;;  %2961 = vmax.xlane.f32.xlu1 %v2960_v51  ;;  %v5861_v21 = vpop.f32.mrf.mxu1 }
 0x6fc   : > { %v5867_v6 = vpop.f32.mrf.mxu0  ;;  %2964 = vmax.xlane.f32.xlu0 %v2963_v33  ;;  %v7165_v33 = vpop.permute.xlu1 %3140 }
 0x6fd   : > { %v2876_v36 = vpop.f32.mrf.mxu1 }
 0x6fe   : > { %v2938_v48 = vmul.f32 0.25, %v2876_v36  ;;  %v2926_v63 = vpop.f32.mrf.mxu0 }
 0x6ff   : > { %v2939_v29 = vmul.f32 0.25, %v2926_v63  ;;  %v5872_v44 = vpop.f32.mrf.mxu1 }
 0x700   : > { %v5878_v55 = vpop.f32.mrf.mxu0  ;;  %v2946_v61 = vadd.f32 %v2938_v48, %v6699_v16  ;;  %v7167_v48 = vpop.permute.xlu1 %3188 }
 0x701   : > { %v2879_v12 = vpop.f32.mrf.mxu1  ;;  %v2947_v14 = vadd.f32 %v2939_v29, %v6685_v56 }
 0x702   : > { %v2929_v11 = vpop.f32.mrf.mxu0  ;;  %v2966_v10 = vsel %vm1162_vm4, %v2946_v61, -inf }
 0x703   : > { %v2969_v23 = vsel %vm1162_vm4, %v2947_v14, -inf  ;;  %2967 = vmax.xlane.f32.xlu1 %v2966_v10  ;;  %v5873_v51 = vpop.f32.mrf.mxu1 }
 0x704   : > { %v5879_v21 = vpop.f32.mrf.mxu0  ;;  %2970 = vmax.xlane.f32.xlu0 %v2969_v23 }
 0x714   : > { %3284 = vrot.lane.b32.xlu1 %v6812_v26, %s6374_s20 }
 0x71a   : > { %3236 = vrot.lane.b32.xlu0 %v6806_v13, %s6374_s20 }
 0x774   : > { %v2950_v6 = vpop.xlane.xlu0 %2949 }
 0x775   : > { %v2953_v36 = vpop.xlane.xlu1 %2952  ;;  %v2972_v63 = vsub.f32 %v7140_v46, %v2950_v6 }
 0x776   : > { %v2973_v29 = vsub.f32 %v7143_v5, %v2953_v36 }
 0x777   : > { %v2980_v10 = vmul.f32 1.442695, %v2972_v63 }
 0x778   : > { %v2982_v44 = vmul.f32 1.442695, %v2973_v29 }
 0x779   : > { %6251 = vpow2.f32 %v2980_v10 }
 0x77a   : > { %6253 = vpow2.f32 %v2982_v44 }
 0x77c   : > { %v2956_v23 = vpop.xlane.xlu0 %2955 }
 0x77d   : > { %v2974_v55 = vsub.f32 %v2942_v2, %v2956_v23 }
 0x77f   : > { %v2984_v12 = vmul.f32 1.442695, %v2974_v55 }
 0x780   : > { %v2959_v11 = vpop.xlane.xlu0 %2958 }
 0x781   : > { %6255 = vpow2.f32 %v2984_v12  ;;  %v2975_v51 = vsub.f32 %v2943_v30, %v2959_v11 }
 0x783   : > { %v2986_v21 = vmul.f32 1.442695, %v2975_v51 }
 0x784   : > { %v2962_v24 = vpop.xlane.xlu1 %2961 }
 0x785   : > { %6257 = vpow2.f32 %v2986_v21  ;;  %v2976_v22 = vsub.f32 %v2944_v42, %v2962_v24  ;;  %v2965_v25 = vpop.xlane.xlu0 %2964 }
 0x786   : > { %v7171_v20 = vpop.eup %6251  ;;  %v2977_v46 = vsub.f32 %v2945_v31, %v2965_v25 }
 0x787   : > { %v7173_v6 = vpop.eup %6253  ;;  %v2988_v5 = vmul.f32 1.442695, %v2976_v22  ;;  %v2996_v36 = vsel %vm1162_vm4, %v7171_v20, 0.0 }
 0x788   : > { %v2990_v63 = vmul.f32 1.442695, %v2977_v46  ;;  %v2999_v2 = vsel %vm1162_vm4, %v7173_v6, 0.0  ;;  %2997 = vadd.xlane.f32.xlu1 %v2996_v36 }
 0x789   : > { %6259 = vpow2.f32 %v2988_v5  ;;  %3000 = vadd.xlane.f32.xlu0 %v2999_v2 }
 0x78a   : > { %6261 = vpow2.f32 %v2990_v63 }
 0x78c   : > { %v2968_v44 = vpop.xlane.xlu1 %2967 }
 0x78d   : > { %v2971_v23 = vpop.xlane.xlu0 %2970  ;;  %v2978_v55 = vsub.f32 %v2946_v61, %v2968_v44 }
 0x78e   : > { %v7179_v30 = vpop.eup %6255  ;;  %v2979_v12 = vsub.f32 %v2947_v14, %v2971_v23 }
 0x78f   : > { %v3002_v24 = vsel %vm1162_vm4, %v7179_v30, 0.0  ;;  %v2992_v11 = vmul.f32 1.442695, %v2978_v55 }
 0x790   : > { %3003 = vadd.xlane.f32.xlu1 %v3002_v24  ;;  %v2994_v51 = vmul.f32 1.442695, %v2979_v12 }
 0x791   : > { %6263 = vpow2.f32 %v2992_v11 }
 0x792   : > { %v7183_v25 = vpop.eup %6257  ;;  %6265 = vpow2.f32 %v2994_v51 }
 0x793   : > { %v3005_v22 = vsel %vm1162_vm4, %v7183_v25, 0.0 }
 0x794   : > { %3006 = vadd.xlane.f32.xlu0 %v3005_v22  ;;  %v3146_v22 = vsel %vm1262_vm3, %v7165_v33, 0 }
 0x796   : > { %v7187_v42 = vpop.eup %6259 }
 0x797   : > { %v7189_v31 = vpop.eup %6261  ;;  %v3008_v29 = vsel %vm1162_vm4, %v7187_v42, 0.0 }
 0x798   : > { %3009 = vadd.xlane.f32.xlu1 %v3008_v29  ;;  %v3011_v10 = vsel %vm1162_vm4, %v7189_v31, 0.0  ;;  %v3194_v29 = vsel %vm1262_vm3, %v7167_v48, 0 }
 0x799   : > { %3012 = vadd.xlane.f32.xlu0 %v3011_v10 }
 0x79e   : > { %v7199_v21 = vpop.eup %6263 }
 0x79f   : > { %v7201_v46 = vpop.eup %6265  ;;  %v3014_v5 = vsel %vm1162_vm4, %v7199_v21, 0.0 }
 0x7a0   : > { %v3017_v36 = vsel %vm1162_vm4, %v7201_v46, 0.0 }
 0x7a9   : > { %3380 = vrot.lane.b32.xlu1 %v6830_v35, %s6374_s20 }
 0x7af   : > { %3332 = vrot.lane.b32.xlu0 %v6846_v0, %s6374_s20 }
 0x7cd   : > { %3015 = vadd.xlane.f32.xlu1 %v3014_v5 }
 0x7ce   : > { %3018 = vadd.xlane.f32.xlu0 %v3017_v36 }
 0x7de   : > { %3480 = vrot.lane.b32.xlu1 %v6524_v34, %s6375_s17 }
 0x7e2   : > { %3478 = vrot.lane.b32.xlu1 %v6524_v34, %s6376_s21  ;;  %v3285_v34 = vpop.permute.xlu1 %3284 }
 0x7e4   : > { %3430 = vrot.lane.b32.xlu0 %v6532_v39, %s6375_s17 }
 0x7e6   : > { %3580 = vrot.lane.b32.xlu1 %v6545_v45, %s6375_s17 }
 0x7e8   : > { %3428 = vrot.lane.b32.xlu0 %v6532_v39, %s6376_s21  ;;  %v3237_v39 = vpop.permute.xlu0 %3236 }
 0x7e9   : > { %v3242_v48 = vsel %vm1262_vm3, %v3237_v39, 0 }
 0x7ea   : > { %3578 = vrot.lane.b32.xlu1 %v6545_v45, %s6376_s21 }
 0x7ec   : > { %3530 = vrot.lane.b32.xlu0 %v6534_v40, %s6375_s17 }
 0x7ee   : > { %3680 = vrot.lane.b32.xlu1 %v6558_v54, %s6375_s17 }
 0x7f0   : > { %3528 = vrot.lane.b32.xlu0 %v6534_v40, %s6376_s21 }
 0x7f2   : > { %3678 = vrot.lane.b32.xlu1 %v6558_v54, %s6376_s21 }
 0x7f4   : > { %3630 = vrot.lane.b32.xlu0 %v6549_v49, %s6375_s17 }
 0x7f6   : > { %3780 = vrot.lane.b32.xlu1 %v6569_v62, %s6375_s17 }
 0x7f8   : > { %3628 = vrot.lane.b32.xlu0 %v6549_v49, %s6376_s21 }
 0x7fa   : > { %3778 = vrot.lane.b32.xlu1 %v6569_v62, %s6376_s21 }
 0x7fc   : > { %3730 = vrot.lane.b32.xlu0 %v6562_v58, %s6375_s17 }
 0x7fe   : > { %3940 = vrot.lane.b32.xlu1 %v6626_v19, %s6376_s21 }
 0x800   : > { %3728 = vrot.lane.b32.xlu0 %v6562_v58, %s6376_s21 }
 0x811   : > { %v2998_v40 = vpop.xlane.xlu1 %2997 }
 0x812   : > { %6267 = vrcp.f32 %v2998_v40  ;;  %v3001_v45 = vpop.xlane.xlu0 %3000 }
 0x813   : > { %6269 = vrcp.f32 %v3001_v45 }
 0x819   : > { %v3004_v54 = vpop.xlane.xlu1 %3003 }
 0x81a   : > { %6271 = vrcp.f32 %v3004_v54 }
 0x81d   : > { %v3007_v49 = vpop.xlane.xlu0 %3006 }
 0x81e   : > { %6273 = vrcp.f32 %v3007_v49 }
 0x81f   : > { %v6268_v62 = vpop.eup %6267 }
 0x820   : > { %v6270_v61 = vpop.eup %6269  ;;  %v3028_v14 = vmul.f32 %v6268_v62, %v7171_v20  ;;  %v7855_v20 = vmov 0.0  }
 0x821   : > { %v3010_v63 = vpop.xlane.xlu1 %3009  ;;  %v3029_v19 = vmul.f32 %v6270_v61, %v7173_v6 }
 0x822   : > { %6275 = vrcp.f32 %v3010_v63  ;;  %v3013_v2 = vpop.xlane.xlu0 %3012  ;;  %v3036_v58 = vpack.c.bf16 %v3028_v14, %v3028_v14 }
 0x823   : > { %6277 = vrcp.f32 %v3013_v2  ;;  %v3037_v24 = vpack.c.bf16 %v3029_v19, %v3029_v19 }
 0x824   : > { %5883 = vmatmul.mubr.msk.bf16.vlgmr.msra.gmra.mxu1 %vm1162_vm4, %v3036_v58 }
 0x825   : > { %5889 = vmatmul.mubr.msk.bf16.vlgmr.msra.gmra.mxu0 %vm1162_vm4, %v3037_v24  ;;  %5893 = vmatpush3.bf16.msra.mxu1 %v3146_v22  ;;  %v3381_v40 = vpop.permute.xlu1 %3380 }
 0x826   : > { %5899 = vmatpush3.bf16.msra.mxu0 %v3194_v29  ;;  %5894 = vmatprep.mubr.msk.bf16.mxu1 %vm6368_vm1, %v7855_v20  ;;  %v3333_v5 = vpop.permute.xlu0 %3332 }
 0x827   : > { %v6272_v6 = vpop.eup %6271  ;;  %5904 = vmatprep.subr.bf16.mxu1 %v7855_v20  ;;  %5900 = vmatprep.mubr.msk.bf16.mxu0 %vm6368_vm1, %v7855_v20  ;;  %v3338_v39 = vsel %vm1262_vm3, %v3333_v5, 0 }
 0x828   : > { %v3030_v33 = vmul.f32 %v6272_v6, %v7179_v30  ;;  %5910 = vmatprep.subr.bf16.mxu0 %v7855_v20  ;;  %v3290_v30 = vsel %vm1262_vm3, %v3285_v34, 0  ;;  %v3386_v34 = vsel %vm1262_vm3, %v3381_v40, 0 }
 0x82a   : > { %v3038_v10 = vpack.c.bf16 %v3030_v33, %v3030_v33 }
 0x82b   : > { %v6274_v44 = vpop.eup %6273 }
 0x82c   : > { %5895 = vmatmul.mubr.msk.bf16.vlgmr.msra.gmra.mxu1 %vm1162_vm4, %v3038_v10  ;;  %v3031_v23 = vmul.f32 %v6274_v44, %v7183_v25 }
 0x82d   : > { %5905 = vmatpush3.bf16.msra.mxu1 %v3242_v48  ;;  %5906 = vmatprep.mubr.msk.bf16.mxu1 %vm6368_vm1, %v7855_v20 }
 0x82e   : > { %v3039_v55 = vpack.c.bf16 %v3031_v23, %v3031_v23  ;;  %5916 = vmatprep.subr.bf16.mxu1 %v7855_v20 }
 0x82f   : > { %v6276_v12 = vpop.eup %6275 }
 0x830   : > { %v6278_v11 = vpop.eup %6277  ;;  %5901 = vmatmul.mubr.msk.bf16.vlgmr.msra.gmra.mxu0 %vm1162_vm4, %v3039_v55  ;;  %v3032_v51 = vmul.f32 %v6276_v12, %v7187_v42 }
 0x831   : > { %5911 = vmatpush3.bf16.msra.mxu0 %v3290_v30  ;;  %5912 = vmatprep.mubr.msk.bf16.mxu0 %vm6368_vm1, %v7855_v20  ;;  %v3033_v36 = vmul.f32 %v6278_v11, %v7189_v31 }
 0x832   : > { %v3040_v25 = vpack.c.bf16 %v3032_v51, %v3032_v51  ;;  %5922 = vmatprep.subr.bf16.mxu0 %v7855_v20 }
 0x833   : > { %v3041_v42 = vpack.c.bf16 %v3033_v36, %v3033_v36 }
 0x834   : > { %5907 = vmatmul.mubr.msk.bf16.vlgmr.msra.gmra.mxu1 %vm1162_vm4, %v3040_v25 }
 0x835   : > { %5917 = vmatpush3.bf16.msra.mxu1 %v3338_v39  ;;  %5918 = vmatprep.mubr.msk.bf16.mxu1 %vm6368_vm1, %v7855_v20 }
 0x836   : > { %5928 = vmatprep.subr.bf16.mxu1 %v7855_v20 }
 0x838   : > { %5913 = vmatmul.mubr.msk.bf16.vlgmr.msra.gmra.mxu0 %vm1162_vm4, %v3041_v42 }
 0x839   : > { %5923 = vmatpush3.bf16.msra.mxu0 %v3386_v34  ;;  %5924 = vmatprep.mubr.msk.bf16.mxu0 %vm6368_vm1, %v7855_v20 }
 0x83a   : > { %5934 = vmatprep.subr.bf16.mxu0 %v7855_v20 }
 0x856   : > { %v3016_v31 = vpop.xlane.xlu1 %3015 }
 0x857   : > { %6279 = vrcp.f32 %v3016_v31  ;;  %v3019_v45 = vpop.xlane.xlu0 %3018 }
 0x858   : > { %6281 = vrcp.f32 %v3019_v45 }
 0x85a   : > { %v3481_v54 = vpop.permute.xlu1 %3480 }
 0x85b   : > { %v3431_v49 = vpop.permute.xlu0 %3430  ;;  %v3486_v10 = vsel %vm716_vm2, %v3481_v54, 0 }
 0x85c   : > { %v3436_v33 = vsel %vm716_vm2, %v3431_v49, 0 }
 0x85e   : > { %v3479_v62 = vpop.permute.xlu1 %3478 }
 0x85f   : > { %v3429_v61 = vpop.permute.xlu0 %3428 }
 0x862   : > { %v3581_v14 = vpop.permute.xlu1 %3580 }
 0x863   : > { %v3531_v58 = vpop.permute.xlu0 %3530  ;;  %v3586_v48 = vsel %vm716_vm2, %v3581_v14, 0 }
 0x864   : > { %v6280_v63 = vpop.eup %6279  ;;  %v3536_v44 = vsel %vm716_vm2, %v3531_v58, 0 }
 0x865   : > { %v6282_v19 = vpop.eup %6281  ;;  %v3034_v2 = vmul.f32 %v6280_v63, %v7199_v21 }
 0x866   : > { %v3035_v24 = vmul.f32 %v6282_v19, %v7201_v46  ;;  %v3579_v29 = vpop.permute.xlu1 %3578 }
 0x867   : > { %v3042_v22 = vpack.c.bf16 %v3034_v2, %v3034_v2  ;;  %v3529_v21 = vpop.permute.xlu0 %3528 }
 0x868   : > { %v3043_v6 = vpack.c.bf16 %v3035_v24, %v3035_v24 }
 0x869   : > { %5919 = vmatmul.mubr.msk.bf16.vlgmr.msra.gmra.mxu1 %vm1162_vm4, %v3042_v22 }
 0x86a   : > { %5925 = vmatmul.mubr.msk.bf16.vlgmr.msra.gmra.mxu0 %vm1162_vm4, %v3043_v6  ;;  %5929 = vmatpush3.bf16.xpose.msra.mxu1 %v3436_v33  ;;  %v3681_v46 = vpop.permute.xlu1 %3680 }
 0x86b   : > { %5935 = vmatpush3.bf16.xpose.msra.mxu0 %v3486_v10  ;;  %5930 = vmatprep.mubr.msk.bf16.mxu1 %vm6368_vm1, %v7855_v20  ;;  %v3631_v23 = vpop.permute.xlu0 %3630  ;;  %v3686_v30 = vsel %vm716_vm2, %v3681_v46, 0 }
 0x86c   : > { %5936 = vmatprep.mubr.msk.bf16.mxu0 %vm6368_vm1, %v7855_v20  ;;  %5940 = vmatprep.subr.bf16.mxu1 %v7855_v20  ;;  %v3636_v11 = vsel %vm716_vm2, %v3631_v23, 0 }
 0x86d   : > { %5946 = vmatprep.subr.bf16.mxu0 %v7855_v20 }
 0x86e   : > { %v3679_v55 = vpop.permute.xlu1 %3678 }
 0x86f   : > { %v3629_v12 = vpop.permute.xlu0 %3628 }
 0x871   : > { %5931 = vmatmul.mubr.msk.bf16.vlgmr.msra.gmra.mxu1 %vm716_vm2, %v3429_v61 }
 0x872   : > { %5937 = vmatmul.mubr.msk.bf16.vlgmr.msra.gmra.mxu0 %vm716_vm2, %v3479_v62  ;;  %5941 = vmatpush3.bf16.xpose.msra.mxu1 %v3536_v44  ;;  %v3781_v51 = vpop.permute.xlu1 %3780 }
 0x873   : > { %5947 = vmatpush3.bf16.xpose.msra.mxu0 %v3586_v48  ;;  %5942 = vmatprep.mubr.msk.bf16.mxu1 %vm6368_vm1, %v7855_v20  ;;  %v3731_v5 = vpop.permute.xlu0 %3730  ;;  %v3786_v39 = vsel %vm716_vm2, %v3781_v51, 0 }
 0x874   : > { %5948 = vmatprep.mubr.msk.bf16.mxu0 %vm6368_vm1, %v7855_v20  ;;  %5952 = vmatprep.subr.bf16.mxu1 %v7855_v20  ;;  %v3736_v36 = vsel %vm716_vm2, %v3731_v5, 0 }
 0x875   : > { %5958 = vmatprep.subr.bf16.mxu0 %v7855_v20 }
 0x876   : > { %v3779_v25 = vpop.permute.xlu1 %3778 }
 0x877   : > { %v3729_v42 = vpop.permute.xlu0 %3728 }
 0x879   : > { %5943 = vmatmul.mubr.msk.bf16.vlgmr.msra.gmra.mxu1 %vm716_vm2, %v3529_v21 }
 0x87a   : > { %5949 = vmatmul.mubr.msk.bf16.vlgmr.msra.gmra.mxu0 %vm716_vm2, %v3579_v29  ;;  %5953 = vmatpush3.bf16.xpose.msra.mxu1 %v3636_v11  ;;  %v3941_v40 = vpop.permute.xlu1 %3940 }
 0x87b   : > { %5959 = vmatpush3.bf16.xpose.msra.mxu0 %v3686_v30  ;;  %5954 = vmatprep.mubr.msk.bf16.mxu1 %vm6368_vm1, %v7855_v20  ;;  %v3946_v34 = vsel %vm1262_vm3, %v3941_v40, 0 }
 0x87c   : > { %5960 = vmatprep.mubr.msk.bf16.mxu0 %vm6368_vm1, %v7855_v20  ;;  %5964 = vmatprep.subr.bf16.mxu1 %v7855_v20 }
 0x87d   : > { %5970 = vmatprep.subr.bf16.mxu0 %v7855_v20 }
 0x881   : > { %5955 = vmatmul.mubr.msk.bf16.vlgmr.msra.gmra.mxu1 %vm716_vm2, %v3629_v12 }
 0x882   : > { %5961 = vmatmul.mubr.msk.bf16.vlgmr.msra.gmra.mxu0 %vm716_vm2, %v3679_v55  ;;  %5965 = vmatpush3.bf16.xpose.msra.mxu1 %v3736_v36 }
 0x883   : > { %5971 = vmatpush3.bf16.xpose.msra.mxu0 %v3786_v39  ;;  %5966 = vmatprep.mubr.msk.bf16.mxu1 %vm6368_vm1, %v7855_v20 }
 0x884   : > { %5972 = vmatprep.mubr.msk.bf16.mxu0 %vm6368_vm1, %v7855_v20  ;;  %5976 = vmatprep.subr.bf16.mxu1 %v7855_v20 }
 0x885   : > { %5982 = vmatprep.subr.bf16.mxu0 %v7855_v20 }
 0x889   : > { %5967 = vmatmul.mubr.msk.bf16.vlgmr.msra.gmra.mxu1 %vm716_vm2, %v3729_v42 }
 0x88a   : > { %5973 = vmatmul.mubr.msk.bf16.vlgmr.msra.gmra.mxu0 %vm716_vm2, %v3779_v25  ;;  %5977 = vmatpush3.bf16.msra.mxu1 %v3946_v34 }
 0x88b   : > { %5978 = vmatprep.mubr.msk.bf16.mxu1 %vm6368_vm1, %v7855_v20  ;;  %5984 = vmatprep.mubr.msk.bf16.mxu0 %vm6368_vm1, %v7855_v20 }
 0x88c   : > { %5988 = vmatprep.subr.bf16.mxu1 %v7855_v20 }
 0x8e4   : > { %v7329_v31 = vpop.f32.mrf.mxu1 }
 0x8e5   : > { %v7331_v45 = vpop.f32.mrf.mxu0 }
 0x8e6   : > { %v6109_v54 = vpack.i.bf16 %v7331_v45, %v7329_v31  ;;  %v5884_v49 = vpop.f32.mrf.mxu1 }
 0x8e7   : > { %v5890_v62 = vpop.f32.mrf.mxu0 }
 0x8e8   : > { %v3089_v61 = vpop.f32.mrf.mxu1 }
 0x8e9   : > { %v3137_v14 = vpop.f32.mrf.mxu0 }
 0x8ea   : > { %v5885_v63 = vpop.f32.mrf.mxu1 }
 0x8eb   : > { %v5891_v19 = vpop.f32.mrf.mxu0 }
 0x8ec   : > { %v7335_v2 = vpop.f32.mrf.mxu1 }
 0x8ee   : > { %v5896_v58 = vpop.f32.mrf.mxu1 }
 0x8f0   : > { %v3185_v24 = vpop.f32.mrf.mxu1  ;;  %v7337_v22 = vpop.f32.mrf.mxu0 }
 0x8f1   : > { %v6114_v29 = vpack.i.bf16 %v7337_v22, %v7335_v2 }
 0x8f2   : > { %v5897_v6 = vpop.f32.mrf.mxu1  ;;  %v5902_v33 = vpop.f32.mrf.mxu0 }
 0x8f4   : > { %v3233_v10 = vpop.f32.mrf.mxu0  ;;  %v7341_v21 = vpop.f32.mrf.mxu1 }
 0x8f6   : > { %v5903_v46 = vpop.f32.mrf.mxu0  ;;  %v5908_v44 = vpop.f32.mrf.mxu1 }
 0x8f8   : > { %v3281_v48 = vpop.f32.mrf.mxu1  ;;  %v7343_v23 = vpop.f32.mrf.mxu0 }
 0x8f9   : > { %v6134_v55 = vpack.i.bf16 %v7343_v23, %v7341_v21 }
 0x8fa   : > { %v5909_v12 = vpop.f32.mrf.mxu1  ;;  %v5914_v11 = vpop.f32.mrf.mxu0 }
 0x8fc   : > { %v3329_v30 = vpop.f32.mrf.mxu0 }
 0x8fe   : > { %v5915_v51 = vpop.f32.mrf.mxu0 }
 0x929   : > { %v7347_v5 = vpop.f32.mrf.mxu1 }
 0x92a   : > { %v7349_v25 = vpop.f32.mrf.mxu0 }
 0x92b   : > { %v6144_v36 = vpack.i.bf16 %v7349_v25, %v7347_v5  ;;  %v5920_v39 = vpop.f32.mrf.mxu1 }
 0x92c   : > { %v5926_v40 = vpop.f32.mrf.mxu0 }
 0x92d   : > { %v3377_v42 = vpop.f32.mrf.mxu1 }
 0x92e   : > { %v3425_v34 = vpop.f32.mrf.mxu0 }
 0x92f   : > { %v5921_v49 = vpop.f32.mrf.mxu1 }
 0x930   : > { %v5927_v62 = vpop.f32.mrf.mxu0 }
 0x931   : > { %v3472_v61 = vpop.f32.mrf.mxu1 }
 0x932   : > { %v3828_v14 = vmul.f32 0.25, %v3472_v61  ;;  %v3522_v63 = vpop.f32.mrf.mxu0 }
 0x933   : > { %v3829_v19 = vmul.f32 0.25, %v3522_v63  ;;  %v5932_v58 = vpop.f32.mrf.mxu1 }
 0x934   : > { %v7354_v24 = vadd.f32 %v3828_v14, %v6658_v52  ;;  %v5938_v6 = vpop.f32.mrf.mxu0 }
 0x935   : > { %v7357_v33 = vadd.f32 %v3829_v19, %v6650_v37  ;;  %v3475_v10 = vpop.f32.mrf.mxu1 }
 0x936   : > { %v3525_v46 = vpop.f32.mrf.mxu0  ;;  %v3844_v44 = vsel %vm1162_vm4, %v7354_v24, -inf }
 0x937   : > { %v3847_v48 = vsel %vm1162_vm4, %v7357_v33, -inf  ;;  %3845 = vmax.xlane.f32.xlu0 %v3844_v44  ;;  %v5933_v12 = vpop.f32.mrf.mxu1 }
 0x938   : > { %3848 = vmax.xlane.f32.xlu1 %v3847_v48  ;;  %v5939_v11 = vpop.f32.mrf.mxu0 }
 0x939   : > { %v3572_v30 = vpop.f32.mrf.mxu1 }
 0x93a   : > { %v3830_v51 = vmul.f32 0.25, %v3572_v30  ;;  %v3622_v52 = vpop.f32.mrf.mxu0 }
 0x93b   : > { %v3831_v39 = vmul.f32 0.25, %v3622_v52  ;;  %v5944_v40 = vpop.f32.mrf.mxu1 }
 0x93c   : > { %v3838_v37 = vadd.f32 %v3830_v51, %v6666_v3  ;;  %v5950_v42 = vpop.f32.mrf.mxu0 }
 0x93d   : > { %v3575_v34 = vpop.f32.mrf.mxu1  ;;  %v3839_v49 = vadd.f32 %v3831_v39, %v6676_v18 }
 0x93e   : > { %v3625_v62 = vpop.f32.mrf.mxu0  ;;  %v3850_v61 = vsel %vm1162_vm4, %v3838_v37, -inf }
 0x93f   : > { %3851 = vmax.xlane.f32.xlu0 %v3850_v61  ;;  %v5945_v14 = vpop.f32.mrf.mxu1  ;;  %v3853_v10 = vsel %vm1162_vm4, %v3839_v49, -inf }
 0x940   : > { %v5951_v63 = vpop.f32.mrf.mxu0 }
 0x941   : > { %v3672_v19 = vpop.f32.mrf.mxu1 }
 0x942   : > { %v3832_v58 = vmul.f32 0.25, %v3672_v19  ;;  %v3722_v6 = vpop.f32.mrf.mxu0 }
 0x943   : > { %v3833_v46 = vmul.f32 0.25, %v3722_v6  ;;  %3854 = vmax.xlane.f32.xlu0 %v3853_v10  ;;  %v5956_v44 = vpop.f32.mrf.mxu1 }
 0x944   : > { %v7368_v3 = vadd.f32 %v3832_v58, %v6688_v57  ;;  %v5962_v48 = vpop.f32.mrf.mxu0 }
 0x945   : > { %v7371_v18 = vadd.f32 %v3833_v46, %v6679_v27  ;;  %v3675_v12 = vpop.f32.mrf.mxu1 }
 0x946   : > { %v3725_v11 = vpop.f32.mrf.mxu0  ;;  %v3856_v30 = vsel %vm1162_vm4, %v7368_v3, -inf }
 0x947   : > { %v3859_v51 = vsel %vm1162_vm4, %v7371_v18, -inf  ;;  %3857 = vmax.xlane.f32.xlu1 %v3856_v30  ;;  %v5957_v52 = vpop.f32.mrf.mxu1 }
 0x948   : > { %v5963_v39 = vpop.f32.mrf.mxu0  ;;  %3860 = vmax.xlane.f32.xlu0 %v3859_v51 }
 0x949   : > { %v3772_v40 = vpop.f32.mrf.mxu1 }
 0x94a   : > { %v3834_v42 = vmul.f32 0.25, %v3772_v40  ;;  %v3822_v57 = vpop.f32.mrf.mxu0 }
 0x94b   : > { %v3835_v34 = vmul.f32 0.25, %v3822_v57  ;;  %v5968_v62 = vpop.f32.mrf.mxu1 }
 0x94c   : > { %v3842_v27 = vadd.f32 %v3834_v42, %v6699_v16  ;;  %v5974_v61 = vpop.f32.mrf.mxu0 }
 0x94d   : > { %v3843_v14 = vadd.f32 %v3835_v34, %v6685_v56  ;;  %v3775_v63 = vpop.f32.mrf.mxu1 }
 0x94e   : > { %v3825_v19 = vpop.f32.mrf.mxu0  ;;  %v3862_v58 = vsel %vm1162_vm4, %v3842_v27, -inf }
 0x94f   : > { %v3865_v6 = vsel %vm1162_vm4, %v3843_v14, -inf  ;;  %3863 = vmax.xlane.f32.xlu1 %v3862_v58  ;;  %v5969_v10 = vpop.f32.mrf.mxu1 }
 0x950   : > { %v5975_v46 = vpop.f32.mrf.mxu0  ;;  %3866 = vmax.xlane.f32.xlu0 %v3865_v6 }
 0x960   : > { %4036 = vrot.lane.b32.xlu1 %v6784_v8, %s6376_s21 }
 0x964   : > { %4084 = vrot.lane.b32.xlu1 %v6777_v1, %s6376_s21 }
 0x966   : > { %3988 = vrot.lane.b32.xlu0 %v6609_v15, %s6376_s21 }
 0x9c0   : > { %v3846_v56 = vpop.xlane.xlu0 %3845 }
 0x9c1   : > { %v3849_v16 = vpop.xlane.xlu1 %3848  ;;  %v3868_v44 = vsub.f32 %v7354_v24, %v3846_v56 }
 0x9c2   : > { %v3869_v48 = vsub.f32 %v7357_v33, %v3849_v16 }
 0x9c3   : > { %v3876_v12 = vmul.f32 1.442695, %v3868_v44 }
 0x9c4   : > { %v3878_v11 = vmul.f32 1.442695, %v3869_v48 }
 0x9c5   : > { %6283 = vpow2.f32 %v3876_v12 }
 0x9c6   : > { %6285 = vpow2.f32 %v3878_v11 }
 0x9c8   : > { %v3852_v30 = vpop.xlane.xlu0 %3851 }
 0x9c9   : > { %v3870_v51 = vsub.f32 %v3838_v37, %v3852_v30 }
 0x9cb   : > { %v3880_v52 = vmul.f32 1.442695, %v3870_v51  ;;  %v7856_v51 = vpack.i.bf16 %v7123_v47, %v7121_v4  ;;  %v7859_v4 = vpack.i.bf16 %v7129_v32, %v7127_v9 }
 0x9cc   : > { %v3855_v8 = vpop.xlane.xlu0 %3854 }
 0x9cd   : > { %6287 = vpow2.f32 %v3880_v52  ;;  %v3871_v39 = vsub.f32 %v3839_v49, %v3855_v8  ;;  %v7857_v52 = vpack.i.bf16 %v7135_v53, %v7133_v28 }
 0x9cf   : > { %v3882_v1 = vmul.f32 1.442695, %v3871_v39 }
 0x9d0   : > { %v3858_v19 = vpop.xlane.xlu1 %3857 }
 0x9d1   : > { %6289 = vpow2.f32 %v3882_v1  ;;  %v3861_v42 = vpop.xlane.xlu0 %3860  ;;  %v3872_v58 = vsub.f32 %v7368_v3, %v3858_v19 }
 0x9d2   : > { %v7389_v40 = vpop.eup %6283  ;;  %v3873_v10 = vsub.f32 %v7371_v18, %v3861_v42 }
 0x9d3   : > { %v7391_v15 = vpop.eup %6285  ;;  %v3892_v24 = vsel %vm1162_vm4, %v7389_v40, 0.0  ;;  %v3884_v46 = vmul.f32 1.442695, %v3872_v58 }
 0x9d4   : > { %v3895_v33 = vsel %vm1162_vm4, %v7391_v15, 0.0  ;;  %3893 = vadd.xlane.f32.xlu1 %v3892_v24  ;;  %v3886_v16 = vmul.f32 1.442695, %v3873_v10 }
 0x9d5   : > { %3896 = vadd.xlane.f32.xlu0 %v3895_v33  ;;  %6291 = vpow2.f32 %v3884_v46 }
 0x9d6   : > { %6293 = vpow2.f32 %v3886_v16 }
 0x9d8   : > { %v3864_v6 = vpop.xlane.xlu1 %3863 }
 0x9d9   : > { %v3867_v37 = vpop.xlane.xlu0 %3866  ;;  %v3874_v56 = vsub.f32 %v3842_v27, %v3864_v6 }
 0x9da   : > { %v7397_v57 = vpop.eup %6287  ;;  %v3875_v48 = vsub.f32 %v3843_v14, %v3867_v37 }
 0x9db   : > { %v3898_v49 = vsel %vm1162_vm4, %v7397_v57, 0.0  ;;  %v3888_v44 = vmul.f32 1.442695, %v3874_v56 }
 0x9dc   : > { %3899 = vadd.xlane.f32.xlu1 %v3898_v49  ;;  %v3890_v12 = vmul.f32 1.442695, %v3875_v48 }
 0x9dd   : > { %v3989_v34 = vpop.permute.xlu0 %3988  ;;  %6295 = vpow2.f32 %v3888_v44 }
 0x9de   : > { %v7401_v62 = vpop.eup %6289  ;;  %v3994_v61 = vsel %vm1262_vm3, %v3989_v34, 0  ;;  %6297 = vpow2.f32 %v3890_v12 }
 0x9df   : > { %5983 = vmatpush3.bf16.msra.mxu0 %v3994_v61  ;;  %v3901_v63 = vsel %vm1162_vm4, %v7401_v62, 0.0 }
 0x9e0   : > { %3902 = vadd.xlane.f32.xlu0 %v3901_v63  ;;  %5994 = vmatprep.subr.bf16.mxu0 %v7855_v20 }
 0x9ed   : > { %4180 = vrot.lane.b32.xlu1 %v6812_v26, %s6376_s21  ;;  %v7413_v26 = vpop.eup %6291 }
 0x9ee   : > { %v7415_v11 = vpop.eup %6293 }
 0x9ef   : > { %v7419_v3 = vpop.eup %6295  ;;  %v3907_v27 = vsel %vm1162_vm4, %v7415_v11, 0.0 }
 0x9f0   : > { %v3910_v18 = vsel %vm1162_vm4, %v7419_v3, 0.0  ;;  %v7425_v14 = vpop.eup %6297 }
 0x9f1   : > { %v3913_v30 = vsel %vm1162_vm4, %v7425_v14, 0.0 }
 0x9f6   : > { %4132 = vrot.lane.b32.xlu0 %v6806_v13, %s6376_s21  ;;  %v3904_v13 = vsel %vm1162_vm4, %v7413_v26, 0.0 }
 0xa11   : > { %3905 = vadd.xlane.f32.xlu1 %v3904_v13 }
 0xa15   : > { %3911 = vadd.xlane.f32.xlu1 %v3910_v18  ;;  %3908 = vadd.xlane.f32.xlu0 %v3907_v27 }
 0xa19   : > { %3914 = vadd.xlane.f32.xlu0 %v3913_v30  ;;  %v6172_v30 = vld [vmem:[%s7834_s4 + $0x10] sm:$0xff]  }
 0xa26   : > { %4276 = vrot.lane.b32.xlu1 %v6830_v35, %s6376_s21  ;;  %v7858_v35 = vpack.i.bf16 %v7115_v43, %v7117_v38 }
 0xa2a   : > { %6105 = vrot.lane.b32.xlu1 %v7856_v51, %s6375_s17 }
 0xa2e   : > { %6115 = vrot.lane.b32.xlu1 %v6114_v29, %s6373_s19 }
 0xa2f   : > { %4228 = vrot.lane.b32.xlu0 %v6846_v0, %s6376_s21  ;;  %v4037_v0 = vpop.permute.xlu1 %4036  ;;  %s484_s21 = scalar_lea.vmem %s7844_s14, %s5372_s25 }
 0xa30   : > { %v4042_v9 = vsel %vm1262_vm3, %v4037_v0, 0  ;;  %v6174_v0 = vld [vmem:[%s7834_s4] sm:$0xff]  }
 0xa32   : > { %6125 = vrot.lane.b32.xlu1 %v7857_v52, %s6375_s17 }
 0xa33   : > { %6100 = vrot.lane.b32.xlu0 %v7858_v35, %s6375_s17  ;;  %v4085_v47 = vpop.permute.xlu1 %4084 }
 0xa34   : > { %v4090_v32 = vsel %vm1262_vm3, %v4085_v47, 0 }
 0xa37   : > { %6110 = vrot.lane.b32.xlu0 %v6109_v54, %s6373_s19 }
 0xa3b   : > { %6120 = vrot.lane.b32.xlu0 %v7859_v4, %s6375_s17 }
 0xa5d   : > { %v3894_v2 = vpop.xlane.xlu1 %3893 }
 0xa5e   : > { %6299 = vrcp.f32 %v3894_v2  ;;  %v3897_v28 = vpop.xlane.xlu0 %3896 }
 0xa5f   : > { %6301 = vrcp.f32 %v3897_v28 }
 0xa65   : > { %v3900_v53 = vpop.xlane.xlu1 %3899 }
 0xa66   : > { %6303 = vrcp.f32 %v3900_v53 }
 0xa69   : > { %v3903_v43 = vpop.xlane.xlu0 %3902  ;;  %v4181_v42 = vpop.permute.xlu1 %4180 }
 0xa6a   : > { %6305 = vrcp.f32 %v3903_v43 }
 0xa6b   : > { %v6300_v38 = vpop.eup %6299 }
 0xa6c   : > { %v6302_v22 = vpop.eup %6301  ;;  %v3924_v31 = vmul.f32 %v6300_v38, %v7389_v40 }
 0xa6d   : > { %v3925_v45 = vmul.f32 %v6302_v22, %v7391_v15  ;;  %v4133_v1 = vpop.permute.xlu0 %4132 }
 0xa6e   : > { %v3932_v54 = vpack.c.bf16 %v3924_v31, %v3924_v31  ;;  %v4138_v33 = vsel %vm1262_vm3, %v4133_v1, 0 }
 0xa6f   : > { %v3933_v29 = vpack.c.bf16 %v3925_v45, %v3925_v45 }
 0xa70   : > { %5979 = vmatmul.mubr.msk.bf16.vlgmr.msra.gmra.mxu1 %vm1162_vm4, %v3932_v54 }
 0xa71   : > { %5985 = vmatmul.mubr.msk.bf16.vlgmr.msra.gmra.mxu0 %vm1162_vm4, %v3933_v29  ;;  %5989 = vmatpush3.bf16.msra.mxu1 %v4042_v9 }
 0xa72   : > { %5995 = vmatpush3.bf16.msra.mxu0 %v4090_v32  ;;  %5990 = vmatprep.mubr.msk.bf16.mxu1 %vm6368_vm1, %v7855_v20 }
 0xa73   : > { %v6304_v8 = vpop.eup %6303  ;;  %6000 = vmatprep.subr.bf16.mxu1 %v7855_v20  ;;  %5996 = vmatprep.mubr.msk.bf16.mxu0 %vm6368_vm1, %v7855_v20 }
 0xa74   : > { %v3926_v39 = vmul.f32 %v6304_v8, %v7397_v57  ;;  %6006 = vmatprep.subr.bf16.mxu0 %v7855_v20  ;;  %v4186_v57 = vsel %vm1262_vm3, %v4181_v42, 0 }
 0xa76   : > { %v3934_v40 = vpack.c.bf16 %v3926_v39, %v3926_v39 }
 0xa77   : > { %v6306_v15 = vpop.eup %6305 }
 0xa78   : > { %v3927_v24 = vmul.f32 %v6306_v15, %v7401_v62  ;;  %5991 = vmatmul.mubr.msk.bf16.vlgmr.msra.gmra.mxu1 %vm1162_vm4, %v3934_v40 }
 0xa79   : > { %6001 = vmatpush3.bf16.msra.mxu1 %v4138_v33  ;;  %6002 = vmatprep.mubr.msk.bf16.mxu1 %vm6368_vm1, %v7855_v20 }
 0xa7a   : > { %v3935_v37 = vpack.c.bf16 %v3927_v24, %v3927_v24  ;;  %6012 = vmatprep.subr.bf16.mxu1 %v7855_v20 }
 0xa7c   : > { %5997 = vmatmul.mubr.msk.bf16.vlgmr.msra.gmra.mxu0 %vm1162_vm4, %v3935_v37 }
 0xa7d   : > { %6007 = vmatpush3.bf16.msra.mxu0 %v4186_v57  ;;  %6008 = vmatprep.mubr.msk.bf16.mxu0 %vm6368_vm1, %v7855_v20 }
 0xa7e   : > { %6018 = vmatprep.subr.bf16.mxu0 %v7855_v20 }
 0xa9a   : > { %v3906_v49 = vpop.xlane.xlu1 %3905 }
 0xa9b   : > { %6307 = vrcp.f32 %v3906_v49 }
 0xa9e   : > { %v3912_v34 = vpop.xlane.xlu1 %3911  ;;  %v3909_v62 = vpop.xlane.xlu0 %3908 }
 0xa9f   : > { %6309 = vrcp.f32 %v3912_v34 }
 0xaa0   : > { %6311 = vrcp.f32 %v3909_v62 }
 0xaa2   : > { %v3915_v61 = vpop.xlane.xlu0 %3914  ;;  %v4277_v48 = vpop.permute.xlu1 %4276 }
 0xaa3   : > { %6313 = vrcp.f32 %v3915_v61 }
 0xaa6   : > { %v4229_v58 = vpop.permute.xlu0 %4228 }
 0xaa7   : > { %v4234_v56 = vsel %vm1262_vm3, %v4229_v58, 0 }
 0xaa8   : > { %v6308_v63 = vpop.eup %6307 }
 0xaa9   : > { %v3928_v19 = vmul.f32 %v6308_v63, %v7413_v26  ;;  %v4282_v26 = vsel %vm1262_vm3, %v4277_v48, 0  ;;  %v6106_v63 = vpop.permute.xlu1 %6105 }
 0xaab   : > { %v3936_v6 = vpack.c.bf16 %v3928_v19, %v3928_v19 }
 0xaac   : > { %v6310_v10 = vpop.eup %6309 }
 0xaad   : > { %v6312_v46 = vpop.eup %6311  ;;  %6003 = vmatmul.mubr.msk.bf16.vlgmr.msra.gmra.mxu1 %vm1162_vm4, %v3936_v6  ;;  %v3930_v44 = vmul.f32 %v6310_v10, %v7419_v3  ;;  %v6171_v3 = vld [vmem:[%s7834_s4 + $0x18] sm:$0xff]  }
 0xaae   : > { %v3929_v16 = vmul.f32 %v6312_v46, %v7415_v11  ;;  %6013 = vmatpush3.bf16.msra.mxu1 %v4234_v56  ;;  %6014 = vmatprep.mubr.msk.bf16.mxu1 %vm6368_vm1, %v7855_v20 }
 0xaaf   : > { %v3938_v18 = vpack.c.bf16 %v3930_v44, %v3930_v44  ;;  %6024 = vmatprep.subr.bf16.mxu1 %v6171_v3 }
 0xab0   : > { %v3937_v12 = vpack.c.bf16 %v3929_v16, %v3929_v16  ;;  %v6314_v13 = vpop.eup %6313  ;;  %v6116_v16 = vpop.permute.xlu1 %6115 }
 0xab1   : > { %v3931_v11 = vmul.f32 %v6314_v13, %v7425_v14 }
 0xab2   : > { %6009 = vmatmul.mubr.msk.bf16.vlgmr.msra.gmra.mxu0 %vm1162_vm4, %v3937_v12 }
 0xab3   : > { %6019 = vmatpush3.bf16.msra.mxu0 %v4282_v26  ;;  %6020 = vmatprep.mubr.msk.bf16.mxu0 %vm6368_vm1, %v7855_v20  ;;  %v3939_v27 = vpack.c.bf16 %v3931_v11, %v3931_v11  ;;  %v6173_v20 = vld [vmem:[%s7834_s4 + $0x8] sm:$0xff]  }
 0xab5   : > { %6015 = vmatmul.mubr.msk.bf16.vlgmr.msra.gmra.mxu1 %vm1162_vm4, %v3938_v18 }
 0xab6   : > { %6025 = vmatpush3.bf16.msra.mxu1 %v6171_v3 }
 0xab7   : > { %6026 = vmatprep.subr.bf16.mxu1 %v6172_v30 }
 0xaba   : > { %6021 = vmatmul.mubr.msk.bf16.vlgmr.msra.gmra.mxu0 %vm1162_vm4, %v3939_v27  ;;  %6027 = vmatpush3.bf16.msra.mxu1 %v6172_v30  ;;  %v6126_v30 = vpop.permute.xlu1 %6125 }
 0xabb   : > { %6028 = vmatprep.subr.bf16.mxu1 %v6173_v20 }
 0xabe   : > { %6029 = vmatpush3.bf16.msra.mxu1 %v6173_v20  ;;  %v6108_v20 = vunpack.i.h.bf16 %v6106_v63 }
 0xabf   : > { %6030 = vmatprep.subr.bf16.mxu1 %v6174_v0 }
 0xac2   : > { %6031 = vmatpush3.bf16.msra.mxu1 %v6174_v0 }
 0xb30   : > { %v3982_v14 = vpop.f32.mrf.mxu1 }
 0xb31   : > { %v4030_v51 = vpop.f32.mrf.mxu0 }
 0xb32   : > { %v6129_v52 = vpack.i.bf16 %v4030_v51, %v3982_v14  ;;  %v5980_v35 = vpop.f32.mrf.mxu1  ;;  %v6107_v14 = vunpack.i.l.bf16 %v6106_v63  ;;  %v6117_v51 = vunpack.i.l.bf16 %v6116_v16 }
 0xb33   : > { %v5986_v4 = vpop.f32.mrf.mxu0 }
 0xb34   : > { %6130 = vrot.lane.b32.xlu0 %v6129_v52, %s6371_s16  ;;  %v3985_v47 = vpop.f32.mrf.mxu1  ;;  %v4422_v35 = vsel %vm716_vm2, %v6905_v7, %v6107_v14 }
 0xb35   : > { %v4033_v2 = vpop.f32.mrf.mxu0  ;;  %v4431_v47 = vsel %vm4428_vm5, %v4422_v35, %v6117_v51 }
 0xb36   : > { %v5981_v28 = vpop.f32.mrf.mxu1 }
 0xb37   : > { %v5987_v53 = vpop.f32.mrf.mxu0 }
 0xb38   : > { %6135 = vrot.lane.b32.xlu0 %v6134_v55, %s6373_s19  ;;  %v4078_v43 = vpop.f32.mrf.mxu1 }
 0xb3a   : > { %v5992_v38 = vpop.f32.mrf.mxu1 }
 0xb3c   : > { %v4081_v22 = vpop.f32.mrf.mxu1  ;;  %v4126_v31 = vpop.f32.mrf.mxu0 }
 0xb3d   : > { %v6139_v45 = vpack.i.bf16 %v4126_v31, %v4078_v43 }
 0xb3e   : > { %v5993_v54 = vpop.f32.mrf.mxu1  ;;  %v5998_v29 = vpop.f32.mrf.mxu0 }
 0xb3f   : > { %6140 = vrot.lane.b32.xlu1 %v6139_v45, %s6371_s16 }
 0xb40   : > { %v4129_v9 = vpop.f32.mrf.mxu0 }
 0xb42   : > { %v5999_v32 = vpop.f32.mrf.mxu0 }
 0xb43   : > { %6145 = vrot.lane.b32.xlu1 %v6144_v36, %s6373_s19  ;;  %v6101_v36 = vpop.permute.xlu0 %6100 }
 0xb44   : > { %v6103_v58 = vunpack.i.h.bf16 %v6101_v36  ;;  %v6102_v6 = vunpack.i.l.bf16 %v6101_v36 }
 0xb46   : > { %v4421_v44 = vsel %vm716_vm2, %v6901_v17, %v6103_v58  ;;  %v4420_v48 = vsel %vm716_vm2, %v6903_v60, %v6102_v6  ;;  %v6118_v17 = vunpack.i.h.bf16 %v6116_v16  ;;  %v4423_v60 = vsel %vm716_vm2, %v6907_v59, %v6108_v20 }
 0xb47   : > { %v6111_v61 = vpop.permute.xlu0 %6110 }
 0xb48   : > { %v6113_v10 = vunpack.i.h.bf16 %v6111_v61  ;;  %v6112_v46 = vunpack.i.l.bf16 %v6111_v61  ;;  %v4432_v2 = vsel %vm4428_vm5, %v4423_v60, %v6118_v17 }
 0xb4a   : > { %v4429_v26 = vsel %vm4428_vm5, %v4420_v48, %v6112_v46  ;;  %v4430_v18 = vsel %vm4428_vm5, %v4421_v44, %v6113_v10  ;;  %v6350_v48 = vld [vmem:[%s6481_s15 + $0x10] sm:$0xff] }
 0xb4b   : > { %v6121_v19 = vpop.permute.xlu0 %6120 }
 0xb4c   : > { %v6123_v22 = vunpack.i.h.bf16 %v6121_v19  ;;  %v6122_v31 = vunpack.i.l.bf16 %v6121_v19  ;;  %v5451_v19 = vld [vmem:[%s7835_s5] ss:$0 sm:$0xff] }
 0xb4e   : > { %v4425_v7 = vsel %vm716_vm2, %v6909_v41, %v6123_v22  ;;  %v4424_v29 = vsel %vm716_vm2, %v6913_v50, %v6122_v31  ;;  %v7860_v50 = vld [vmem:[#allocation4_spill] sm:$0xff]  ;;  %v6355_v31 = vld [vmem:[%s6481_s15 + $0x28] sm:$0xff] }
 0xb6d   : > { %v4174_v8 = vpop.f32.mrf.mxu1 }
 0xb6f   : > { %v6004_v39 = vpop.f32.mrf.mxu1 }
 0xb71   : > { %v4177_v21 = vpop.f32.mrf.mxu1 }
 0xb72   : > { %v4222_v23 = vpop.f32.mrf.mxu0 }
 0xb73   : > { %v6149_v55 = vpack.i.bf16 %v4222_v23, %v4174_v8  ;;  %v6005_v1 = vpop.f32.mrf.mxu1 }
 0xb74   : > { %v6010_v40 = vpop.f32.mrf.mxu0 }
 0xb75   : > { %6150 = vrot.lane.b32.xlu0 %v6149_v55, %s6371_s16  ;;  %v4270_v15 = vpop.f32.mrf.mxu1  ;;  %v6128_v40 = vunpack.i.h.bf16 %v6126_v30 }
 0xb76   : > { %v4225_v24 = vpop.f32.mrf.mxu0 }
 0xb77   : > { %v6016_v33 = vpop.f32.mrf.mxu1 }
 0xb78   : > { %v6011_v42 = vpop.f32.mrf.mxu0 }
 0xb79   : > { %v4273_v37 = vpop.f32.mrf.mxu1  ;;  %v4427_v42 = vsel %vm716_vm2, %v7860_v50, %v6128_v40 }
 0xb7a   : > { %v4318_v57 = vpop.f32.mrf.mxu0  ;;  %v7861_v37 = vld [vmem:[#allocation5_spill] sm:$0xff] }
 0xb7b   : > { %v6154_v49 = vpack.i.bf16 %v4318_v57, %v4270_v15  ;;  %v6017_v34 = vpop.f32.mrf.mxu1  ;;  %v6127_v15 = vunpack.i.l.bf16 %v6126_v30 }
 0xb7c   : > { %v6022_v62 = vpop.f32.mrf.mxu0 }
 0xb7d   : > { %6155 = vrot.lane.b32.xlu1 %v6154_v49, %s6371_s16  ;;  %v4426_v57 = vsel %vm716_vm2, %v7861_v37, %v6127_v15 }
 0xb7e   : > { %v4321_v5 = vpop.f32.mrf.mxu0 }
 0xb80   : > { %v6023_v25 = vpop.f32.mrf.mxu0 }
 0xba6   : > { %v6131_v56 = vpop.permute.xlu0 %6130 }
 0xba7   : > { %v6133_v12 = vunpack.i.h.bf16 %v6131_v56  ;;  %v6132_v13 = vunpack.i.l.bf16 %v6131_v56  ;;  %v6349_v56 = vld [vmem:[%s6481_s15] sm:$0xff] }
 0xba9   : > { %v4438_v11 = vsel %vm4437_vm6, %v4429_v26, %v6132_v13  ;;  %v4439_v27 = vsel %vm4437_vm6, %v4430_v18, %v6133_v12 }
 0xbaa   : > { %v4446_v3 = vpack.c.bf16 %v4439_v27, %v4438_v11  ;;  %v6136_v38 = vpop.permute.xlu0 %6135  ;;  %v6351_v11 = vld [vmem:[%s6481_s15 + $0x8] sm:$0xff] }
 0xbab   : > { %v6138_v59 = vunpack.i.h.bf16 %v6136_v38  ;;  %v6137_v45 = vunpack.i.l.bf16 %v6136_v38 }
 0xbac   : > { %6032 = vmatprep.mubr.msk.bf16.mxu1 %vm558_vm0, %v4446_v3  ;;  %v6352_v3 = vld [vmem:[%s6481_s15 + $0x18] sm:$0xff] }
 0xbad   : > { %v4433_v8 = vsel %vm4428_vm5, %v4424_v29, %v6137_v45  ;;  %v4434_v39 = vsel %vm4428_vm5, %v4425_v7, %v6138_v59  ;;  %v6356_v45 = vld [vmem:[%s6481_s15 + $0x38] sm:$0xff] }
 0xbb1   : > { %v6141_v52 = vpop.permute.xlu1 %6140 }
 0xbb2   : > { %v6143_v4 = vunpack.i.h.bf16 %v6141_v52  ;;  %v6142_v0 = vunpack.i.l.bf16 %v6141_v52 }
 0xbb4   : > { %v4441_v28 = vsel %vm4437_vm6, %v4432_v2, %v6143_v4  ;;  %v4440_v53 = vsel %vm4437_vm6, %v4431_v47, %v6142_v0  ;;  %v6353_v0 = vld [vmem:[%s6481_s15 + $0x20] sm:$0xff] }
 0xbb5   : > { %v4447_v43 = vpack.c.bf16 %v4441_v28, %v4440_v53  ;;  %v6146_v21 = vpop.permute.xlu1 %6145  ;;  %v6354_v28 = vld [vmem:[%s6481_s15 + $0x30] sm:$0xff] }
 0xbb6   : > { %v6148_v24 = vunpack.i.h.bf16 %v6146_v21  ;;  %v6147_v33 = vunpack.i.l.bf16 %v6146_v21 }
 0xbb7   : > { %6033 = vmatmul.mubr.msk.bf16.vlgmr.msra.gmra.mxu1 %vm558_vm0, %v4447_v43 }
 0xbb8   : > { %v4436_v62 = vsel %vm4428_vm5, %v4427_v42, %v6148_v24  ;;  %v4435_v5 = vsel %vm4428_vm5, %v4426_v57, %v6147_v33 }
 0xbe7   : > { %v6151_v54 = vpop.permute.xlu0 %6150 }
 0xbe8   : > { %v6153_v9 = vunpack.i.h.bf16 %v6151_v54  ;;  %v6152_v32 = vunpack.i.l.bf16 %v6151_v54 }
 0xbea   : > { %v4442_v23 = vsel %vm4437_vm6, %v4433_v8, %v6152_v32  ;;  %v4443_v55 = vsel %vm4437_vm6, %v4434_v39, %v6153_v9 }
 0xbeb   : > { %v4448_v1 = vpack.c.bf16 %v4443_v55, %v4442_v23 }
 0xbed   : > { %6036 = vmatprep.mubr.msk.bf16.mxu1 %vm558_vm0, %v4448_v1 }
 0xbef   : > { %v6156_v41 = vpop.permute.xlu1 %6155 }
 0xbf0   : > { %v6158_v49 = vunpack.i.h.bf16 %v6156_v41  ;;  %v6157_v34 = vunpack.i.l.bf16 %v6156_v41 }
 0xbf2   : > { %v4445_v25 = vsel %vm4437_vm6, %v4436_v62, %v6158_v49  ;;  %v4444_v36 = vsel %vm4437_vm6, %v4435_v5, %v6157_v34 }
 0xbf3   : > { %v4449_v61 = vpack.c.bf16 %v4445_v25, %v4444_v36  ;;  %v6175_v25 = vld [vmem:[%s7838_s8 + $0x18] sm:$0xff]   ;;  %v6176_v36 = vld [vmem:[%s7838_s8 + $0x10] sm:$0xff]  }
 0xbf4   : > { %6040 = vmatprep.subr.bf16.mxu0 %v6175_v25 }
 0xbf5   : > { %6037 = vmatmul.mubr.msk.bf16.gmra.mxu1 %vm558_vm0, %v4449_v61  ;;  %6041 = vmatpush3.bf16.msra.mxu0 %v6175_v25  ;;  %v6177_v61 = vld [vmem:[%s7838_s8 + $0x8] sm:$0xff]  }
 0xbf6   : > { %6042 = vmatprep.subr.bf16.mxu0 %v6176_v36 }
 0xbf9   : > { %6043 = vmatpush3.bf16.msra.mxu0 %v6176_v36 }
 0xbfa   : > { %6044 = vmatprep.subr.bf16.mxu0 %v6177_v61 }
 0xbfd   : > { %6045 = vmatpush3.bf16.msra.mxu0 %v6177_v61 }
 0xc77   : > { %v6034_v63 = vpop.f32.mrf.mxu1 }
 0xc78   : > { %v4544_v6 = vadd.f32 %v6034_v63, %v5451_v19  ;;  %v6178_v63 = vld [vmem:[%s7838_s8] sm:$0xff]  }
 0xc79   : > { %v4535_v58 = vpop.f32.mrf.mxu1  ;;  %6046 = vmatprep.subr.bf16.mxu0 %v6178_v63 }
 0xc7a   : > { %v4536_v10 = vadd.f32 %v5451_v19, %v4535_v58  ;;  %v4568_v12 = vadd.f32 %v6350_v48, %v4544_v6  ;;  %6047 = vmatpush3.bf16.msra.mxu0 %v6178_v63 }
 0xc7b   : > { %v6035_v46 = vpop.f32.mrf.mxu1 }
 0xc7c   : > { %v4566_v16 = vadd.f32 %v6349_v56, %v4536_v10  ;;  %v4547_v13 = vadd.f32 %v6035_v46, %v5451_v19  ;;  %v4582_v14 = vsel %vm558_vm0, %v4568_v12, 0.0 }
 0xc7d   : > { %v4538_v44 = vpop.f32.mrf.mxu1 }
 0xc7e   : > { %v4539_v26 = vadd.f32 %v5451_v19, %v4538_v44  ;;  %v4576_v18 = vsel %vm558_vm0, %v4566_v16, 0.0  ;;  %v4569_v30 = vadd.f32 %v6352_v3, %v4547_v13 }
 0xc7f   : > { %4577 = vadd.xlane.f32.xlu0 %v4576_v18 }
 0xc80   : > { %v4567_v27 = vadd.f32 %v6351_v11, %v4539_v26  ;;  %v4585_v17 = vsel %vm558_vm0, %v4569_v30, 0.0 }
 0xc82   : > { %v4579_v20 = vsel %vm558_vm0, %v4567_v27, 0.0 }
 0xc83   : > { %4580 = vadd.xlane.f32.xlu1 %v4579_v20  ;;  %4583 = vadd.xlane.f32.xlu0 %v4582_v14 }
 0xc87   : > { %4586 = vadd.xlane.f32.xlu0 %v4585_v17 }
 0xcb5   : > { %v6038_v51 = vpop.f32.mrf.mxu1 }
 0xcb6   : > { %v4560_v60 = vadd.f32 %v6038_v51, %v5451_v19  ;;  %v6179_v51 = vld [vmem:[%s7840_s10 + $0x38] sm:$0xff]  }
 0xcb7   : > { %v4551_v52 = vpop.f32.mrf.mxu1  ;;  %6056 = vmatprep.subr.bf16.mxu1 %v6179_v51 }
 0xcb8   : > { %v4552_v35 = vadd.f32 %v5451_v19, %v4551_v52  ;;  %v4572_v53 = vadd.f32 %v6354_v28, %v4560_v60  ;;  %v6180_v52 = vld [vmem:[%s7840_s10 + $0x30] sm:$0xff]   ;;  %6057 = vmatpush3.bf16.msra.mxu1 %v6179_v51  ;;  %v6181_v60 = vld [vmem:[%s7840_s10 + $0x28] sm:$0xff]  }
 0xcb9   : > { %v6039_v4 = vpop.f32.mrf.mxu1  ;;  %6058 = vmatprep.subr.bf16.mxu1 %v6180_v52 }
 0xcba   : > { %v4570_v47 = vadd.f32 %v6353_v0, %v4552_v35  ;;  %v4563_v43 = vadd.f32 %v6039_v4, %v5451_v19  ;;  %v4594_v7 = vsel %vm558_vm0, %v4572_v53, 0.0  ;;  %v6182_v35 = vld [vmem:[%s7840_s10 + $0x20] sm:$0xff]   ;;  %v6183_v4 = vld [vmem:[%s7840_s10 + $0x18] sm:$0xff]  }
 0xcbb   : > { %v4554_v2 = vpop.f32.mrf.mxu1 }
 0xcbc   : > { %v4555_v38 = vadd.f32 %v5451_v19, %v4554_v2  ;;  %v4588_v22 = vsel %vm558_vm0, %v4570_v47, 0.0  ;;  %v4573_v54 = vadd.f32 %v6356_v45, %v4563_v43  ;;  %6059 = vmatpush3.bf16.msra.mxu1 %v6180_v52 }
 0xcbd   : > { %4589 = vadd.xlane.f32.xlu1 %v4588_v22  ;;  %6060 = vmatprep.subr.bf16.mxu1 %v6181_v60 }
 0xcbe   : > { %v4571_v59 = vadd.f32 %v6355_v31, %v4555_v38  ;;  %v4597_v9 = vsel %vm558_vm0, %v4573_v54, 0.0 }
 0xcc0   : > { %v4591_v29 = vsel %vm558_vm0, %v4571_v59, 0.0  ;;  %6061 = vmatpush3.bf16.msra.mxu1 %v6181_v60 }
 0xcc1   : > { %4595 = vadd.xlane.f32.xlu1 %v4594_v7  ;;  %4592 = vadd.xlane.f32.xlu0 %v4591_v29 }
 0xcc2   : > { %6062 = vmatprep.subr.bf16.mxu1 %v6182_v35 }
 0xcc4   : > { %6063 = vmatpush3.bf16.msra.mxu1 %v6182_v35 }
 0xcc5   : > { %4598 = vadd.xlane.f32.xlu0 %v4597_v9  ;;  %6064 = vmatprep.subr.bf16.mxu1 %v6183_v4  ;;  %v5460_v9 = vld [vmem:[%s7836_s6] ss:$0 sm:$0xff] }
 0xcc8   : > { %6065 = vmatpush3.bf16.msra.mxu1 %v6183_v4 }
 0xd08   : > { %v4578_v32 = vpop.xlane.xlu0 %4577 }
 0xd09   : > { %v4601_v8 = vmul.f32 0.015625, %v4578_v32 }
 0xd0b   : > { %v7574_v39 = vsub.f32 %v4566_v16, %v4601_v8 }
 0xd0c   : > { %v4581_v21 = vpop.xlane.xlu1 %4580  ;;  %v4584_v23 = vpop.xlane.xlu0 %4583 }
 0xd0d   : > { %v4602_v55 = vmul.f32 0.015625, %v4581_v21  ;;  %v4603_v1 = vmul.f32 0.015625, %v4584_v23  ;;  %v4617_v40 = vmul.f32 %v7574_v39, %v7574_v39 }
 0xd0f   : > { %v7578_v15 = vsub.f32 %v4567_v27, %v4602_v55  ;;  %v7580_v24 = vsub.f32 %v4568_v12, %v4603_v1  ;;  %v4625_v33 = vsel %vm558_vm0, %v4617_v40, 0.0  ;;  %v5461_v1 = vld [vmem:[%s7837_s7] ss:$0 sm:$0xff] }
 0xd10   : > { %4626 = vadd.xlane.f32.xlu1 %v4625_v33  ;;  %v4587_v41 = vpop.xlane.xlu0 %4586 }
 0xd11   : > { %v4604_v50 = vmul.f32 0.015625, %v4587_v41  ;;  %v4618_v42 = vmul.f32 %v7578_v15, %v7578_v15  ;;  %v4619_v37 = vmul.f32 %v7580_v24, %v7580_v24 }
 0xd13   : > { %v7587_v57 = vsub.f32 %v4569_v30, %v4604_v50  ;;  %v4628_v49 = vsel %vm558_vm0, %v4618_v42, 0.0  ;;  %v4631_v34 = vsel %vm558_vm0, %v4619_v37, 0.0 }
 0xd14   : > { %4629 = vadd.xlane.f32.xlu0 %v4628_v49  ;;  %4632 = vadd.xlane.f32.xlu1 %v4631_v34 }
 0xd15   : > { %v4620_v62 = vmul.f32 %v7587_v57, %v7587_v57 }
 0xd17   : > { %v4634_v5 = vsel %vm558_vm0, %v4620_v62, 0.0 }
 0xd18   : > { %4635 = vadd.xlane.f32.xlu0 %v4634_v5 }
 0xd46   : > { %v4590_v19 = vpop.xlane.xlu1 %4589 }
 0xd47   : > { %v4605_v58 = vmul.f32 0.015625, %v4590_v19 }
 0xd49   : > { %v7606_v6 = vsub.f32 %v4570_v47, %v4605_v58 }
 0xd4a   : > { %v4596_v10 = vpop.xlane.xlu1 %4595  ;;  %v4593_v46 = vpop.xlane.xlu0 %4592 }
 0xd4b   : > { %v4607_v56 = vmul.f32 0.015625, %v4596_v10  ;;  %v4606_v16 = vmul.f32 0.015625, %v4593_v46  ;;  %v4621_v44 = vmul.f32 %v7606_v6, %v7606_v6 }
 0xd4d   : > { %v7610_v48 = vsub.f32 %v4572_v53, %v4607_v56  ;;  %v7612_v12 = vsub.f32 %v4571_v59, %v4606_v16  ;;  %v4637_v13 = vsel %vm558_vm0, %v4621_v44, 0.0 }
 0xd4e   : > { %4638 = vadd.xlane.f32.xlu1 %v4637_v13  ;;  %v4599_v26 = vpop.xlane.xlu0 %4598 }
 0xd4f   : > { %v4608_v18 = vmul.f32 0.015625, %v4599_v26  ;;  %v4623_v11 = vmul.f32 %v7610_v48, %v7610_v48  ;;  %v4622_v27 = vmul.f32 %v7612_v12, %v7612_v12 }
 0xd51   : > { %v7619_v3 = vsub.f32 %v4573_v54, %v4608_v18  ;;  %v4643_v30 = vsel %vm558_vm0, %v4623_v11, 0.0  ;;  %v4640_v20 = vsel %vm558_vm0, %v4622_v27, 0.0 }
 0xd52   : > { %4644 = vadd.xlane.f32.xlu1 %v4643_v30  ;;  %4641 = vadd.xlane.f32.xlu0 %v4640_v20 }
 0xd53   : > { %v4624_v14 = vmul.f32 %v7619_v3, %v7619_v3 }
 0xd55   : > { %v4646_v17 = vsel %vm558_vm0, %v4624_v14, 0.0 }
 0xd56   : > { %4647 = vadd.xlane.f32.xlu0 %v4646_v17 }
 0xd99   : > { %v4627_v0 = vpop.xlane.xlu1 %4626 }
 0xd9a   : > { %v4649_v47 = vmul.f32 0.015625, %v4627_v0  ;;  %v6186_v0 = vld [vmem:[%s7840_s10] sm:$0xff]  }
 0xd9c   : > { %v4657_v2 = vadd.f32 1e-05, %v4649_v47 }
 0xd9d   : > { %v4633_v28 = vpop.xlane.xlu1 %4632  ;;  %v4630_v53 = vpop.xlane.xlu0 %4629 }
 0xd9e   : > { %6315 = vrsqrt.f32 %v4657_v2  ;;  %v4651_v43 = vmul.f32 0.015625, %v4633_v28  ;;  %v4650_v38 = vmul.f32 0.015625, %v4630_v53  ;;  %v5462_v28 = vld [vmem:[%s7839_s9] ss:$0 sm:$0xff] }
 0xda0   : > { %v4659_v22 = vadd.f32 1e-05, %v4651_v43  ;;  %v4658_v31 = vadd.f32 1e-05, %v4650_v38 }
 0xda1   : > { %v4636_v59 = vpop.xlane.xlu0 %4635 }
 0xda2   : > { %6317 = vrsqrt.f32 %v4659_v22  ;;  %v4652_v45 = vmul.f32 0.015625, %v4636_v59 }
 0xda3   : > { %6319 = vrsqrt.f32 %v4658_v31 }
 0xda4   : > { %v4660_v54 = vadd.f32 1e-05, %v4652_v45 }
 0xda6   : > { %6321 = vrsqrt.f32 %v4660_v54 }
 0xdab   : > { %v6316_v7 = vpop.eup %6315 }
 0xdac   : > { %v4673_v29 = vmul.f32 %v6316_v7, %v7574_v39 }
 0xdae   : > { %v4687_v55 = vmul.f32 %v5460_v9, %v4673_v29 }
 0xdaf   : > { %v6318_v32 = vpop.eup %6317 }
 0xdb0   : > { %v6320_v8 = vpop.eup %6319  ;;  %v4675_v21 = vmul.f32 %v6318_v32, %v7580_v24  ;;  %v7651_v50 = vadd.f32 %v5461_v1, %v4687_v55 }
 0xdb1   : > { %v4674_v23 = vmul.f32 %v6320_v8, %v7578_v15 }
 0xdb2   : > { %v4689_v41 = vmul.f32 %v5460_v9, %v4675_v21 }
 0xdb3   : > { %v6322_v40 = vpop.eup %6321  ;;  %v4688_v33 = vmul.f32 %v5460_v9, %v4674_v23 }
 0xdb4   : > { %v4676_v39 = vmul.f32 %v6322_v40, %v7587_v57  ;;  %v7657_v49 = vadd.f32 %v5461_v1, %v4689_v41 }
 0xdb5   : > { %v7653_v42 = vadd.f32 %v5461_v1, %v4688_v33 }
 0xdb6   : > { %v4690_v37 = vmul.f32 %v5460_v9, %v4676_v39 }
 0xdb7   : > { %v4709_v24 = vpack.c.bf16 %v7653_v42, %v7651_v50 }
 0xdb8   : > { %v7659_v15 = vadd.f32 %v5461_v1, %v4690_v37 }
 0xdb9   : > { %6048 = vmatprep.mubr.msk.bf16.mxu0 %vm558_vm0, %v4709_v24 }
 0xdba   : > { %v4710_v34 = vpack.c.bf16 %v7659_v15, %v7657_v49 }
 0xdbc   : > { %6049 = vmatmul.mubr.msk.bf16.vlgmr.msra.gmra.mxu0 %vm558_vm0, %v4710_v34 }
 0xdd7   : > { %v4639_v57 = vpop.xlane.xlu1 %4638 }
 0xdd8   : > { %v4653_v62 = vmul.f32 0.015625, %v4639_v57 }
 0xdda   : > { %v4661_v5 = vadd.f32 1e-05, %v4653_v62 }
 0xddb   : > { %v4645_v25 = vpop.xlane.xlu1 %4644  ;;  %v4642_v36 = vpop.xlane.xlu0 %4641 }
 0xddc   : > { %6323 = vrsqrt.f32 %v4661_v5  ;;  %v4655_v61 = vmul.f32 0.015625, %v4645_v25  ;;  %v4654_v63 = vmul.f32 0.015625, %v4642_v36  ;;  %v5471_v5 = vld [vmem:[%s7841_s11] ss:$0 sm:$0xff] }
 0xdde   : > { %v4663_v19 = vadd.f32 1e-05, %v4655_v61  ;;  %v4662_v58 = vadd.f32 1e-05, %v4654_v63 }
 0xddf   : > { %v4648_v10 = vpop.xlane.xlu0 %4647 }
 0xde0   : > { %6325 = vrsqrt.f32 %v4663_v19  ;;  %v4656_v46 = vmul.f32 0.015625, %v4648_v10 }
 0xde1   : > { %6327 = vrsqrt.f32 %v4662_v58 }
 0xde2   : > { %v4664_v56 = vadd.f32 1e-05, %v4656_v46 }
 0xde4   : > { %6329 = vrsqrt.f32 %v4664_v56 }
 0xde9   : > { %v6324_v16 = vpop.eup %6323 }
 0xdea   : > { %v4677_v44 = vmul.f32 %v6324_v16, %v7606_v6 }
 0xdec   : > { %v4691_v27 = vmul.f32 %v5460_v9, %v4677_v44 }
 0xded   : > { %v6326_v13 = vpop.eup %6325 }
 0xdee   : > { %v6328_v26 = vpop.eup %6327  ;;  %v4679_v18 = vmul.f32 %v6326_v13, %v7610_v48  ;;  %v7669_v51 = vadd.f32 %v5461_v1, %v4691_v27 }
 0xdef   : > { %v4678_v11 = vmul.f32 %v6328_v26, %v7612_v12  ;;  %v6184_v12 = vld [vmem:[%s7840_s10 + $0x10] sm:$0xff]  }
 0xdf0   : > { %v4693_v17 = vmul.f32 %v5460_v9, %v4679_v18  ;;  %6066 = vmatprep.subr.bf16.mxu1 %v6184_v12 }
 0xdf1   : > { %v6330_v30 = vpop.eup %6329  ;;  %v4692_v20 = vmul.f32 %v5460_v9, %v4678_v11  ;;  %6067 = vmatpush3.bf16.msra.mxu1 %v6184_v12 }
 0xdf2   : > { %v4680_v14 = vmul.f32 %v6330_v30, %v7619_v3  ;;  %v7675_v35 = vadd.f32 %v5461_v1, %v4693_v17  ;;  %v6185_v3 = vld [vmem:[%s7840_s10 + $0x8] sm:$0xff]  }
 0xdf3   : > { %v7671_v52 = vadd.f32 %v5461_v1, %v4692_v20  ;;  %6068 = vmatprep.subr.bf16.mxu1 %v6185_v3 }
 0xdf4   : > { %v4694_v60 = vmul.f32 %v5460_v9, %v4680_v14 }
 0xdf5   : > { %v4711_v6 = vpack.c.bf16 %v7671_v52, %v7669_v51  ;;  %6069 = vmatpush3.bf16.msra.mxu1 %v6185_v3 }
 0xdf6   : > { %v7677_v4 = vadd.f32 %v5461_v1, %v4694_v60  ;;  %6070 = vmatprep.subr.bf16.mxu1 %v6186_v0 }
 0xdf7   : > { %6052 = vmatprep.mubr.msk.bf16.mxu0 %vm558_vm0, %v4711_v6 }
 0xdf8   : > { %v4712_v48 = vpack.c.bf16 %v7677_v4, %v7675_v35 }
 0xdf9   : > { %6071 = vmatpush3.bf16.msra.mxu1 %v6186_v0 }
 0xdfa   : > { %6053 = vmatmul.mubr.msk.bf16.gmra.mxu0 %vm558_vm0, %v4712_v48 }
 0xe7c   : > { %v6050_v47 = vpop.f32.mrf.mxu0 }
 0xe7d   : > { %v4807_v22 = vadd.f32 %v6050_v47, %v5462_v28 }
 0xe7e   : > { %v4798_v2 = vpop.f32.mrf.mxu0 }
 0xe7f   : > { %v4799_v43 = vadd.f32 %v5462_v28, %v4798_v2  ;;  %v4831_v29 = vmax.f32 %v4807_v22, 0.0  ;;  %v7714_v2 = vld [vmem:[%s6645_s28] sm:$0xff] }
 0xe80   : > { %v6051_v53 = vpop.f32.mrf.mxu0 }
 0xe81   : > { %v4810_v38 = vadd.f32 %v6051_v53, %v5462_v28  ;;  %v4829_v54 = vmax.f32 %v4799_v43, 0.0 }
 0xe82   : > { %v4801_v31 = vpop.f32.mrf.mxu0 }
 0xe83   : > { %v4802_v59 = vadd.f32 %v5462_v28, %v4801_v31  ;;  %v4832_v45 = vmax.f32 %v4810_v38, 0.0 }
 0xe85   : > { %v4830_v7 = vmax.f32 %v4802_v59, 0.0  ;;  %v4838_v32 = vpack.c.bf16 %v4832_v45, %v4831_v29 }
 0xe87   : > { %v4837_v9 = vpack.c.bf16 %v4830_v7, %v4829_v54 }
 0xe89   : > { %6072 = vmatprep.mubr.bf16.mxu1 %v4837_v9 }
 0xe8a   : > { %6073 = vmatmul.mubr.bf16.vlgmr.msra.gmra.mxu1 %v4838_v32 }
 0xeba   : > { %v6054_v8 = vpop.f32.mrf.mxu0 }
 0xebb   : > { %v4823_v40 = vadd.f32 %v6054_v8, %v5462_v28 }
 0xebc   : > { %v4814_v21 = vpop.f32.mrf.mxu0 }
 0xebd   : > { %v4815_v55 = vadd.f32 %v5462_v28, %v4814_v21  ;;  %v4835_v34 = vmax.f32 %v4823_v40, 0.0 }
 0xebe   : > { %v6055_v23 = vpop.f32.mrf.mxu0 }
 0xebf   : > { %v4826_v1 = vadd.f32 %v6055_v23, %v5462_v28  ;;  %v4833_v37 = vmax.f32 %v4815_v55, 0.0 }
 0xec0   : > { %v4817_v33 = vpop.f32.mrf.mxu0 }
 0xec1   : > { %v4818_v41 = vadd.f32 %v5462_v28, %v4817_v33  ;;  %v4836_v39 = vmax.f32 %v4826_v1, 0.0  ;;  %v7862_v28 = vld [vmem:[#allocation2_spill] sm:$0xff] }
 0xec2   : > { %v5136_v53 = vsub.s32 2, %v7862_v28  ;;  %v7864_v38 = vsub.s32 1, %v7862_v28 }
 0xec3   : > { %v4834_v24 = vmax.f32 %v4818_v41, 0.0  ;;  %v4840_v62 = vpack.c.bf16 %v4836_v39, %v4835_v34 }
 0xec4   : > { %v5130_v22 = vrot.slane %v7714_v2, %v7864_v38 }
 0xec5   : > { %v4839_v57 = vpack.c.bf16 %v4834_v24, %v4833_v37 }
 0xec7   : > { %6076 = vmatprep.mubr.bf16.mxu1 %v4839_v57 }
 0xec8   : > { %6077 = vmatmul.mubr.bf16.gmra.mxu1 %v4840_v62 }
 0xf4a   : > { %v6074_v25 = vpop.f32.mrf.mxu1 }
 0xf4b   : > { %v4955_v36 = vadd.f32 %v6074_v25, %v5471_v5 }
 0xf4c   : > { %v4946_v61 = vpop.f32.mrf.mxu1 }
 0xf4d   : > { %v4979_v63 = vadd.f32 %v4955_v36, %v7657_v49  ;;  %v4947_v19 = vadd.f32 %v5471_v5, %v4946_v61 }
 0xf4e   : > { %v6075_v58 = vpop.f32.mrf.mxu1 }
 0xf4f   : > { %v4977_v10 = vadd.f32 %v4947_v19, %v7651_v50  ;;  %v4958_v46 = vadd.f32 %v6075_v58, %v5471_v5  ;;  %v4993_v56 = vsel %vm558_vm0, %v4979_v63, 0.0 }
 0xf50   : > { %4994 = vadd.xlane.f32.xlu0 %v4993_v56  ;;  %v4949_v16 = vpop.f32.mrf.mxu1 }
 0xf51   : > { %v4980_v44 = vadd.f32 %v4958_v46, %v7659_v15  ;;  %v4950_v13 = vadd.f32 %v5471_v5, %v4949_v16  ;;  %v4987_v26 = vsel %vm558_vm0, %v4977_v10, 0.0 }
 0xf52   : > { %4988 = vadd.xlane.f32.xlu1 %v4987_v26 }
 0xf53   : > { %v4978_v18 = vadd.f32 %v4950_v13, %v7653_v42  ;;  %v4996_v11 = vsel %vm558_vm0, %v4980_v44, 0.0 }
 0xf54   : > { %4997 = vadd.xlane.f32.xlu0 %v4996_v11 }
 0xf55   : > { %v4990_v49 = vsel %vm558_vm0, %v4978_v18, 0.0 }
 0xf56   : > { %4991 = vadd.xlane.f32.xlu1 %v4990_v49 }
 0xf88   : > { %v6078_v50 = vpop.f32.mrf.mxu1 }
 0xf89   : > { %v4971_v30 = vadd.f32 %v6078_v50, %v5471_v5 }
 0xf8a   : > { %v4962_v27 = vpop.f32.mrf.mxu1 }
 0xf8b   : > { %v4963_v20 = vadd.f32 %v5471_v5, %v4962_v27  ;;  %v4983_v60 = vadd.f32 %v4971_v30, %v7675_v35  ;;  %v5150_v27 = vsub.s32 4, %v7862_v28 }
 0xf8c   : > { %v6079_v14 = vpop.f32.mrf.mxu1 }
 0xf8d   : > { %v4981_v15 = vadd.f32 %v4963_v20, %v7669_v51  ;;  %v4974_v6 = vadd.f32 %v6079_v14, %v5471_v5  ;;  %v5005_v47 = vsel %vm558_vm0, %v4983_v60, 0.0  ;;  %v5240_v51 = vsel %vm1162_vm4, %v7714_v2, 0.0 }
 0xf8e   : > { %v4965_v17 = vpop.f32.mrf.mxu1  ;;  %v5151_v30 = vrot.slane %v7714_v2, %v5150_v27  ;;  %v5164_v20 = vsub.s32 6, %v7862_v28 }
 0xf8f   : > { %v4966_v48 = vadd.f32 %v5471_v5, %v4965_v17  ;;  %v4999_v42 = vsel %vm558_vm0, %v4981_v15, 0.0  ;;  %v4984_v3 = vadd.f32 %v4974_v6, %v7677_v4  ;;  %v7863_v4 = vld [vmem:[#allocation3_spill] sm:$0xff] }
 0xf90   : > { %5000 = vadd.xlane.f32.xlu1 %v4999_v42  ;;  %v5123_v43 = vrot.slane %v7714_v2, %v7863_v4  ;;  %v5165_v14 = vrot.slane %v7714_v2, %v5164_v20 }
 0xf91   : > { %v4982_v12 = vadd.f32 %v4966_v48, %v7671_v52  ;;  %v5008_v35 = vsel %vm558_vm0, %v4984_v3, 0.0  ;;  %v5137_v52 = vrot.slane %v7714_v2, %v5136_v53  ;;  %v5171_v48 = vsub.s32 7, %v7862_v28 }
 0xf93   : > { %v5002_v0 = vsel %vm558_vm0, %v4982_v12, 0.0  ;;  %v5172_v42 = vrot.slane %v7714_v2, %v5171_v48 }
 0xf94   : > { %5003 = vadd.xlane.f32.xlu0 %v5002_v0  ;;  %5006 = vadd.xlane.f32.xlu1 %v5005_v47 }
 0xf98   : > { %5009 = vadd.xlane.f32.xlu0 %v5008_v35  ;;  %5241 = vadd.xlane.f32.xlu1 %v5240_v51 }
 0xfa9   : > { %5139 = vbcast.lane.b32.xlu1 %v5137_v52, 256 }
 0xfad   : > { %5125 = vbcast.lane.b32.xlu1 %v5123_v43, 256 }
 0xfae   : > { %5132 = vbcast.lane.b32.xlu0 %v5130_v22, 256 }
 0xfd9   : > { %v4995_v31 = vpop.xlane.xlu0 %4994 }
 0xfda   : > { %v5013_v59 = vmul.f32 0.015625, %v4995_v31 }
 0xfdb   : > { %v4989_v45 = vpop.xlane.xlu1 %4988 }
 0xfdc   : > { %v7726_v54 = vsub.f32 %v4979_v63, %v5013_v59  ;;  %v5011_v7 = vmul.f32 0.015625, %v4989_v45 }
 0xfdd   : > { %v4998_v29 = vpop.xlane.xlu0 %4997 }
 0xfde   : > { %v7728_v9 = vsub.f32 %v4977_v10, %v5011_v7  ;;  %v5014_v32 = vmul.f32 0.015625, %v4998_v29  ;;  %v5029_v8 = vmul.f32 %v7726_v54, %v7726_v54 }
 0xfdf   : > { %v4992_v21 = vpop.xlane.xlu1 %4991 }
 0xfe0   : > { %v7732_v23 = vsub.f32 %v4980_v44, %v5014_v32  ;;  %v5012_v55 = vmul.f32 0.015625, %v4992_v21  ;;  %v5041_v1 = vsel %vm558_vm0, %v5029_v8, 0.0  ;;  %v5027_v40 = vmul.f32 %v7728_v9, %v7728_v9  ;;  %v7782_v8 = vld [vmem:[%s7842_s12] ss:$0 sm:$0xff] }
 0xfe1   : > { %5042 = vadd.xlane.f32.xlu0 %v5041_v1 }
 0xfe2   : > { %v7737_v33 = vsub.f32 %v4978_v18, %v5012_v55  ;;  %v5035_v41 = vsel %vm558_vm0, %v5027_v40, 0.0  ;;  %v5030_v39 = vmul.f32 %v7732_v23, %v7732_v23 }
 0xfe3   : > { %5036 = vadd.xlane.f32.xlu1 %v5035_v41 }
 0xfe4   : > { %v5044_v37 = vsel %vm558_vm0, %v5030_v39, 0.0  ;;  %v5028_v24 = vmul.f32 %v7737_v33, %v7737_v33 }
 0xfe5   : > { %5045 = vadd.xlane.f32.xlu0 %v5044_v37 }
 0xfe6   : > { %v5038_v34 = vsel %vm558_vm0, %v5028_v24, 0.0 }
 0xfe7   : > { %5039 = vadd.xlane.f32.xlu1 %v5038_v34 }
0x1019   : > { %v5001_v57 = vpop.xlane.xlu1 %5000 }
0x101a   : > { %v5015_v62 = vmul.f32 0.015625, %v5001_v57 }
0x101c   : > { %v7746_v61 = vsub.f32 %v4981_v15, %v5015_v62  ;;  %v5143_v15 = vsub.s32 3, %v7862_v28 }
0x101d   : > { %v5007_v5 = vpop.xlane.xlu1 %5006  ;;  %v5004_v25 = vpop.xlane.xlu0 %5003 }
0x101e   : > { %v5017_v36 = vmul.f32 0.015625, %v5007_v5  ;;  %v5016_v19 = vmul.f32 0.015625, %v5004_v25  ;;  %v5031_v13 = vmul.f32 %v7746_v61, %v7746_v61  ;;  %v5144_v17 = vrot.slane %v7714_v2, %v5143_v15 }
0x1020   : > { %v7748_v63 = vsub.f32 %v4983_v60, %v5017_v36  ;;  %v7752_v56 = vsub.f32 %v4982_v12, %v5016_v19  ;;  %v5047_v18 = vsel %vm558_vm0, %v5031_v13, 0.0  ;;  %v5157_v60 = vsub.s32 5, %v7862_v28 }
0x1021   : > { %v5010_v58 = vpop.xlane.xlu0 %5009  ;;  %v7776_v12 = vpop.xlane.xlu1 %5241 }
0x1022   : > { %v5018_v10 = vmul.f32 0.015625, %v5010_v58  ;;  %v5033_v46 = vmul.f32 %v7748_v63, %v7748_v63  ;;  %v5032_v49 = vmul.f32 %v7752_v56, %v7752_v56  ;;  %v5158_v6 = vrot.slane %v7714_v2, %v5157_v60 }
0x1023   : > { %v5243_v15 = vmax.f32 %v7776_v12, 1.0 }
0x1024   : > { %v7754_v16 = vsub.f32 %v4984_v3, %v5018_v10  ;;  %v5053_v44 = vsel %vm558_vm0, %v5033_v46, 0.0  ;;  %v5050_v50 = vsel %vm558_vm0, %v5032_v49, 0.0 }
0x1025   : > { %5054 = vadd.xlane.f32.xlu1 %v5053_v44  ;;  %v5140_v3 = vpop.permute.xlu1 %5139  ;;  %v5133_v51 = vpop.permute.xlu0 %5132 }
0x1026   : > { %v5034_v26 = vmul.f32 %v7754_v16, %v7754_v16 }
0x1028   : > { %v5056_v11 = vsel %vm558_vm0, %v5034_v26, 0.0 }
0x1029   : > { %5048 = vadd.xlane.f32.xlu1 %v5047_v18  ;;  %5057 = vadd.xlane.f32.xlu0 %v5056_v11  ;;  %v5126_v0 = vpop.permute.xlu1 %5125 }
0x102d   : > { %5051 = vadd.xlane.f32.xlu0 %v5050_v50 }
0x103a   : > { %5153 = vbcast.lane.b32.xlu1 %v5151_v30, 256 }
0x103e   : > { %5167 = vbcast.lane.b32.xlu1 %v5165_v14, 256 }
0x1043   : > { %5146 = vbcast.lane.b32.xlu0 %v5144_v17, 256 }
0x1047   : > { %5160 = vbcast.lane.b32.xlu0 %v5158_v6, 256 }
0x104b   : > { %5174 = vbcast.lane.b32.xlu0 %v5172_v42, 256 }
0x106a   : > { %v5043_v53 = vpop.xlane.xlu0 %5042 }
0x106b   : > { %v5061_v43 = vmul.f32 0.015625, %v5043_v53 }
0x106c   : > { %v5037_v47 = vpop.xlane.xlu1 %5036 }
0x106d   : > { %v5059_v22 = vmul.f32 0.015625, %v5037_v47  ;;  %v5069_v28 = vadd.f32 1e-05, %v5061_v43 }
0x106e   : > { %v5046_v38 = vpop.xlane.xlu0 %5045 }
0x106f   : > { %v5062_v31 = vmul.f32 0.015625, %v5046_v38  ;;  %v5067_v59 = vadd.f32 1e-05, %v5059_v22 }
0x1070   : > { %v5040_v35 = vpop.xlane.xlu1 %5039 }
0x1071   : > { %v5060_v52 = vmul.f32 0.015625, %v5040_v35  ;;  %v5070_v45 = vadd.f32 1e-05, %v5062_v31 }
0x1073   : > { %v5068_v4 = vadd.f32 1e-05, %v5060_v52 }
0x1075   : > { %6331 = vrsqrt.f32 %v5068_v4 }
0x1076   : > { %6333 = vrsqrt.f32 %v5069_v28 }
0x1077   : > { %6335 = vrsqrt.f32 %v5067_v59 }
0x1078   : > { %6337 = vrsqrt.f32 %v5070_v45 }
0x1082   : > { %v6332_v2 = vpop.eup %6331 }
0x1083   : > { %v5084_v7 = vmul.f32 %v6332_v2, %v7737_v33  ;;  %v6334_v29 = vpop.eup %6333  ;;  %v7790_v33 = vld [vmem:[%s7843_s13] ss:$0 sm:$0xff] }
0x1084   : > { %v6336_v32 = vpop.eup %6335  ;;  %v5085_v1 = vmul.f32 %v6334_v29, %v7726_v54 }
0x1085   : > { %v5098_v21 = vmul.f32 %v7782_v8, %v5084_v7  ;;  %v6338_v55 = vpop.eup %6337  ;;  %v5083_v41 = vmul.f32 %v6336_v32, %v7728_v9 }
0x1086   : > { %v5086_v24 = vmul.f32 %v6338_v55, %v7732_v23  ;;  %v5099_v57 = vmul.f32 %v7782_v8, %v5085_v1 }
0x1087   : > { %v5112_v34 = vadd.f32 %v7790_v33, %v5098_v21  ;;  %v5097_v54 = vmul.f32 %v7782_v8, %v5083_v41 }
0x1088   : > { %v5100_v58 = vmul.f32 %v7782_v8, %v5086_v24  ;;  %v5113_v44 = vadd.f32 %v7790_v33, %v5099_v57 }
0x1089   : > { %v5177_v10 = vmul.f32 %v5133_v51, %v5112_v34  ;;  %v5111_v13 = vadd.f32 %v7790_v33, %v5097_v54 }
0x108a   : > { %v5114_v18 = vadd.f32 %v7790_v33, %v5100_v58  ;;  %v5178_v49 = vmul.f32 %v5140_v3, %v5113_v44 }
0x108b   : > { %v5191_v11 = vsel %vm558_vm0, %v5177_v10, 0.0  ;;  %v5176_v27 = vmul.f32 %v5126_v0, %v5111_v13 }
0x108c   : > { %v5192_v20 = vrot.slane %v5191_v11, 4  ;;  %v5198_v17 = vsel %vm558_vm0, %v5178_v49, 0.0 }
0x108d   : > { %v5184_v6 = vsel %vm558_vm0, %v5176_v27, 0.0  ;;  %v5199_v51 = vrot.slane %v5198_v17, 4 }
0x108e   : > { %v5193_v42 = vadd.f32 %v5192_v20, %v5191_v11  ;;  %v5185_v35 = vrot.slane %v5184_v6, 4 }
0x108f   : > { %v5200_v22 = vadd.f32 %v5199_v51, %v5198_v17 }
0x1090   : > { %v5194_v4 = vrot.slane %v5193_v42, 2  ;;  %v5186_v59 = vadd.f32 %v5185_v35, %v5184_v6 }
0x1091   : > { %v5201_v55 = vrot.slane %v5200_v22, 2 }
0x1092   : > { %v5195_v29 = vadd.f32 %v5194_v4, %v5193_v42 }
0x1094   : > { %v5196_v57 = vrot.slane %v5195_v29, 1 }
0x1096   : > { %v5197_v13 = vadd.f32 %v5196_v57, %v5195_v29 }
0x10ae   : > { %v5055_v40 = vpop.xlane.xlu1 %5054 }
0x10af   : > { %v5065_v39 = vmul.f32 0.015625, %v5055_v40 }
0x10b1   : > { %v5073_v37 = vadd.f32 1e-05, %v5065_v39  ;;  %v5187_v39 = vrot.slane %v5186_v59, 2 }
0x10b2   : > { %v5049_v62 = vpop.xlane.xlu1 %5048  ;;  %v5058_v5 = vpop.xlane.xlu0 %5057 }
0x10b3   : > { %6339 = vrsqrt.f32 %v5073_v37  ;;  %v5063_v25 = vmul.f32 0.015625, %v5049_v62  ;;  %v5066_v9 = vmul.f32 0.015625, %v5058_v5 }
0x10b5   : > { %v5071_v36 = vadd.f32 1e-05, %v5063_v25  ;;  %v5074_v19 = vadd.f32 1e-05, %v5066_v9  ;;  %v5202_v25 = vadd.f32 %v5201_v55, %v5200_v22 }
0x10b6   : > { %v5052_v46 = vpop.xlane.xlu0 %5051  ;;  %v5154_v60 = vpop.permute.xlu1 %5153 }
0x10b7   : > { %6341 = vrsqrt.f32 %v5071_v36  ;;  %v5064_v23 = vmul.f32 0.015625, %v5052_v46 }
0x10b8   : > { %6343 = vrsqrt.f32 %v5074_v19  ;;  %v5188_v19 = vadd.f32 %v5187_v39, %v5186_v59 }
0x10b9   : > { %v5072_v26 = vadd.f32 1e-05, %v5064_v23 }
0x10ba   : > { %v5147_v50 = vpop.permute.xlu0 %5146  ;;  %v5168_v12 = vpop.permute.xlu1 %5167  ;;  %v5189_v27 = vrot.slane %v5188_v19, 1 }
0x10bb   : > { %6345 = vrsqrt.f32 %v5072_v26  ;;  %v5179_v30 = vmul.f32 %v5147_v50, %v5114_v18  ;;  %v5203_v18 = vrot.slane %v5202_v25, 1 }
0x10bc   : > { %6347 = vrcp.f32 %v5243_v15  ;;  %v5190_v51 = vadd.f32 %v5189_v27, %v5188_v19 }
0x10bd   : > { %v5205_v14 = vsel %vm558_vm0, %v5179_v30, 0.0 }
0x10be   : > { %v5206_v47 = vrot.slane %v5205_v14, 4  ;;  %v5161_v53 = vpop.permute.xlu0 %5160 }
0x10c0   : > { %v6340_v48 = vpop.eup %6339  ;;  %v5207_v43 = vadd.f32 %v5206_v47, %v5205_v14 }
0x10c1   : > { %v5089_v3 = vmul.f32 %v6340_v48, %v7748_v63  ;;  %v5204_v48 = vadd.f32 %v5203_v18, %v5202_v25 }
0x10c2   : > { %v5208_v32 = vrot.slane %v5207_v43, 2  ;;  %v5175_v41 = vpop.permute.xlu0 %5174 }
0x10c3   : > { %v5103_v0 = vmul.f32 %v7782_v8, %v5089_v3 }
0x10c4   : > { %v6342_v52 = vpop.eup %6341  ;;  %v5209_v62 = vadd.f32 %v5208_v32, %v5207_v43 }
0x10c5   : > { %v6344_v38 = vpop.eup %6343  ;;  %v5087_v31 = vmul.f32 %v6342_v52, %v7746_v61  ;;  %v5117_v28 = vadd.f32 %v7790_v33, %v5103_v0 }
0x10c6   : > { %v5090_v45 = vmul.f32 %v6344_v38, %v7754_v16  ;;  %v5210_v26 = vrot.slane %v5209_v62, 1 }
0x10c7   : > { %v5101_v63 = vmul.f32 %v7782_v8, %v5087_v31  ;;  %v5182_v2 = vmul.f32 %v5168_v12, %v5117_v28 }
0x10c8   : > { %v6346_v7 = vpop.eup %6345  ;;  %v5104_v21 = vmul.f32 %v7782_v8, %v5090_v45  ;;  %v5211_v17 = vadd.f32 %v5210_v26, %v5209_v62 }
0x10c9   : > { %v5115_v1 = vadd.f32 %v7790_v33, %v5101_v63  ;;  %v5226_v40 = vsel %vm558_vm0, %v5182_v2, 0.0  ;;  %v5088_v61 = vmul.f32 %v6346_v7, %v7752_v56  ;;  %v6348_v46 = vpop.eup %6347 }
0x10ca   : > { %v5227_v37 = vrot.slane %v5226_v40, 4  ;;  %v5118_v16 = vadd.f32 %v7790_v33, %v5104_v21  ;;  %v5246_v30 = vrot.slane %v6348_v46, 1  ;;  %v5248_v3 = vrot.slane %v6348_v46, 3 }
0x10cb   : > { %v5180_v24 = vmul.f32 %v5154_v60, %v5115_v1  ;;  %v5102_v34 = vmul.f32 %v7782_v8, %v5088_v61  ;;  %v5249_v52 = vrot.slane %v6348_v46, 4  ;;  %v5261_v59 = vmul.f32 %v6348_v46, %v5190_v51 }
0x10cc   : > { %v5228_v5 = vadd.f32 %v5227_v37, %v5226_v40  ;;  %v5183_v54 = vmul.f32 %v5175_v41, %v5118_v16  ;;  %v5262_v15 = vmul.f32 %v5246_v30, %v5197_v13  ;;  %v5264_v12 = vmul.f32 %v5248_v3, %v5211_v17 }
0x10cd   : > { %v5212_v9 = vsel %vm558_vm0, %v5180_v24, 0.0  ;;  %v5116_v36 = vadd.f32 %v7790_v33, %v5102_v34  ;;  %v5251_v7 = vrot.slane %v6348_v46, 6  ;;  %v5250_v29 = vrot.slane %v6348_v46, 5 }
0x10ce   : > { %v5213_v58 = vrot.slane %v5212_v9, 4  ;;  %v5229_v56 = vrot.slane %v5228_v5, 2  ;;  %v5233_v10 = vsel %vm558_vm0, %v5183_v54, 0.0  ;;  %v5277_v43 = vrot.slane %v5262_v15, 7 }
0x10cf   : > { %v5181_v44 = vmul.f32 %v5161_v53, %v5116_v36  ;;  %v5234_v23 = vrot.slane %v5233_v10, 4  ;;  %v5247_v53 = vrot.slane %v6348_v46, 2  ;;  %v5283_v21 = vrot.slane %v5264_v12, 5 }
0x10d0   : > { %v5214_v8 = vadd.f32 %v5213_v58, %v5212_v9  ;;  %v5230_v11 = vadd.f32 %v5229_v56, %v5228_v5  ;;  %v5279_v32 = vsel %vm5278_vm7, %v5277_v43, %v5261_v59  ;;  %v5252_v1 = vrot.slane %v6348_v46, 7 }
0x10d1   : > { %v5219_v49 = vsel %vm558_vm0, %v5181_v44, 0.0  ;;  %v5235_v50 = vadd.f32 %v5234_v23, %v5233_v10  ;;  %v5263_v31 = vmul.f32 %v5247_v53, %v5204_v48 }
0x10d2   : > { %v5215_v20 = vrot.slane %v5214_v8, 2  ;;  %v5220_v33 = vrot.slane %v5219_v49, 4  ;;  %v5231_v42 = vrot.slane %v5230_v11, 1 }
0x10d3   : > { %v5236_v14 = vrot.slane %v5235_v50, 2  ;;  %v5280_v40 = vrot.slane %v5263_v31, 6 }
0x10d4   : > { %v5216_v60 = vadd.f32 %v5215_v20, %v5214_v8  ;;  %v5221_v6 = vadd.f32 %v5220_v33, %v5219_v49  ;;  %v5232_v28 = vadd.f32 %v5231_v42, %v5230_v11 }
0x10d5   : > { %v5237_v47 = vadd.f32 %v5236_v14, %v5235_v50  ;;  %v5282_v16 = vsel %vm5281_vm8, %v5280_v40, %v5279_v32 }
0x10d6   : > { %v5217_v35 = vrot.slane %v5216_v60, 1  ;;  %v5222_v0 = vrot.slane %v5221_v6, 2  ;;  %v5267_v41 = vmul.f32 %v5251_v7, %v5232_v28  ;;  %v5285_v24 = vsel %vm5284_vm9, %v5283_v21, %v5282_v16 }
0x10d7   : > { %v5238_v4 = vrot.slane %v5237_v47, 1 }
0x10d8   : > { %v5218_v38 = vadd.f32 %v5217_v35, %v5216_v60  ;;  %v5223_v22 = vadd.f32 %v5222_v0, %v5221_v6  ;;  %v5292_v62 = vrot.slane %v5267_v41, 2 }
0x10d9   : > { %v5239_v2 = vadd.f32 %v5238_v4, %v5237_v47 }
0x10da   : > { %v5265_v45 = vmul.f32 %v5249_v52, %v5218_v38  ;;  %v5224_v63 = vrot.slane %v5223_v22, 1 }
0x10db   : > { %v5268_v37 = vmul.f32 %v5252_v1, %v5239_v2 }
0x10dc   : > { %v5225_v55 = vadd.f32 %v5224_v63, %v5223_v22  ;;  %v5286_v61 = vrot.slane %v5265_v45, 4 }
0x10dd   : > { %v5295_v54 = vrot.slane %v5268_v37, 1 }
0x10de   : > { %v5266_v39 = vmul.f32 %v5250_v29, %v5225_v55  ;;  %v5288_v57 = vsel %vm5287_vm10, %v5286_v61, %v5285_v24 }
0x10e0   : > { %v5289_v34 = vrot.slane %v5266_v39, 3 }
0x10e2   : > { %v5291_v5 = vsel %vm5290_vm11, %v5289_v34, %v5288_v57 }
0x10e3   : > { %v5294_v25 = vsel %vm5293_vm12, %v5292_v62, %v5291_v5 }
0x10e4   : > { %v5297_v9 = vsel %vm5296_vm13, %v5295_v54, %v5294_v25 }
0x10e5   : > { %5299 = vst.msk [vmem:[%s484_s21] sm:$0xff] %vm558_vm0, %v5297_v9 }
0x10e6 PF: > { %s24_s29 = sadd.s32 1, %s6364_s29  }
0x10e7   : > { %p21_p5 = scmp.ge.s32.totalorder %s24_s29, 4  }
0x10e9   :  { %23 = sbr.rel (!%p21_p5) target bundleno = 1 (0x1), region = 109 }

// kernel: closed_call.6
= control target key start
LH: loop header
LB: loop body
LE: loop exit
PB: predicated region body
PF: predicated region fallthrough
CT: control target
= control target key end

     0   :  { %s6283_s29 = smov 0   ;;  %s7620_s0 = inlined_call_operand.vmem [shape: f32[16,8,64], index: 0, kind: input, shape index: {}]   ;;  %s7621_s1 = inlined_call_operand.vmem [shape: f32[16,8], index: 1, kind: input, shape index: {}]   ;;  %s7622_s2 = inlined_call_operand.vmem [shape: bf16[64,192], index: 2, kind: input, shape index: {}]   ;;  %s7623_s3 = inlined_call_operand.vmem [shape: f32[1,192], index: 3, kind: input, shape index: {}]   ;;  %s7624_s4 = inlined_call_operand.vmem [shape: bf16[64,64], index: 4, kind: input, shape index: {}]   ;;  %s7625_s5 = inlined_call_operand.vmem [shape: f32[1,64], index: 5, kind: input, shape index: {}]   ;;  %s7626_s6 = inlined_call_operand.vmem [shape: f32[1,64], index: 6, kind: input, shape index: {}]   ;;  %s7627_s7 = inlined_call_operand.vmem [shape: f32[1,64], index: 7, kind: input, shape index: {}]   ;;  %s7628_s8 = inlined_call_operand.vmem [shape: bf16[64,128], index: 8, kind: input, shape index: {}]   ;;  %s7629_s9 = inlined_call_operand.vmem [shape: f32[1,128], index: 9, kind: input, shape index: {}]   ;;  %s7630_s10 = inlined_call_operand.vmem [shape: bf16[128,64], index: 10, kind: input, shape index: {}]   ;;  %s7631_s11 = inlined_call_operand.vmem [shape: f32[1,64], index: 11, kind: input, shape index: {}]   ;;  %s7632_s12 = inlined_call_operand.vmem [shape: f32[1,64], index: 12, kind: input, shape index: {}]   ;;  %s7633_s13 = inlined_call_operand.vmem [shape: f32[1,64], index: 13, kind: input, shape index: {}]   ;;  %s7634_s14 = inlined_call_operand.vmem [shape: f32[16,8,64], index: 14, kind: output, shape index: {}]  }
   0x1 LB: > { %s6289_s30 = sadd.s32 4294967295, %s6195_s29   ;;  %p5202_p0 = scmp.ge.s32.totalorder %s6195_s29, 1  ;;  %s6195_s29 = sphi %s6283_s29, %s24_s29  }
   0x2   : > { %p422_p1 = scmp.lt.s32.totalorder %s6195_s29, 3 }
   0x4   : > { %p423_p2 = pnand %p5202_p0, %p422_p1 }
   0x6   : > { %426 = sbr.rel (%p423_p2) target bundleno = 4300 (0x10cc), region = 76 }
   0xb   : > { %v5993_v0 = vld [vmem:[%s7622_s2 + $0x34] ss:$8 sps:$4 sm:$0xff]   ;;  %s5203_s17 = sshll.u32 %s6289_s30, 3  ;;  %v5995_v1 = vld [vmem:[%s7622_s2 + $0x30] ss:$8 sps:$4 sm:$0xff]   ;;  %v6197_v2 = vmov 0   ;;  %v511_v21 = vlaneseq }
   0xc   : > { %606 = vmatprep.mubr.bf16.mxu0 %v6197_v2  ;;  %p473_p3 = scmp.lt.s32.totalorder %s5203_s17, 15  ;;  %582 = vmatprep.subr.bf16.mxu0 %v5993_v0  ;;  %v5996_v3 = vld [vmem:[%s7622_s2 + $0x24] ss:$8 sps:$4 sm:$0xff]   ;;  %v5998_v4 = vld [vmem:[%s7622_s2 + $0x20] ss:$8 sps:$4 sm:$0xff]   ;;  %vm561_vm0 = vcmask 523264  }
   0xd   : > { %583 = vmatpush1.bf16.msra.mxu0 %v5995_v1  ;;  %v5999_v5 = vld [vmem:[%s7622_s2 + $0x14] ss:$8 sps:$4 sm:$0xff]   ;;  %v6001_v6 = vld [vmem:[%s7622_s2 + $0x10] ss:$8 sps:$4 sm:$0xff]   ;;  %v6002_v7 = vld [vmem:[%s7622_s2 + $0x4] ss:$8 sps:$4 sm:$0xff]  }
   0xe   : > { %s7647_s17 = smov (!%p473_p3, %s5203_s17), 15  ;;  %584 = vmatprep.subr.bf16.mxu0 %v5996_v3  ;;  %v6004_v8 = vld [vmem:[%s7622_s2] ss:$8 sps:$4 sm:$0xff]   ;;  %v6340_v22 = vshrl.u32 %v511_v21, 7  ;;  %v7635_v23 = vmov 0.0   ;;  %vm6199_vm1 = vmmov 0  }
   0xf   : > { %s5204_s26 = sshll.u32 %s7647_s17, 3  ;;  %5480 = vmatprep.subr.bf16.mxu1 %v7635_v23  ;;  %v509_v25 = vld [vmem:[%s7623_s3] sm:$0x3]  ;;  %5482 = vmatprep.mubr.msk.bf16.mxu1 %vm6199_vm1, %v7635_v23  ;;  %s6200_s25 = smov 64   ;;  %vm719_vm2 = vcmask 130048   ;;  %vm1265_vm3 = vcmask 1043456  }
  0x10   : > { %s6317_s15 = scalar_lea.vmem %s7620_s0, %s5204_s26  ;;  %v6345_v24 = vsub.s32 0, %v6340_v22  ;;  %v517_v30 = vsub.s32 1, %v6340_v22  ;;  %p478_p4 = scmp.lt.s32.totalorder %s6289_s30, 1  ;;  %v6201_v21 = vmov 1966171168   ;;  %vm1165_vm4 = vcmask 64512  }
  0x11   : > { %585 = vmatpush1.bf16.msra.mxu0 %v5998_v4  ;;  %v489_v9 = vld [vmem:[%s6317_s15] sm:$0xff]  ;;  %v490_v10 = vld [vmem:[%s6317_s15 + $0x8] sm:$0xff]  ;;  %v491_v12 = vld [vmem:[%s6317_s15 + $0x10] sm:$0xff]  ;;  %s6203_s19 = smov 112   ;;  %s6204_s20 = smov 32   ;;  %vm4431_vm5 = vcmask 261120  }
  0x12   : > { %586 = vmatprep.subr.bf16.mxu0 %v5999_v5  ;;  %v497_v11 = vpack.c.bf16 %v490_v10, %v489_v9  ;;  %v492_v13 = vld [vmem:[%s6317_s15 + $0x18] sm:$0xff]  ;;  %v493_v15 = vld [vmem:[%s6317_s15 + $0x20] sm:$0xff]  ;;  %v494_v16 = vld [vmem:[%s6317_s15 + $0x28] sm:$0xff]  ;;  %v514_v28 = vrot.slane %v509_v25, %v6345_v24  ;;  %v6362_v36 = vrot.slane %v509_v25, %v517_v30  ;;  %s7649_s30 = smov (!%p478_p4, %s6289_s30), 1  ;;  %v653_v25 = vunpack.c.l.s4 %v6201_v21  ;;  %s6205_s21 = smov 96  }
  0x13   : > { %v498_v14 = vpack.c.bf16 %v492_v13, %v491_v12  ;;  %v499_v17 = vpack.c.bf16 %v494_v16, %v493_v15  ;;  %v495_v18 = vld [vmem:[%s6317_s15 + $0x30] sm:$0xff]  ;;  %v496_v19 = vld [vmem:[%s6317_s15 + $0x38] sm:$0xff]  ;;  %s5205_s27 = sshll.u32 %s7649_s30, 3  ;;  %s6202_s30 = smov 48   ;;  %vm4440_vm6 = vcmask 392192  }
  0x14   : > { %v500_v20 = vpack.c.bf16 %v496_v19, %v495_v18  ;;  %s481_s18 = scalar_lea.vmem %s7621_s1, %s5205_s27  ;;  %s6206_s22 = smov 16  }
  0x15   : > { %587 = vmatpush1.bf16.msra.mxu0 %v6001_v6  ;;  %s6207_s23 = smov 80  }
  0x16   : > { %588 = vmatprep.subr.bf16.mxu0 %v6002_v7 }
  0x19   : > { %589 = vmatpush1.bf16.msra.mxu0 %v6004_v8 }
  0x1a   : > { %5474 = vmatprep.subr.bf16.mxu0 %v7635_v23 }
  0x1c   : > { %5216 = vmatmul.mubr.msk.bf16.vlgmr.msra.gmra.mxu0 %vm561_vm0, %v497_v11 }
  0x1d   : > { %616 = vmatprep.mubr.bf16.mxu0 %v6197_v2 }
  0x24   : > { %5217 = vmatmul.mubr.msk.bf16.gmra.mxu0 %vm561_vm0, %v498_v14 }
  0x25   : > { %626 = vmatprep.mubr.bf16.mxu0 %v6197_v2 }
  0x2c   : > { %5218 = vmatmul.mubr.msk.bf16.gmra.mxu0 %vm561_vm0, %v499_v17 }
  0x2d   : > { %636 = vmatprep.mubr.bf16.mxu0 %v6197_v2 }
  0x34   : > { %5219 = vmatmul.mubr.msk.bf16.gmra.mxu0 %vm561_vm0, %v500_v20 }
  0x35   : > { %5476 = vmatprep.mubr.msk.bf16.mxu0 %vm6199_vm1, %v7635_v23 }
  0xdc   : > { %v608_v26 = vpop.f32.mrf.mxu0 }
  0xdd   : > { %v609_v33 = vadd.f32 %v608_v26, %v514_v28  ;;  %v647_v26 = vld [vmem:[%s481_s18] sm:$0xff] }
  0xde   : > { %v6350_v27 = vpop.f32.mrf.mxu0 }
  0xdf   : > { %v6366_v39 = vpack.c.bf16 %v609_v33, %v609_v33  ;;  %v611_v17 = vadd.f32 %v6350_v27, %v6362_v36  ;;  %v5220_v27 = vadd.f32 -1.0, %v647_v26 }
  0xe0   : > { %v612_v29 = vpop.f32.mrf.mxu0 }
  0xe1   : > { %v613_v31 = vadd.f32 %v612_v29, %v514_v28  ;;  %v6460_v19 = vpack.c.bf16 %v611_v17, %v611_v17  ;;  %v649_v29 = vmul.f32 1e+09, %v5220_v27 }
  0xe2   : > { %v6358_v32 = vpop.f32.mrf.mxu0 }
  0xe3   : > { %v6360_v34 = vpack.c.bf16 %v613_v31, %v613_v31  ;;  %v615_v12 = vadd.f32 %v6358_v32, %v6362_v36  ;;  %v1267_v20 = vsel %vm1265_vm3, %v6460_v19, 0 }
  0xe4   : > { %v618_v35 = vpop.f32.mrf.mxu0 }
  0xe5   : > { %v619_v37 = vadd.f32 %v618_v35, %v514_v28  ;;  %767 = vrot.lane.b32.xlu0 %v6360_v34, %s6200_s25  ;;  %v6443_v15 = vpack.c.bf16 %v615_v12, %v615_v12 }
  0xe6   : > { %v620_v38 = vpop.f32.mrf.mxu0 }
  0xe7   : > { %v6368_v40 = vpack.c.bf16 %v619_v37, %v619_v37  ;;  %v6371_v41 = vadd.f32 %v620_v38, %v6362_v36  ;;  %v1313_v18 = vsel %vm1265_vm3, %v6443_v15, 0 }
  0xe8   : > { %v622_v42 = vpop.f32.mrf.mxu0 }
  0xe9   : > { %v623_v43 = vadd.f32 %v622_v42, %v514_v28  ;;  %717 = vrot.lane.b32.xlu0 %v6366_v39, %s6200_s25  ;;  %816 = vrot.lane.b32.xlu1 %v6368_v40, %s6200_s25 }
  0xea   : > { %v6377_v44 = vpop.f32.mrf.mxu0 }
  0xeb   : > { %v6379_v45 = vpack.c.bf16 %v623_v43, %v623_v43  ;;  %v651_v43 = vcombine.high %v649_v29, %v649_v29 }
  0xec   : > { %v628_v46 = vpop.f32.mrf.mxu0 }
  0xed   : > { %v629_v47 = vadd.f32 %v628_v46, %v514_v28  ;;  %865 = vrot.lane.b32.xlu1 %v6379_v45, %s6200_s25 }
  0xee   : > { %v630_v48 = vpop.f32.mrf.mxu0 }
  0xef   : > { %v6383_v49 = vpack.c.bf16 %v629_v47, %v629_v47  ;;  %v6386_v50 = vadd.f32 %v630_v48, %v6362_v36 }
  0xf0   : > { %v632_v51 = vpop.f32.mrf.mxu0 }
  0xf1   : > { %v633_v52 = vadd.f32 %v632_v51, %v514_v28  ;;  %914 = vrot.lane.b32.xlu0 %v6383_v49, %s6200_s25 }
  0xf2   : > { %v6390_v53 = vpop.f32.mrf.mxu0 }
  0xf3   : > { %v6392_v54 = vpack.c.bf16 %v633_v52, %v633_v52 }
  0xf4   : > { %v638_v55 = vpop.f32.mrf.mxu0 }
  0xf5   : > { %v639_v56 = vadd.f32 %v638_v55, %v514_v28  ;;  %963 = vrot.lane.b32.xlu1 %v6392_v54, %s6200_s25 }
  0xf6   : > { %v640_v57 = vpop.f32.mrf.mxu0 }
  0xf7   : > { %v6396_v58 = vpack.c.bf16 %v639_v56, %v639_v56  ;;  %v6399_v59 = vadd.f32 %v640_v57, %v6362_v36 }
  0xf8   : > { %v642_v60 = vpop.f32.mrf.mxu0 }
  0xf9   : > { %v643_v61 = vadd.f32 %v642_v60, %v514_v28  ;;  %1012 = vrot.lane.b32.xlu0 %v6396_v58, %s6200_s25  ;;  %v654_v28 = vunpack.c.0.s8 %v653_v25 }
  0xfa   : > { %v6478_v46 = vpop.f32.mrf.mxu0 }
  0xfb   : > { %v6403_v62 = vpack.c.bf16 %v643_v61, %v643_v61  ;;  %v657_v30 = vsub.s32 %v654_v28, %v6340_v22 }
  0xfd   : > { %1061 = vrot.lane.b32.xlu1 %v6403_v62, %s6200_s25  ;;  %v658_v31 = vrot.slane %v649_v29, %v657_v30  ;;  %v665_v60 = vrot.slane %v651_v43, %v657_v30 }
  0xff   : > { %v666_v32 = vcombine.high %v658_v31, %v658_v31  ;;  %v674_v37 = vrot.slane %v658_v31, %v657_v30  ;;  %v681_v31 = vrot.slane %v665_v60, %v657_v30 }
 0x101   : > { %v688_v33 = vrot.slane %v666_v32, %v657_v30  ;;  %v6484_v51 = vrot.slane %v674_v37, %v6345_v24  ;;  %v696_v22 = vcombine.high %v674_v37, %v674_v37 }
 0x103   : > { %v6476_v35 = vrot.slane %v688_v33, %v6345_v24 }
 0x157   : > { %v768_v63 = vpop.permute.xlu0 %767 }
 0x158   : > { %v773_v0 = vsel %vm719_vm2, %v768_v63, 0 }
 0x159   : > { %5481 = vmatpush3.bf16.xpose.msra.mxu1 %v773_v0 }
 0x15a   : > { %5486 = vmatprep.subr.bf16.mxu1 %v7635_v23 }
 0x15b   : > { %v718_v1 = vpop.permute.xlu0 %717  ;;  %v817_v3 = vpop.permute.xlu1 %816 }
 0x15c   : > { %v724_v2 = vsel %vm719_vm2, %v718_v1, 0  ;;  %v822_v4 = vsel %vm719_vm2, %v817_v3, 0  ;;  %v6492_v1 = vrot.slane %v696_v22, %v6345_v24  ;;  %v6514_v22 = vrot.slane %v681_v31, %v6345_v24 }
 0x15d   : > { %5475 = vmatpush3.bf16.xpose.msra.mxu0 %v724_v2 }
 0x15e   : > { %5504 = vmatprep.subr.bf16.mxu0 %v7635_v23 }
 0x15f   : > { %v866_v5 = vpop.permute.xlu1 %865 }
 0x160   : > { %5483 = vmatmul.mubr.msk.bf16.vlgmr.msra.gmra.mxu1 %vm719_vm2, %v6360_v34  ;;  %v871_v7 = vsel %vm719_vm2, %v866_v5, 0 }
 0x161   : > { %5487 = vmatpush3.bf16.xpose.msra.mxu1 %v822_v4  ;;  %5488 = vmatprep.mubr.msk.bf16.mxu1 %vm6199_vm1, %v7635_v23 }
 0x162   : > { %5492 = vmatprep.subr.bf16.mxu1 %v7635_v23 }
 0x163   : > { %v915_v9 = vpop.permute.xlu0 %914 }
 0x164   : > { %5477 = vmatmul.mubr.msk.bf16.vlgmr.msra.gmra.mxu0 %vm719_vm2, %v6366_v39  ;;  %v920_v10 = vsel %vm719_vm2, %v915_v9, 0 }
 0x165   : > { %5506 = vmatprep.mubr.msk.bf16.mxu0 %vm6199_vm1, %v7635_v23 }
 0x167   : > { %v964_v6 = vpop.permute.xlu1 %963 }
 0x168   : > { %v969_v8 = vsel %vm719_vm2, %v964_v6, 0  ;;  %5489 = vmatmul.mubr.msk.bf16.vlgmr.msra.gmra.mxu1 %vm719_vm2, %v6368_v40  ;;  %v667_v6 = vcombine.high %v665_v60, %v665_v60 }
 0x169   : > { %5493 = vmatpush3.bf16.xpose.msra.mxu1 %v871_v7  ;;  %5505 = vmatpush3.bf16.xpose.msra.mxu0 %v969_v8 }
 0x16a   : > { %5494 = vmatprep.mubr.msk.bf16.mxu1 %vm6199_vm1, %v7635_v23  ;;  %5498 = vmatprep.subr.bf16.mxu1 %v7635_v23 }
 0x16b   : > { %5516 = vmatprep.subr.bf16.mxu0 %v7635_v23  ;;  %v1013_v14 = vpop.permute.xlu0 %1012 }
 0x16c   : > { %v1018_v16 = vsel %vm719_vm2, %v1013_v14, 0 }
 0x16f   : > { %v1062_v11 = vpop.permute.xlu1 %1061 }
 0x170   : > { %v1067_v13 = vsel %vm719_vm2, %v1062_v11, 0  ;;  %5495 = vmatmul.mubr.msk.bf16.vlgmr.msra.gmra.mxu1 %vm719_vm2, %v6379_v45  ;;  %5507 = vmatmul.mubr.msk.bf16.vlgmr.msra.gmra.mxu0 %vm719_vm2, %v6392_v54 }
 0x171   : > { %5499 = vmatpush3.bf16.xpose.msra.mxu1 %v920_v10  ;;  %5517 = vmatpush3.bf16.xpose.msra.mxu0 %v1067_v13  ;;  %v698_v10 = vcombine.high %v688_v33, %v688_v33  ;;  %v695_v13 = vrot.slane %v667_v6, %v657_v30 }
 0x172   : > { %5500 = vmatprep.mubr.msk.bf16.mxu1 %vm6199_vm1, %v7635_v23  ;;  %5518 = vmatprep.mubr.msk.bf16.mxu0 %vm6199_vm1, %v7635_v23 }
 0x173   : > { %5510 = vmatprep.subr.bf16.mxu1 %v7635_v23  ;;  %5528 = vmatprep.subr.bf16.mxu0 %v7635_v23  ;;  %v6505_v25 = vrot.slane %v695_v13, %v6345_v24  ;;  %v699_v29 = vcombine.high %v695_v13, %v695_v13 }
 0x178   : > { %5501 = vmatmul.mubr.msk.bf16.vlgmr.msra.gmra.mxu1 %vm719_vm2, %v6383_v49  ;;  %5519 = vmatmul.mubr.msk.bf16.vlgmr.msra.gmra.mxu0 %vm719_vm2, %v6403_v62 }
 0x179   : > { %5511 = vmatpush3.bf16.xpose.msra.mxu1 %v1018_v16  ;;  %5529 = vmatpush3.bf16.msra.mxu0 %v1313_v18  ;;  %v6502_v16 = vrot.slane %v698_v10, %v6345_v24 }
 0x17a   : > { %5512 = vmatprep.mubr.msk.bf16.mxu1 %vm6199_vm1, %v7635_v23  ;;  %5522 = vmatprep.subr.bf16.mxu1 %v7635_v23 }
 0x17b   : > { %5530 = vmatprep.mubr.msk.bf16.mxu0 %vm6199_vm1, %v7635_v23  ;;  %5540 = vmatprep.subr.bf16.mxu0 %v7635_v23 }
 0x180   : > { %5513 = vmatmul.mubr.msk.bf16.vlgmr.msra.gmra.mxu1 %vm719_vm2, %v6396_v58 }
 0x181   : > { %5523 = vmatpush3.bf16.msra.mxu1 %v1267_v20  ;;  %5524 = vmatprep.mubr.msk.bf16.mxu1 %vm6199_vm1, %v7635_v23 }
 0x182   : > { %5534 = vmatprep.subr.bf16.mxu1 %v7635_v23 }
 0x220   : > { %v809_v38 = vpop.f32.mrf.mxu1 }
 0x221   : > { %v1110_v42 = vmul.f32 0.25, %v809_v38 }
 0x222   : > { %v5484_v47 = vpop.f32.mrf.mxu1 }
 0x223   : > { %v6481_v48 = vadd.f32 %v6476_v35, %v1110_v42  ;;  %v6511_v47 = vrot.slane %v699_v29, %v6345_v24 }
 0x224   : > { %v760_v52 = vpop.f32.mrf.mxu0  ;;  %v812_v55 = vpop.f32.mrf.mxu1 }
 0x225   : > { %v1109_v56 = vmul.f32 0.25, %v760_v52  ;;  %v1169_v57 = vsel %vm1165_vm4, %v6481_v48, -inf }
 0x226   : > { %1170 = vmax.xlane.f32.xlu1 %v1169_v57  ;;  %v5478_v61 = vpop.f32.mrf.mxu0  ;;  %v5485_v63 = vpop.f32.mrf.mxu1 }
 0x227   : > { %v6489_v0 = vadd.f32 %v6484_v51, %v1109_v56 }
 0x228   : > { %v763_v2 = vpop.f32.mrf.mxu0  ;;  %v858_v3 = vpop.f32.mrf.mxu1 }
 0x229   : > { %v1111_v4 = vmul.f32 0.25, %v858_v3  ;;  %v1166_v5 = vsel %vm1165_vm4, %v6489_v0, -inf  ;;  %v697_v3 = vcombine.high %v681_v31, %v681_v31 }
 0x22a   : > { %v5490_v7 = vpop.f32.mrf.mxu1  ;;  %1167 = vmax.xlane.f32.xlu0 %v1166_v5  ;;  %v5479_v8 = vpop.f32.mrf.mxu0 }
 0x22b   : > { %v6497_v9 = vadd.f32 %v6492_v1, %v1111_v4 }
 0x22c   : > { %v861_v11 = vpop.f32.mrf.mxu1 }
 0x22d   : > { %v1172_v12 = vsel %vm1165_vm4, %v6497_v9, -inf  ;;  %v6525_v11 = vrot.slane %v697_v3, %v6345_v24 }
 0x22e   : > { %v5491_v14 = vpop.f32.mrf.mxu1  ;;  %1173 = vmax.xlane.f32.xlu0 %v1172_v12 }
 0x230   : > { %v907_v17 = vpop.f32.mrf.mxu1  ;;  %v1005_v18 = vpop.f32.mrf.mxu0 }
 0x231   : > { %v1112_v20 = vmul.f32 0.25, %v907_v17  ;;  %v1114_v21 = vmul.f32 0.25, %v1005_v18 }
 0x232   : > { %v5496_v26 = vpop.f32.mrf.mxu1  ;;  %v5508_v27 = vpop.f32.mrf.mxu0 }
 0x233   : > { %v1160_v28 = vadd.f32 %v6502_v16, %v1112_v20  ;;  %v1162_v38 = vadd.f32 %v6505_v25, %v1114_v21 }
 0x234   : > { %v910_v32 = vpop.f32.mrf.mxu1  ;;  %v1008_v33 = vpop.f32.mrf.mxu0 }
 0x235   : > { %v1175_v37 = vsel %vm1165_vm4, %v1160_v28, -inf  ;;  %v1181_v30 = vsel %vm1165_vm4, %v1162_v38, -inf }
 0x236   : > { %v5497_v42 = vpop.f32.mrf.mxu1  ;;  %1176 = vmax.xlane.f32.xlu0 %v1175_v37  ;;  %v5509_v43 = vpop.f32.mrf.mxu0 }
 0x238   : > { %v956_v52 = vpop.f32.mrf.mxu1  ;;  %v1103_v55 = vpop.f32.mrf.mxu0 }
 0x239   : > { %v1113_v56 = vmul.f32 0.25, %v956_v52  ;;  %v1116_v57 = vmul.f32 0.25, %v1103_v55 }
 0x23a   : > { %1182 = vmax.xlane.f32.xlu0 %v1181_v30  ;;  %v5502_v60 = vpop.f32.mrf.mxu1  ;;  %v5520_v61 = vpop.f32.mrf.mxu0 }
 0x23b   : > { %v1164_v63 = vadd.f32 %v6511_v47, %v1116_v57  ;;  %v6519_v2 = vadd.f32 %v6514_v22, %v1113_v56 }
 0x23c   : > { %v959_v4 = vpop.f32.mrf.mxu1  ;;  %v1106_v5 = vpop.f32.mrf.mxu0 }
 0x23d   : > { %v1187_v6 = vsel %vm1165_vm4, %v1164_v63, -inf  ;;  %v1178_v7 = vsel %vm1165_vm4, %v6519_v2, -inf }
 0x23e   : > { %1188 = vmax.xlane.f32.xlu0 %v1187_v6  ;;  %v5521_v8 = vpop.f32.mrf.mxu0  ;;  %1179 = vmax.xlane.f32.xlu1 %v1178_v7  ;;  %v5503_v10 = vpop.f32.mrf.mxu1 }
 0x240   : > { %v1054_v12 = vpop.f32.mrf.mxu1 }
 0x241   : > { %v1115_v13 = vmul.f32 0.25, %v1054_v12 }
 0x242   : > { %v5514_v14 = vpop.f32.mrf.mxu1 }
 0x243   : > { %v6528_v17 = vadd.f32 %v6525_v11, %v1115_v13 }
 0x244   : > { %v1057_v18 = vpop.f32.mrf.mxu1 }
 0x245   : > { %v1184_v20 = vsel %vm1165_vm4, %v6528_v17, -inf }
 0x246   : > { %1185 = vmax.xlane.f32.xlu1 %v1184_v20  ;;  %v5515_v21 = vpop.f32.mrf.mxu1 }
 0x2af   : > { %v1171_v26 = vpop.xlane.xlu1 %1170 }
 0x2b0   : > { %v1191_v27 = vsub.f32 %v6481_v48, %v1171_v26 }
 0x2b2   : > { %v1200_v29 = vmul.f32 1.442695, %v1191_v27 }
 0x2b3   : > { %v1168_v31 = vpop.xlane.xlu0 %1167 }
 0x2b4   : > { %6021 = vpow2.f32 %v1200_v29  ;;  %v1190_v24 = vsub.f32 %v6489_v0, %v1168_v31 }
 0x2b6   : > { %v1198_v32 = vmul.f32 1.442695, %v1190_v24 }
 0x2b7   : > { %v1174_v33 = vpop.xlane.xlu0 %1173 }
 0x2b8   : > { %6023 = vpow2.f32 %v1198_v32  ;;  %v1192_v37 = vsub.f32 %v6497_v9, %v1174_v33  ;;  %v625_v32 = vadd.f32 %v6377_v44, %v6362_v36 }
 0x2ba   : > { %v1202_v42 = vmul.f32 1.442695, %v1192_v37  ;;  %v6603_v37 = vpack.c.bf16 %v625_v32, %v625_v32 }
 0x2bc   : > { %6025 = vpow2.f32 %v1202_v42  ;;  %v1405_v44 = vsel %vm1265_vm3, %v6603_v37, 0 }
 0x2bf   : > { %v1177_v43 = vpop.xlane.xlu0 %1176 }
 0x2c0   : > { %v1193_v52 = vsub.f32 %v1160_v28, %v1177_v43 }
 0x2c1   : > { %v6535_v55 = vpop.eup %6021 }
 0x2c2   : > { %v1204_v56 = vmul.f32 1.442695, %v1193_v52  ;;  %v1217_v48 = vsel %vm1165_vm4, %v6535_v55, 0.0 }
 0x2c3   : > { %1218 = vadd.xlane.f32.xlu0 %v1217_v48  ;;  %v1183_v57 = vpop.xlane.xlu0 %1182  ;;  %v6610_v48 = vpack.c.bf16 %v6371_v41, %v6371_v41 }
 0x2c4   : > { %6027 = vpow2.f32 %v1204_v56  ;;  %v1195_v30 = vsub.f32 %v1162_v38, %v1183_v57 }
 0x2c5   : > { %v6539_v0 = vpop.eup %6023  ;;  %v1359_v41 = vsel %vm1265_vm3, %v6610_v48, 0 }
 0x2c6   : > { %v1208_v60 = vmul.f32 1.442695, %v1195_v30  ;;  %v1214_v9 = vsel %vm1165_vm4, %v6539_v0, 0.0 }
 0x2c7   : > { %1215 = vadd.xlane.f32.xlu1 %v1214_v9  ;;  %v1189_v61 = vpop.xlane.xlu0 %1188  ;;  %v1180_v12 = vpop.xlane.xlu1 %1179 }
 0x2c8   : > { %6029 = vpow2.f32 %v1208_v60  ;;  %v1197_v28 = vsub.f32 %v1164_v63, %v1189_v61  ;;  %v1194_v13 = vsub.f32 %v6519_v2, %v1180_v12  ;;  %v6632_v61 = vpack.c.bf16 %v6386_v50, %v6386_v50 }
 0x2c9   : > { %v6543_v3 = vpop.eup %6025 }
 0x2ca   : > { %v1212_v4 = vmul.f32 1.442695, %v1197_v28  ;;  %v1220_v5 = vsel %vm1165_vm4, %v6543_v3, 0.0  ;;  %v1206_v14 = vmul.f32 1.442695, %v1194_v13  ;;  %v635_v28 = vadd.f32 %v6390_v53, %v6362_v36 }
 0x2cb   : > { %1221 = vadd.xlane.f32.xlu1 %v1220_v5 }
 0x2cc   : > { %6031 = vpow2.f32 %v1212_v4 }
 0x2cd   : > { %6033 = vpow2.f32 %v1206_v14 }
 0x2cf   : > { %v1186_v20 = vpop.xlane.xlu1 %1185 }
 0x2d0   : > { %v1196_v21 = vsub.f32 %v6528_v17, %v1186_v20 }
 0x2d1   : > { %v6547_v6 = vpop.eup %6027 }
 0x2d2   : > { %v1223_v38 = vsel %vm1165_vm4, %v6547_v6, 0.0  ;;  %v1210_v26 = vmul.f32 1.442695, %v1196_v21 }
 0x2d3   : > { %1224 = vadd.xlane.f32.xlu0 %v1223_v38  ;;  %v6638_v38 = vpack.c.bf16 %v635_v28, %v635_v28 }
 0x2d4   : > { %6035 = vpow2.f32 %v1210_v26 }
 0x2d5   : > { %v6551_v7 = vpop.eup %6029  ;;  %v1497_v12 = vsel %vm1265_vm3, %v6638_v38, 0 }
 0x2d6   : > { %v1229_v8 = vsel %vm1165_vm4, %v6551_v7, 0.0 }
 0x2d7   : > { %1230 = vadd.xlane.f32.xlu0 %v1229_v8 }
 0x2d9   : > { %v6555_v63 = vpop.eup %6031 }
 0x2da   : > { %v1235_v10 = vsel %vm1165_vm4, %v6555_v63, 0.0  ;;  %v6568_v18 = vpop.eup %6033 }
 0x2db   : > { %1236 = vadd.xlane.f32.xlu0 %v1235_v10  ;;  %v1226_v2 = vsel %vm1165_vm4, %v6568_v18, 0.0  ;;  %v645_v10 = vadd.f32 %v6478_v46, %v6362_v36 }
 0x2dc   : > { %1633 = vrot.lane.b32.xlu1 %v6366_v39, %s6202_s30 }
 0x2dd   : > { %v6656_v13 = vpack.c.bf16 %v645_v10, %v645_v10 }
 0x2df   : > { %v1589_v36 = vsel %vm1265_vm3, %v6656_v13, 0 }
 0x2e1   : > { %v6585_v27 = vpop.eup %6035 }
 0x2e2   : > { %v1232_v29 = vsel %vm1165_vm4, %v6585_v27, 0.0 }
 0x2f1   : > { %1683 = vrot.lane.b32.xlu0 %v6360_v34, %s6202_s30 }
 0x2f5   : > { %1733 = vrot.lane.b32.xlu0 %v6368_v40, %s6202_s30 }
 0x2f9   : > { %1731 = vrot.lane.b32.xlu0 %v6368_v40, %s6203_s19 }
 0x2fd   : > { %1833 = vrot.lane.b32.xlu0 %v6383_v49, %s6202_s30 }
 0x300   : > { %1227 = vadd.xlane.f32.xlu1 %v1226_v2 }
 0x301   : > { %1831 = vrot.lane.b32.xlu0 %v6383_v49, %s6203_s19 }
 0x305   : > { %1933 = vrot.lane.b32.xlu0 %v6396_v58, %s6202_s30 }
 0x309   : > { %1931 = vrot.lane.b32.xlu0 %v6396_v58, %s6203_s19 }
 0x30d   : > { %2193 = vrot.lane.b32.xlu0 %v6443_v15, %s6203_s19 }
 0x311   : > { %1631 = vrot.lane.b32.xlu1 %v6366_v39, %s6203_s19 }
 0x335   : > { %1233 = vadd.xlane.f32.xlu1 %v1232_v29 }
 0x346   : > { %1681 = vrot.lane.b32.xlu1 %v6360_v34, %s6203_s19 }
 0x34a   : > { %1783 = vrot.lane.b32.xlu1 %v6379_v45, %s6202_s30 }
 0x34c   : > { %v1219_v31 = vpop.xlane.xlu0 %1218 }
 0x34d   : > { %6037 = vrcp.f32 %v1219_v31 }
 0x34e   : > { %1781 = vrot.lane.b32.xlu1 %v6379_v45, %s6203_s19 }
 0x350   : > { %v1216_v17 = vpop.xlane.xlu1 %1215 }
 0x351   : > { %6039 = vrcp.f32 %v1216_v17  ;;  %v6672_v17 = vpack.c.bf16 %v6399_v59, %v6399_v59 }
 0x352   : > { %1883 = vrot.lane.b32.xlu1 %v6392_v54, %s6202_s30 }
 0x353   : > { %v1543_v32 = vsel %vm1265_vm3, %v6672_v17, 0 }
 0x354   : > { %v1222_v24 = vpop.xlane.xlu1 %1221 }
 0x355   : > { %6041 = vrcp.f32 %v1222_v24 }
 0x356   : > { %1881 = vrot.lane.b32.xlu1 %v6392_v54, %s6203_s19 }
 0x358   : > { %v1634_v26 = vpop.permute.xlu1 %1633 }
 0x35a   : > { %v6038_v33 = vpop.eup %6037  ;;  %1983 = vrot.lane.b32.xlu1 %v6403_v62, %s6202_s30 }
 0x35b   : > { %v1247_v42 = vmul.f32 %v6038_v33, %v6535_v55 }
 0x35c   : > { %v1225_v43 = vpop.xlane.xlu0 %1224 }
 0x35d   : > { %6043 = vrcp.f32 %v1225_v43  ;;  %v1255_v52 = vpack.c.bf16 %v1247_v42, %v1247_v42 }
 0x35e   : > { %v6040_v56 = vpop.eup %6039  ;;  %1981 = vrot.lane.b32.xlu1 %v6403_v62, %s6203_s19 }
 0x35f   : > { %5531 = vmatmul.mubr.msk.bf16.vlgmr.msra.gmra.mxu0 %vm1165_vm4, %v1255_v52  ;;  %v1246_v57 = vmul.f32 %v6040_v56, %v6539_v0 }
 0x360   : > { %5541 = vmatpush3.bf16.msra.mxu0 %v1405_v44  ;;  %v1231_v55 = vpop.xlane.xlu0 %1230  ;;  %5542 = vmatprep.mubr.msk.bf16.mxu0 %vm6199_vm1, %v7635_v23 }
 0x361   : > { %6045 = vrcp.f32 %v1231_v55  ;;  %v1254_v30 = vpack.c.bf16 %v1246_v57, %v1246_v57  ;;  %5552 = vmatprep.subr.bf16.mxu0 %v7635_v23 }
 0x362   : > { %v6042_v60 = vpop.eup %6041  ;;  %2144 = vrot.lane.b32.xlu1 %v6460_v19, %s6203_s19 }
 0x363   : > { %5525 = vmatmul.mubr.msk.bf16.vlgmr.msra.gmra.mxu1 %vm1165_vm4, %v1254_v30  ;;  %v1248_v0 = vmul.f32 %v6042_v60, %v6543_v3  ;;  %v1451_v3 = vsel %vm1265_vm3, %v6632_v61, 0 }
 0x364   : > { %5535 = vmatpush3.bf16.msra.mxu1 %v1359_v41  ;;  %5536 = vmatprep.mubr.msk.bf16.mxu1 %vm6199_vm1, %v7635_v23  ;;  %v1237_v9 = vpop.xlane.xlu0 %1236 }
 0x365   : > { %5546 = vmatprep.subr.bf16.mxu1 %v7635_v23  ;;  %6047 = vrcp.f32 %v1237_v9  ;;  %v1256_v4 = vpack.c.bf16 %v1248_v0, %v1248_v0 }
 0x366   : > { %2242 = vrot.lane.b32.xlu1 %v6610_v48, %s6203_s19 }
 0x368   : > { %v1684_v20 = vpop.permute.xlu0 %1683 }
 0x36a   : > { %v6044_v5 = vpop.eup %6043  ;;  %2291 = vrot.lane.b32.xlu1 %v6603_v37, %s6203_s19 }
 0x36b   : > { %5537 = vmatmul.mubr.msk.bf16.vlgmr.msra.gmra.mxu1 %vm1165_vm4, %v1256_v4  ;;  %v1249_v8 = vmul.f32 %v6044_v5, %v6547_v6  ;;  %v1639_v4 = vsel %vm719_vm2, %v1634_v26, 0 }
 0x36c   : > { %5547 = vmatpush3.bf16.msra.mxu1 %v1451_v3  ;;  %5548 = vmatprep.mubr.msk.bf16.mxu1 %vm6199_vm1, %v7635_v23  ;;  %v1734_v33 = vpop.permute.xlu0 %1733 }
 0x36d   : > { %v1257_v50 = vpack.c.bf16 %v1249_v8, %v1249_v8  ;;  %5558 = vmatprep.subr.bf16.mxu1 %v7635_v23 }
 0x36e   : > { %v6046_v53 = vpop.eup %6045 }
 0x36f   : > { %5543 = vmatmul.mubr.msk.bf16.vlgmr.msra.gmra.mxu0 %vm1165_vm4, %v1257_v50  ;;  %v1251_v6 = vmul.f32 %v6046_v53, %v6551_v7  ;;  %v1689_v7 = vsel %vm719_vm2, %v1684_v20, 0  ;;  %v1739_v50 = vsel %vm719_vm2, %v1734_v33, 0 }
 0x370   : > { %5553 = vmatpush3.bf16.msra.mxu0 %v1497_v12  ;;  %5554 = vmatprep.mubr.msk.bf16.mxu0 %vm6199_vm1, %v7635_v23  ;;  %v1732_v43 = vpop.permute.xlu0 %1731 }
 0x371   : > { %5564 = vmatprep.subr.bf16.mxu0 %v7635_v23  ;;  %v1259_v14 = vpack.c.bf16 %v1251_v6, %v1251_v6 }
 0x372   : > { %v6048_v2 = vpop.eup %6047 }
 0x373   : > { %v1253_v46 = vmul.f32 %v6048_v2, %v6555_v63 }
 0x375   : > { %v1261_v21 = vpack.c.bf16 %v1253_v46, %v1253_v46 }
 0x377   : > { %5555 = vmatmul.mubr.msk.bf16.vlgmr.msra.gmra.mxu0 %vm1165_vm4, %v1259_v14 }
 0x378   : > { %5565 = vmatpush3.bf16.msra.mxu0 %v1589_v36  ;;  %5566 = vmatprep.mubr.msk.bf16.mxu0 %vm6199_vm1, %v7635_v23 }
 0x379   : > { %5576 = vmatprep.subr.bf16.mxu0 %v7635_v23 }
 0x37f   : > { %5567 = vmatmul.mubr.msk.bf16.vlgmr.msra.gmra.mxu0 %vm1165_vm4, %v1261_v21 }
 0x380   : > { %5577 = vmatpush3.bf16.xpose.msra.mxu0 %v1689_v7  ;;  %5578 = vmatprep.mubr.msk.bf16.mxu0 %vm6199_vm1, %v7635_v23 }
 0x381   : > { %5588 = vmatprep.subr.bf16.mxu0 %v7635_v23 }
 0x389   : > { %v1228_v29 = vpop.xlane.xlu1 %1227 }
 0x38a   : > { %6049 = vrcp.f32 %v1228_v29 }
 0x38d   : > { %v1632_v42 = vpop.permute.xlu1 %1631 }
 0x397   : > { %v6050_v31 = vpop.eup %6049 }
 0x398   : > { %v1250_v63 = vmul.f32 %v6050_v31, %v6568_v18  ;;  %v1834_v18 = vpop.permute.xlu0 %1833 }
 0x399   : > { %v1839_v6 = vsel %vm719_vm2, %v1834_v18, 0 }
 0x39a   : > { %v1258_v24 = vpack.c.bf16 %v1250_v63, %v1250_v63 }
 0x39c   : > { %5549 = vmatmul.mubr.msk.bf16.vlgmr.msra.gmra.mxu1 %vm1165_vm4, %v1258_v24  ;;  %v1832_v57 = vpop.permute.xlu0 %1831 }
 0x39d   : > { %5559 = vmatpush3.bf16.msra.mxu1 %v1543_v32  ;;  %5560 = vmatprep.mubr.msk.bf16.mxu1 %vm6199_vm1, %v7635_v23 }
 0x39e   : > { %5570 = vmatprep.subr.bf16.mxu1 %v7635_v23 }
 0x3a0   : > { %v1934_v28 = vpop.permute.xlu0 %1933 }
 0x3a1   : > { %v1939_v14 = vsel %vm719_vm2, %v1934_v28, 0 }
 0x3be   : > { %v1234_v52 = vpop.xlane.xlu1 %1233 }
 0x3bf   : > { %6051 = vrcp.f32 %v1234_v52 }
 0x3c2   : > { %v1682_v59 = vpop.permute.xlu1 %1681 }
 0x3c3   : > { %5579 = vmatmul.mubr.msk.bf16.vlgmr.msra.gmra.mxu0 %vm719_vm2, %v1682_v59 }
 0x3c4   : > { %5590 = vmatprep.mubr.msk.bf16.mxu0 %vm6199_vm1, %v7635_v23 }
 0x3c6   : > { %v1784_v56 = vpop.permute.xlu1 %1783 }
 0x3c7   : > { %v1789_v44 = vsel %vm719_vm2, %v1784_v56, 0 }
 0x3c8   : > { %5589 = vmatpush3.bf16.xpose.msra.mxu0 %v1789_v44 }
 0x3c9   : > { %5600 = vmatprep.subr.bf16.mxu0 %v7635_v23 }
 0x3ca   : > { %v1782_v55 = vpop.permute.xlu1 %1781 }
 0x3cc   : > { %v6052_v30 = vpop.eup %6051 }
 0x3cd   : > { %v1252_v60 = vmul.f32 %v6052_v30, %v6585_v27  ;;  %v1932_v27 = vpop.permute.xlu0 %1931 }
 0x3ce   : > { %v1884_v41 = vpop.permute.xlu1 %1883 }
 0x3cf   : > { %v1889_v0 = vsel %vm719_vm2, %v1884_v41, 0  ;;  %5591 = vmatmul.mubr.msk.bf16.vlgmr.msra.gmra.mxu0 %vm719_vm2, %v1782_v55  ;;  %v1260_v9 = vpack.c.bf16 %v1252_v60, %v1252_v60 }
 0x3d0   : > { %5601 = vmatpush3.bf16.xpose.msra.mxu0 %v1889_v0  ;;  %5602 = vmatprep.mubr.msk.bf16.mxu0 %vm6199_vm1, %v7635_v23 }
 0x3d1   : > { %5561 = vmatmul.mubr.msk.bf16.vlgmr.msra.gmra.mxu1 %vm1165_vm4, %v1260_v9  ;;  %5612 = vmatprep.subr.bf16.mxu0 %v7635_v23  ;;  %v2194_v53 = vpop.permute.xlu0 %2193 }
 0x3d2   : > { %5571 = vmatpush3.bf16.xpose.msra.mxu1 %v1639_v4  ;;  %v1882_v5 = vpop.permute.xlu1 %1881  ;;  %5572 = vmatprep.mubr.msk.bf16.mxu1 %vm6199_vm1, %v7635_v23  ;;  %v2199_v12 = vsel %vm1265_vm3, %v2194_v53, 0 }
 0x3d3   : > { %5582 = vmatprep.subr.bf16.mxu1 %v7635_v23 }
 0x3d6   : > { %v1984_v3 = vpop.permute.xlu1 %1983 }
 0x3d7   : > { %v1989_v8 = vsel %vm719_vm2, %v1984_v3, 0  ;;  %5603 = vmatmul.mubr.msk.bf16.vlgmr.msra.gmra.mxu0 %vm719_vm2, %v1882_v5 }
 0x3d8   : > { %5613 = vmatpush3.bf16.xpose.msra.mxu0 %v1989_v8  ;;  %5614 = vmatprep.mubr.msk.bf16.mxu0 %vm6199_vm1, %v7635_v23 }
 0x3d9   : > { %5573 = vmatmul.mubr.msk.bf16.vlgmr.msra.gmra.mxu1 %vm719_vm2, %v1632_v42  ;;  %5624 = vmatprep.subr.bf16.mxu0 %v7635_v23 }
 0x3da   : > { %5583 = vmatpush3.bf16.xpose.msra.mxu1 %v1739_v50  ;;  %5584 = vmatprep.mubr.msk.bf16.mxu1 %vm6199_vm1, %v7635_v23  ;;  %v1982_v10 = vpop.permute.xlu1 %1981 }
 0x3db   : > { %5594 = vmatprep.subr.bf16.mxu1 %v7635_v23 }
 0x3de   : > { %v2145_v2 = vpop.permute.xlu1 %2144 }
 0x3df   : > { %5615 = vmatmul.mubr.msk.bf16.vlgmr.msra.gmra.mxu0 %vm719_vm2, %v1982_v10  ;;  %v2150_v36 = vsel %vm1265_vm3, %v2145_v2, 0 }
 0x3e0   : > { %5625 = vmatpush3.bf16.msra.mxu0 %v2199_v12  ;;  %5626 = vmatprep.mubr.msk.bf16.mxu0 %vm6199_vm1, %v7635_v23 }
 0x3e1   : > { %5585 = vmatmul.mubr.msk.bf16.vlgmr.msra.gmra.mxu1 %vm719_vm2, %v1732_v43  ;;  %5636 = vmatprep.subr.bf16.mxu0 %v7635_v23 }
 0x3e2   : > { %5595 = vmatpush3.bf16.xpose.msra.mxu1 %v1839_v6  ;;  %5596 = vmatprep.mubr.msk.bf16.mxu1 %vm6199_vm1, %v7635_v23 }
 0x3e3   : > { %5606 = vmatprep.subr.bf16.mxu1 %v7635_v23 }
 0x3e9   : > { %5597 = vmatmul.mubr.msk.bf16.vlgmr.msra.gmra.mxu1 %vm719_vm2, %v1832_v57 }
 0x3ea   : > { %5607 = vmatpush3.bf16.xpose.msra.mxu1 %v1939_v14  ;;  %5608 = vmatprep.mubr.msk.bf16.mxu1 %vm6199_vm1, %v7635_v23 }
 0x3eb   : > { %5618 = vmatprep.subr.bf16.mxu1 %v7635_v23 }
 0x3f1   : > { %5609 = vmatmul.mubr.msk.bf16.vlgmr.msra.gmra.mxu1 %vm719_vm2, %v1932_v27 }
 0x3f2   : > { %5619 = vmatpush3.bf16.msra.mxu1 %v2150_v36  ;;  %5620 = vmatprep.mubr.msk.bf16.mxu1 %vm6199_vm1, %v7635_v23 }
 0x3f3   : > { %5630 = vmatprep.subr.bf16.mxu1 %v7635_v23 }
 0x41f   : > { %v6727_v46 = vpop.f32.mrf.mxu0 }
 0x421   : > { %v5532_v20 = vpop.f32.mrf.mxu0 }
 0x423   : > { %v6729_v21 = vpop.f32.mrf.mxu1  ;;  %v1352_v7 = vpop.f32.mrf.mxu0 }
 0x425   : > { %v5526_v26 = vpop.f32.mrf.mxu1  ;;  %v5533_v29 = vpop.f32.mrf.mxu0 }
 0x427   : > { %v1306_v31 = vpop.f32.mrf.mxu1 }
 0x429   : > { %v5527_v63 = vpop.f32.mrf.mxu1 }
 0x42b   : > { %v6731_v24 = vpop.f32.mrf.mxu1 }
 0x42d   : > { %v5538_v32 = vpop.f32.mrf.mxu1 }
 0x42f   : > { %v1398_v33 = vpop.f32.mrf.mxu1  ;;  %v6733_v42 = vpop.f32.mrf.mxu0 }
 0x431   : > { %v5539_v43 = vpop.f32.mrf.mxu1  ;;  %v5544_v52 = vpop.f32.mrf.mxu0 }
 0x433   : > { %v1444_v59 = vpop.f32.mrf.mxu0 }
 0x435   : > { %v5545_v18 = vpop.f32.mrf.mxu0 }
 0x437   : > { %v6735_v56 = vpop.f32.mrf.mxu0 }
 0x439   : > { %v5556_v44 = vpop.f32.mrf.mxu0 }
 0x43b   : > { %v1536_v57 = vpop.f32.mrf.mxu0 }
 0x43d   : > { %v5557_v55 = vpop.f32.mrf.mxu0 }
 0x43f   : > { %v6737_v30 = vpop.f32.mrf.mxu0 }
 0x440   : > { %7637 = vst [vmem:[#allocation2_spill] sm:$0xff] %v6737_v30 }
 0x441   : > { %v5568_v60 = vpop.f32.mrf.mxu0 }
 0x443   : > { %v1628_v41 = vpop.f32.mrf.mxu0 }
 0x445   : > { %v5569_v0 = vpop.f32.mrf.mxu0 }
 0x45c   : > { %v6739_v9 = vpop.f32.mrf.mxu1 }
 0x45e   : > { %v5550_v28 = vpop.f32.mrf.mxu1 }
 0x460   : > { %v1490_v4 = vpop.f32.mrf.mxu1 }
 0x462   : > { %v5551_v5 = vpop.f32.mrf.mxu1 }
 0x483   : > { %v1725_v27 = vpop.f32.mrf.mxu0 }
 0x484   : > { %v2032_v3 = vmul.f32 0.25, %v1725_v27 }
 0x485   : > { %v5580_v8 = vpop.f32.mrf.mxu0 }
 0x486   : > { %v6742_v50 = vadd.f32 %v2032_v3, %v6476_v35 }
 0x487   : > { %v1728_v53 = vpop.f32.mrf.mxu0 }
 0x488   : > { %v2050_v10 = vsel %vm1165_vm4, %v6742_v50, -inf }
 0x489   : > { %2051 = vmax.xlane.f32.xlu1 %v2050_v10  ;;  %v5581_v12 = vpop.f32.mrf.mxu0 }
 0x48f   : > { %v1825_v6 = vpop.f32.mrf.mxu0 }
 0x490   : > { %v2034_v28 = vmul.f32 0.25, %v1825_v6 }
 0x491   : > { %v6746_v14 = vpop.f32.mrf.mxu1  ;;  %v5592_v2 = vpop.f32.mrf.mxu0 }
 0x492   : > { %7638 = vst [vmem:[#allocation3_spill] sm:$0xff] %v6746_v14  ;;  %v2042_v2 = vadd.f32 %v2034_v28, %v6502_v16 }
 0x493   : > { %v5562_v36 = vpop.f32.mrf.mxu1  ;;  %v1828_v20 = vpop.f32.mrf.mxu0 }
 0x495   : > { %v1582_v7 = vpop.f32.mrf.mxu1  ;;  %v5593_v26 = vpop.f32.mrf.mxu0 }
 0x497   : > { %v5563_v29 = vpop.f32.mrf.mxu1  ;;  %v1925_v31 = vpop.f32.mrf.mxu0 }
 0x498   : > { %v2036_v10 = vmul.f32 0.25, %v1925_v31  ;;  %v2056_v29 = vsel %vm1165_vm4, %v2042_v2, -inf }
 0x499   : > { %v1675_v63 = vpop.f32.mrf.mxu1  ;;  %v5604_v32 = vpop.f32.mrf.mxu0 }
 0x49a   : > { %v2031_v33 = vmul.f32 0.25, %v1675_v63  ;;  %v2044_v6 = vadd.f32 %v2036_v10, %v6505_v25 }
 0x49b   : > { %v5574_v43 = vpop.f32.mrf.mxu1  ;;  %v1928_v52 = vpop.f32.mrf.mxu0 }
 0x49c   : > { %v2039_v59 = vadd.f32 %v2031_v33, %v6484_v51  ;;  %v2062_v31 = vsel %vm1165_vm4, %v2044_v6, -inf }
 0x49d   : > { %v1678_v18 = vpop.f32.mrf.mxu1  ;;  %v5605_v44 = vpop.f32.mrf.mxu0 }
 0x49e   : > { %v2047_v57 = vsel %vm1165_vm4, %v2039_v59, -inf }
 0x49f   : > { %v5575_v55 = vpop.f32.mrf.mxu1  ;;  %2048 = vmax.xlane.f32.xlu0 %v2047_v57  ;;  %v2025_v60 = vpop.f32.mrf.mxu0 }
 0x4a0   : > { %v2038_v7 = vmul.f32 0.25, %v2025_v60 }
 0x4a1   : > { %v1775_v41 = vpop.f32.mrf.mxu1  ;;  %v5616_v0 = vpop.f32.mrf.mxu0 }
 0x4a2   : > { %v2033_v4 = vmul.f32 0.25, %v1775_v41  ;;  %v6759_v52 = vadd.f32 %v2038_v7, %v6511_v47 }
 0x4a3   : > { %v5586_v5 = vpop.f32.mrf.mxu1  ;;  %v2028_v27 = vpop.f32.mrf.mxu0 }
 0x4a4   : > { %v2041_v3 = vadd.f32 %v2033_v4, %v6492_v1  ;;  %v2068_v55 = vsel %vm1165_vm4, %v6759_v52, -inf  ;;  %v6769_v5 = vpop.permute.xlu1 %2242 }
 0x4a5   : > { %v1778_v8 = vpop.f32.mrf.mxu1  ;;  %v5617_v53 = vpop.f32.mrf.mxu0 }
 0x4a6   : > { %v2053_v12 = vsel %vm1165_vm4, %v2041_v3, -inf }
 0x4a7   : > { %2054 = vmax.xlane.f32.xlu0 %v2053_v12  ;;  %v5587_v36 = vpop.f32.mrf.mxu1 }
 0x4a8   : > { %v6771_v27 = vpop.permute.xlu1 %2291 }
 0x4a9   : > { %v1875_v20 = vpop.f32.mrf.mxu1 }
 0x4aa   : > { %v2035_v26 = vmul.f32 0.25, %v1875_v20 }
 0x4ab   : > { %2057 = vmax.xlane.f32.xlu0 %v2056_v29  ;;  %v5598_v63 = vpop.f32.mrf.mxu1 }
 0x4ac   : > { %v2043_v32 = vadd.f32 %v2035_v26, %v6514_v22 }
 0x4ad   : > { %v1878_v33 = vpop.f32.mrf.mxu1 }
 0x4ae   : > { %v2059_v43 = vsel %vm1165_vm4, %v2043_v32, -inf }
 0x4af   : > { %2063 = vmax.xlane.f32.xlu0 %v2062_v31  ;;  %2060 = vmax.xlane.f32.xlu1 %v2059_v43  ;;  %v5599_v18 = vpop.f32.mrf.mxu1 }
 0x4b1   : > { %v1975_v44 = vpop.f32.mrf.mxu1 }
 0x4b2   : > { %v2037_v57 = vmul.f32 0.25, %v1975_v44 }
 0x4b3   : > { %2069 = vmax.xlane.f32.xlu0 %v2068_v55  ;;  %v5610_v60 = vpop.f32.mrf.mxu1 }
 0x4b4   : > { %v2045_v41 = vadd.f32 %v2037_v57, %v6525_v11 }
 0x4b5   : > { %v1978_v0 = vpop.f32.mrf.mxu1 }
 0x4b6   : > { %v2065_v28 = vsel %vm1165_vm4, %v2045_v41, -inf }
 0x4b7   : > { %2066 = vmax.xlane.f32.xlu1 %v2065_v28  ;;  %v5611_v4 = vpop.f32.mrf.mxu1 }
 0x4c8   : > { %2389 = vrot.lane.b32.xlu1 %v6638_v38, %s6203_s19 }
 0x4c9   : > { %2340 = vrot.lane.b32.xlu0 %v6632_v61, %s6203_s19 }
 0x512   : > { %v2052_v8 = vpop.xlane.xlu1 %2051 }
 0x513   : > { %v2072_v53 = vsub.f32 %v6742_v50, %v2052_v8 }
 0x515   : > { %v2081_v10 = vmul.f32 1.442695, %v2072_v53 }
 0x517   : > { %6053 = vpow2.f32 %v2081_v10 }
 0x524   : > { %v6774_v12 = vpop.eup %6053 }
 0x525   : > { %v2098_v36 = vsel %vm1165_vm4, %v6774_v12, 0.0 }
 0x526   : > { %2099 = vadd.xlane.f32.xlu0 %v2098_v36 }
 0x528   : > { %v2049_v20 = vpop.xlane.xlu0 %2048 }
 0x529   : > { %v2071_v7 = vsub.f32 %v2039_v59, %v2049_v20 }
 0x52b   : > { %v2079_v26 = vmul.f32 1.442695, %v2071_v7 }
 0x52d   : > { %6055 = vpow2.f32 %v2079_v26 }
 0x530   : > { %v2055_v29 = vpop.xlane.xlu0 %2054 }
 0x531   : > { %v2073_v63 = vsub.f32 %v2041_v3, %v2055_v29 }
 0x533   : > { %v2083_v33 = vmul.f32 1.442695, %v2073_v63 }
 0x534   : > { %v2058_v31 = vpop.xlane.xlu0 %2057 }
 0x535   : > { %6057 = vpow2.f32 %v2083_v33  ;;  %v2074_v43 = vsub.f32 %v2042_v2, %v2058_v31 }
 0x537   : > { %v2085_v18 = vmul.f32 1.442695, %v2074_v43 }
 0x538   : > { %v2061_v50 = vpop.xlane.xlu1 %2060  ;;  %v2064_v44 = vpop.xlane.xlu0 %2063 }
 0x539   : > { %6059 = vpow2.f32 %v2085_v18  ;;  %v2075_v57 = vsub.f32 %v2043_v32, %v2061_v50  ;;  %v2076_v55 = vsub.f32 %v2044_v6, %v2064_v44 }
 0x53a   : > { %v6778_v60 = vpop.eup %6055 }
 0x53b   : > { %v2087_v0 = vmul.f32 1.442695, %v2075_v57  ;;  %v2089_v28 = vmul.f32 1.442695, %v2076_v55  ;;  %v2095_v59 = vsel %vm1165_vm4, %v6778_v60, 0.0 }
 0x53c   : > { %2096 = vadd.xlane.f32.xlu1 %v2095_v59  ;;  %v2070_v20 = vpop.xlane.xlu0 %2069 }
 0x53d   : > { %6061 = vpow2.f32 %v2087_v0  ;;  %v2078_v26 = vsub.f32 %v6759_v52, %v2070_v20  ;;  %v2297_v0 = vsel %vm1265_vm3, %v6771_v27, 0 }
 0x53e   : > { %6063 = vpow2.f32 %v2089_v28 }
 0x53f   : > { %v2093_v63 = vmul.f32 1.442695, %v2078_v26 }
 0x540   : > { %v2067_v36 = vpop.xlane.xlu1 %2066  ;;  %v2341_v52 = vpop.permute.xlu0 %2340 }
 0x541   : > { %v2077_v7 = vsub.f32 %v2045_v41, %v2067_v36  ;;  %v2248_v36 = vsel %vm1265_vm3, %v6769_v5, 0 }
 0x542   : > { %v6782_v3 = vpop.eup %6057 }
 0x543   : > { %v2101_v2 = vsel %vm1165_vm4, %v6782_v3, 0.0  ;;  %v2091_v29 = vmul.f32 1.442695, %v2077_v7 }
 0x544   : > { %2102 = vadd.xlane.f32.xlu1 %v2101_v2  ;;  %v2390_v55 = vpop.permute.xlu1 %2389 }
 0x545   : > { %6065 = vpow2.f32 %v2091_v29  ;;  %v2346_v29 = vsel %vm1265_vm3, %v2341_v52, 0 }
 0x546   : > { %v6786_v4 = vpop.eup %6059  ;;  %6067 = vpow2.f32 %v2093_v63 }
 0x547   : > { %v2104_v6 = vsel %vm1165_vm4, %v6786_v4, 0.0 }
 0x548   : > { %2105 = vadd.xlane.f32.xlu0 %v2104_v6 }
 0x54a   : > { %v6790_v32 = vpop.eup %6061 }
 0x54b   : > { %v6792_v8 = vpop.eup %6063  ;;  %v2107_v53 = vsel %vm1165_vm4, %v6790_v32, 0.0 }
 0x54c   : > { %2108 = vadd.xlane.f32.xlu1 %v2107_v53  ;;  %v2110_v10 = vsel %vm1165_vm4, %v6792_v8, 0.0 }
 0x54d   : > { %2111 = vadd.xlane.f32.xlu0 %v2110_v10 }
 0x552   : > { %v6803_v33 = vpop.eup %6065 }
 0x553   : > { %v6805_v31 = vpop.eup %6067  ;;  %v2113_v43 = vsel %vm1165_vm4, %v6803_v33, 0.0 }
 0x554   : > { %v2116_v18 = vsel %vm1165_vm4, %v6805_v31, 0.0 }
 0x55d   : > { %2487 = vrot.lane.b32.xlu1 %v6656_v13, %s6203_s19 }
 0x563   : > { %2438 = vrot.lane.b32.xlu0 %v6672_v17, %s6203_s19 }
 0x581   : > { %2114 = vadd.xlane.f32.xlu1 %v2113_v43 }
 0x582   : > { %2117 = vadd.xlane.f32.xlu0 %v2116_v18 }
 0x592   : > { %2587 = vrot.lane.b32.xlu1 %v6360_v34, %s6204_s20 }
 0x596   : > { %2585 = vrot.lane.b32.xlu1 %v6360_v34, %s6205_s21 }
 0x598   : > { %2537 = vrot.lane.b32.xlu0 %v6366_v39, %s6204_s20 }
 0x59a   : > { %2687 = vrot.lane.b32.xlu1 %v6379_v45, %s6204_s20 }
 0x59c   : > { %2535 = vrot.lane.b32.xlu0 %v6366_v39, %s6205_s21 }
 0x59e   : > { %2685 = vrot.lane.b32.xlu1 %v6379_v45, %s6205_s21 }
 0x5a0   : > { %2637 = vrot.lane.b32.xlu0 %v6368_v40, %s6204_s20 }
 0x5a2   : > { %2787 = vrot.lane.b32.xlu1 %v6392_v54, %s6204_s20 }
 0x5a4   : > { %2635 = vrot.lane.b32.xlu0 %v6368_v40, %s6205_s21 }
 0x5a6   : > { %2785 = vrot.lane.b32.xlu1 %v6392_v54, %s6205_s21 }
 0x5a8   : > { %2737 = vrot.lane.b32.xlu0 %v6383_v49, %s6204_s20 }
 0x5aa   : > { %2887 = vrot.lane.b32.xlu1 %v6403_v62, %s6204_s20 }
 0x5ac   : > { %2735 = vrot.lane.b32.xlu0 %v6383_v49, %s6205_s21 }
 0x5ae   : > { %2885 = vrot.lane.b32.xlu1 %v6403_v62, %s6205_s21 }
 0x5af   : > { %v2100_v41 = vpop.xlane.xlu0 %2099 }
 0x5b0   : > { %2837 = vrot.lane.b32.xlu0 %v6396_v58, %s6204_s20  ;;  %6069 = vrcp.f32 %v2100_v41  ;;  %v2395_v41 = vsel %vm1265_vm3, %v2390_v55, 0 }
 0x5b2   : > { %3047 = vrot.lane.b32.xlu1 %v6460_v19, %s6205_s21 }
 0x5b4   : > { %2835 = vrot.lane.b32.xlu0 %v6396_v58, %s6205_s21 }
 0x5b6   : > { %3143 = vrot.lane.b32.xlu1 %v6610_v48, %s6205_s21 }
 0x5b8   : > { %3095 = vrot.lane.b32.xlu0 %v6443_v15, %s6205_s21 }
 0x5ba   : > { %3191 = vrot.lane.b32.xlu1 %v6603_v37, %s6205_s21 }
 0x5bd   : > { %v6070_v50 = vpop.eup %6069 }
 0x5be   : > { %v2128_v44 = vmul.f32 %v6070_v50, %v6774_v12 }
 0x5c0   : > { %v2136_v57 = vpack.c.bf16 %v2128_v44, %v2128_v44 }
 0x5c2   : > { %5627 = vmatmul.mubr.msk.bf16.vlgmr.msra.gmra.mxu0 %vm1165_vm4, %v2136_v57 }
 0x5c3   : > { %5637 = vmatpush3.bf16.msra.mxu0 %v2297_v0  ;;  %5638 = vmatprep.mubr.msk.bf16.mxu0 %vm6199_vm1, %v7635_v23 }
 0x5c4   : > { %5648 = vmatprep.subr.bf16.mxu0 %v7635_v23 }
 0x5c5   : > { %v2097_v28 = vpop.xlane.xlu1 %2096 }
 0x5c6   : > { %6071 = vrcp.f32 %v2097_v28 }
 0x5cd   : > { %v2103_v59 = vpop.xlane.xlu1 %2102 }
 0x5ce   : > { %6073 = vrcp.f32 %v2103_v59 }
 0x5d1   : > { %v2106_v2 = vpop.xlane.xlu0 %2105 }
 0x5d2   : > { %6075 = vrcp.f32 %v2106_v2 }
 0x5d3   : > { %v6072_v12 = vpop.eup %6071 }
 0x5d4   : > { %v2127_v6 = vmul.f32 %v6072_v12, %v6778_v60 }
 0x5d5   : > { %v2109_v53 = vpop.xlane.xlu1 %2108 }
 0x5d6   : > { %6077 = vrcp.f32 %v2109_v53  ;;  %v2112_v27 = vpop.xlane.xlu0 %2111  ;;  %v2135_v10 = vpack.c.bf16 %v2127_v6, %v2127_v6 }
 0x5d7   : > { %6079 = vrcp.f32 %v2112_v27 }
 0x5d8   : > { %5621 = vmatmul.mubr.msk.bf16.vlgmr.msra.gmra.mxu1 %vm1165_vm4, %v2135_v10 }
 0x5d9   : > { %5631 = vmatpush3.bf16.msra.mxu1 %v2248_v36  ;;  %5632 = vmatprep.mubr.msk.bf16.mxu1 %vm6199_vm1, %v7635_v23  ;;  %v2488_v57 = vpop.permute.xlu1 %2487 }
 0x5da   : > { %5642 = vmatprep.subr.bf16.mxu1 %v7635_v23  ;;  %v2439_v52 = vpop.permute.xlu0 %2438  ;;  %v2493_v55 = vsel %vm1265_vm3, %v2488_v57, 0 }
 0x5db   : > { %v6074_v20 = vpop.eup %6073  ;;  %v2444_v44 = vsel %vm1265_vm3, %v2439_v52, 0 }
 0x5dc   : > { %v2129_v7 = vmul.f32 %v6074_v20, %v6782_v3 }
 0x5de   : > { %v2137_v60 = vpack.c.bf16 %v2129_v7, %v2129_v7 }
 0x5df   : > { %v6076_v26 = vpop.eup %6075 }
 0x5e0   : > { %5633 = vmatmul.mubr.msk.bf16.vlgmr.msra.gmra.mxu1 %vm1165_vm4, %v2137_v60  ;;  %v2130_v63 = vmul.f32 %v6076_v26, %v6786_v4 }
 0x5e1   : > { %5643 = vmatpush3.bf16.msra.mxu1 %v2346_v29  ;;  %5644 = vmatprep.mubr.msk.bf16.mxu1 %vm6199_vm1, %v7635_v23 }
 0x5e2   : > { %v2138_v5 = vpack.c.bf16 %v2130_v63, %v2130_v63  ;;  %5654 = vmatprep.subr.bf16.mxu1 %v7635_v23 }
 0x5e3   : > { %v6078_v43 = vpop.eup %6077 }
 0x5e4   : > { %v6080_v18 = vpop.eup %6079  ;;  %5639 = vmatmul.mubr.msk.bf16.vlgmr.msra.gmra.mxu0 %vm1165_vm4, %v2138_v5  ;;  %v2131_v3 = vmul.f32 %v6078_v43, %v6790_v32 }
 0x5e5   : > { %5649 = vmatpush3.bf16.msra.mxu0 %v2395_v41  ;;  %5650 = vmatprep.mubr.msk.bf16.mxu0 %vm6199_vm1, %v7635_v23  ;;  %v2132_v50 = vmul.f32 %v6080_v18, %v6792_v8 }
 0x5e6   : > { %v2139_v4 = vpack.c.bf16 %v2131_v3, %v2131_v3  ;;  %5660 = vmatprep.subr.bf16.mxu0 %v7635_v23 }
 0x5e7   : > { %v2140_v32 = vpack.c.bf16 %v2132_v50, %v2132_v50 }
 0x5e8   : > { %5645 = vmatmul.mubr.msk.bf16.vlgmr.msra.gmra.mxu1 %vm1165_vm4, %v2139_v4 }
 0x5e9   : > { %5655 = vmatpush3.bf16.msra.mxu1 %v2444_v44  ;;  %5656 = vmatprep.mubr.msk.bf16.mxu1 %vm6199_vm1, %v7635_v23 }
 0x5ea   : > { %5666 = vmatprep.subr.bf16.mxu1 %v7635_v23 }
 0x5ec   : > { %5651 = vmatmul.mubr.msk.bf16.vlgmr.msra.gmra.mxu0 %vm1165_vm4, %v2140_v32 }
 0x5ed   : > { %5661 = vmatpush3.bf16.msra.mxu0 %v2493_v55  ;;  %5662 = vmatprep.mubr.msk.bf16.mxu0 %vm6199_vm1, %v7635_v23 }
 0x5ee   : > { %5672 = vmatprep.subr.bf16.mxu0 %v7635_v23 }
 0x60a   : > { %v2115_v8 = vpop.xlane.xlu1 %2114 }
 0x60b   : > { %6081 = vrcp.f32 %v2115_v8  ;;  %v2118_v0 = vpop.xlane.xlu0 %2117 }
 0x60c   : > { %6083 = vrcp.f32 %v2118_v0 }
 0x60e   : > { %v2588_v28 = vpop.permute.xlu1 %2587 }
 0x60f   : > { %v2538_v59 = vpop.permute.xlu0 %2537  ;;  %v2593_v5 = vsel %vm719_vm2, %v2588_v28, 0 }
 0x610   : > { %v2543_v29 = vsel %vm719_vm2, %v2538_v59, 0 }
 0x612   : > { %v2586_v2 = vpop.permute.xlu1 %2585 }
 0x613   : > { %v2536_v12 = vpop.permute.xlu0 %2535 }
 0x616   : > { %v2688_v6 = vpop.permute.xlu1 %2687 }
 0x617   : > { %v2638_v53 = vpop.permute.xlu0 %2637  ;;  %v2693_v18 = vsel %vm719_vm2, %v2688_v6, 0 }
 0x618   : > { %v6082_v27 = vpop.eup %6081  ;;  %v2643_v43 = vsel %vm719_vm2, %v2638_v53, 0 }
 0x619   : > { %v6084_v10 = vpop.eup %6083  ;;  %v2133_v36 = vmul.f32 %v6082_v27, %v6803_v33 }
 0x61a   : > { %v2134_v20 = vmul.f32 %v6084_v10, %v6805_v31  ;;  %v2686_v60 = vpop.permute.xlu1 %2685 }
 0x61b   : > { %v2141_v7 = vpack.c.bf16 %v2133_v36, %v2133_v36  ;;  %v2636_v63 = vpop.permute.xlu0 %2635 }
 0x61c   : > { %v2142_v26 = vpack.c.bf16 %v2134_v20, %v2134_v20 }
 0x61d   : > { %5657 = vmatmul.mubr.msk.bf16.vlgmr.msra.gmra.mxu1 %vm1165_vm4, %v2141_v7 }
 0x61e   : > { %5663 = vmatmul.mubr.msk.bf16.vlgmr.msra.gmra.mxu0 %vm1165_vm4, %v2142_v26  ;;  %5667 = vmatpush3.bf16.xpose.msra.mxu1 %v2543_v29  ;;  %v2788_v33 = vpop.permute.xlu1 %2787 }
 0x61f   : > { %5673 = vmatpush3.bf16.xpose.msra.mxu0 %v2593_v5  ;;  %5668 = vmatprep.mubr.msk.bf16.mxu1 %vm6199_vm1, %v7635_v23  ;;  %v2738_v31 = vpop.permute.xlu0 %2737  ;;  %v2793_v4 = vsel %vm719_vm2, %v2788_v33, 0 }
 0x620   : > { %5674 = vmatprep.mubr.msk.bf16.mxu0 %vm6199_vm1, %v7635_v23  ;;  %5678 = vmatprep.subr.bf16.mxu1 %v7635_v23  ;;  %v2743_v52 = vsel %vm719_vm2, %v2738_v31, 0 }
 0x621   : > { %5684 = vmatprep.subr.bf16.mxu0 %v7635_v23 }
 0x622   : > { %v2786_v41 = vpop.permute.xlu1 %2785 }
 0x623   : > { %v2736_v3 = vpop.permute.xlu0 %2735 }
 0x625   : > { %5669 = vmatmul.mubr.msk.bf16.vlgmr.msra.gmra.mxu1 %vm719_vm2, %v2536_v12 }
 0x626   : > { %5675 = vmatmul.mubr.msk.bf16.vlgmr.msra.gmra.mxu0 %vm719_vm2, %v2586_v2  ;;  %5679 = vmatpush3.bf16.xpose.msra.mxu1 %v2643_v43  ;;  %v2888_v50 = vpop.permute.xlu1 %2887 }
 0x627   : > { %5685 = vmatpush3.bf16.xpose.msra.mxu0 %v2693_v18  ;;  %5680 = vmatprep.mubr.msk.bf16.mxu1 %vm6199_vm1, %v7635_v23  ;;  %v2838_v44 = vpop.permute.xlu0 %2837  ;;  %v2893_v8 = vsel %vm719_vm2, %v2888_v50, 0 }
 0x628   : > { %5686 = vmatprep.mubr.msk.bf16.mxu0 %vm6199_vm1, %v7635_v23  ;;  %5690 = vmatprep.subr.bf16.mxu1 %v7635_v23  ;;  %v2843_v32 = vsel %vm719_vm2, %v2838_v44, 0 }
 0x629   : > { %5696 = vmatprep.subr.bf16.mxu0 %v7635_v23 }
 0x62a   : > { %v2886_v57 = vpop.permute.xlu1 %2885 }
 0x62b   : > { %v2836_v55 = vpop.permute.xlu0 %2835 }
 0x62d   : > { %5681 = vmatmul.mubr.msk.bf16.vlgmr.msra.gmra.mxu1 %vm719_vm2, %v2636_v63 }
 0x62e   : > { %5687 = vmatmul.mubr.msk.bf16.vlgmr.msra.gmra.mxu0 %vm719_vm2, %v2686_v60  ;;  %5691 = vmatpush3.bf16.xpose.msra.mxu1 %v2743_v52  ;;  %v3048_v0 = vpop.permute.xlu1 %3047 }
 0x62f   : > { %5697 = vmatpush3.bf16.xpose.msra.mxu0 %v2793_v4  ;;  %5692 = vmatprep.mubr.msk.bf16.mxu1 %vm6199_vm1, %v7635_v23  ;;  %v3096_v28 = vpop.permute.xlu0 %3095  ;;  %v3053_v59 = vsel %vm1265_vm3, %v3048_v0, 0 }
 0x630   : > { %5698 = vmatprep.mubr.msk.bf16.mxu0 %vm6199_vm1, %v7635_v23  ;;  %5702 = vmatprep.subr.bf16.mxu1 %v7635_v23  ;;  %v3101_v2 = vsel %vm1265_vm3, %v3096_v28, 0 }
 0x631   : > { %5708 = vmatprep.subr.bf16.mxu0 %v7635_v23 }
 0x635   : > { %5693 = vmatmul.mubr.msk.bf16.vlgmr.msra.gmra.mxu1 %vm719_vm2, %v2736_v3 }
 0x636   : > { %5699 = vmatmul.mubr.msk.bf16.vlgmr.msra.gmra.mxu0 %vm719_vm2, %v2786_v41  ;;  %5703 = vmatpush3.bf16.xpose.msra.mxu1 %v2843_v32 }
 0x637   : > { %5709 = vmatpush3.bf16.xpose.msra.mxu0 %v2893_v8  ;;  %5704 = vmatprep.mubr.msk.bf16.mxu1 %vm6199_vm1, %v7635_v23 }
 0x638   : > { %5710 = vmatprep.mubr.msk.bf16.mxu0 %vm6199_vm1, %v7635_v23  ;;  %5714 = vmatprep.subr.bf16.mxu1 %v7635_v23 }
 0x639   : > { %5720 = vmatprep.subr.bf16.mxu0 %v7635_v23 }
 0x63d   : > { %5705 = vmatmul.mubr.msk.bf16.vlgmr.msra.gmra.mxu1 %vm719_vm2, %v2836_v55 }
 0x63e   : > { %5711 = vmatmul.mubr.msk.bf16.vlgmr.msra.gmra.mxu0 %vm719_vm2, %v2886_v57  ;;  %5715 = vmatpush3.bf16.msra.mxu1 %v3053_v59 }
 0x63f   : > { %5721 = vmatpush3.bf16.msra.mxu0 %v3101_v2  ;;  %5716 = vmatprep.mubr.msk.bf16.mxu1 %vm6199_vm1, %v7635_v23 }
 0x640   : > { %5722 = vmatprep.mubr.msk.bf16.mxu0 %vm6199_vm1, %v7635_v23  ;;  %5726 = vmatprep.subr.bf16.mxu1 %v7635_v23 }
 0x641   : > { %5732 = vmatprep.subr.bf16.mxu0 %v7635_v23 }
 0x682   : > { %v6941_v12 = vpop.f32.mrf.mxu0 }
 0x684   : > { %v5628_v6 = vpop.f32.mrf.mxu0 }
 0x686   : > { %v2238_v53 = vpop.f32.mrf.mxu0 }
 0x688   : > { %v5629_v27 = vpop.f32.mrf.mxu0 }
 0x698   : > { %v6943_v10 = vpop.f32.mrf.mxu1 }
 0x69a   : > { %v5622_v20 = vpop.f32.mrf.mxu1 }
 0x69c   : > { %v2189_v7 = vpop.f32.mrf.mxu1 }
 0x69e   : > { %v5623_v60 = vpop.f32.mrf.mxu1 }
 0x6a0   : > { %v6947_v26 = vpop.f32.mrf.mxu1 }
 0x6a2   : > { %v5634_v29 = vpop.f32.mrf.mxu1 }
 0x6a4   : > { %v2287_v63 = vpop.f32.mrf.mxu1  ;;  %v6949_v5 = vpop.f32.mrf.mxu0 }
 0x6a6   : > { %v5635_v31 = vpop.f32.mrf.mxu1  ;;  %v5640_v43 = vpop.f32.mrf.mxu0 }
 0x6a8   : > { %v2336_v18 = vpop.f32.mrf.mxu0  ;;  %v6953_v41 = vpop.f32.mrf.mxu1 }
 0x6aa   : > { %v5641_v3 = vpop.f32.mrf.mxu0  ;;  %v5646_v52 = vpop.f32.mrf.mxu1 }
 0x6ac   : > { %v2385_v4 = vpop.f32.mrf.mxu1  ;;  %v6955_v50 = vpop.f32.mrf.mxu0 }
 0x6ae   : > { %v5647_v57 = vpop.f32.mrf.mxu1  ;;  %v5652_v32 = vpop.f32.mrf.mxu0 }
 0x6b0   : > { %v2434_v55 = vpop.f32.mrf.mxu0 }
 0x6b2   : > { %v5653_v8 = vpop.f32.mrf.mxu0 }
 0x6dd   : > { %v6959_v0 = vpop.f32.mrf.mxu1 }
 0x6de   : > { %v6961_v28 = vpop.f32.mrf.mxu0 }
 0x6df   : > { %v5658_v2 = vpop.f32.mrf.mxu1 }
 0x6e0   : > { %v5664_v6 = vpop.f32.mrf.mxu0 }
 0x6e1   : > { %v2483_v53 = vpop.f32.mrf.mxu1 }
 0x6e2   : > { %v2532_v27 = vpop.f32.mrf.mxu0 }
 0x6e3   : > { %v5659_v20 = vpop.f32.mrf.mxu1 }
 0x6e4   : > { %v5665_v7 = vpop.f32.mrf.mxu0 }
 0x6e5   : > { %v2579_v60 = vpop.f32.mrf.mxu1 }
 0x6e6   : > { %v2935_v29 = vmul.f32 0.25, %v2579_v60  ;;  %v2629_v63 = vpop.f32.mrf.mxu0 }
 0x6e7   : > { %v2936_v31 = vmul.f32 0.25, %v2629_v63  ;;  %v5670_v43 = vpop.f32.mrf.mxu1 }
 0x6e8   : > { %v5676_v18 = vpop.f32.mrf.mxu0  ;;  %v6966_v3 = vadd.f32 %v2935_v29, %v6484_v51 }
 0x6e9   : > { %v2582_v52 = vpop.f32.mrf.mxu1  ;;  %v6969_v4 = vadd.f32 %v2936_v31, %v6476_v35 }
 0x6ea   : > { %v2632_v57 = vpop.f32.mrf.mxu0  ;;  %v2951_v32 = vsel %vm1165_vm4, %v6966_v3, -inf }
 0x6eb   : > { %v2954_v55 = vsel %vm1165_vm4, %v6969_v4, -inf  ;;  %2952 = vmax.xlane.f32.xlu0 %v2951_v32  ;;  %v5671_v8 = vpop.f32.mrf.mxu1 }
 0x6ec   : > { %2955 = vmax.xlane.f32.xlu1 %v2954_v55  ;;  %v5677_v2 = vpop.f32.mrf.mxu0 }
 0x6ed   : > { %v2679_v6 = vpop.f32.mrf.mxu1 }
 0x6ee   : > { %v2937_v53 = vmul.f32 0.25, %v2679_v6  ;;  %v2729_v27 = vpop.f32.mrf.mxu0 }
 0x6ef   : > { %v2938_v20 = vmul.f32 0.25, %v2729_v27  ;;  %v5682_v7 = vpop.f32.mrf.mxu1 }
 0x6f0   : > { %v5688_v60 = vpop.f32.mrf.mxu0  ;;  %v2945_v29 = vadd.f32 %v2937_v53, %v6492_v1 }
 0x6f1   : > { %v2682_v63 = vpop.f32.mrf.mxu1  ;;  %v2946_v18 = vadd.f32 %v2938_v20, %v6502_v16 }
 0x6f2   : > { %v2732_v31 = vpop.f32.mrf.mxu0  ;;  %v2957_v43 = vsel %vm1165_vm4, %v2945_v29, -inf }
 0x6f3   : > { %2958 = vmax.xlane.f32.xlu0 %v2957_v43  ;;  %v5683_v52 = vpop.f32.mrf.mxu1  ;;  %v2960_v2 = vsel %vm1165_vm4, %v2946_v18, -inf }
 0x6f4   : > { %v5689_v57 = vpop.f32.mrf.mxu0 }
 0x6f5   : > { %v2779_v32 = vpop.f32.mrf.mxu1 }
 0x6f6   : > { %v2939_v55 = vmul.f32 0.25, %v2779_v32  ;;  %v2829_v8 = vpop.f32.mrf.mxu0 }
 0x6f7   : > { %v2940_v6 = vmul.f32 0.25, %v2829_v8  ;;  %2961 = vmax.xlane.f32.xlu0 %v2960_v2  ;;  %v5694_v27 = vpop.f32.mrf.mxu1 }
 0x6f8   : > { %v5700_v7 = vpop.f32.mrf.mxu0  ;;  %v2947_v53 = vadd.f32 %v2939_v55, %v6514_v22 }
 0x6f9   : > { %v2782_v60 = vpop.f32.mrf.mxu1  ;;  %v2948_v63 = vadd.f32 %v2940_v6, %v6505_v25 }
 0x6fa   : > { %v2832_v31 = vpop.f32.mrf.mxu0  ;;  %v2963_v20 = vsel %vm1165_vm4, %v2947_v53, -inf }
 0x6fb   : > { %v2966_v43 = vsel %vm1165_vm4, %v2948_v63, -inf  ;;  %2964 = vmax.xlane.f32.xlu1 %v2963_v20  ;;  %v5695_v52 = vpop.f32.mrf.mxu1 }
 0x6fc   : > { %v5701_v57 = vpop.f32.mrf.mxu0  ;;  %2967 = vmax.xlane.f32.xlu0 %v2966_v43  ;;  %v6991_v43 = vpop.permute.xlu1 %3143 }
 0x6fd   : > { %v2879_v32 = vpop.f32.mrf.mxu1 }
 0x6fe   : > { %v2941_v44 = vmul.f32 0.25, %v2879_v32  ;;  %v2929_v8 = vpop.f32.mrf.mxu0 }
 0x6ff   : > { %v2942_v2 = vmul.f32 0.25, %v2929_v8  ;;  %v5706_v27 = vpop.f32.mrf.mxu1 }
 0x700   : > { %v5712_v7 = vpop.f32.mrf.mxu0  ;;  %v2949_v55 = vadd.f32 %v2941_v44, %v6525_v11  ;;  %v6993_v44 = vpop.permute.xlu1 %3191 }
 0x701   : > { %v2882_v60 = vpop.f32.mrf.mxu1  ;;  %v2950_v6 = vadd.f32 %v2942_v2, %v6511_v47 }
 0x702   : > { %v2932_v31 = vpop.f32.mrf.mxu0  ;;  %v2969_v36 = vsel %vm1165_vm4, %v2949_v55, -inf }
 0x703   : > { %v2972_v59 = vsel %vm1165_vm4, %v2950_v6, -inf  ;;  %2970 = vmax.xlane.f32.xlu1 %v2969_v36  ;;  %v5707_v20 = vpop.f32.mrf.mxu1 }
 0x704   : > { %v5713_v52 = vpop.f32.mrf.mxu0  ;;  %2973 = vmax.xlane.f32.xlu0 %v2972_v59 }
 0x714   : > { %3287 = vrot.lane.b32.xlu1 %v6638_v38, %s6205_s21 }
 0x71a   : > { %3239 = vrot.lane.b32.xlu0 %v6632_v61, %s6205_s21 }
 0x774   : > { %v2953_v57 = vpop.xlane.xlu0 %2952 }
 0x775   : > { %v2956_v32 = vpop.xlane.xlu1 %2955  ;;  %v2975_v8 = vsub.f32 %v6966_v3, %v2953_v57 }
 0x776   : > { %v2976_v2 = vsub.f32 %v6969_v4, %v2956_v32 }
 0x777   : > { %v2983_v36 = vmul.f32 1.442695, %v2975_v8 }
 0x778   : > { %v2985_v27 = vmul.f32 1.442695, %v2976_v2 }
 0x779   : > { %6085 = vpow2.f32 %v2983_v36 }
 0x77a   : > { %6087 = vpow2.f32 %v2985_v27 }
 0x77c   : > { %v2959_v59 = vpop.xlane.xlu0 %2958 }
 0x77d   : > { %v2977_v7 = vsub.f32 %v2945_v29, %v2959_v59 }
 0x77f   : > { %v2987_v60 = vmul.f32 1.442695, %v2977_v7 }
 0x780   : > { %v2962_v31 = vpop.xlane.xlu0 %2961 }
 0x781   : > { %6089 = vpow2.f32 %v2987_v60  ;;  %v2978_v20 = vsub.f32 %v2946_v18, %v2962_v31 }
 0x783   : > { %v2989_v52 = vmul.f32 1.442695, %v2978_v20 }
 0x784   : > { %v2965_v33 = vpop.xlane.xlu1 %2964 }
 0x785   : > { %6091 = vpow2.f32 %v2989_v52  ;;  %v2979_v23 = vsub.f32 %v2947_v53, %v2965_v33  ;;  %v2968_v14 = vpop.xlane.xlu0 %2967 }
 0x786   : > { %v6997_v30 = vpop.eup %6085  ;;  %v2980_v3 = vsub.f32 %v2948_v63, %v2968_v14 }
 0x787   : > { %v6999_v57 = vpop.eup %6087  ;;  %v2991_v4 = vmul.f32 1.442695, %v2979_v23  ;;  %v2999_v32 = vsel %vm1165_vm4, %v6997_v30, 0.0 }
 0x788   : > { %v2993_v8 = vmul.f32 1.442695, %v2980_v3  ;;  %v3002_v29 = vsel %vm1165_vm4, %v6999_v57, 0.0  ;;  %3000 = vadd.xlane.f32.xlu1 %v2999_v32 }
 0x789   : > { %6093 = vpow2.f32 %v2991_v4  ;;  %3003 = vadd.xlane.f32.xlu0 %v3002_v29 }
 0x78a   : > { %6095 = vpow2.f32 %v2993_v8 }
 0x78c   : > { %v2971_v27 = vpop.xlane.xlu1 %2970 }
 0x78d   : > { %v2974_v59 = vpop.xlane.xlu0 %2973  ;;  %v2981_v7 = vsub.f32 %v2949_v55, %v2971_v27 }
 0x78e   : > { %v7005_v18 = vpop.eup %6089  ;;  %v2982_v60 = vsub.f32 %v2950_v6, %v2974_v59 }
 0x78f   : > { %v3005_v33 = vsel %vm1165_vm4, %v7005_v18, 0.0  ;;  %v2995_v31 = vmul.f32 1.442695, %v2981_v7 }
 0x790   : > { %3006 = vadd.xlane.f32.xlu1 %v3005_v33  ;;  %v2997_v20 = vmul.f32 1.442695, %v2982_v60 }
 0x791   : > { %6097 = vpow2.f32 %v2995_v31 }
 0x792   : > { %v7009_v14 = vpop.eup %6091  ;;  %6099 = vpow2.f32 %v2997_v20 }
 0x793   : > { %v3008_v23 = vsel %vm1165_vm4, %v7009_v14, 0.0 }
 0x794   : > { %3009 = vadd.xlane.f32.xlu0 %v3008_v23  ;;  %v3149_v23 = vsel %vm1265_vm3, %v6991_v43, 0 }
 0x796   : > { %v7013_v53 = vpop.eup %6093 }
 0x797   : > { %v7015_v63 = vpop.eup %6095  ;;  %v3011_v2 = vsel %vm1165_vm4, %v7013_v53, 0.0 }
 0x798   : > { %3012 = vadd.xlane.f32.xlu1 %v3011_v2  ;;  %v3014_v36 = vsel %vm1165_vm4, %v7015_v63, 0.0  ;;  %v3197_v2 = vsel %vm1265_vm3, %v6993_v44, 0 }
 0x799   : > { %3015 = vadd.xlane.f32.xlu0 %v3014_v36 }
 0x79e   : > { %v7025_v52 = vpop.eup %6097 }
 0x79f   : > { %v7027_v3 = vpop.eup %6099  ;;  %v3017_v4 = vsel %vm1165_vm4, %v7025_v52, 0.0 }
 0x7a0   : > { %v3020_v32 = vsel %vm1165_vm4, %v7027_v3, 0.0 }
 0x7a9   : > { %3383 = vrot.lane.b32.xlu1 %v6656_v13, %s6205_s21 }
 0x7af   : > { %3335 = vrot.lane.b32.xlu0 %v6672_v17, %s6205_s21 }
 0x7cd   : > { %3018 = vadd.xlane.f32.xlu1 %v3017_v4 }
 0x7ce   : > { %3021 = vadd.xlane.f32.xlu0 %v3020_v32 }
 0x7de   : > { %3483 = vrot.lane.b32.xlu1 %v6360_v34, %s6206_s22 }
 0x7e2   : > { %3481 = vrot.lane.b32.xlu1 %v6360_v34, %s6207_s23  ;;  %v3288_v34 = vpop.permute.xlu1 %3287 }
 0x7e4   : > { %3433 = vrot.lane.b32.xlu0 %v6366_v39, %s6206_s22 }
 0x7e6   : > { %3583 = vrot.lane.b32.xlu1 %v6379_v45, %s6206_s22 }
 0x7e8   : > { %3431 = vrot.lane.b32.xlu0 %v6366_v39, %s6207_s23  ;;  %v3240_v39 = vpop.permute.xlu0 %3239 }
 0x7e9   : > { %v3245_v44 = vsel %vm1265_vm3, %v3240_v39, 0 }
 0x7ea   : > { %3581 = vrot.lane.b32.xlu1 %v6379_v45, %s6207_s23 }
 0x7ec   : > { %3533 = vrot.lane.b32.xlu0 %v6368_v40, %s6206_s22 }
 0x7ee   : > { %3683 = vrot.lane.b32.xlu1 %v6392_v54, %s6206_s22 }
 0x7f0   : > { %3531 = vrot.lane.b32.xlu0 %v6368_v40, %s6207_s23 }
 0x7f2   : > { %3681 = vrot.lane.b32.xlu1 %v6392_v54, %s6207_s23 }
 0x7f4   : > { %3633 = vrot.lane.b32.xlu0 %v6383_v49, %s6206_s22 }
 0x7f6   : > { %3783 = vrot.lane.b32.xlu1 %v6403_v62, %s6206_s22 }
 0x7f8   : > { %3631 = vrot.lane.b32.xlu0 %v6383_v49, %s6207_s23 }
 0x7fa   : > { %3781 = vrot.lane.b32.xlu1 %v6403_v62, %s6207_s23 }
 0x7fc   : > { %3733 = vrot.lane.b32.xlu0 %v6396_v58, %s6206_s22 }
 0x7fe   : > { %3943 = vrot.lane.b32.xlu1 %v6460_v19, %s6207_s23 }
 0x800   : > { %3731 = vrot.lane.b32.xlu0 %v6396_v58, %s6207_s23 }
 0x811   : > { %v3001_v40 = vpop.xlane.xlu1 %3000 }
 0x812   : > { %6101 = vrcp.f32 %v3001_v40  ;;  %v3004_v45 = vpop.xlane.xlu0 %3003 }
 0x813   : > { %6103 = vrcp.f32 %v3004_v45 }
 0x819   : > { %v3007_v54 = vpop.xlane.xlu1 %3006 }
 0x81a   : > { %6105 = vrcp.f32 %v3007_v54 }
 0x81d   : > { %v3010_v49 = vpop.xlane.xlu0 %3009 }
 0x81e   : > { %6107 = vrcp.f32 %v3010_v49 }
 0x81f   : > { %v6102_v62 = vpop.eup %6101 }
 0x820   : > { %v6104_v55 = vpop.eup %6103  ;;  %v3031_v6 = vmul.f32 %v6102_v62, %v6997_v30  ;;  %v7639_v30 = vmov 0.0  }
 0x821   : > { %v3013_v8 = vpop.xlane.xlu1 %3012  ;;  %v3032_v19 = vmul.f32 %v6104_v55, %v6999_v57 }
 0x822   : > { %6109 = vrcp.f32 %v3013_v8  ;;  %v3016_v29 = vpop.xlane.xlu0 %3015  ;;  %v3039_v58 = vpack.c.bf16 %v3031_v6, %v3031_v6 }
 0x823   : > { %6111 = vrcp.f32 %v3016_v29  ;;  %v3040_v33 = vpack.c.bf16 %v3032_v19, %v3032_v19 }
 0x824   : > { %5717 = vmatmul.mubr.msk.bf16.vlgmr.msra.gmra.mxu1 %vm1165_vm4, %v3039_v58 }
 0x825   : > { %5723 = vmatmul.mubr.msk.bf16.vlgmr.msra.gmra.mxu0 %vm1165_vm4, %v3040_v33  ;;  %5727 = vmatpush3.bf16.msra.mxu1 %v3149_v23  ;;  %v3384_v40 = vpop.permute.xlu1 %3383 }
 0x826   : > { %5733 = vmatpush3.bf16.msra.mxu0 %v3197_v2  ;;  %5728 = vmatprep.mubr.msk.bf16.mxu1 %vm6199_vm1, %v7639_v30  ;;  %v3336_v4 = vpop.permute.xlu0 %3335 }
 0x827   : > { %v6106_v57 = vpop.eup %6105  ;;  %5738 = vmatprep.subr.bf16.mxu1 %v7639_v30  ;;  %5734 = vmatprep.mubr.msk.bf16.mxu0 %vm6199_vm1, %v7639_v30  ;;  %v3341_v39 = vsel %vm1265_vm3, %v3336_v4, 0 }
 0x828   : > { %v3033_v43 = vmul.f32 %v6106_v57, %v7005_v18  ;;  %5744 = vmatprep.subr.bf16.mxu0 %v7639_v30  ;;  %v3293_v18 = vsel %vm1265_vm3, %v3288_v34, 0  ;;  %v3389_v34 = vsel %vm1265_vm3, %v3384_v40, 0 }
 0x82a   : > { %v3041_v36 = vpack.c.bf16 %v3033_v43, %v3033_v43 }
 0x82b   : > { %v6108_v27 = vpop.eup %6107 }
 0x82c   : > { %5729 = vmatmul.mubr.msk.bf16.vlgmr.msra.gmra.mxu1 %vm1165_vm4, %v3041_v36  ;;  %v3034_v59 = vmul.f32 %v6108_v27, %v7009_v14 }
 0x82d   : > { %5739 = vmatpush3.bf16.msra.mxu1 %v3245_v44  ;;  %5740 = vmatprep.mubr.msk.bf16.mxu1 %vm6199_vm1, %v7639_v30 }
 0x82e   : > { %v3042_v7 = vpack.c.bf16 %v3034_v59, %v3034_v59  ;;  %5750 = vmatprep.subr.bf16.mxu1 %v7639_v30 }
 0x82f   : > { %v6110_v60 = vpop.eup %6109 }
 0x830   : > { %v6112_v31 = vpop.eup %6111  ;;  %5735 = vmatmul.mubr.msk.bf16.vlgmr.msra.gmra.mxu0 %vm1165_vm4, %v3042_v7  ;;  %v3035_v20 = vmul.f32 %v6110_v60, %v7013_v53 }
 0x831   : > { %5745 = vmatpush3.bf16.msra.mxu0 %v3293_v18  ;;  %5746 = vmatprep.mubr.msk.bf16.mxu0 %vm6199_vm1, %v7639_v30  ;;  %v3036_v32 = vmul.f32 %v6112_v31, %v7015_v63 }
 0x832   : > { %v3043_v14 = vpack.c.bf16 %v3035_v20, %v3035_v20  ;;  %5756 = vmatprep.subr.bf16.mxu0 %v7639_v30 }
 0x833   : > { %v3044_v53 = vpack.c.bf16 %v3036_v32, %v3036_v32 }
 0x834   : > { %5741 = vmatmul.mubr.msk.bf16.vlgmr.msra.gmra.mxu1 %vm1165_vm4, %v3043_v14 }
 0x835   : > { %5751 = vmatpush3.bf16.msra.mxu1 %v3341_v39  ;;  %5752 = vmatprep.mubr.msk.bf16.mxu1 %vm6199_vm1, %v7639_v30 }
 0x836   : > { %5762 = vmatprep.subr.bf16.mxu1 %v7639_v30 }
 0x838   : > { %5747 = vmatmul.mubr.msk.bf16.vlgmr.msra.gmra.mxu0 %vm1165_vm4, %v3044_v53 }
 0x839   : > { %5757 = vmatpush3.bf16.msra.mxu0 %v3389_v34  ;;  %5758 = vmatprep.mubr.msk.bf16.mxu0 %vm6199_vm1, %v7639_v30 }
 0x83a   : > { %5768 = vmatprep.subr.bf16.mxu0 %v7639_v30 }
 0x856   : > { %v3019_v63 = vpop.xlane.xlu1 %3018 }
 0x857   : > { %6113 = vrcp.f32 %v3019_v63  ;;  %v3022_v45 = vpop.xlane.xlu0 %3021 }
 0x858   : > { %6115 = vrcp.f32 %v3022_v45 }
 0x85a   : > { %v3484_v54 = vpop.permute.xlu1 %3483 }
 0x85b   : > { %v3434_v49 = vpop.permute.xlu0 %3433  ;;  %v3489_v36 = vsel %vm719_vm2, %v3484_v54, 0 }
 0x85c   : > { %v3439_v43 = vsel %vm719_vm2, %v3434_v49, 0 }
 0x85e   : > { %v3482_v62 = vpop.permute.xlu1 %3481 }
 0x85f   : > { %v3432_v55 = vpop.permute.xlu0 %3431 }
 0x862   : > { %v3584_v6 = vpop.permute.xlu1 %3583 }
 0x863   : > { %v3534_v58 = vpop.permute.xlu0 %3533  ;;  %v3589_v44 = vsel %vm719_vm2, %v3584_v6, 0 }
 0x864   : > { %v6114_v8 = vpop.eup %6113  ;;  %v3539_v27 = vsel %vm719_vm2, %v3534_v58, 0 }
 0x865   : > { %v6116_v19 = vpop.eup %6115  ;;  %v3037_v29 = vmul.f32 %v6114_v8, %v7025_v52 }
 0x866   : > { %v3038_v33 = vmul.f32 %v6116_v19, %v7027_v3  ;;  %v3582_v2 = vpop.permute.xlu1 %3581 }
 0x867   : > { %v3045_v23 = vpack.c.bf16 %v3037_v29, %v3037_v29  ;;  %v3532_v52 = vpop.permute.xlu0 %3531 }
 0x868   : > { %v3046_v57 = vpack.c.bf16 %v3038_v33, %v3038_v33 }
 0x869   : > { %5753 = vmatmul.mubr.msk.bf16.vlgmr.msra.gmra.mxu1 %vm1165_vm4, %v3045_v23 }
 0x86a   : > { %5759 = vmatmul.mubr.msk.bf16.vlgmr.msra.gmra.mxu0 %vm1165_vm4, %v3046_v57  ;;  %5763 = vmatpush3.bf16.xpose.msra.mxu1 %v3439_v43  ;;  %v3684_v3 = vpop.permute.xlu1 %3683 }
 0x86b   : > { %5769 = vmatpush3.bf16.xpose.msra.mxu0 %v3489_v36  ;;  %5764 = vmatprep.mubr.msk.bf16.mxu1 %vm6199_vm1, %v7639_v30  ;;  %v3634_v59 = vpop.permute.xlu0 %3633  ;;  %v3689_v18 = vsel %vm719_vm2, %v3684_v3, 0 }
 0x86c   : > { %5770 = vmatprep.mubr.msk.bf16.mxu0 %vm6199_vm1, %v7639_v30  ;;  %5774 = vmatprep.subr.bf16.mxu1 %v7639_v30  ;;  %v3639_v31 = vsel %vm719_vm2, %v3634_v59, 0 }
 0x86d   : > { %5780 = vmatprep.subr.bf16.mxu0 %v7639_v30 }
 0x86e   : > { %v3682_v7 = vpop.permute.xlu1 %3681 }
 0x86f   : > { %v3632_v60 = vpop.permute.xlu0 %3631 }
 0x871   : > { %5765 = vmatmul.mubr.msk.bf16.vlgmr.msra.gmra.mxu1 %vm719_vm2, %v3432_v55 }
 0x872   : > { %5771 = vmatmul.mubr.msk.bf16.vlgmr.msra.gmra.mxu0 %vm719_vm2, %v3482_v62  ;;  %5775 = vmatpush3.bf16.xpose.msra.mxu1 %v3539_v27  ;;  %v3784_v20 = vpop.permute.xlu1 %3783 }
 0x873   : > { %5781 = vmatpush3.bf16.xpose.msra.mxu0 %v3589_v44  ;;  %5776 = vmatprep.mubr.msk.bf16.mxu1 %vm6199_vm1, %v7639_v30  ;;  %v3734_v4 = vpop.permute.xlu0 %3733  ;;  %v3789_v39 = vsel %vm719_vm2, %v3784_v20, 0 }
 0x874   : > { %5782 = vmatprep.mubr.msk.bf16.mxu0 %vm6199_vm1, %v7639_v30  ;;  %5786 = vmatprep.subr.bf16.mxu1 %v7639_v30  ;;  %v3739_v32 = vsel %vm719_vm2, %v3734_v4, 0 }
 0x875   : > { %5792 = vmatprep.subr.bf16.mxu0 %v7639_v30 }
 0x876   : > { %v3782_v14 = vpop.permute.xlu1 %3781 }
 0x877   : > { %v3732_v53 = vpop.permute.xlu0 %3731 }
 0x879   : > { %5777 = vmatmul.mubr.msk.bf16.vlgmr.msra.gmra.mxu1 %vm719_vm2, %v3532_v52 }
 0x87a   : > { %5783 = vmatmul.mubr.msk.bf16.vlgmr.msra.gmra.mxu0 %vm719_vm2, %v3582_v2  ;;  %5787 = vmatpush3.bf16.xpose.msra.mxu1 %v3639_v31  ;;  %v3944_v40 = vpop.permute.xlu1 %3943 }
 0x87b   : > { %5793 = vmatpush3.bf16.xpose.msra.mxu0 %v3689_v18  ;;  %5788 = vmatprep.mubr.msk.bf16.mxu1 %vm6199_vm1, %v7639_v30  ;;  %v3949_v34 = vsel %vm1265_vm3, %v3944_v40, 0 }
 0x87c   : > { %5794 = vmatprep.mubr.msk.bf16.mxu0 %vm6199_vm1, %v7639_v30  ;;  %5798 = vmatprep.subr.bf16.mxu1 %v7639_v30 }
 0x87d   : > { %5804 = vmatprep.subr.bf16.mxu0 %v7639_v30 }
 0x881   : > { %5789 = vmatmul.mubr.msk.bf16.vlgmr.msra.gmra.mxu1 %vm719_vm2, %v3632_v60 }
 0x882   : > { %5795 = vmatmul.mubr.msk.bf16.vlgmr.msra.gmra.mxu0 %vm719_vm2, %v3682_v7  ;;  %5799 = vmatpush3.bf16.xpose.msra.mxu1 %v3739_v32 }
 0x883   : > { %5805 = vmatpush3.bf16.xpose.msra.mxu0 %v3789_v39  ;;  %5800 = vmatprep.mubr.msk.bf16.mxu1 %vm6199_vm1, %v7639_v30 }
 0x884   : > { %5806 = vmatprep.mubr.msk.bf16.mxu0 %vm6199_vm1, %v7639_v30  ;;  %5810 = vmatprep.subr.bf16.mxu1 %v7639_v30 }
 0x885   : > { %5816 = vmatprep.subr.bf16.mxu0 %v7639_v30 }
 0x889   : > { %5801 = vmatmul.mubr.msk.bf16.vlgmr.msra.gmra.mxu1 %vm719_vm2, %v3732_v53 }
 0x88a   : > { %5807 = vmatmul.mubr.msk.bf16.vlgmr.msra.gmra.mxu0 %vm719_vm2, %v3782_v14  ;;  %5811 = vmatpush3.bf16.msra.mxu1 %v3949_v34 }
 0x88b   : > { %5812 = vmatprep.mubr.msk.bf16.mxu1 %vm6199_vm1, %v7639_v30  ;;  %5818 = vmatprep.mubr.msk.bf16.mxu0 %vm6199_vm1, %v7639_v30 }
 0x88c   : > { %5822 = vmatprep.subr.bf16.mxu1 %v7639_v30 }
 0x8e4   : > { %v7155_v63 = vpop.f32.mrf.mxu1 }
 0x8e5   : > { %v7157_v45 = vpop.f32.mrf.mxu0 }
 0x8e6   : > { %v5943_v54 = vpack.i.bf16 %v7157_v45, %v7155_v63  ;;  %v5718_v49 = vpop.f32.mrf.mxu1 }
 0x8e7   : > { %v5724_v62 = vpop.f32.mrf.mxu0 }
 0x8e8   : > { %v3092_v55 = vpop.f32.mrf.mxu1 }
 0x8e9   : > { %v3140_v6 = vpop.f32.mrf.mxu0 }
 0x8ea   : > { %v5719_v8 = vpop.f32.mrf.mxu1 }
 0x8eb   : > { %v5725_v19 = vpop.f32.mrf.mxu0 }
 0x8ec   : > { %v7161_v29 = vpop.f32.mrf.mxu1 }
 0x8ee   : > { %v5730_v58 = vpop.f32.mrf.mxu1 }
 0x8f0   : > { %v3188_v33 = vpop.f32.mrf.mxu1  ;;  %v7163_v23 = vpop.f32.mrf.mxu0 }
 0x8f1   : > { %v5948_v2 = vpack.i.bf16 %v7163_v23, %v7161_v29 }
 0x8f2   : > { %v5731_v57 = vpop.f32.mrf.mxu1  ;;  %v5736_v43 = vpop.f32.mrf.mxu0 }
 0x8f4   : > { %v3236_v36 = vpop.f32.mrf.mxu0  ;;  %v7167_v52 = vpop.f32.mrf.mxu1 }
 0x8f6   : > { %v5737_v3 = vpop.f32.mrf.mxu0  ;;  %v5742_v27 = vpop.f32.mrf.mxu1 }
 0x8f8   : > { %v3284_v44 = vpop.f32.mrf.mxu1  ;;  %v7169_v59 = vpop.f32.mrf.mxu0 }
 0x8f9   : > { %v5968_v7 = vpack.i.bf16 %v7169_v59, %v7167_v52 }
 0x8fa   : > { %v5743_v60 = vpop.f32.mrf.mxu1  ;;  %v5748_v31 = vpop.f32.mrf.mxu0 }
 0x8fc   : > { %v3332_v18 = vpop.f32.mrf.mxu0 }
 0x8fe   : > { %v5749_v20 = vpop.f32.mrf.mxu0 }
 0x929   : > { %v7173_v4 = vpop.f32.mrf.mxu1 }
 0x92a   : > { %v7175_v14 = vpop.f32.mrf.mxu0 }
 0x92b   : > { %v5978_v32 = vpack.i.bf16 %v7175_v14, %v7173_v4  ;;  %v5754_v39 = vpop.f32.mrf.mxu1 }
 0x92c   : > { %v5760_v40 = vpop.f32.mrf.mxu0 }
 0x92d   : > { %v3380_v53 = vpop.f32.mrf.mxu1 }
 0x92e   : > { %v3428_v34 = vpop.f32.mrf.mxu0 }
 0x92f   : > { %v5755_v49 = vpop.f32.mrf.mxu1 }
 0x930   : > { %v5761_v62 = vpop.f32.mrf.mxu0 }
 0x931   : > { %v3475_v55 = vpop.f32.mrf.mxu1 }
 0x932   : > { %v3831_v6 = vmul.f32 0.25, %v3475_v55  ;;  %v3525_v8 = vpop.f32.mrf.mxu0 }
 0x933   : > { %v3832_v19 = vmul.f32 0.25, %v3525_v8  ;;  %v5766_v58 = vpop.f32.mrf.mxu1 }
 0x934   : > { %v7180_v33 = vadd.f32 %v3831_v6, %v6484_v51  ;;  %v5772_v57 = vpop.f32.mrf.mxu0 }
 0x935   : > { %v7183_v43 = vadd.f32 %v3832_v19, %v6476_v35  ;;  %v3478_v36 = vpop.f32.mrf.mxu1 }
 0x936   : > { %v3528_v3 = vpop.f32.mrf.mxu0  ;;  %v3847_v27 = vsel %vm1165_vm4, %v7180_v33, -inf }
 0x937   : > { %v3850_v44 = vsel %vm1165_vm4, %v7183_v43, -inf  ;;  %3848 = vmax.xlane.f32.xlu0 %v3847_v27  ;;  %v5767_v60 = vpop.f32.mrf.mxu1 }
 0x938   : > { %3851 = vmax.xlane.f32.xlu1 %v3850_v44  ;;  %v5773_v31 = vpop.f32.mrf.mxu0 }
 0x939   : > { %v3575_v18 = vpop.f32.mrf.mxu1 }
 0x93a   : > { %v3833_v20 = vmul.f32 0.25, %v3575_v18  ;;  %v3625_v51 = vpop.f32.mrf.mxu0 }
 0x93b   : > { %v3834_v39 = vmul.f32 0.25, %v3625_v51  ;;  %v5778_v40 = vpop.f32.mrf.mxu1 }
 0x93c   : > { %v3841_v35 = vadd.f32 %v3833_v20, %v6492_v1  ;;  %v5784_v53 = vpop.f32.mrf.mxu0 }
 0x93d   : > { %v3578_v34 = vpop.f32.mrf.mxu1  ;;  %v3842_v49 = vadd.f32 %v3834_v39, %v6502_v16 }
 0x93e   : > { %v3628_v62 = vpop.f32.mrf.mxu0  ;;  %v3853_v55 = vsel %vm1165_vm4, %v3841_v35, -inf }
 0x93f   : > { %3854 = vmax.xlane.f32.xlu0 %v3853_v55  ;;  %v5779_v6 = vpop.f32.mrf.mxu1  ;;  %v3856_v36 = vsel %vm1165_vm4, %v3842_v49, -inf }
 0x940   : > { %v5785_v8 = vpop.f32.mrf.mxu0 }
 0x941   : > { %v3675_v19 = vpop.f32.mrf.mxu1 }
 0x942   : > { %v3835_v58 = vmul.f32 0.25, %v3675_v19  ;;  %v3725_v57 = vpop.f32.mrf.mxu0 }
 0x943   : > { %v3836_v3 = vmul.f32 0.25, %v3725_v57  ;;  %3857 = vmax.xlane.f32.xlu0 %v3856_v36  ;;  %v5790_v27 = vpop.f32.mrf.mxu1 }
 0x944   : > { %v7194_v1 = vadd.f32 %v3835_v58, %v6514_v22  ;;  %v5796_v44 = vpop.f32.mrf.mxu0 }
 0x945   : > { %v7197_v16 = vadd.f32 %v3836_v3, %v6505_v25  ;;  %v3678_v60 = vpop.f32.mrf.mxu1 }
 0x946   : > { %v3728_v31 = vpop.f32.mrf.mxu0  ;;  %v3859_v18 = vsel %vm1165_vm4, %v7194_v1, -inf }
 0x947   : > { %v3862_v20 = vsel %vm1165_vm4, %v7197_v16, -inf  ;;  %3860 = vmax.xlane.f32.xlu1 %v3859_v18  ;;  %v5791_v51 = vpop.f32.mrf.mxu1 }
 0x948   : > { %v5797_v39 = vpop.f32.mrf.mxu0  ;;  %3863 = vmax.xlane.f32.xlu0 %v3862_v20 }
 0x949   : > { %v3775_v40 = vpop.f32.mrf.mxu1 }
 0x94a   : > { %v3837_v53 = vmul.f32 0.25, %v3775_v40  ;;  %v3825_v22 = vpop.f32.mrf.mxu0 }
 0x94b   : > { %v3838_v34 = vmul.f32 0.25, %v3825_v22  ;;  %v5802_v62 = vpop.f32.mrf.mxu1 }
 0x94c   : > { %v3845_v25 = vadd.f32 %v3837_v53, %v6525_v11  ;;  %v5808_v55 = vpop.f32.mrf.mxu0 }
 0x94d   : > { %v3846_v6 = vadd.f32 %v3838_v34, %v6511_v47  ;;  %v3778_v8 = vpop.f32.mrf.mxu1 }
 0x94e   : > { %v3828_v19 = vpop.f32.mrf.mxu0  ;;  %v3865_v58 = vsel %vm1165_vm4, %v3845_v25, -inf }
 0x94f   : > { %v3868_v57 = vsel %vm1165_vm4, %v3846_v6, -inf  ;;  %3866 = vmax.xlane.f32.xlu1 %v3865_v58  ;;  %v5803_v36 = vpop.f32.mrf.mxu1 }
 0x950   : > { %v5809_v3 = vpop.f32.mrf.mxu0  ;;  %3869 = vmax.xlane.f32.xlu0 %v3868_v57 }
 0x960   : > { %4039 = vrot.lane.b32.xlu1 %v6610_v48, %s6207_s23 }
 0x964   : > { %4087 = vrot.lane.b32.xlu1 %v6603_v37, %s6207_s23 }
 0x966   : > { %3991 = vrot.lane.b32.xlu0 %v6443_v15, %s6207_s23 }
 0x9c0   : > { %v3849_v47 = vpop.xlane.xlu0 %3848 }
 0x9c1   : > { %v3852_v11 = vpop.xlane.xlu1 %3851  ;;  %v3871_v27 = vsub.f32 %v7180_v33, %v3849_v47 }
 0x9c2   : > { %v3872_v44 = vsub.f32 %v7183_v43, %v3852_v11 }
 0x9c3   : > { %v3879_v60 = vmul.f32 1.442695, %v3871_v27 }
 0x9c4   : > { %v3881_v31 = vmul.f32 1.442695, %v3872_v44 }
 0x9c5   : > { %6117 = vpow2.f32 %v3879_v60 }
 0x9c6   : > { %6119 = vpow2.f32 %v3881_v31 }
 0x9c8   : > { %v3855_v18 = vpop.xlane.xlu0 %3854 }
 0x9c9   : > { %v3873_v20 = vsub.f32 %v3841_v35, %v3855_v18 }
 0x9cb   : > { %v3883_v51 = vmul.f32 1.442695, %v3873_v20  ;;  %v7640_v20 = vpack.i.bf16 %v6949_v5, %v6947_v26  ;;  %v7643_v26 = vpack.i.bf16 %v6955_v50, %v6953_v41 }
 0x9cc   : > { %v3858_v48 = vpop.xlane.xlu0 %3857 }
 0x9cd   : > { %6121 = vpow2.f32 %v3883_v51  ;;  %v3874_v39 = vsub.f32 %v3842_v49, %v3858_v48  ;;  %v7641_v51 = vpack.i.bf16 %v6961_v28, %v6959_v0 }
 0x9cf   : > { %v3885_v37 = vmul.f32 1.442695, %v3874_v39 }
 0x9d0   : > { %v3861_v19 = vpop.xlane.xlu1 %3860 }
 0x9d1   : > { %6123 = vpow2.f32 %v3885_v37  ;;  %v3864_v53 = vpop.xlane.xlu0 %3863  ;;  %v3875_v58 = vsub.f32 %v7194_v1, %v3861_v19 }
 0x9d2   : > { %v7215_v40 = vpop.eup %6117  ;;  %v3876_v36 = vsub.f32 %v7197_v16, %v3864_v53 }
 0x9d3   : > { %v7217_v15 = vpop.eup %6119  ;;  %v3895_v33 = vsel %vm1165_vm4, %v7215_v40, 0.0  ;;  %v3887_v3 = vmul.f32 1.442695, %v3875_v58 }
 0x9d4   : > { %v3898_v43 = vsel %vm1165_vm4, %v7217_v15, 0.0  ;;  %3896 = vadd.xlane.f32.xlu1 %v3895_v33  ;;  %v3889_v11 = vmul.f32 1.442695, %v3876_v36 }
 0x9d5   : > { %3899 = vadd.xlane.f32.xlu0 %v3898_v43  ;;  %6125 = vpow2.f32 %v3887_v3 }
 0x9d6   : > { %6127 = vpow2.f32 %v3889_v11 }
 0x9d8   : > { %v3867_v57 = vpop.xlane.xlu1 %3866 }
 0x9d9   : > { %v3870_v35 = vpop.xlane.xlu0 %3869  ;;  %v3877_v47 = vsub.f32 %v3845_v25, %v3867_v57 }
 0x9da   : > { %v7223_v22 = vpop.eup %6121  ;;  %v3878_v44 = vsub.f32 %v3846_v6, %v3870_v35 }
 0x9db   : > { %v3901_v49 = vsel %vm1165_vm4, %v7223_v22, 0.0  ;;  %v3891_v27 = vmul.f32 1.442695, %v3877_v47 }
 0x9dc   : > { %3902 = vadd.xlane.f32.xlu1 %v3901_v49  ;;  %v3893_v60 = vmul.f32 1.442695, %v3878_v44 }
 0x9dd   : > { %v3992_v34 = vpop.permute.xlu0 %3991  ;;  %6129 = vpow2.f32 %v3891_v27 }
 0x9de   : > { %v7227_v62 = vpop.eup %6123  ;;  %v3997_v55 = vsel %vm1265_vm3, %v3992_v34, 0  ;;  %6131 = vpow2.f32 %v3893_v60 }
 0x9df   : > { %5817 = vmatpush3.bf16.msra.mxu0 %v3997_v55  ;;  %v3904_v8 = vsel %vm1165_vm4, %v7227_v62, 0.0 }
 0x9e0   : > { %3905 = vadd.xlane.f32.xlu0 %v3904_v8  ;;  %5828 = vmatprep.subr.bf16.mxu0 %v7639_v30 }
 0x9ed   : > { %4183 = vrot.lane.b32.xlu1 %v6638_v38, %s6207_s23  ;;  %v7239_v38 = vpop.eup %6125 }
 0x9ee   : > { %v7241_v31 = vpop.eup %6127 }
 0x9ef   : > { %v7245_v1 = vpop.eup %6129  ;;  %v3910_v25 = vsel %vm1165_vm4, %v7241_v31, 0.0 }
 0x9f0   : > { %v3913_v16 = vsel %vm1165_vm4, %v7245_v1, 0.0  ;;  %v7251_v6 = vpop.eup %6131 }
 0x9f1   : > { %v3916_v18 = vsel %vm1165_vm4, %v7251_v6, 0.0 }
 0x9f6   : > { %4135 = vrot.lane.b32.xlu0 %v6632_v61, %s6207_s23  ;;  %v3907_v61 = vsel %vm1165_vm4, %v7239_v38, 0.0 }
 0xa11   : > { %3908 = vadd.xlane.f32.xlu1 %v3907_v61 }
 0xa15   : > { %3914 = vadd.xlane.f32.xlu1 %v3913_v16  ;;  %3911 = vadd.xlane.f32.xlu0 %v3910_v25 }
 0xa19   : > { %3917 = vadd.xlane.f32.xlu0 %v3916_v18  ;;  %v6006_v18 = vld [vmem:[%s7624_s4 + $0x10] sm:$0xff]  }
 0xa26   : > { %4279 = vrot.lane.b32.xlu1 %v6656_v13, %s6207_s23  ;;  %v7642_v13 = vpack.i.bf16 %v6941_v12, %v6943_v10 }
 0xa2a   : > { %5939 = vrot.lane.b32.xlu1 %v7640_v20, %s6206_s22 }
 0xa2e   : > { %5949 = vrot.lane.b32.xlu1 %v5948_v2, %s6204_s20 }
 0xa2f   : > { %4231 = vrot.lane.b32.xlu0 %v6672_v17, %s6207_s23  ;;  %v4040_v17 = vpop.permute.xlu1 %4039 }
 0xa30   : > { %v4045_v41 = vsel %vm1265_vm3, %v4040_v17, 0  ;;  %v6008_v17 = vld [vmem:[%s7624_s4] sm:$0xff]  }
 0xa32   : > { %5959 = vrot.lane.b32.xlu1 %v7641_v51, %s6206_s22 }
 0xa33   : > { %5934 = vrot.lane.b32.xlu0 %v7642_v13, %s6206_s22  ;;  %v4088_v5 = vpop.permute.xlu1 %4087 }
 0xa34   : > { %v4093_v50 = vsel %vm1265_vm3, %v4088_v5, 0 }
 0xa37   : > { %5944 = vrot.lane.b32.xlu0 %v5943_v54, %s6204_s20 }
 0xa3b   : > { %5954 = vrot.lane.b32.xlu0 %v7643_v26, %s6206_s22 }
 0xa5d   : > { %v3897_v29 = vpop.xlane.xlu1 %3896 }
 0xa5e   : > { %6133 = vrcp.f32 %v3897_v29  ;;  %v3900_v0 = vpop.xlane.xlu0 %3899 }
 0xa5f   : > { %6135 = vrcp.f32 %v3900_v0 }
 0xa65   : > { %v3903_v28 = vpop.xlane.xlu1 %3902 }
 0xa66   : > { %6137 = vrcp.f32 %v3903_v28 }
 0xa69   : > { %v3906_v12 = vpop.xlane.xlu0 %3905  ;;  %v4184_v53 = vpop.permute.xlu1 %4183 }
 0xa6a   : > { %6139 = vrcp.f32 %v3906_v12 }
 0xa6b   : > { %v6134_v10 = vpop.eup %6133 }
 0xa6c   : > { %v6136_v23 = vpop.eup %6135  ;;  %v3927_v63 = vmul.f32 %v6134_v10, %v7215_v40 }
 0xa6d   : > { %v3928_v45 = vmul.f32 %v6136_v23, %v7217_v15  ;;  %v4136_v37 = vpop.permute.xlu0 %4135 }
 0xa6e   : > { %v3935_v54 = vpack.c.bf16 %v3927_v63, %v3927_v63  ;;  %v4141_v43 = vsel %vm1265_vm3, %v4136_v37, 0 }
 0xa6f   : > { %v3936_v2 = vpack.c.bf16 %v3928_v45, %v3928_v45 }
 0xa70   : > { %5813 = vmatmul.mubr.msk.bf16.vlgmr.msra.gmra.mxu1 %vm1165_vm4, %v3935_v54 }
 0xa71   : > { %5819 = vmatmul.mubr.msk.bf16.vlgmr.msra.gmra.mxu0 %vm1165_vm4, %v3936_v2  ;;  %5823 = vmatpush3.bf16.msra.mxu1 %v4045_v41 }
 0xa72   : > { %5829 = vmatpush3.bf16.msra.mxu0 %v4093_v50  ;;  %5824 = vmatprep.mubr.msk.bf16.mxu1 %vm6199_vm1, %v7639_v30 }
 0xa73   : > { %v6138_v48 = vpop.eup %6137  ;;  %5834 = vmatprep.subr.bf16.mxu1 %v7639_v30  ;;  %5830 = vmatprep.mubr.msk.bf16.mxu0 %vm6199_vm1, %v7639_v30 }
 0xa74   : > { %v3929_v39 = vmul.f32 %v6138_v48, %v7223_v22  ;;  %5840 = vmatprep.subr.bf16.mxu0 %v7639_v30  ;;  %v4189_v22 = vsel %vm1265_vm3, %v4184_v53, 0 }
 0xa76   : > { %v3937_v40 = vpack.c.bf16 %v3929_v39, %v3929_v39 }
 0xa77   : > { %v6140_v15 = vpop.eup %6139 }
 0xa78   : > { %v3930_v33 = vmul.f32 %v6140_v15, %v7227_v62  ;;  %5825 = vmatmul.mubr.msk.bf16.vlgmr.msra.gmra.mxu1 %vm1165_vm4, %v3937_v40 }
 0xa79   : > { %5835 = vmatpush3.bf16.msra.mxu1 %v4141_v43  ;;  %5836 = vmatprep.mubr.msk.bf16.mxu1 %vm6199_vm1, %v7639_v30 }
 0xa7a   : > { %v3938_v35 = vpack.c.bf16 %v3930_v33, %v3930_v33  ;;  %5846 = vmatprep.subr.bf16.mxu1 %v7639_v30 }
 0xa7c   : > { %5831 = vmatmul.mubr.msk.bf16.vlgmr.msra.gmra.mxu0 %vm1165_vm4, %v3938_v35 }
 0xa7d   : > { %5841 = vmatpush3.bf16.msra.mxu0 %v4189_v22  ;;  %5842 = vmatprep.mubr.msk.bf16.mxu0 %vm6199_vm1, %v7639_v30 }
 0xa7e   : > { %5852 = vmatprep.subr.bf16.mxu0 %v7639_v30 }
 0xa9a   : > { %v3909_v49 = vpop.xlane.xlu1 %3908 }
 0xa9b   : > { %6141 = vrcp.f32 %v3909_v49 }
 0xa9e   : > { %v3915_v34 = vpop.xlane.xlu1 %3914  ;;  %v3912_v62 = vpop.xlane.xlu0 %3911 }
 0xa9f   : > { %6143 = vrcp.f32 %v3915_v34 }
 0xaa0   : > { %6145 = vrcp.f32 %v3912_v62 }
 0xaa2   : > { %v3918_v55 = vpop.xlane.xlu0 %3917  ;;  %v4280_v44 = vpop.permute.xlu1 %4279 }
 0xaa3   : > { %6147 = vrcp.f32 %v3918_v55 }
 0xaa6   : > { %v4232_v58 = vpop.permute.xlu0 %4231 }
 0xaa7   : > { %v4237_v47 = vsel %vm1265_vm3, %v4232_v58, 0 }
 0xaa8   : > { %v6142_v8 = vpop.eup %6141 }
 0xaa9   : > { %v3931_v19 = vmul.f32 %v6142_v8, %v7239_v38  ;;  %v4285_v38 = vsel %vm1265_vm3, %v4280_v44, 0  ;;  %v5940_v8 = vpop.permute.xlu1 %5939 }
 0xaab   : > { %v3939_v57 = vpack.c.bf16 %v3931_v19, %v3931_v19 }
 0xaac   : > { %v6144_v36 = vpop.eup %6143 }
 0xaad   : > { %v6146_v3 = vpop.eup %6145  ;;  %5837 = vmatmul.mubr.msk.bf16.vlgmr.msra.gmra.mxu1 %vm1165_vm4, %v3939_v57  ;;  %v3933_v27 = vmul.f32 %v6144_v36, %v7245_v1  ;;  %v6005_v1 = vld [vmem:[%s7624_s4 + $0x18] sm:$0xff]  }
 0xaae   : > { %v3932_v11 = vmul.f32 %v6146_v3, %v7241_v31  ;;  %5847 = vmatpush3.bf16.msra.mxu1 %v4237_v47  ;;  %5848 = vmatprep.mubr.msk.bf16.mxu1 %vm6199_vm1, %v7639_v30 }
 0xaaf   : > { %v3941_v16 = vpack.c.bf16 %v3933_v27, %v3933_v27  ;;  %5858 = vmatprep.subr.bf16.mxu1 %v6005_v1 }
 0xab0   : > { %v3940_v60 = vpack.c.bf16 %v3932_v11, %v3932_v11  ;;  %v6148_v61 = vpop.eup %6147  ;;  %v5950_v11 = vpop.permute.xlu1 %5949 }
 0xab1   : > { %v3934_v31 = vmul.f32 %v6148_v61, %v7251_v6 }
 0xab2   : > { %5843 = vmatmul.mubr.msk.bf16.vlgmr.msra.gmra.mxu0 %vm1165_vm4, %v3940_v60 }
 0xab3   : > { %5853 = vmatpush3.bf16.msra.mxu0 %v4285_v38  ;;  %5854 = vmatprep.mubr.msk.bf16.mxu0 %vm6199_vm1, %v7639_v30  ;;  %v3942_v25 = vpack.c.bf16 %v3934_v31, %v3934_v31  ;;  %v6007_v30 = vld [vmem:[%s7624_s4 + $0x8] sm:$0xff]  }
 0xab5   : > { %5849 = vmatmul.mubr.msk.bf16.vlgmr.msra.gmra.mxu1 %vm1165_vm4, %v3941_v16 }
 0xab6   : > { %5859 = vmatpush3.bf16.msra.mxu1 %v6005_v1 }
 0xab7   : > { %5860 = vmatprep.subr.bf16.mxu1 %v6006_v18 }
 0xaba   : > { %5855 = vmatmul.mubr.msk.bf16.vlgmr.msra.gmra.mxu0 %vm1165_vm4, %v3942_v25  ;;  %5861 = vmatpush3.bf16.msra.mxu1 %v6006_v18  ;;  %v5960_v18 = vpop.permute.xlu1 %5959 }
 0xabb   : > { %5862 = vmatprep.subr.bf16.mxu1 %v6007_v30 }
 0xabe   : > { %5863 = vmatpush3.bf16.msra.mxu1 %v6007_v30  ;;  %v5942_v30 = vunpack.i.h.bf16 %v5940_v8 }
 0xabf   : > { %5864 = vmatprep.subr.bf16.mxu1 %v6008_v17 }
 0xac2   : > { %5865 = vmatpush3.bf16.msra.mxu1 %v6008_v17 }
 0xb30   : > { %v3985_v6 = vpop.f32.mrf.mxu1 }
 0xb31   : > { %v4033_v20 = vpop.f32.mrf.mxu0 }
 0xb32   : > { %v5963_v51 = vpack.i.bf16 %v4033_v20, %v3985_v6  ;;  %v5814_v13 = vpop.f32.mrf.mxu1  ;;  %v5941_v6 = vunpack.i.l.bf16 %v5940_v8  ;;  %v5951_v20 = vunpack.i.l.bf16 %v5950_v11 }
 0xb33   : > { %v5820_v26 = vpop.f32.mrf.mxu0 }
 0xb34   : > { %5964 = vrot.lane.b32.xlu0 %v5963_v51, %s6202_s30  ;;  %v3988_v5 = vpop.f32.mrf.mxu1  ;;  %v4425_v13 = vsel %vm719_vm2, %v6731_v24, %v5941_v6 }
 0xb35   : > { %v4036_v29 = vpop.f32.mrf.mxu0  ;;  %v4434_v5 = vsel %vm4431_vm5, %v4425_v13, %v5951_v20 }
 0xb36   : > { %v5815_v0 = vpop.f32.mrf.mxu1 }
 0xb37   : > { %v5821_v28 = vpop.f32.mrf.mxu0 }
 0xb38   : > { %5969 = vrot.lane.b32.xlu0 %v5968_v7, %s6204_s20  ;;  %v4081_v12 = vpop.f32.mrf.mxu1 }
 0xb3a   : > { %v5826_v10 = vpop.f32.mrf.mxu1 }
 0xb3c   : > { %v4084_v23 = vpop.f32.mrf.mxu1  ;;  %v4129_v63 = vpop.f32.mrf.mxu0 }
 0xb3d   : > { %v5973_v45 = vpack.i.bf16 %v4129_v63, %v4081_v12 }
 0xb3e   : > { %v5827_v54 = vpop.f32.mrf.mxu1  ;;  %v5832_v2 = vpop.f32.mrf.mxu0 }
 0xb3f   : > { %5974 = vrot.lane.b32.xlu1 %v5973_v45, %s6202_s30 }
 0xb40   : > { %v4132_v41 = vpop.f32.mrf.mxu0 }
 0xb42   : > { %v5833_v50 = vpop.f32.mrf.mxu0 }
 0xb43   : > { %5979 = vrot.lane.b32.xlu1 %v5978_v32, %s6204_s20  ;;  %v5935_v32 = vpop.permute.xlu0 %5934  ;;  %s7592_s20 = scalar_lea.vmem %s7634_s14, %s5204_s26 }
 0xb44   : > { %v5937_v58 = vunpack.i.h.bf16 %v5935_v32  ;;  %v5936_v57 = vunpack.i.l.bf16 %v5935_v32 }
 0xb46   : > { %v4424_v27 = vsel %vm719_vm2, %v6727_v46, %v5937_v58  ;;  %v4423_v44 = vsel %vm719_vm2, %v6729_v21, %v5936_v57  ;;  %v5952_v46 = vunpack.i.h.bf16 %v5950_v11  ;;  %v4426_v21 = vsel %vm719_vm2, %v6733_v42, %v5942_v30 }
 0xb47   : > { %v5945_v55 = vpop.permute.xlu0 %5944 }
 0xb48   : > { %v5947_v36 = vunpack.i.h.bf16 %v5945_v55  ;;  %v5946_v3 = vunpack.i.l.bf16 %v5945_v55  ;;  %v4435_v29 = vsel %vm4431_vm5, %v4426_v21, %v5952_v46 }
 0xb4a   : > { %v4432_v38 = vsel %vm4431_vm5, %v4423_v44, %v5946_v3  ;;  %v4433_v16 = vsel %vm4431_vm5, %v4424_v27, %v5947_v36  ;;  %v6182_v44 = vld [vmem:[%s6317_s15 + $0x10] sm:$0xff] }
 0xb4b   : > { %v5955_v19 = vpop.permute.xlu0 %5954 }
 0xb4c   : > { %v5957_v23 = vunpack.i.h.bf16 %v5955_v19  ;;  %v5956_v63 = vunpack.i.l.bf16 %v5955_v19  ;;  %v5285_v19 = vld [vmem:[%s7625_s5] ss:$0 sm:$0xff] }
 0xb4e   : > { %v4428_v24 = vsel %vm719_vm2, %v6735_v56, %v5957_v23  ;;  %v4427_v2 = vsel %vm719_vm2, %v6739_v9, %v5956_v63  ;;  %v7644_v9 = vld [vmem:[#allocation2_spill] sm:$0xff]  ;;  %v6187_v63 = vld [vmem:[%s6317_s15 + $0x28] sm:$0xff] }
 0xb6d   : > { %v4177_v48 = vpop.f32.mrf.mxu1 }
 0xb6f   : > { %v5838_v39 = vpop.f32.mrf.mxu1 }
 0xb71   : > { %v4180_v52 = vpop.f32.mrf.mxu1 }
 0xb72   : > { %v4225_v59 = vpop.f32.mrf.mxu0 }
 0xb73   : > { %v5983_v7 = vpack.i.bf16 %v4225_v59, %v4177_v48  ;;  %v5839_v37 = vpop.f32.mrf.mxu1 }
 0xb74   : > { %v5844_v40 = vpop.f32.mrf.mxu0 }
 0xb75   : > { %5984 = vrot.lane.b32.xlu0 %v5983_v7, %s6202_s30  ;;  %v4273_v15 = vpop.f32.mrf.mxu1  ;;  %v5962_v40 = vunpack.i.h.bf16 %v5960_v18 }
 0xb76   : > { %v4228_v33 = vpop.f32.mrf.mxu0 }
 0xb77   : > { %v5850_v43 = vpop.f32.mrf.mxu1 }
 0xb78   : > { %v5845_v53 = vpop.f32.mrf.mxu0 }
 0xb79   : > { %v4276_v35 = vpop.f32.mrf.mxu1  ;;  %v4430_v53 = vsel %vm719_vm2, %v7644_v9, %v5962_v40 }
 0xb7a   : > { %v4321_v22 = vpop.f32.mrf.mxu0  ;;  %v7645_v35 = vld [vmem:[#allocation3_spill] sm:$0xff] }
 0xb7b   : > { %v5988_v49 = vpack.i.bf16 %v4321_v22, %v4273_v15  ;;  %v5851_v34 = vpop.f32.mrf.mxu1  ;;  %v5961_v15 = vunpack.i.l.bf16 %v5960_v18 }
 0xb7c   : > { %v5856_v62 = vpop.f32.mrf.mxu0 }
 0xb7d   : > { %5989 = vrot.lane.b32.xlu1 %v5988_v49, %s6202_s30  ;;  %v4429_v22 = vsel %vm719_vm2, %v7645_v35, %v5961_v15 }
 0xb7e   : > { %v4324_v4 = vpop.f32.mrf.mxu0 }
 0xb80   : > { %v5857_v14 = vpop.f32.mrf.mxu0 }
 0xba6   : > { %v5965_v47 = vpop.permute.xlu0 %5964 }
 0xba7   : > { %v5967_v60 = vunpack.i.h.bf16 %v5965_v47  ;;  %v5966_v61 = vunpack.i.l.bf16 %v5965_v47  ;;  %v6181_v47 = vld [vmem:[%s6317_s15] sm:$0xff] }
 0xba9   : > { %v4441_v31 = vsel %vm4440_vm6, %v4432_v38, %v5966_v61  ;;  %v4442_v25 = vsel %vm4440_vm6, %v4433_v16, %v5967_v60 }
 0xbaa   : > { %v4449_v1 = vpack.c.bf16 %v4442_v25, %v4441_v31  ;;  %v5970_v10 = vpop.permute.xlu0 %5969  ;;  %v6183_v31 = vld [vmem:[%s6317_s15 + $0x8] sm:$0xff] }
 0xbab   : > { %v5972_v42 = vunpack.i.h.bf16 %v5970_v10  ;;  %v5971_v45 = vunpack.i.l.bf16 %v5970_v10 }
 0xbac   : > { %5866 = vmatprep.mubr.msk.bf16.mxu1 %vm561_vm0, %v4449_v1  ;;  %v6184_v1 = vld [vmem:[%s6317_s15 + $0x18] sm:$0xff] }
 0xbad   : > { %v4436_v48 = vsel %vm4431_vm5, %v4427_v2, %v5971_v45  ;;  %v4437_v39 = vsel %vm4431_vm5, %v4428_v24, %v5972_v42  ;;  %v6188_v45 = vld [vmem:[%s6317_s15 + $0x38] sm:$0xff] }
 0xbb1   : > { %v5975_v51 = vpop.permute.xlu1 %5974 }
 0xbb2   : > { %v5977_v26 = vunpack.i.h.bf16 %v5975_v51  ;;  %v5976_v17 = vunpack.i.l.bf16 %v5975_v51 }
 0xbb4   : > { %v4444_v0 = vsel %vm4440_vm6, %v4435_v29, %v5977_v26  ;;  %v4443_v28 = vsel %vm4440_vm6, %v4434_v5, %v5976_v17  ;;  %v6185_v17 = vld [vmem:[%s6317_s15 + $0x20] sm:$0xff] }
 0xbb5   : > { %v4450_v12 = vpack.c.bf16 %v4444_v0, %v4443_v28  ;;  %v5980_v52 = vpop.permute.xlu1 %5979  ;;  %v6186_v0 = vld [vmem:[%s6317_s15 + $0x30] sm:$0xff] }
 0xbb6   : > { %v5982_v33 = vunpack.i.h.bf16 %v5980_v52  ;;  %v5981_v43 = vunpack.i.l.bf16 %v5980_v52 }
 0xbb7   : > { %5867 = vmatmul.mubr.msk.bf16.vlgmr.msra.gmra.mxu1 %vm561_vm0, %v4450_v12 }
 0xbb8   : > { %v4439_v62 = vsel %vm4431_vm5, %v4430_v53, %v5982_v33  ;;  %v4438_v4 = vsel %vm4431_vm5, %v4429_v22, %v5981_v43 }
 0xbe7   : > { %v5985_v54 = vpop.permute.xlu0 %5984 }
 0xbe8   : > { %v5987_v41 = vunpack.i.h.bf16 %v5985_v54  ;;  %v5986_v50 = vunpack.i.l.bf16 %v5985_v54 }
 0xbea   : > { %v4445_v59 = vsel %vm4440_vm6, %v4436_v48, %v5986_v50  ;;  %v4446_v7 = vsel %vm4440_vm6, %v4437_v39, %v5987_v41 }
 0xbeb   : > { %v4451_v37 = vpack.c.bf16 %v4446_v7, %v4445_v59 }
 0xbed   : > { %5870 = vmatprep.mubr.msk.bf16.mxu1 %vm561_vm0, %v4451_v37 }
 0xbef   : > { %v5990_v56 = vpop.permute.xlu1 %5989 }
 0xbf0   : > { %v5992_v49 = vunpack.i.h.bf16 %v5990_v56  ;;  %v5991_v34 = vunpack.i.l.bf16 %v5990_v56 }
 0xbf2   : > { %v4448_v14 = vsel %vm4440_vm6, %v4439_v62, %v5992_v49  ;;  %v4447_v32 = vsel %vm4440_vm6, %v4438_v4, %v5991_v34 }
 0xbf3   : > { %v4452_v55 = vpack.c.bf16 %v4448_v14, %v4447_v32  ;;  %v6009_v14 = vld [vmem:[%s7628_s8 + $0x18] sm:$0xff]   ;;  %v6010_v32 = vld [vmem:[%s7628_s8 + $0x10] sm:$0xff]  }
 0xbf4   : > { %5874 = vmatprep.subr.bf16.mxu0 %v6009_v14 }
 0xbf5   : > { %5871 = vmatmul.mubr.msk.bf16.gmra.mxu1 %vm561_vm0, %v4452_v55  ;;  %5875 = vmatpush3.bf16.msra.mxu0 %v6009_v14  ;;  %v6011_v55 = vld [vmem:[%s7628_s8 + $0x8] sm:$0xff]  }
 0xbf6   : > { %5876 = vmatprep.subr.bf16.mxu0 %v6010_v32 }
 0xbf9   : > { %5877 = vmatpush3.bf16.msra.mxu0 %v6010_v32 }
 0xbfa   : > { %5878 = vmatprep.subr.bf16.mxu0 %v6011_v55 }
 0xbfd   : > { %5879 = vmatpush3.bf16.msra.mxu0 %v6011_v55 }
 0xc77   : > { %v5868_v8 = vpop.f32.mrf.mxu1 }
 0xc78   : > { %v4547_v57 = vadd.f32 %v5868_v8, %v5285_v19  ;;  %v6012_v8 = vld [vmem:[%s7628_s8] sm:$0xff]  }
 0xc79   : > { %v4538_v58 = vpop.f32.mrf.mxu1  ;;  %5880 = vmatprep.subr.bf16.mxu0 %v6012_v8 }
 0xc7a   : > { %v4539_v36 = vadd.f32 %v5285_v19, %v4538_v58  ;;  %v4571_v60 = vadd.f32 %v6182_v44, %v4547_v57  ;;  %5881 = vmatpush3.bf16.msra.mxu0 %v6012_v8 }
 0xc7b   : > { %v5869_v3 = vpop.f32.mrf.mxu1 }
 0xc7c   : > { %v4569_v11 = vadd.f32 %v6181_v47, %v4539_v36  ;;  %v4550_v61 = vadd.f32 %v5869_v3, %v5285_v19  ;;  %v4585_v6 = vsel %vm561_vm0, %v4571_v60, 0.0 }
 0xc7d   : > { %v4541_v27 = vpop.f32.mrf.mxu1 }
 0xc7e   : > { %v4542_v38 = vadd.f32 %v5285_v19, %v4541_v27  ;;  %v4579_v16 = vsel %vm561_vm0, %v4569_v11, 0.0  ;;  %v4572_v18 = vadd.f32 %v6184_v1, %v4550_v61 }
 0xc7f   : > { %4580 = vadd.xlane.f32.xlu0 %v4579_v16 }
 0xc80   : > { %v4570_v25 = vadd.f32 %v6183_v31, %v4542_v38  ;;  %v4588_v46 = vsel %vm561_vm0, %v4572_v18, 0.0 }
 0xc82   : > { %v4582_v30 = vsel %vm561_vm0, %v4570_v25, 0.0 }
 0xc83   : > { %4583 = vadd.xlane.f32.xlu1 %v4582_v30  ;;  %4586 = vadd.xlane.f32.xlu0 %v4585_v6 }
 0xc87   : > { %4589 = vadd.xlane.f32.xlu0 %v4588_v46 }
 0xcb5   : > { %v5872_v20 = vpop.f32.mrf.mxu1 }
 0xcb6   : > { %v4563_v21 = vadd.f32 %v5872_v20, %v5285_v19  ;;  %v6013_v20 = vld [vmem:[%s7630_s10 + $0x38] sm:$0xff]  }
 0xcb7   : > { %v4554_v51 = vpop.f32.mrf.mxu1  ;;  %5890 = vmatprep.subr.bf16.mxu1 %v6013_v20 }
 0xcb8   : > { %v4555_v13 = vadd.f32 %v5285_v19, %v4554_v51  ;;  %v4575_v28 = vadd.f32 %v6186_v0, %v4563_v21  ;;  %v6014_v51 = vld [vmem:[%s7630_s10 + $0x30] sm:$0xff]   ;;  %5891 = vmatpush3.bf16.msra.mxu1 %v6013_v20  ;;  %v6015_v21 = vld [vmem:[%s7630_s10 + $0x28] sm:$0xff]  }
 0xcb9   : > { %v5873_v26 = vpop.f32.mrf.mxu1  ;;  %5892 = vmatprep.subr.bf16.mxu1 %v6014_v51 }
 0xcba   : > { %v4573_v5 = vadd.f32 %v6185_v17, %v4555_v13  ;;  %v4566_v12 = vadd.f32 %v5873_v26, %v5285_v19  ;;  %v4597_v24 = vsel %vm561_vm0, %v4575_v28, 0.0  ;;  %v6016_v13 = vld [vmem:[%s7630_s10 + $0x20] sm:$0xff]   ;;  %v6017_v26 = vld [vmem:[%s7630_s10 + $0x18] sm:$0xff]  }
 0xcbb   : > { %v4557_v29 = vpop.f32.mrf.mxu1 }
 0xcbc   : > { %v4558_v10 = vadd.f32 %v5285_v19, %v4557_v29  ;;  %v4591_v23 = vsel %vm561_vm0, %v4573_v5, 0.0  ;;  %v4576_v54 = vadd.f32 %v6188_v45, %v4566_v12  ;;  %5893 = vmatpush3.bf16.msra.mxu1 %v6014_v51 }
 0xcbd   : > { %4592 = vadd.xlane.f32.xlu1 %v4591_v23  ;;  %5894 = vmatprep.subr.bf16.mxu1 %v6015_v21 }
 0xcbe   : > { %v4574_v42 = vadd.f32 %v6187_v63, %v4558_v10  ;;  %v4600_v41 = vsel %vm561_vm0, %v4576_v54, 0.0 }
 0xcc0   : > { %v4594_v2 = vsel %vm561_vm0, %v4574_v42, 0.0  ;;  %5895 = vmatpush3.bf16.msra.mxu1 %v6015_v21 }
 0xcc1   : > { %4598 = vadd.xlane.f32.xlu1 %v4597_v24  ;;  %4595 = vadd.xlane.f32.xlu0 %v4594_v2 }
 0xcc2   : > { %5896 = vmatprep.subr.bf16.mxu1 %v6016_v13 }
 0xcc4   : > { %5897 = vmatpush3.bf16.msra.mxu1 %v6016_v13 }
 0xcc5   : > { %4601 = vadd.xlane.f32.xlu0 %v4600_v41  ;;  %5898 = vmatprep.subr.bf16.mxu1 %v6017_v26  ;;  %v5294_v41 = vld [vmem:[%s7626_s6] ss:$0 sm:$0xff] }
 0xcc8   : > { %5899 = vmatpush3.bf16.msra.mxu1 %v6017_v26 }
 0xd08   : > { %v4581_v50 = vpop.xlane.xlu0 %4580 }
 0xd09   : > { %v4604_v48 = vmul.f32 0.015625, %v4581_v50 }
 0xd0b   : > { %v7400_v39 = vsub.f32 %v4569_v11, %v4604_v48 }
 0xd0c   : > { %v4584_v52 = vpop.xlane.xlu1 %4583  ;;  %v4587_v59 = vpop.xlane.xlu0 %4586 }
 0xd0d   : > { %v4605_v7 = vmul.f32 0.015625, %v4584_v52  ;;  %v4606_v37 = vmul.f32 0.015625, %v4587_v59  ;;  %v4620_v40 = vmul.f32 %v7400_v39, %v7400_v39 }
 0xd0f   : > { %v7404_v15 = vsub.f32 %v4570_v25, %v4605_v7  ;;  %v7406_v33 = vsub.f32 %v4571_v60, %v4606_v37  ;;  %v4628_v43 = vsel %vm561_vm0, %v4620_v40, 0.0  ;;  %v5295_v37 = vld [vmem:[%s7627_s7] ss:$0 sm:$0xff] }
 0xd10   : > { %4629 = vadd.xlane.f32.xlu1 %v4628_v43  ;;  %v4590_v56 = vpop.xlane.xlu0 %4589 }
 0xd11   : > { %v4607_v9 = vmul.f32 0.015625, %v4590_v56  ;;  %v4621_v53 = vmul.f32 %v7404_v15, %v7404_v15  ;;  %v4622_v35 = vmul.f32 %v7406_v33, %v7406_v33 }
 0xd13   : > { %v7413_v22 = vsub.f32 %v4572_v18, %v4607_v9  ;;  %v4631_v49 = vsel %vm561_vm0, %v4621_v53, 0.0  ;;  %v4634_v34 = vsel %vm561_vm0, %v4622_v35, 0.0 }
 0xd14   : > { %4632 = vadd.xlane.f32.xlu0 %v4631_v49  ;;  %4635 = vadd.xlane.f32.xlu1 %v4634_v34 }
 0xd15   : > { %v4623_v62 = vmul.f32 %v7413_v22, %v7413_v22 }
 0xd17   : > { %v4637_v4 = vsel %vm561_vm0, %v4623_v62, 0.0 }
 0xd18   : > { %4638 = vadd.xlane.f32.xlu0 %v4637_v4 }
 0xd46   : > { %v4593_v19 = vpop.xlane.xlu1 %4592 }
 0xd47   : > { %v4608_v58 = vmul.f32 0.015625, %v4593_v19 }
 0xd49   : > { %v7432_v57 = vsub.f32 %v4573_v5, %v4608_v58 }
 0xd4a   : > { %v4599_v36 = vpop.xlane.xlu1 %4598  ;;  %v4596_v3 = vpop.xlane.xlu0 %4595 }
 0xd4b   : > { %v4610_v47 = vmul.f32 0.015625, %v4599_v36  ;;  %v4609_v11 = vmul.f32 0.015625, %v4596_v3  ;;  %v4624_v27 = vmul.f32 %v7432_v57, %v7432_v57 }
 0xd4d   : > { %v7436_v44 = vsub.f32 %v4575_v28, %v4610_v47  ;;  %v7438_v60 = vsub.f32 %v4574_v42, %v4609_v11  ;;  %v4640_v61 = vsel %vm561_vm0, %v4624_v27, 0.0 }
 0xd4e   : > { %4641 = vadd.xlane.f32.xlu1 %v4640_v61  ;;  %v4602_v38 = vpop.xlane.xlu0 %4601 }
 0xd4f   : > { %v4611_v16 = vmul.f32 0.015625, %v4602_v38  ;;  %v4626_v31 = vmul.f32 %v7436_v44, %v7436_v44  ;;  %v4625_v25 = vmul.f32 %v7438_v60, %v7438_v60 }
 0xd51   : > { %v7445_v1 = vsub.f32 %v4576_v54, %v4611_v16  ;;  %v4646_v18 = vsel %vm561_vm0, %v4626_v31, 0.0  ;;  %v4643_v30 = vsel %vm561_vm0, %v4625_v25, 0.0 }
 0xd52   : > { %4647 = vadd.xlane.f32.xlu1 %v4646_v18  ;;  %4644 = vadd.xlane.f32.xlu0 %v4643_v30 }
 0xd53   : > { %v4627_v6 = vmul.f32 %v7445_v1, %v7445_v1 }
 0xd55   : > { %v4649_v46 = vsel %vm561_vm0, %v4627_v6, 0.0 }
 0xd56   : > { %4650 = vadd.xlane.f32.xlu0 %v4649_v46 }
 0xd99   : > { %v4630_v17 = vpop.xlane.xlu1 %4629 }
 0xd9a   : > { %v4652_v5 = vmul.f32 0.015625, %v4630_v17  ;;  %v6020_v17 = vld [vmem:[%s7630_s10] sm:$0xff]  }
 0xd9c   : > { %v4660_v29 = vadd.f32 1e-05, %v4652_v5 }
 0xd9d   : > { %v4636_v0 = vpop.xlane.xlu1 %4635  ;;  %v4633_v28 = vpop.xlane.xlu0 %4632 }
 0xd9e   : > { %6149 = vrsqrt.f32 %v4660_v29  ;;  %v4654_v12 = vmul.f32 0.015625, %v4636_v0  ;;  %v4653_v10 = vmul.f32 0.015625, %v4633_v28  ;;  %v5296_v0 = vld [vmem:[%s7629_s9] ss:$0 sm:$0xff] }
 0xda0   : > { %v4662_v23 = vadd.f32 1e-05, %v4654_v12  ;;  %v4661_v63 = vadd.f32 1e-05, %v4653_v10 }
 0xda1   : > { %v4639_v42 = vpop.xlane.xlu0 %4638 }
 0xda2   : > { %6151 = vrsqrt.f32 %v4662_v23  ;;  %v4655_v45 = vmul.f32 0.015625, %v4639_v42 }
 0xda3   : > { %6153 = vrsqrt.f32 %v4661_v63 }
 0xda4   : > { %v4663_v54 = vadd.f32 1e-05, %v4655_v45 }
 0xda6   : > { %6155 = vrsqrt.f32 %v4663_v54 }
 0xdab   : > { %v6150_v24 = vpop.eup %6149 }
 0xdac   : > { %v4676_v2 = vmul.f32 %v6150_v24, %v7400_v39 }
 0xdae   : > { %v4690_v7 = vmul.f32 %v5294_v41, %v4676_v2 }
 0xdaf   : > { %v6152_v50 = vpop.eup %6151 }
 0xdb0   : > { %v6154_v48 = vpop.eup %6153  ;;  %v4678_v52 = vmul.f32 %v6152_v50, %v7406_v33  ;;  %v7477_v9 = vadd.f32 %v5295_v37, %v4690_v7 }
 0xdb1   : > { %v4677_v59 = vmul.f32 %v6154_v48, %v7404_v15 }
 0xdb2   : > { %v4692_v56 = vmul.f32 %v5294_v41, %v4678_v52 }
 0xdb3   : > { %v6156_v40 = vpop.eup %6155  ;;  %v4691_v43 = vmul.f32 %v5294_v41, %v4677_v59 }
 0xdb4   : > { %v4679_v39 = vmul.f32 %v6156_v40, %v7413_v22  ;;  %v7483_v49 = vadd.f32 %v5295_v37, %v4692_v56 }
 0xdb5   : > { %v7479_v53 = vadd.f32 %v5295_v37, %v4691_v43 }
 0xdb6   : > { %v4693_v35 = vmul.f32 %v5294_v41, %v4679_v39 }
 0xdb7   : > { %v4712_v33 = vpack.c.bf16 %v7479_v53, %v7477_v9 }
 0xdb8   : > { %v7485_v15 = vadd.f32 %v5295_v37, %v4693_v35 }
 0xdb9   : > { %5882 = vmatprep.mubr.msk.bf16.mxu0 %vm561_vm0, %v4712_v33 }
 0xdba   : > { %v4713_v34 = vpack.c.bf16 %v7485_v15, %v7483_v49 }
 0xdbc   : > { %5883 = vmatmul.mubr.msk.bf16.vlgmr.msra.gmra.mxu0 %vm561_vm0, %v4713_v34 }
 0xdd7   : > { %v4642_v22 = vpop.xlane.xlu1 %4641 }
 0xdd8   : > { %v4656_v62 = vmul.f32 0.015625, %v4642_v22 }
 0xdda   : > { %v4664_v4 = vadd.f32 1e-05, %v4656_v62 }
 0xddb   : > { %v4648_v14 = vpop.xlane.xlu1 %4647  ;;  %v4645_v32 = vpop.xlane.xlu0 %4644 }
 0xddc   : > { %6157 = vrsqrt.f32 %v4664_v4  ;;  %v4658_v55 = vmul.f32 0.015625, %v4648_v14  ;;  %v4657_v8 = vmul.f32 0.015625, %v4645_v32  ;;  %v5305_v4 = vld [vmem:[%s7631_s11] ss:$0 sm:$0xff] }
 0xdde   : > { %v4666_v19 = vadd.f32 1e-05, %v4658_v55  ;;  %v4665_v58 = vadd.f32 1e-05, %v4657_v8 }
 0xddf   : > { %v4651_v36 = vpop.xlane.xlu0 %4650 }
 0xde0   : > { %6159 = vrsqrt.f32 %v4666_v19  ;;  %v4659_v3 = vmul.f32 0.015625, %v4651_v36 }
 0xde1   : > { %6161 = vrsqrt.f32 %v4665_v58 }
 0xde2   : > { %v4667_v47 = vadd.f32 1e-05, %v4659_v3 }
 0xde4   : > { %6163 = vrsqrt.f32 %v4667_v47 }
 0xde9   : > { %v6158_v11 = vpop.eup %6157 }
 0xdea   : > { %v4680_v27 = vmul.f32 %v6158_v11, %v7432_v57 }
 0xdec   : > { %v4694_v25 = vmul.f32 %v5294_v41, %v4680_v27 }
 0xded   : > { %v6160_v61 = vpop.eup %6159 }
 0xdee   : > { %v6162_v38 = vpop.eup %6161  ;;  %v4682_v16 = vmul.f32 %v6160_v61, %v7436_v44  ;;  %v7495_v20 = vadd.f32 %v5295_v37, %v4694_v25 }
 0xdef   : > { %v4681_v31 = vmul.f32 %v6162_v38, %v7438_v60  ;;  %v6018_v60 = vld [vmem:[%s7630_s10 + $0x10] sm:$0xff]  }
 0xdf0   : > { %v4696_v46 = vmul.f32 %v5294_v41, %v4682_v16  ;;  %5900 = vmatprep.subr.bf16.mxu1 %v6018_v60 }
 0xdf1   : > { %v6164_v18 = vpop.eup %6163  ;;  %v4695_v30 = vmul.f32 %v5294_v41, %v4681_v31  ;;  %5901 = vmatpush3.bf16.msra.mxu1 %v6018_v60 }
 0xdf2   : > { %v4683_v6 = vmul.f32 %v6164_v18, %v7445_v1  ;;  %v7501_v13 = vadd.f32 %v5295_v37, %v4696_v46  ;;  %v6019_v1 = vld [vmem:[%s7630_s10 + $0x8] sm:$0xff]  }
 0xdf3   : > { %v7497_v51 = vadd.f32 %v5295_v37, %v4695_v30  ;;  %5902 = vmatprep.subr.bf16.mxu1 %v6019_v1 }
 0xdf4   : > { %v4697_v21 = vmul.f32 %v5294_v41, %v4683_v6 }
 0xdf5   : > { %v4714_v57 = vpack.c.bf16 %v7497_v51, %v7495_v20  ;;  %5903 = vmatpush3.bf16.msra.mxu1 %v6019_v1 }
 0xdf6   : > { %v7503_v26 = vadd.f32 %v5295_v37, %v4697_v21  ;;  %5904 = vmatprep.subr.bf16.mxu1 %v6020_v17 }
 0xdf7   : > { %5886 = vmatprep.mubr.msk.bf16.mxu0 %vm561_vm0, %v4714_v57 }
 0xdf8   : > { %v4715_v44 = vpack.c.bf16 %v7503_v26, %v7501_v13 }
 0xdf9   : > { %5905 = vmatpush3.bf16.msra.mxu1 %v6020_v17 }
 0xdfa   : > { %5887 = vmatmul.mubr.msk.bf16.gmra.mxu0 %vm561_vm0, %v4715_v44 }
 0xe7c   : > { %v5884_v5 = vpop.f32.mrf.mxu0 }
 0xe7d   : > { %v4810_v23 = vadd.f32 %v5884_v5, %v5296_v0 }
 0xe7e   : > { %v4801_v29 = vpop.f32.mrf.mxu0 }
 0xe7f   : > { %v4802_v12 = vadd.f32 %v5296_v0, %v4801_v29  ;;  %v4834_v2 = vmax.f32 %v4810_v23, 0.0 }
 0xe80   : > { %v5885_v28 = vpop.f32.mrf.mxu0 }
 0xe81   : > { %v4813_v10 = vadd.f32 %v5885_v28, %v5296_v0  ;;  %v4832_v54 = vmax.f32 %v4802_v12, 0.0 }
 0xe82   : > { %v4804_v63 = vpop.f32.mrf.mxu0 }
 0xe83   : > { %v4805_v42 = vadd.f32 %v5296_v0, %v4804_v63  ;;  %v4835_v45 = vmax.f32 %v4813_v10, 0.0 }
 0xe85   : > { %v4833_v24 = vmax.f32 %v4805_v42, 0.0  ;;  %v4841_v50 = vpack.c.bf16 %v4835_v45, %v4834_v2 }
 0xe87   : > { %v4840_v41 = vpack.c.bf16 %v4833_v24, %v4832_v54 }
 0xe89   : > { %5906 = vmatprep.mubr.bf16.mxu1 %v4840_v41 }
 0xe8a   : > { %5907 = vmatmul.mubr.bf16.vlgmr.msra.gmra.mxu1 %v4841_v50 }
 0xeba   : > { %v5888_v48 = vpop.f32.mrf.mxu0 }
 0xebb   : > { %v4826_v40 = vadd.f32 %v5888_v48, %v5296_v0 }
 0xebc   : > { %v4817_v52 = vpop.f32.mrf.mxu0 }
 0xebd   : > { %v4818_v7 = vadd.f32 %v5296_v0, %v4817_v52  ;;  %v4838_v34 = vmax.f32 %v4826_v40, 0.0 }
 0xebe   : > { %v5889_v59 = vpop.f32.mrf.mxu0 }
 0xebf   : > { %v4829_v37 = vadd.f32 %v5889_v59, %v5296_v0  ;;  %v4836_v35 = vmax.f32 %v4818_v7, 0.0 }
 0xec0   : > { %v4820_v43 = vpop.f32.mrf.mxu0 }
 0xec1   : > { %v4821_v56 = vadd.f32 %v5296_v0, %v4820_v43  ;;  %v4839_v39 = vmax.f32 %v4829_v37, 0.0 }
 0xec3   : > { %v4837_v33 = vmax.f32 %v4821_v56, 0.0  ;;  %v4843_v62 = vpack.c.bf16 %v4839_v39, %v4838_v34 }
 0xec5   : > { %v4842_v22 = vpack.c.bf16 %v4837_v33, %v4836_v35 }
 0xec7   : > { %5910 = vmatprep.mubr.bf16.mxu1 %v4842_v22 }
 0xec8   : > { %5911 = vmatmul.mubr.bf16.gmra.mxu1 %v4843_v62 }
 0xf4a   : > { %v5908_v14 = vpop.f32.mrf.mxu1 }
 0xf4b   : > { %v4958_v32 = vadd.f32 %v5908_v14, %v5305_v4 }
 0xf4c   : > { %v4949_v55 = vpop.f32.mrf.mxu1 }
 0xf4d   : > { %v4982_v8 = vadd.f32 %v4958_v32, %v7483_v49  ;;  %v4950_v19 = vadd.f32 %v5305_v4, %v4949_v55 }
 0xf4e   : > { %v5909_v58 = vpop.f32.mrf.mxu1 }
 0xf4f   : > { %v4980_v36 = vadd.f32 %v4950_v19, %v7477_v9  ;;  %v4961_v3 = vadd.f32 %v5909_v58, %v5305_v4  ;;  %v4996_v47 = vsel %vm561_vm0, %v4982_v8, 0.0 }
 0xf50   : > { %4997 = vadd.xlane.f32.xlu1 %v4996_v47  ;;  %v4952_v11 = vpop.f32.mrf.mxu1 }
 0xf51   : > { %v4983_v27 = vadd.f32 %v4961_v3, %v7485_v15  ;;  %v4953_v61 = vadd.f32 %v5305_v4, %v4952_v11  ;;  %v4990_v31 = vsel %vm561_vm0, %v4980_v36, 0.0 }
 0xf53   : > { %v4981_v38 = vadd.f32 %v4953_v61, %v7479_v53  ;;  %v4999_v16 = vsel %vm561_vm0, %v4983_v27, 0.0 }
 0xf54   : > { %5000 = vadd.xlane.f32.xlu0 %v4999_v16  ;;  %4991 = vadd.xlane.f32.xlu1 %v4990_v31 }
 0xf55   : > { %v4993_v49 = vsel %vm561_vm0, %v4981_v38, 0.0 }
 0xf58   : > { %4994 = vadd.xlane.f32.xlu0 %v4993_v49 }
 0xf88   : > { %v5912_v9 = vpop.f32.mrf.mxu1 }
 0xf89   : > { %v4974_v18 = vadd.f32 %v5912_v9, %v5305_v4 }
 0xf8a   : > { %v4965_v25 = vpop.f32.mrf.mxu1 }
 0xf8b   : > { %v4966_v30 = vadd.f32 %v5305_v4, %v4965_v25  ;;  %v4986_v21 = vadd.f32 %v4974_v18, %v7501_v13 }
 0xf8c   : > { %v5913_v6 = vpop.f32.mrf.mxu1 }
 0xf8d   : > { %v4984_v46 = vadd.f32 %v4966_v30, %v7495_v20  ;;  %v4977_v53 = vadd.f32 %v5913_v6, %v5305_v4  ;;  %v5008_v5 = vsel %vm561_vm0, %v4986_v21, 0.0 }
 0xf8e   : > { %v4968_v15 = vpop.f32.mrf.mxu1 }
 0xf8f   : > { %v4969_v57 = vadd.f32 %v5305_v4, %v4968_v15  ;;  %v5002_v44 = vsel %vm561_vm0, %v4984_v46, 0.0  ;;  %v4987_v1 = vadd.f32 %v4977_v53, %v7503_v26 }
 0xf90   : > { %5003 = vadd.xlane.f32.xlu1 %v5002_v44 }
 0xf91   : > { %v4985_v60 = vadd.f32 %v4969_v57, %v7497_v51  ;;  %v5011_v20 = vsel %vm561_vm0, %v4987_v1, 0.0 }
 0xf93   : > { %v5005_v17 = vsel %vm561_vm0, %v4985_v60, 0.0 }
 0xf94   : > { %5006 = vadd.xlane.f32.xlu0 %v5005_v17  ;;  %5009 = vadd.xlane.f32.xlu1 %v5008_v5 }
 0xf98   : > { %5012 = vadd.xlane.f32.xlu0 %v5011_v20 }
 0xfd9   : > { %v4998_v29 = vpop.xlane.xlu1 %4997 }
 0xfda   : > { %v5016_v13 = vmul.f32 0.015625, %v4998_v29 }
 0xfdc   : > { %v7540_v0 = vsub.f32 %v4982_v8, %v5016_v13 }
 0xfdd   : > { %v4992_v28 = vpop.xlane.xlu1 %4991  ;;  %v5001_v12 = vpop.xlane.xlu0 %5000 }
 0xfde   : > { %v5014_v10 = vmul.f32 0.015625, %v4992_v28  ;;  %v5017_v23 = vmul.f32 0.015625, %v5001_v12  ;;  %v5032_v51 = vmul.f32 %v7540_v0, %v7540_v0 }
 0xfe0   : > { %v7544_v26 = vsub.f32 %v4980_v36, %v5014_v10  ;;  %v7546_v63 = vsub.f32 %v4983_v27, %v5017_v23  ;;  %v5044_v42 = vsel %vm561_vm0, %v5032_v51, 0.0 }
 0xfe1   : > { %5045 = vadd.xlane.f32.xlu1 %v5044_v42  ;;  %v4995_v45 = vpop.xlane.xlu0 %4994 }
 0xfe2   : > { %v5015_v54 = vmul.f32 0.015625, %v4995_v45  ;;  %v5030_v24 = vmul.f32 %v7544_v26, %v7544_v26  ;;  %v5033_v2 = vmul.f32 %v7546_v63, %v7546_v63 }
 0xfe4   : > { %v7553_v41 = vsub.f32 %v4981_v38, %v5015_v54  ;;  %v5038_v50 = vsel %vm561_vm0, %v5030_v24, 0.0  ;;  %v5047_v48 = vsel %vm561_vm0, %v5033_v2, 0.0 }
 0xfe5   : > { %5039 = vadd.xlane.f32.xlu1 %v5038_v50  ;;  %5048 = vadd.xlane.f32.xlu0 %v5047_v48 }
 0xfe6   : > { %v5031_v52 = vmul.f32 %v7553_v41, %v7553_v41 }
 0xfe8   : > { %v5041_v59 = vsel %vm561_vm0, %v5031_v52, 0.0 }
 0xfe9   : > { %5042 = vadd.xlane.f32.xlu0 %v5041_v59 }
0x1019   : > { %v5004_v7 = vpop.xlane.xlu1 %5003 }
0x101a   : > { %v5018_v37 = vmul.f32 0.015625, %v5004_v7 }
0x101c   : > { %v7560_v40 = vsub.f32 %v4984_v46, %v5018_v37  ;;  %v5314_v46 = vld [vmem:[%s7632_s12] ss:$0 sm:$0xff] }
0x101d   : > { %v5010_v43 = vpop.xlane.xlu1 %5009  ;;  %v5007_v56 = vpop.xlane.xlu0 %5006 }
0x101e   : > { %v5020_v39 = vmul.f32 0.015625, %v5010_v43  ;;  %v5019_v35 = vmul.f32 0.015625, %v5007_v56  ;;  %v5034_v33 = vmul.f32 %v7560_v40, %v7560_v40 }
0x1020   : > { %v7564_v34 = vsub.f32 %v4986_v21, %v5020_v39  ;;  %v7566_v22 = vsub.f32 %v4985_v60, %v5019_v35  ;;  %v5050_v62 = vsel %vm561_vm0, %v5034_v33, 0.0  ;;  %v5315_v21 = vld [vmem:[%s7633_s13] ss:$0 sm:$0xff] }
0x1021   : > { %5051 = vadd.xlane.f32.xlu1 %v5050_v62  ;;  %v5013_v4 = vpop.xlane.xlu0 %5012 }
0x1022   : > { %v5021_v14 = vmul.f32 0.015625, %v5013_v4  ;;  %v5036_v32 = vmul.f32 %v7564_v34, %v7564_v34  ;;  %v5035_v55 = vmul.f32 %v7566_v22, %v7566_v22 }
0x1024   : > { %v7573_v8 = vsub.f32 %v4987_v1, %v5021_v14  ;;  %v5056_v19 = vsel %vm561_vm0, %v5036_v32, 0.0  ;;  %v5053_v58 = vsel %vm561_vm0, %v5035_v55, 0.0 }
0x1025   : > { %5057 = vadd.xlane.f32.xlu1 %v5056_v19  ;;  %5054 = vadd.xlane.f32.xlu0 %v5053_v58 }
0x1026   : > { %v5037_v36 = vmul.f32 %v7573_v8, %v7573_v8 }
0x1028   : > { %v5059_v3 = vsel %vm561_vm0, %v5037_v36, 0.0 }
0x1029   : > { %5060 = vadd.xlane.f32.xlu0 %v5059_v3 }
0x106a   : > { %v5046_v47 = vpop.xlane.xlu1 %5045 }
0x106b   : > { %v5064_v11 = vmul.f32 0.015625, %v5046_v47 }
0x106d   : > { %v5072_v27 = vadd.f32 1e-05, %v5064_v11 }
0x106e   : > { %v5040_v61 = vpop.xlane.xlu1 %5039  ;;  %v5049_v38 = vpop.xlane.xlu0 %5048 }
0x106f   : > { %6165 = vrsqrt.f32 %v5072_v27  ;;  %v5062_v16 = vmul.f32 0.015625, %v5040_v61  ;;  %v5065_v31 = vmul.f32 0.015625, %v5049_v38 }
0x1071   : > { %v5070_v49 = vadd.f32 1e-05, %v5062_v16  ;;  %v5073_v9 = vadd.f32 1e-05, %v5065_v31 }
0x1072   : > { %v5043_v25 = vpop.xlane.xlu0 %5042 }
0x1073   : > { %6167 = vrsqrt.f32 %v5070_v49  ;;  %v5063_v18 = vmul.f32 0.015625, %v5043_v25 }
0x1074   : > { %6169 = vrsqrt.f32 %v5073_v9 }
0x1075   : > { %v5071_v30 = vadd.f32 1e-05, %v5063_v18 }
0x1077   : > { %6171 = vrsqrt.f32 %v5071_v30 }
0x107c   : > { %v6166_v6 = vpop.eup %6165 }
0x107d   : > { %v5088_v15 = vmul.f32 %v6166_v6, %v7540_v0 }
0x107f   : > { %v5102_v53 = vmul.f32 %v5314_v46, %v5088_v15 }
0x1080   : > { %v6168_v57 = vpop.eup %6167 }
0x1081   : > { %v6170_v44 = vpop.eup %6169  ;;  %v5116_v60 = vadd.f32 %v5315_v21, %v5102_v53  ;;  %v5086_v1 = vmul.f32 %v6168_v57, %v7544_v26 }
0x1082   : > { %v5089_v17 = vmul.f32 %v6170_v44, %v7546_v63 }
0x1083   : > { %5124 = vst.msk [vmem:[%s7592_s20 + $0x10] sm:$0xff] %vm561_vm0, %v5116_v60  ;;  %v5100_v5 = vmul.f32 %v5314_v46, %v5086_v1 }
0x1084   : > { %v6172_v20 = vpop.eup %6171  ;;  %v5103_v29 = vmul.f32 %v5314_v46, %v5089_v17 }
0x1085   : > { %v5114_v13 = vadd.f32 %v5315_v21, %v5100_v5  ;;  %v5087_v0 = vmul.f32 %v6172_v20, %v7553_v41 }
0x1086   : > { %v5117_v28 = vadd.f32 %v5315_v21, %v5103_v29 }
0x1087   : > { %5122 = vst.msk [vmem:[%s7592_s20] sm:$0xff] %vm561_vm0, %v5114_v13  ;;  %v5101_v12 = vmul.f32 %v5314_v46, %v5087_v0 }
0x1088   : > { %5125 = vst.msk [vmem:[%s7592_s20 + $0x18] sm:$0xff] %vm561_vm0, %v5117_v28 }
0x1089   : > { %v5115_v10 = vadd.f32 %v5315_v21, %v5101_v12 }
0x108b   : > { %5123 = vst.msk [vmem:[%s7592_s20 + $0x8] sm:$0xff] %vm561_vm0, %v5115_v10 }
0x10aa   : > { %v5052_v23 = vpop.xlane.xlu1 %5051 }
0x10ab   : > { %v5066_v51 = vmul.f32 0.015625, %v5052_v23 }
0x10ad   : > { %v5074_v26 = vadd.f32 1e-05, %v5066_v51 }
0x10ae   : > { %v5058_v63 = vpop.xlane.xlu1 %5057  ;;  %v5055_v42 = vpop.xlane.xlu0 %5054 }
0x10af   : > { %6173 = vrsqrt.f32 %v5074_v26  ;;  %v5068_v45 = vmul.f32 0.015625, %v5058_v63  ;;  %v5067_v54 = vmul.f32 0.015625, %v5055_v42 }
0x10b1   : > { %v5076_v24 = vadd.f32 1e-05, %v5068_v45  ;;  %v5075_v2 = vadd.f32 1e-05, %v5067_v54 }
0x10b2   : > { %v5061_v41 = vpop.xlane.xlu0 %5060 }
0x10b3   : > { %6175 = vrsqrt.f32 %v5076_v24  ;;  %v5069_v50 = vmul.f32 0.015625, %v5061_v41 }
0x10b4   : > { %6177 = vrsqrt.f32 %v5075_v2 }
0x10b5   : > { %v5077_v48 = vadd.f32 1e-05, %v5069_v50 }
0x10b7   : > { %6179 = vrsqrt.f32 %v5077_v48 }
0x10bc   : > { %v6174_v52 = vpop.eup %6173 }
0x10bd   : > { %v5090_v59 = vmul.f32 %v6174_v52, %v7560_v40 }
0x10bf   : > { %v5104_v7 = vmul.f32 %v5314_v46, %v5090_v59 }
0x10c0   : > { %v6176_v37 = vpop.eup %6175 }
0x10c1   : > { %v6178_v43 = vpop.eup %6177  ;;  %v5118_v56 = vadd.f32 %v5315_v21, %v5104_v7  ;;  %v5092_v39 = vmul.f32 %v6176_v37, %v7564_v34 }
0x10c2   : > { %v5091_v35 = vmul.f32 %v6178_v43, %v7566_v22 }
0x10c3   : > { %5126 = vst.msk [vmem:[%s7592_s20 + $0x20] sm:$0xff] %vm561_vm0, %v5118_v56  ;;  %v5106_v33 = vmul.f32 %v5314_v46, %v5092_v39 }
0x10c4   : > { %v6180_v62 = vpop.eup %6179  ;;  %v5105_v4 = vmul.f32 %v5314_v46, %v5091_v35 }
0x10c5   : > { %v5120_v14 = vadd.f32 %v5315_v21, %v5106_v33  ;;  %v5093_v32 = vmul.f32 %v6180_v62, %v7573_v8 }
0x10c6   : > { %v5119_v55 = vadd.f32 %v5315_v21, %v5105_v4 }
0x10c7   : > { %5128 = vst.msk [vmem:[%s7592_s20 + $0x30] sm:$0xff] %vm561_vm0, %v5120_v14  ;;  %v5107_v40 = vmul.f32 %v5314_v46, %v5093_v32 }
0x10c8   : > { %5127 = vst.msk [vmem:[%s7592_s20 + $0x28] sm:$0xff] %vm561_vm0, %v5119_v55 }
0x10c9   : > { %v5121_v19 = vadd.f32 %v5315_v21, %v5107_v40 }
0x10cb   : > { %5129 = vst.msk [vmem:[%s7592_s20 + $0x38] sm:$0xff] %vm561_vm0, %v5121_v19 }
0x10cc PF: > { %s24_s29 = sadd.s32 1, %s6195_s29  }
0x10cd   : > { %p21_p5 = scmp.ge.s32.totalorder %s24_s29, 4  }
0x10cf   :  { %23 = sbr.rel (!%p21_p5) target bundleno = 1 (0x1), region = 109 }

// kernel: _lambda_.5
= control target key start
LH: loop header
LB: loop body
LE: loop exit
PB: predicated region body
PF: predicated region fallthrough
CT: control target
= control target key end

     0   :  { %v218_v1 = vmov 0.0   ;;  %vm219_vm0 = vmmov 0   ;;  %s301_s0 = inlined_call_operand.vmem [shape: f32[2,128], index: 0, kind: input, shape index: {}]   ;;  %s302_s1 = inlined_call_operand.vmem [shape: f32[128,4], index: 1, kind: input, shape index: {}]   ;;  %s303_s2 = inlined_call_operand.vmem [shape: f32[1,4], index: 2, kind: input, shape index: {}]   ;;  %s304_s3 = inlined_call_operand.hbm [shape: f32[2,4], index: 3, kind: output, shape index: {}]  }
   0x1   :  { %v31_v0 = vld [vmem:[%s302_s1 + $0x78] sm:$0xff]  ;;  %154 = vmatprep.subr.mxu0 %v218_v1  ;;  %v30_v2 = vld [vmem:[%s302_s1 + $0x70] sm:$0xff]  ;;  %186 = vmatprep.mubr.msk.f32.mxu0 %vm219_vm0, %v218_v1  ;;  %v29_v3 = vld [vmem:[%s302_s1 + $0x68] sm:$0xff] }
   0x2   :  { %155 = vmatpush3.msra.mxu0 %v31_v0  ;;  %v28_v4 = vld [vmem:[%s302_s1 + $0x60] sm:$0xff] }
   0x3   :  { %156 = vmatprep.subr.mxu0 %v218_v1 }
   0x4   :  { %157 = vmatpush3.msra.mxu0 %v30_v2 }
   0x5   :  { %158 = vmatprep.subr.mxu0 %v218_v1 }
   0x6   :  { %159 = vmatpush3.msra.mxu0 %v29_v3 }
   0x7   :  { %8 = vsyncpa [#allocation3], 0  ;;  %160 = vmatprep.subr.mxu0 %v218_v1  ;;  %v27_v5 = vld [vmem:[%s302_s1 + $0x58] sm:$0xff]  ;;  %v26_v6 = vld [vmem:[%s302_s1 + $0x50] sm:$0xff]  ;;  %vm109_vm1 = vcmask 25600  }
   0x8   :  { %161 = vmatpush3.msra.mxu0 %v28_v4  ;;  %v25_v7 = vld [vmem:[%s302_s1 + $0x48] sm:$0xff]  ;;  %v24_v8 = vld [vmem:[%s302_s1 + $0x40] sm:$0xff]  ;;  %v23_v9 = vld [vmem:[%s302_s1 + $0x38] sm:$0xff] }
   0x9   :  { %162 = vmatprep.subr.mxu0 %v218_v1  ;;  %v22_v10 = vld [vmem:[%s302_s1 + $0x30] sm:$0xff]  ;;  %v21_v11 = vld [vmem:[%s302_s1 + $0x28] sm:$0xff]  ;;  %v20_v12 = vld [vmem:[%s302_s1 + $0x20] sm:$0xff] }
   0xa   :  { %163 = vmatpush3.msra.mxu0 %v27_v5  ;;  %v19_v13 = vld [vmem:[%s302_s1 + $0x18] sm:$0xff]  ;;  %v18_v14 = vld [vmem:[%s302_s1 + $0x10] sm:$0xff]  ;;  %v17_v15 = vld [vmem:[%s302_s1 + $0x8] sm:$0xff] }
   0xb   :  { %164 = vmatprep.subr.mxu0 %v218_v1  ;;  %v16_v16 = vld [vmem:[%s302_s1] sm:$0xff] }
   0xc   :  { %165 = vmatpush3.msra.mxu0 %v26_v6  ;;  %v15_v17 = vld [vmem:[%s301_s0] sm:$0x3]  ;;  %s220_s0 = smov [#allocation2]  }
   0xd   :  { %166 = vmatprep.subr.mxu0 %v218_v1  ;;  %v136_v18 = vld [vmem:[%s303_s2] ss:$0 sm:$0xff]  ;;  %s128_s1 = sshll.u32 %s220_s0, 4  ;;  %s129_s1 = int_to_ptr.vmem [resolvable:$true] %s128_s1 }
   0xe   :  { %167 = vmatpush3.msra.mxu0 %v25_v7  ;;  %s196_s2 = scalar_lea.vmem %s129_s1, 32  ;;  %p201_p1 = scmp.lt.s32.totalorder %s129_s1, %s129_s1 }
   0xf   :  { %168 = vmatprep.subr.mxu0 %v218_v1  ;;  %p197_p0 = scmp.ne.s32.totalorder %s129_s1, %s196_s2  ;;  %p202_p2 = scmp.lt.s32.totalorder %s196_s2, %s196_s2 }
  0x10   :  { %169 = vmatpush3.msra.mxu0 %v24_v8 }
  0x11   :  { %170 = vmatprep.subr.mxu0 %v218_v1  ;;  %p203_p3 = por %p202_p2, %p201_p1 }
  0x12   :  { %171 = vmatpush3.msra.mxu0 %v23_v9 }
  0x13   :  { %172 = vmatprep.subr.mxu0 %v218_v1  ;;  %p204_p4 = pnand %p203_p3, %p197_p0 }
  0x14   :  { %173 = vmatpush3.msra.mxu0 %v22_v10 }
  0x15   :  { %174 = vmatprep.subr.mxu0 %v218_v1 }
  0x16   :  { %175 = vmatpush3.msra.mxu0 %v21_v11 }
  0x17   :  { %176 = vmatprep.subr.mxu0 %v218_v1 }
  0x18   :  { %177 = vmatpush3.msra.mxu0 %v20_v12 }
  0x19   :  { %178 = vmatprep.subr.mxu0 %v218_v1 }
  0x1a   :  { %179 = vmatpush3.msra.mxu0 %v19_v13 }
  0x1b   :  { %180 = vmatprep.subr.mxu0 %v218_v1 }
  0x1c   :  { %181 = vmatpush3.msra.mxu0 %v18_v14 }
  0x1d   :  { %182 = vmatprep.subr.mxu0 %v218_v1 }
  0x1e   :  { %183 = vmatpush3.msra.mxu0 %v17_v15 }
  0x1f   :  { %184 = vmatprep.subr.mxu0 %v218_v1 }
  0x20   :  { %185 = vmatpush3.msra.mxu0 %v16_v16 }
  0x21   :  { %187 = vmatmul.mubr.f32.vlgmr.msra.gmra.mxu0 %v15_v17 }
  0xe1   :  { %v105_v19 = vpop.f32.mrf.mxu0 }
  0xe2   :  { %v106_v20 = vadd.f32 %v136_v18, %v105_v19 }
  0xe3   :  { %v188_v21 = vpop.f32.mrf.mxu0 }
  0xe4   :  { %v110_v22 = vsel %vm109_vm1, %v106_v20, -inf }
  0xe5   :  { %111 = vmax.xlane.f32.xlu0 %v110_v22 }
 0x16e   :  { %v112_v23 = vpop.xlane.xlu0 %111 }
 0x16f   :  { %v113_v24 = vsub.f32 %v106_v20, %v112_v23 }
 0x171   :  { %v114_v25 = vmul.f32 1.442695, %v113_v24 }
 0x173   :  { %192 = vpow2.f32 %v114_v25 }
 0x180   :  { %v193_v26 = vpop.eup %192 }
 0x181   :  { %v116_v27 = vsel %vm109_vm1, %v193_v26, 0.0 }
 0x182   :  { %117 = vadd.xlane.f32.xlu0 %v116_v27 }
 0x20b   :  { %v118_v28 = vpop.xlane.xlu0 %117 }
 0x20c   :  { %194 = vrcp.f32 %v118_v28 }
 0x219   :  { %v195_v29 = vpop.eup %194 }
 0x21a   :  { %v120_v30 = vmul.f32 %v195_v29, %v193_v26 }
 0x21c   :  { %121 = vst.msk [vmem:[#allocation2] sm:$0x3] %vm109_vm1, %v120_v30 }
 0x21d   :  { %207 = shalt.err (!%p204_p4)
}
 0x21e   :  { %131 = dma.vmem_to_hbm [thread:$0]  %s129_s1, 32, %s304_s3, [#allocation3]  }
 0x21f   :  { %216 = dma.done.wait [#allocation3], 32  }
 0x220   :  { %217 = vsyncadd [#allocation3], 4294967264 }
 0x221   :  { %135 = vsyncpa [#allocation3], 1 }

</bundles_post_ra>
